<compile_context>
chip_gen: v7x
topology: tpu7x:2x2x1
jax: 0.10.0
libtpu: 0.0.40
codegen_flags: <defaults>
</compile_context>

<pallas_src>
import jax
import jax.numpy as jnp
from jax.experimental import pallas as pl
from jax.experimental.pallas import tpu as pltpu

NEG_SLOPE = 0.01  # torch.nn.LeakyReLU default


def _lrelu(v):
    return jnp.where(v > 0, v, NEG_SLOPE * v)


def _shift_pm1(a):
    """Return (a[l-1], a[l+1]) along the last dim with zero padding (conv pad=1)."""
    rows, length = a.shape
    z = jnp.zeros((rows, 1), a.dtype)
    am = jnp.concatenate([z, a[:, : length - 1]], axis=1)   # value at l is a[l-1]
    ap = jnp.concatenate([a[:, 1:], z], axis=1)             # value at l is a[l+1]
    return am, ap


def _conv_linear_block(a, w_ref, b_ref, lw_ref, lb_ref, mm):
    """One ContrastiveMLP block with batch folded into the matmuls.

    a      : (B*C_in, L_in)  activations, rows ordered [batch][channel]
    w_ref  : (B*C_out, 3*B*C_in)  batch-block-diagonal, tap-stacked conv weight
    b_ref  : (B*C_out, 1)    conv bias tiled over batch
    lw_ref : (L_in, L_out)   pre-transposed linear weight
    lb_ref : (1, L_out)      linear bias
    """
    a = a.astype(mm)                                   # shift/stack in matmul dtype
    am, ap = _shift_pm1(a)
    stack = jnp.concatenate([am, a, ap], axis=0)       # (3*B*C_in, L_in)
    y = jnp.dot(w_ref[...], stack,
                preferred_element_type=jnp.float32) + b_ref[...]   # (B*C_out, L_in)
    y = _lrelu(y)
    y = jnp.dot(y.astype(mm), lw_ref[...],
                preferred_element_type=jnp.float32) + lb_ref[...]  # (B*C_out, L_out)
    return _lrelu(y)


def _fused_kernel(x_ref,
                  w1_ref, b1_ref, lw1_ref, lb1_ref,
                  w2_ref, b2_ref, lw2_ref, lb2_ref,
                  w3_ref, b3_ref, lw3_ref, lb3_ref,
                  wcd_ref, bcd_ref, hw_hbm_ref, hb_ref,
                  o_ref,
                  hw_vmem, hw_sem):
    mm = lw1_ref.dtype            # matmul storage/compute dtype (f32 or bf16)
    B = o_ref.shape[0]

    # Kick off the head-weight fetch now (HBM -> VMEM scratch); it overlaps all
    # of the block / channel_down compute below and is only waited on at the end.
    hw_copy = pltpu.make_async_copy(hw_hbm_ref, hw_vmem, hw_sem)
    hw_copy.start()

    # --- blocks 1..3: Conv1d(k=3,p=1)+LReLU+Linear+LReLU, one stacked matmul each
    a = x_ref[...]                                                       # (B, 1000)
    a = _conv_linear_block(a, w1_ref, b1_ref, lw1_ref, lb1_ref, mm)      # (B*16, 500)
    a = _conv_linear_block(a, w2_ref, b2_ref, lw2_ref, lb2_ref, mm)      # (B*32, 250)
    a = _conv_linear_block(a, w3_ref, b3_ref, lw3_ref, lb3_ref, mm)      # (B*64, 125)

    # --- channel_down: Conv1d(64->8, k=1) + LeakyReLU; rows become [channel][batch]
    f = jnp.dot(wcd_ref[...], a.astype(mm),
                preferred_element_type=jnp.float32) + bcd_ref[...]       # (8*B, 125)
    f = _lrelu(f).astype(mm)

    # --- relayout (8*B, 125) -> (B, 1000) matching torch .view: feature = c*125 + l
    n_cd = wcd_ref.shape[0] // B
    f_flat = jnp.concatenate([f[c * B:(c + 1) * B, :] for c in range(n_cd)],
                             axis=1)                                     # (B, 1000)

    # --- head: single (B,1000) x (1000,1000) matmul + LeakyReLU
    hw_copy.wait()
    out = jnp.dot(f_flat, hw_vmem[...],
                  preferred_element_type=jnp.float32) + hb_ref[...]
    o_ref[...] = _lrelu(out)


# ----------------------------- glue / packing --------------------------------

def _full_spec(shape):
    zero = (0,) * len(shape)
    return pl.BlockSpec(shape, lambda i, _z=zero: _z)


def _conv_blockdiag(cw, B, dtype):
    """(C_out, C_in, 3) torch conv weight -> (B*C_out, 3*B*C_in) block-diag, tap-stacked."""
    c_out, c_in, k = cw.shape
    wk = jnp.transpose(cw, (2, 0, 1))                    # (3, C_out, C_in)
    eye = jnp.eye(B, dtype=cw.dtype)
    w = jnp.einsum("koc,bd->bokdc", wk, eye)             # (B, C_out, 3, B, C_in)
    return w.reshape(B * c_out, k * B * c_in).astype(dtype)


def _cd_blockdiag(cdw, B, dtype):
    """(8, 64) channel_down weight -> (8*B, B*64) block-diag with rows [channel][batch]."""
    o, c = cdw.shape
    eye = jnp.eye(B, dtype=cdw.dtype)
    w = jnp.einsum("oc,bd->obdc", cdw, eye)              # (8, B, B, 64)
    return w.reshape(o * B, B * c).astype(dtype)


def pack_params(params, batch, matmul_dtype=jnp.bfloat16):
    """One-time layout plumbing (run OUTSIDE the per-call jitted forward)."""
    B = batch
    mm = matmul_dtype
    f32 = jnp.float32
    (cw1, cb1, lw1, lb1), (cw2, cb2, lw2, lb2), (cw3, cb3, lw3, lb3) = params["blocks"]
    cdw = params["cd_w"][:, :, 0]                        # (8, 64)
    cdb = params["cd_b"]                                 # (8,)
    hw = params["l_w"]                                   # (1000, 1000) torch (out, in)
    hb = params["l_b"]                                   # (1000,)
    return (
        _conv_blockdiag(cw1, B, mm), jnp.tile(cb1, B)[:, None].astype(f32),   # (B*16, 3*B)
        lw1.T.astype(mm), lb1[None, :].astype(f32),                           # (1000,500)
        _conv_blockdiag(cw2, B, mm), jnp.tile(cb2, B)[:, None].astype(f32),   # (B*32, 3*B*16)
        lw2.T.astype(mm), lb2[None, :].astype(f32),                           # (500,250)
        _conv_blockdiag(cw3, B, mm), jnp.tile(cb3, B)[:, None].astype(f32),   # (B*64, 3*B*32)
        lw3.T.astype(mm), lb3[None, :].astype(f32),                           # (250,125)
        _cd_blockdiag(cdw, B, mm), jnp.repeat(cdb, B)[:, None].astype(f32),   # (8*B, B*64)
        hw.T.astype(mm),                                                      # (1000,1000)
        hb[None, :].astype(f32),                                              # (1,1000)
    )


@jax.jit
def contrastive_semantic_forward(x, packed):
    B = x.shape[0]
    hwT = packed[-2]
    n_out = hwT.shape[1]
    mm = hwT.dtype

    # Sanity: packed params were built for this batch size.
    assert packed[0].shape[0] % 16 == 0 and packed[0].shape[0] // 16 == B

    kargs = [x.astype(jnp.float32), *packed]
    hw_idx = len(kargs) - 2                   # head weight stays in HBM (manual DMA)

    in_specs = [pl.BlockSpec(memory_space=pl.ANY) if i == hw_idx else _full_spec(a.shape)
                for i, a in enumerate(kargs)]

    # Advisory cost hint for the XLA scheduler.
    l_last = kargs[11].shape[1]
    flops = 2 * B * hwT.shape[0] * n_out                                  # head
    flops += 2 * kargs[13].shape[0] * kargs[13].shape[1] * l_last         # channel_down
    for wi, lwi in ((1, 3), (5, 7), (9, 11)):
        w, lw = kargs[wi], kargs[lwi]
        flops += 2 * w.shape[0] * w.shape[1] * lw.shape[0]                # conv matmul
        flops += 2 * w.shape[0] * lw.shape[0] * lw.shape[1]               # linear
    bytes_accessed = sum(a.size * a.dtype.itemsize for a in kargs) + B * n_out * 4

    vmem_limit = (16 if jnp.dtype(mm).itemsize <= 2 else 32) * 1024 * 1024

    return pl.pallas_call(
        _fused_kernel,
        out_shape=jax.ShapeDtypeStruct((B, n_out), jnp.float32),
        grid=(1,),
        in_specs=in_specs,
        out_specs=_full_spec((B, n_out)),
        scratch_shapes=[
            pltpu.VMEM((hwT.shape[0], hwT.shape[1]), mm),   # head weight landing buffer
            pltpu.SemaphoreType.DMA,                        # completion sem for the copy
        ],
        compiler_params=pltpu.CompilerParams(
            dimension_semantics=("arbitrary",),
            vmem_limit_bytes=vmem_limit,
        ),
        cost_estimate=pl.CostEstimate(
            flops=int(flops), transcendentals=0, bytes_accessed=int(bytes_accessed)),
    )(*kargs)


# --------------------------- init & pure-JAX reference ------------------------

def init_params(key):
    """Deterministic parameter init (shapes match the torch module's __init__)."""
    chans = [(1, 16), (16, 32), (32, 64)]
    lens = [(1000, 500), (500, 250), (250, 125)]

    def uinit(k, shape, fan_in):
        bound = 1.0 / jnp.sqrt(float(fan_in))
        return jax.random.uniform(k, shape, jnp.float32, -bound, bound)

    keys = jax.random.split(key, 20)
    ki = iter(range(20))
    blocks = []
    for (cin, cout), (lin, lout) in zip(chans, lens):
        cw = uinit(keys[next(ki)], (cout, cin, 3), cin * 3)
        cb = uinit(keys[next(ki)], (cout,), cin * 3)
        lw = uinit(keys[next(ki)], (lout, lin), lin)
        lb = uinit(keys[next(ki)], (lout,), lin)
        blocks.append((cw, cb, lw, lb))
    cd_w = uinit(keys[next(ki)], (8, 64, 1), 64)
    cd_b = uinit(keys[next(ki)], (8,), 64)
    l_w = uinit(keys[next(ki)], (1000, 1000), 1000)
    l_b = uinit(keys[next(ki)], (1000,), 1000)
    return dict(blocks=blocks, cd_w=cd_w, cd_b=cd_b, l_w=l_w, l_b=l_b)


def reference_forward(x, params):
    """Pure-JAX reference mirroring the PyTorch forward (sanity check)."""
    B = x.shape[0]
    h = x[:, None, :]                                           # (B, 1, 1000)
    for cw, cb, lw, lb in params["blocks"]:
        wt = jnp.transpose(cw, (2, 0, 1))                       # (3, Cout, Cin)
        C, L = h.shape[1], h.shape[2]
        z = jnp.zeros((B, C, 1), h.dtype)
        hm = jnp.concatenate([z, h[:, :, : L - 1]], axis=2)
        hp = jnp.concatenate([h[:, :, 1:], z], axis=2)
        y = (jnp.einsum("oc,bcl->bol", wt[0], hm)
             + jnp.einsum("oc,bcl->bol", wt[1], h)
             + jnp.einsum("oc,bcl->bol", wt[2], hp)) + cb[None, :, None]
        y = _lrelu(y)
        y = jnp.einsum("bcl,ol->bco", y, lw) + lb[None, None, :]
        h = _lrelu(y)
    y = jnp.einsum("oc,bcl->bol", params["cd_w"][:, :, 0], h) + params["cd_b"][None, :, None]
    h = _lrelu(y).reshape(B, -1)                                # (B, 1000)
    y = h @ params["l_w"].T + params["l_b"][None, :]
    return _lrelu(y)


if __name__ == "__main__":
    key = jax.random.PRNGKey(0)
    pkey, xkey = jax.random.split(key)
    params = init_params(pkey)

    # Module architecture fixes the feature length at 1000; batch kept small.
    B = 2
    x = jax.random.normal(xkey, (B, 1000), dtype=jnp.float32)

    ref = reference_forward(x, params)

    # Exact-semantics path: f32 weights / f32 matmuls.
    packed_f32 = pack_params(params, B, jnp.float32)
    out_f32 = jax.block_until_ready(contrastive_semantic_forward(x, packed_f32))
    assert out_f32.shape == (B, 1000), out_f32.shape
    assert bool(jnp.all(jnp.isfinite(out_f32)))
    err_f32 = float(jnp.max(jnp.abs(out_f32 - ref)))
    assert err_f32 < 1e-2, f"f32 path max abs error vs reference: {err_f32}"

    # Perf path (default): bf16 weights / matmul inputs, f32 accumulation + elementwise.
    packed_bf16 = pack_params(params, B, jnp.bfloat16)
    out_bf16 = jax.block_until_ready(contrastive_semantic_forward(x, packed_bf16))
    assert out_bf16.shape == (B, 1000), out_bf16.shape
    assert bool(jnp.all(jnp.isfinite(out_bf16)))
    err_bf16 = float(jnp.max(jnp.abs(out_bf16 - ref)))
    assert err_bf16 < 5e-2, f"bf16 path max abs error vs reference: {err_bf16}"

    print("KERNEL_OK")
</pallas_src>

<mosaic_0001>
module attributes {stable_mosaic.version = 11 : i64} {
  func.func @_fused_kernel(%arg0: i32, %arg1: memref<2x1000xf32, #tpu.memory_space<vmem>>, %arg2: memref<32x6xf32, #tpu.memory_space<vmem>>, %arg3: memref<32x1xf32, #tpu.memory_space<vmem>>, %arg4: memref<1000x500xf32, #tpu.memory_space<vmem>>, %arg5: memref<1x500xf32, #tpu.memory_space<vmem>>, %arg6: memref<64x96xf32, #tpu.memory_space<vmem>>, %arg7: memref<64x1xf32, #tpu.memory_space<vmem>>, %arg8: memref<500x250xf32, #tpu.memory_space<vmem>>, %arg9: memref<1x250xf32, #tpu.memory_space<vmem>>, %arg10: memref<128x192xf32, #tpu.memory_space<vmem>>, %arg11: memref<128x1xf32, #tpu.memory_space<vmem>>, %arg12: memref<250x125xf32, #tpu.memory_space<vmem>>, %arg13: memref<1x125xf32, #tpu.memory_space<vmem>>, %arg14: memref<16x128xf32, #tpu.memory_space<vmem>>, %arg15: memref<16x1xf32, #tpu.memory_space<vmem>>, %arg16: memref<1000x1000xf32, #tpu.memory_space<any>>, %arg17: memref<1x1000xf32, #tpu.memory_space<vmem>>, %arg18: memref<2x1000xf32, #tpu.memory_space<vmem>>, %arg19: memref<1000x1000xf32, #tpu.memory_space<vmem>>, %arg20: memref<!tpu.dma_semaphore, #tpu.memory_space<semaphore_mem>>) attributes {dimension_semantics = [#tpu.dimension_semantics<arbitrary>], iteration_bounds = array<i64: 1>, scalar_prefetch = 0 : i64, scratch_operands = 2 : i64, tpu.core_type = #tpu.core_type<tc>, window_params = [{pipeline_mode = #tpu.pipeline_mode<synchronous>, transform_indices = @transform_0, window_bounds = array<i64: 2, 1000>}, {pipeline_mode = #tpu.pipeline_mode<synchronous>, transform_indices = @transform_1, window_bounds = array<i64: 32, 6>}, {pipeline_mode = #tpu.pipeline_mode<synchronous>, transform_indices = @transform_2, window_bounds = array<i64: 32, 1>}, {pipeline_mode = #tpu.pipeline_mode<synchronous>, transform_indices = @transform_3, window_bounds = array<i64: 1000, 500>}, {pipeline_mode = #tpu.pipeline_mode<synchronous>, transform_indices = @transform_4, window_bounds = array<i64: 1, 500>}, {pipeline_mode = #tpu.pipeline_mode<synchronous>, transform_indices = @transform_5, window_bounds = array<i64: 64, 96>}, {pipeline_mode = #tpu.pipeline_mode<synchronous>, transform_indices = @transform_6, window_bounds = array<i64: 64, 1>}, {pipeline_mode = #tpu.pipeline_mode<synchronous>, transform_indices = @transform_7, window_bounds = array<i64: 500, 250>}, {pipeline_mode = #tpu.pipeline_mode<synchronous>, transform_indices = @transform_8, window_bounds = array<i64: 1, 250>}, {pipeline_mode = #tpu.pipeline_mode<synchronous>, transform_indices = @transform_9, window_bounds = array<i64: 128, 192>}, {pipeline_mode = #tpu.pipeline_mode<synchronous>, transform_indices = @transform_10, window_bounds = array<i64: 128, 1>}, {pipeline_mode = #tpu.pipeline_mode<synchronous>, transform_indices = @transform_11, window_bounds = array<i64: 250, 125>}, {pipeline_mode = #tpu.pipeline_mode<synchronous>, transform_indices = @transform_12, window_bounds = array<i64: 1, 125>}, {pipeline_mode = #tpu.pipeline_mode<synchronous>, transform_indices = @transform_13, window_bounds = array<i64: 16, 128>}, {pipeline_mode = #tpu.pipeline_mode<synchronous>, transform_indices = @transform_14, window_bounds = array<i64: 16, 1>}, {}, {pipeline_mode = #tpu.pipeline_mode<synchronous>, transform_indices = @transform_16, window_bounds = array<i64: 1, 1000>}, {pipeline_mode = #tpu.pipeline_mode<synchronous>, transform_indices = @transform_17, window_bounds = array<i64: 2, 1000>}]} {
    tpu.enqueue_dma source(%arg16 : memref<1000x1000xf32, #tpu.memory_space<any>>) target(%arg19 : memref<1000x1000xf32, #tpu.memory_space<vmem>>) target_semaphore(%arg20 : memref<!tpu.dma_semaphore, #tpu.memory_space<semaphore_mem>>)
    %c0 = arith.constant 0 : index
    %c0_0 = arith.constant 0 : index
    %0 = vector.load %arg1[%c0, %c0_0] : memref<2x1000xf32, #tpu.memory_space<vmem>>, vector<2x1000xf32>
    %cst = arith.constant 0.000000e+00 : f32
    %1 = vector.broadcast %cst : f32 to vector<2x1xf32>
    %2 = vector.extract_strided_slice %0 {offsets = [0, 0], sizes = [2, 999], strides = [1, 1]} : vector<2x1000xf32> to vector<2x999xf32>
    %3 = tpu.concatenate %1, %2 in 1 : vector<2x1xf32>, vector<2x999xf32> -> vector<2x1000xf32>
    %4 = vector.extract_strided_slice %0 {offsets = [0, 1], sizes = [2, 999], strides = [1, 1]} : vector<2x1000xf32> to vector<2x999xf32>
    %5 = tpu.concatenate %4, %1 in 1 : vector<2x999xf32>, vector<2x1xf32> -> vector<2x1000xf32>
    %6 = tpu.concatenate %3, %0, %5 in 0 : vector<2x1000xf32>, vector<2x1000xf32>, vector<2x1000xf32> -> vector<6x1000xf32>
    %c0_1 = arith.constant 0 : index
    %c0_2 = arith.constant 0 : index
    %7 = vector.load %arg2[%c0_1, %c0_2] : memref<32x6xf32, #tpu.memory_space<vmem>>, vector<32x6xf32>
    %cst_3 = arith.constant dense<0.000000e+00> : vector<32x1000xf32>
    %8 = tpu.matmul %7, %6, %cst_3 {dimension_numbers = #tpu.dot_dimension_numbers<[1], [0], [0], [1], [0, 0, 1, 1], [], []>} : vector<32x6xf32>, vector<6x1000xf32>, vector<32x1000xf32> -> vector<32x1000xf32>
    %c0_4 = arith.constant 0 : index
    %c0_5 = arith.constant 0 : index
    %9 = vector.load %arg3[%c0_4, %c0_5] : memref<32x1xf32, #tpu.memory_space<vmem>>, vector<32x1xf32>
    %10 = vector.broadcast %9 : vector<32x1xf32> to vector<32x1000xf32>
    %11 = arith.addf %8, %10 : vector<32x1000xf32>
    %cst_6 = arith.constant 0.000000e+00 : f32
    %12 = vector.broadcast %cst_6 : f32 to vector<32x1000xf32>
    %13 = arith.cmpf ogt, %11, %12 : vector<32x1000xf32>
    %cst_7 = arith.constant 0.00999999977 : f32
    %14 = vector.broadcast %cst_7 : f32 to vector<32x1000xf32>
    %15 = arith.mulf %14, %11 : vector<32x1000xf32>
    %16 = arith.select %13, %11, %15 : vector<32x1000xi1>, vector<32x1000xf32>
    %c0_8 = arith.constant 0 : index
    %c0_9 = arith.constant 0 : index
    %17 = vector.load %arg4[%c0_8, %c0_9] : memref<1000x500xf32, #tpu.memory_space<vmem>>, vector<1000x500xf32>
    %cst_10 = arith.constant dense<0.000000e+00> : vector<32x500xf32>
    %18 = tpu.matmul %16, %17, %cst_10 {dimension_numbers = #tpu.dot_dimension_numbers<[1], [0], [0], [1], [0, 0, 1, 1], [], []>} : vector<32x1000xf32>, vector<1000x500xf32>, vector<32x500xf32> -> vector<32x500xf32>
    %c0_11 = arith.constant 0 : index
    %c0_12 = arith.constant 0 : index
    %19 = vector.load %arg5[%c0_11, %c0_12] : memref<1x500xf32, #tpu.memory_space<vmem>>, vector<1x500xf32>
    %20 = vector.broadcast %19 : vector<1x500xf32> to vector<32x500xf32>
    %21 = arith.addf %18, %20 : vector<32x500xf32>
    %cst_13 = arith.constant 0.000000e+00 : f32
    %22 = vector.broadcast %cst_13 : f32 to vector<32x500xf32>
    %23 = arith.cmpf ogt, %21, %22 : vector<32x500xf32>
    %cst_14 = arith.constant 0.00999999977 : f32
    %24 = vector.broadcast %cst_14 : f32 to vector<32x500xf32>
    %25 = arith.mulf %24, %21 : vector<32x500xf32>
    %26 = arith.select %23, %21, %25 : vector<32x500xi1>, vector<32x500xf32>
    %cst_15 = arith.constant 0.000000e+00 : f32
    %27 = vector.broadcast %cst_15 : f32 to vector<32x1xf32>
    %28 = vector.extract_strided_slice %26 {offsets = [0, 0], sizes = [32, 499], strides = [1, 1]} : vector<32x500xf32> to vector<32x499xf32>
    %29 = tpu.concatenate %27, %28 in 1 : vector<32x1xf32>, vector<32x499xf32> -> vector<32x500xf32>
    %30 = vector.extract_strided_slice %26 {offsets = [0, 1], sizes = [32, 499], strides = [1, 1]} : vector<32x500xf32> to vector<32x499xf32>
    %31 = tpu.concatenate %30, %27 in 1 : vector<32x499xf32>, vector<32x1xf32> -> vector<32x500xf32>
    %32 = tpu.concatenate %29, %26, %31 in 0 : vector<32x500xf32>, vector<32x500xf32>, vector<32x500xf32> -> vector<96x500xf32>
    %c0_16 = arith.constant 0 : index
    %c0_17 = arith.constant 0 : index
    %33 = vector.load %arg6[%c0_16, %c0_17] : memref<64x96xf32, #tpu.memory_space<vmem>>, vector<64x96xf32>
    %cst_18 = arith.constant dense<0.000000e+00> : vector<64x500xf32>
    %34 = tpu.matmul %33, %32, %cst_18 {dimension_numbers = #tpu.dot_dimension_numbers<[1], [0], [0], [1], [0, 0, 1, 1], [], []>} : vector<64x96xf32>, vector<96x500xf32>, vector<64x500xf32> -> vector<64x500xf32>
    %c0_19 = arith.constant 0 : index
    %c0_20 = arith.constant 0 : index
    %35 = vector.load %arg7[%c0_19, %c0_20] : memref<64x1xf32, #tpu.memory_space<vmem>>, vector<64x1xf32>
    %36 = vector.broadcast %35 : vector<64x1xf32> to vector<64x500xf32>
    %37 = arith.addf %34, %36 : vector<64x500xf32>
    %cst_21 = arith.constant 0.000000e+00 : f32
    %38 = vector.broadcast %cst_21 : f32 to vector<64x500xf32>
    %39 = arith.cmpf ogt, %37, %38 : vector<64x500xf32>
    %cst_22 = arith.constant 0.00999999977 : f32
    %40 = vector.broadcast %cst_22 : f32 to vector<64x500xf32>
    %41 = arith.mulf %40, %37 : vector<64x500xf32>
    %42 = arith.select %39, %37, %41 : vector<64x500xi1>, vector<64x500xf32>
    %c0_23 = arith.constant 0 : index
    %c0_24 = arith.constant 0 : index
    %43 = vector.load %arg8[%c0_23, %c0_24] : memref<500x250xf32, #tpu.memory_space<vmem>>, vector<500x250xf32>
    %cst_25 = arith.constant dense<0.000000e+00> : vector<64x250xf32>
    %44 = tpu.matmul %42, %43, %cst_25 {dimension_numbers = #tpu.dot_dimension_numbers<[1], [0], [0], [1], [0, 0, 1, 1], [], []>} : vector<64x500xf32>, vector<500x250xf32>, vector<64x250xf32> -> vector<64x250xf32>
    %c0_26 = arith.constant 0 : index
    %c0_27 = arith.constant 0 : index
    %45 = vector.load %arg9[%c0_26, %c0_27] : memref<1x250xf32, #tpu.memory_space<vmem>>, vector<1x250xf32>
    %46 = vector.broadcast %45 : vector<1x250xf32> to vector<64x250xf32>
    %47 = arith.addf %44, %46 : vector<64x250xf32>
    %cst_28 = arith.constant 0.000000e+00 : f32
    %48 = vector.broadcast %cst_28 : f32 to vector<64x250xf32>
    %49 = arith.cmpf ogt, %47, %48 : vector<64x250xf32>
    %cst_29 = arith.constant 0.00999999977 : f32
    %50 = vector.broadcast %cst_29 : f32 to vector<64x250xf32>
    %51 = arith.mulf %50, %47 : vector<64x250xf32>
    %52 = arith.select %49, %47, %51 : vector<64x250xi1>, vector<64x250xf32>
    %cst_30 = arith.constant 0.000000e+00 : f32
    %53 = vector.broadcast %cst_30 : f32 to vector<64x1xf32>
    %54 = vector.extract_strided_slice %52 {offsets = [0, 0], sizes = [64, 249], strides = [1, 1]} : vector<64x250xf32> to vector<64x249xf32>
    %55 = tpu.concatenate %53, %54 in 1 : vector<64x1xf32>, vector<64x249xf32> -> vector<64x250xf32>
    %56 = vector.extract_strided_slice %52 {offsets = [0, 1], sizes = [64, 249], strides = [1, 1]} : vector<64x250xf32> to vector<64x249xf32>
    %57 = tpu.concatenate %56, %53 in 1 : vector<64x249xf32>, vector<64x1xf32> -> vector<64x250xf32>
    %58 = tpu.concatenate %55, %52, %57 in 0 : vector<64x250xf32>, vector<64x250xf32>, vector<64x250xf32> -> vector<192x250xf32>
    %c0_31 = arith.constant 0 : index
    %c0_32 = arith.constant 0 : index
    %59 = vector.load %arg10[%c0_31, %c0_32] : memref<128x192xf32, #tpu.memory_space<vmem>>, vector<128x192xf32>
    %cst_33 = arith.constant dense<0.000000e+00> : vector<128x250xf32>
    %60 = tpu.matmul %59, %58, %cst_33 {dimension_numbers = #tpu.dot_dimension_numbers<[1], [0], [0], [1], [0, 0, 1, 1], [], []>} : vector<128x192xf32>, vector<192x250xf32>, vector<128x250xf32> -> vector<128x250xf32>
    %c0_34 = arith.constant 0 : index
    %c0_35 = arith.constant 0 : index
    %61 = vector.load %arg11[%c0_34, %c0_35] : memref<128x1xf32, #tpu.memory_space<vmem>>, vector<128x1xf32>
    %62 = vector.broadcast %61 : vector<128x1xf32> to vector<128x250xf32>
    %63 = arith.addf %60, %62 : vector<128x250xf32>
    %cst_36 = arith.constant 0.000000e+00 : f32
    %64 = vector.broadcast %cst_36 : f32 to vector<128x250xf32>
    %65 = arith.cmpf ogt, %63, %64 : vector<128x250xf32>
    %cst_37 = arith.constant 0.00999999977 : f32
    %66 = vector.broadcast %cst_37 : f32 to vector<128x250xf32>
    %67 = arith.mulf %66, %63 : vector<128x250xf32>
    %68 = arith.select %65, %63, %67 : vector<128x250xi1>, vector<128x250xf32>
    %c0_38 = arith.constant 0 : index
    %c0_39 = arith.constant 0 : index
    %69 = vector.load %arg12[%c0_38, %c0_39] : memref<250x125xf32, #tpu.memory_space<vmem>>, vector<250x125xf32>
    %cst_40 = arith.constant dense<0.000000e+00> : vector<128x125xf32>
    %70 = tpu.matmul %68, %69, %cst_40 {dimension_numbers = #tpu.dot_dimension_numbers<[1], [0], [0], [1], [0, 0, 1, 1], [], []>} : vector<128x250xf32>, vector<250x125xf32>, vector<128x125xf32> -> vector<128x125xf32>
    %c0_41 = arith.constant 0 : index
    %c0_42 = arith.constant 0 : index
    %71 = vector.load %arg13[%c0_41, %c0_42] : memref<1x125xf32, #tpu.memory_space<vmem>>, vector<1x125xf32>
    %72 = vector.broadcast %71 : vector<1x125xf32> to vector<128x125xf32>
    %73 = arith.addf %70, %72 : vector<128x125xf32>
    %cst_43 = arith.constant 0.000000e+00 : f32
    %74 = vector.broadcast %cst_43 : f32 to vector<128x125xf32>
    %75 = arith.cmpf ogt, %73, %74 : vector<128x125xf32>
    %cst_44 = arith.constant 0.00999999977 : f32
    %76 = vector.broadcast %cst_44 : f32 to vector<128x125xf32>
    %77 = arith.mulf %76, %73 : vector<128x125xf32>
    %78 = arith.select %75, %73, %77 : vector<128x125xi1>, vector<128x125xf32>
    %c0_45 = arith.constant 0 : index
    %c0_46 = arith.constant 0 : index
    %79 = vector.load %arg14[%c0_45, %c0_46] : memref<16x128xf32, #tpu.memory_space<vmem>>, vector<16x128xf32>
    %cst_47 = arith.constant dense<0.000000e+00> : vector<16x125xf32>
    %80 = tpu.matmul %79, %78, %cst_47 {dimension_numbers = #tpu.dot_dimension_numbers<[1], [0], [0], [1], [0, 0, 1, 1], [], []>} : vector<16x128xf32>, vector<128x125xf32>, vector<16x125xf32> -> vector<16x125xf32>
    %c0_48 = arith.constant 0 : index
    %c0_49 = arith.constant 0 : index
    %81 = vector.load %arg15[%c0_48, %c0_49] : memref<16x1xf32, #tpu.memory_space<vmem>>, vector<16x1xf32>
    %82 = vector.broadcast %81 : vector<16x1xf32> to vector<16x125xf32>
    %83 = arith.addf %80, %82 : vector<16x125xf32>
    %cst_50 = arith.constant 0.000000e+00 : f32
    %84 = vector.broadcast %cst_50 : f32 to vector<16x125xf32>
    %85 = arith.cmpf ogt, %83, %84 : vector<16x125xf32>
    %cst_51 = arith.constant 0.00999999977 : f32
    %86 = vector.broadcast %cst_51 : f32 to vector<16x125xf32>
    %87 = arith.mulf %86, %83 : vector<16x125xf32>
    %88 = arith.select %85, %83, %87 : vector<16x125xi1>, vector<16x125xf32>
    %89 = vector.extract_strided_slice %88 {offsets = [0, 0], sizes = [2, 125], strides = [1, 1]} : vector<16x125xf32> to vector<2x125xf32>
    %90 = vector.extract_strided_slice %88 {offsets = [2, 0], sizes = [2, 125], strides = [1, 1]} : vector<16x125xf32> to vector<2x125xf32>
    %91 = vector.extract_strided_slice %88 {offsets = [4, 0], sizes = [2, 125], strides = [1, 1]} : vector<16x125xf32> to vector<2x125xf32>
    %92 = vector.extract_strided_slice %88 {offsets = [6, 0], sizes = [2, 125], strides = [1, 1]} : vector<16x125xf32> to vector<2x125xf32>
    %93 = vector.extract_strided_slice %88 {offsets = [8, 0], sizes = [2, 125], strides = [1, 1]} : vector<16x125xf32> to vector<2x125xf32>
    %94 = vector.extract_strided_slice %88 {offsets = [10, 0], sizes = [2, 125], strides = [1, 1]} : vector<16x125xf32> to vector<2x125xf32>
    %95 = vector.extract_strided_slice %88 {offsets = [12, 0], sizes = [2, 125], strides = [1, 1]} : vector<16x125xf32> to vector<2x125xf32>
    %96 = vector.extract_strided_slice %88 {offsets = [14, 0], sizes = [2, 125], strides = [1, 1]} : vector<16x125xf32> to vector<2x125xf32>
    %97 = tpu.concatenate %89, %90, %91, %92, %93, %94, %95, %96 in 1 : vector<2x125xf32>, vector<2x125xf32>, vector<2x125xf32>, vector<2x125xf32>, vector<2x125xf32>, vector<2x125xf32>, vector<2x125xf32>, vector<2x125xf32> -> vector<2x1000xf32>
    tpu.wait_dma2 semaphore(%arg20 : memref<!tpu.dma_semaphore, #tpu.memory_space<semaphore_mem>>) src(%arg16 : memref<1000x1000xf32, #tpu.memory_space<any>>) dst(%arg19 : memref<1000x1000xf32, #tpu.memory_space<vmem>>)
    %c0_52 = arith.constant 0 : index
    %c0_53 = arith.constant 0 : index
    %98 = vector.load %arg19[%c0_52, %c0_53] : memref<1000x1000xf32, #tpu.memory_space<vmem>>, vector<1000x1000xf32>
    %cst_54 = arith.constant dense<0.000000e+00> : vector<2x1000xf32>
    %99 = tpu.matmul %97, %98, %cst_54 {dimension_numbers = #tpu.dot_dimension_numbers<[1], [0], [0], [1], [0, 0, 1, 1], [], []>} : vector<2x1000xf32>, vector<1000x1000xf32>, vector<2x1000xf32> -> vector<2x1000xf32>
    %c0_55 = arith.constant 0 : index
    %c0_56 = arith.constant 0 : index
    %100 = vector.load %arg17[%c0_55, %c0_56] : memref<1x1000xf32, #tpu.memory_space<vmem>>, vector<1x1000xf32>
    %101 = vector.broadcast %100 : vector<1x1000xf32> to vector<2x1000xf32>
    %102 = arith.addf %99, %101 : vector<2x1000xf32>
    %cst_57 = arith.constant 0.000000e+00 : f32
    %103 = vector.broadcast %cst_57 : f32 to vector<2x1000xf32>
    %104 = arith.cmpf ogt, %102, %103 : vector<2x1000xf32>
    %cst_58 = arith.constant 0.00999999977 : f32
    %105 = vector.broadcast %cst_58 : f32 to vector<2x1000xf32>
    %106 = arith.mulf %105, %102 : vector<2x1000xf32>
    %107 = arith.select %104, %102, %106 : vector<2x1000xi1>, vector<2x1000xf32>
    %c0_59 = arith.constant 0 : index
    %c0_60 = arith.constant 0 : index
    %108 = vector.load %arg18[%c0_59, %c0_60] : memref<2x1000xf32, #tpu.memory_space<vmem>>, vector<2x1000xf32>
    tpu.vector_store %arg18[%c0_59, %c0_60], %107 {strides = array<i32>} : memref<2x1000xf32, #tpu.memory_space<vmem>>, vector<2x1000xf32>,
    return
  }
  func.func @transform_0(%arg0: i32) -> (i32, i32) {
    %c0_i32 = arith.constant 0 : i32
    %c0_i32_0 = arith.constant 0 : i32
    %c0_i32_1 = arith.constant 0 : i32
    return %c0_i32, %c0_i32_0 : i32, i32
  }
  func.func @transform_1(%arg0: i32) -> (i32, i32) {
    %c0_i32 = arith.constant 0 : i32
    %c0_i32_0 = arith.constant 0 : i32
    %c0_i32_1 = arith.constant 0 : i32
    return %c0_i32, %c0_i32_0 : i32, i32
  }
  func.func @transform_2(%arg0: i32) -> (i32, i32) {
    %c0_i32 = arith.constant 0 : i32
    %c0_i32_0 = arith.constant 0 : i32
    %c0_i32_1 = arith.constant 0 : i32
    return %c0_i32, %c0_i32_0 : i32, i32
  }
  func.func @transform_3(%arg0: i32) -> (i32, i32) {
    %c0_i32 = arith.constant 0 : i32
    %c0_i32_0 = arith.constant 0 : i32
    %c0_i32_1 = arith.constant 0 : i32
    return %c0_i32, %c0_i32_0 : i32, i32
  }
  func.func @transform_4(%arg0: i32) -> (i32, i32) {
    %c0_i32 = arith.constant 0 : i32
    %c0_i32_0 = arith.constant 0 : i32
    %c0_i32_1 = arith.constant 0 : i32
    return %c0_i32, %c0_i32_0 : i32, i32
  }
  func.func @transform_5(%arg0: i32) -> (i32, i32) {
    %c0_i32 = arith.constant 0 : i32
    %c0_i32_0 = arith.constant 0 : i32
    %c0_i32_1 = arith.constant 0 : i32
    return %c0_i32, %c0_i32_0 : i32, i32
  }
  func.func @transform_6(%arg0: i32) -> (i32, i32) {
    %c0_i32 = arith.constant 0 : i32
    %c0_i32_0 = arith.constant 0 : i32
    %c0_i32_1 = arith.constant 0 : i32
    return %c0_i32, %c0_i32_0 : i32, i32
  }
  func.func @transform_7(%arg0: i32) -> (i32, i32) {
    %c0_i32 = arith.constant 0 : i32
    %c0_i32_0 = arith.constant 0 : i32
    %c0_i32_1 = arith.constant 0 : i32
    return %c0_i32, %c0_i32_0 : i32, i32
  }
  func.func @transform_8(%arg0: i32) -> (i32, i32) {
    %c0_i32 = arith.constant 0 : i32
    %c0_i32_0 = arith.constant 0 : i32
    %c0_i32_1 = arith.constant 0 : i32
    return %c0_i32, %c0_i32_0 : i32, i32
  }
  func.func @transform_9(%arg0: i32) -> (i32, i32) {
    %c0_i32 = arith.constant 0 : i32
    %c0_i32_0 = arith.constant 0 : i32
    %c0_i32_1 = arith.constant 0 : i32
    return %c0_i32, %c0_i32_0 : i32, i32
  }
  func.func @transform_10(%arg0: i32) -> (i32, i32) {
    %c0_i32 = arith.constant 0 : i32
    %c0_i32_0 = arith.constant 0 : i32
    %c0_i32_1 = arith.constant 0 : i32
    return %c0_i32, %c0_i32_0 : i32, i32
  }
  func.func @transform_11(%arg0: i32) -> (i32, i32) {
    %c0_i32 = arith.constant 0 : i32
    %c0_i32_0 = arith.constant 0 : i32
    %c0_i32_1 = arith.constant 0 : i32
    return %c0_i32, %c0_i32_0 : i32, i32
  }
  func.func @transform_12(%arg0: i32) -> (i32, i32) {
    %c0_i32 = arith.constant 0 : i32
    %c0_i32_0 = arith.constant 0 : i32
    %c0_i32_1 = arith.constant 0 : i32
    return %c0_i32, %c0_i32_0 : i32, i32
  }
  func.func @transform_13(%arg0: i32) -> (i32, i32) {
    %c0_i32 = arith.constant 0 : i32
    %c0_i32_0 = arith.constant 0 : i32
    %c0_i32_1 = arith.constant 0 : i32
    return %c0_i32, %c0_i32_0 : i32, i32
  }
  func.func @transform_14(%arg0: i32) -> (i32, i32) {
    %c0_i32 = arith.constant 0 : i32
    %c0_i32_0 = arith.constant 0 : i32
    %c0_i32_1 = arith.constant 0 : i32
    return %c0_i32, %c0_i32_0 : i32, i32
  }
  func.func @transform_16(%arg0: i32) -> (i32, i32) {
    %c0_i32 = arith.constant 0 : i32
    %c0_i32_0 = arith.constant 0 : i32
    %c0_i32_1 = arith.constant 0 : i32
    return %c0_i32, %c0_i32_0 : i32, i32
  }
  func.func @transform_17(%arg0: i32) -> (i32, i32) {
    %c0_i32 = arith.constant 0 : i32
    %c0_i32_0 = arith.constant 0 : i32
    %c0_i32_1 = arith.constant 0 : i32
    return %c0_i32, %c0_i32_0 : i32, i32
  }
}

</mosaic_0001>

<bundles_post_ra>
// kernel: contrastive_semantic_forward.1
= control target key start
LH: loop header
LB: loop body
LE: loop exit
PB: predicated region body
PF: predicated region fallthrough
CT: control target
= control target key end

     0   :  { %s10591_s0 = inlined_call_operand.hbm [shape: f32[2,1000], index: 0, kind: input, shape index: {}]   ;;  %s10592_s1 = inlined_call_operand.vmem [shape: f32[32,6], index: 1, kind: input, shape index: {}]   ;;  %s10593_s2 = inlined_call_operand.vmem [shape: f32[32,1], index: 2, kind: input, shape index: {}]   ;;  %s10594_s3 = inlined_call_operand.hbm [shape: f32[1000,500], index: 3, kind: input, shape index: {}]   ;;  %s10595_s4 = inlined_call_operand.hbm [shape: f32[1,500], index: 4, kind: input, shape index: {}]   ;;  %s10596_s5 = inlined_call_operand.hbm [shape: f32[64,96], index: 5, kind: input, shape index: {}]   ;;  %s10597_s6 = inlined_call_operand.vmem [shape: f32[64,1], index: 6, kind: input, shape index: {}]   ;;  %s10598_s7 = inlined_call_operand.hbm [shape: f32[500,250], index: 7, kind: input, shape index: {}]   ;;  %s10599_s8 = inlined_call_operand.hbm [shape: f32[1,250], index: 8, kind: input, shape index: {}]   ;;  %s10600_s9 = inlined_call_operand.vmem [shape: f32[128,192], index: 9, kind: input, shape index: {}]   ;;  %s10601_s10 = inlined_call_operand.vmem [shape: f32[128,1], index: 10, kind: input, shape index: {}]   ;;  %s10602_s11 = inlined_call_operand.hbm [shape: f32[250,125], index: 11, kind: input, shape index: {}]   ;;  %s10603_s12 = inlined_call_operand.hbm [shape: f32[1,125], index: 12, kind: input, shape index: {}]   ;;  %s10604_s13 = inlined_call_operand.hbm [shape: f32[16,128], index: 13, kind: input, shape index: {}]   ;;  %s10605_s14 = inlined_call_operand.vmem [shape: f32[16,1], index: 14, kind: input, shape index: {}]   ;;  %s10606_s15 = inlined_call_operand.hbm [shape: f32[1000,1000], index: 15, kind: input, shape index: {}]   ;;  %s10607_s16 = inlined_call_operand.hbm [shape: f32[1,1000], index: 16, kind: input, shape index: {}]   ;;  %s10608_s17 = inlined_call_operand.hbm [shape: f32[2,1000], index: 17, kind: output, shape index: {}]  }
   0x1   :  { %10611 = sst [smem:[#allocation34_spill]] %s10591_s0 }
   0x2   :  { %10612 = sst [smem:[#allocation35_spill]] %s10592_s1 }
   0x3   :  { %22 = vsyncpa [#allocation5], 0 }
   0x4   :  { %23 = vsyncpa [#allocation8], 0 }
   0x5   :  { %24 = vsyncpa [#allocation11], 0 }
   0x6   :  { %25 = vsyncpa [#allocation14], 0 }
   0x7   :  { %26 = vsyncpa [#allocation17], 0 }
   0x8   :  { %27 = vsyncpa [#allocation20], 0 }
   0x9   :  { %28 = vsyncpa [#allocation6], 0  ;;  %s9096_s24 = smov [#allocation7]   ;;  %s8816_s28 = scalar_lea.hbm %s10594_s3, 64000 }
   0xa   :  { %s48_s25 = sshll.u32 %s9096_s24, 4  ;;  %p8817_p0 = scmp.ne.s32.totalorder %s10594_s3, %s8816_s28  ;;  %s49_s25 = int_to_ptr.vmem [resolvable:$true] %s48_s25 }
   0xb   :  { %p8820_p1 = scmp.lt.u32.totalorder %s8816_s28, %s10594_s3 }
   0xd   :  { %p8822_p2 = pnand %p8820_p1, %p8817_p0 }
   0xf   :  { %8825 = shalt.err (!%p8822_p2)
}
  0x10   :  { %s8826_s19 = scalar_lea.vmem %s49_s25, 64000  ;;  %p8831_p4 = scmp.lt.s32.totalorder %s49_s25, %s49_s25 }
  0x11   :  { %p8827_p3 = scmp.ne.s32.totalorder %s49_s25, %s8826_s19  ;;  %p8832_p5 = scmp.lt.s32.totalorder %s8826_s19, %s8826_s19 }
  0x13   :  { %p8833_p6 = por %p8832_p5, %p8831_p4 }
  0x15   :  { %p8834_p7 = pnand %p8833_p6, %p8827_p3 }
  0x17   :  { %8837 = shalt.err (!%p8834_p7)
}
  0x18   :  { %s9097_s1 = smov 512   ;;  %s9098_s20 = smov 32  }
  0x19   :  { %54 = dma.hbm_to_vmem [thread:$0]  %s10594_s3, 64000, %s49_s25, [#allocation8], %s9097_s1, %s9097_s1, %s9098_s20  }
  0x1a   :  { %s9099_s23 = smov [#allocation10]   ;;  %s8838_s28 = scalar_lea.hbm %s10596_s5, 1024 }
  0x1b   :  { %s70_s24 = sshll.u32 %s9099_s23, 4  ;;  %p8839_p8 = scmp.ne.s32.totalorder %s10596_s5, %s8838_s28  ;;  %s71_s24 = int_to_ptr.vmem [resolvable:$true] %s70_s24 }
  0x1c   :  { %p8842_p9 = scmp.lt.u32.totalorder %s8838_s28, %s10596_s5 }
  0x1e   :  { %p8844_p10 = pnand %p8842_p9, %p8839_p8 }
  0x20   :  { %8847 = shalt.err (!%p8844_p10)
}
  0x21   :  { %s8848_s19 = scalar_lea.vmem %s71_s24, 1024  ;;  %p8853_p12 = scmp.lt.s32.totalorder %s71_s24, %s71_s24 }
  0x22   :  { %p8849_p11 = scmp.ne.s32.totalorder %s71_s24, %s8848_s19  ;;  %p8854_p13 = scmp.lt.s32.totalorder %s8848_s19, %s8848_s19 }
  0x24   :  { %p8855_p0 = por %p8854_p13, %p8853_p12 }
  0x26   :  { %p8856_p1 = pnand %p8855_p0, %p8849_p11 }
  0x28   :  { %8859 = shalt.err (!%p8856_p1)
}
  0x29   :  { %s9100_s3 = smov 128   ;;  %s9101_s25 = smov 8  }
  0x2a   :  { %76 = dma.hbm_to_vmem [thread:$0]  %s10596_s5, 1024, %s71_s24, [#allocation11], %s9100_s3, %s9100_s3, %s9101_s25  }
  0x2b   :  { %s9102_s21 = smov [#allocation13]   ;;  %s9103_s23 = smov [#allocation16]  }
  0x2c   :  { %s97_s22 = sshll.u32 %s9102_s21, 4  ;;  %s123_s26 = sshll.u32 %s9103_s23, 4  ;;  %s98_s22 = int_to_ptr.vmem [resolvable:$true] %s97_s22  ;;  %s124_s26 = int_to_ptr.vmem [resolvable:$true] %s123_s26 }
  0x2d   :  { %s8860_s29 = scalar_lea.hbm %s10599_s8, 32 }
  0x2e   :  { %p8861_p2 = scmp.ne.s32.totalorder %s10599_s8, %s8860_s29  ;;  %p8864_p3 = scmp.lt.u32.totalorder %s8860_s29, %s10599_s8 }
  0x30   :  { %p8866_p4 = pnand %p8864_p3, %p8861_p2 }
  0x32   :  { %8869 = shalt.err (!%p8866_p4)
}
  0x33   :  { %s8870_s5 = scalar_lea.vmem %s98_s22, 32  ;;  %p8875_p6 = scmp.lt.s32.totalorder %s98_s22, %s98_s22 }
  0x34   :  { %p8871_p5 = scmp.ne.s32.totalorder %s98_s22, %s8870_s5  ;;  %p8876_p7 = scmp.lt.s32.totalorder %s8870_s5, %s8870_s5 }
  0x36   :  { %p8877_p8 = por %p8876_p7, %p8875_p6 }
  0x38   :  { %p8878_p9 = pnand %p8877_p8, %p8871_p5 }
  0x3a   :  { %8881 = shalt.err (!%p8878_p9)
}
  0x3b   :  { %100 = dma.hbm_to_vmem [thread:$0]  %s10599_s8, 32, %s98_s22, [#allocation14]  }
  0x3c   :  { %s8882_s23 = scalar_lea.hbm %s10603_s12, 16 }
  0x3d   :  { %p8883_p10 = scmp.ne.s32.totalorder %s10603_s12, %s8882_s23  ;;  %p8886_p11 = scmp.lt.u32.totalorder %s8882_s23, %s10603_s12 }
  0x3f   :  { %p8888_p12 = pnand %p8886_p11, %p8883_p10 }
  0x41   :  { %8891 = shalt.err (!%p8888_p12)
}
  0x42   :  { %s8892_s30 = scalar_lea.vmem %s124_s26, 16  ;;  %s8896_s18 = scalar_lea.vmem %s124_s26, 32 }
  0x43   :  { %p8893_p13 = scmp.ne.s32.totalorder %s124_s26, %s8892_s30  ;;  %p8897_p0 = scmp.lt.s32.totalorder %s124_s26, %s124_s26 }
  0x44   :  { %p8898_p1 = scmp.lt.s32.totalorder %s8896_s18, %s8892_s30 }
  0x46   :  { %p8899_p2 = por %p8898_p1, %p8897_p0 }
  0x48   :  { %p8900_p3 = pnand %p8899_p2, %p8893_p13 }
  0x4a   :  { %8903 = shalt.err (!%p8900_p3)
}
  0x4b   :  { %126 = dma.hbm_to_vmem [thread:$0]  %s10603_s12, 16, %s124_s26, [#allocation17]  }
  0x4c   :  { %s9104_s19 = smov [#allocation4]   ;;  %s9105_s24 = smov [#allocation9]  }
  0x4d   :  { %s35_s5 = sshll.u32 %s9104_s19, 4  ;;  %s61_s1 = sshll.u32 %s9105_s24, 4  ;;  %s36_s5 = int_to_ptr.vmem [resolvable:$true] %s35_s5  ;;  %s62_s1 = int_to_ptr.vmem [resolvable:$true] %s61_s1 }
  0x4e   :  { %s10613_s23 = sld [smem:[#allocation34_spill]] }
  0x54   :  { %s8904_s27 = scalar_lea.hbm %s10613_s23, 256 }
  0x55   :  { %p8905_p4 = scmp.ne.s32.totalorder %s10613_s23, %s8904_s27  ;;  %p8908_p5 = scmp.lt.u32.totalorder %s8904_s27, %s10613_s23 }
  0x57   :  { %p8910_p6 = pnand %p8908_p5, %p8905_p4 }
  0x59   :  { %8913 = shalt.err (!%p8910_p6)
}
  0x5a   :  { %s8914_s12 = scalar_lea.vmem %s36_s5, 256  ;;  %p8919_p8 = scmp.lt.s32.totalorder %s36_s5, %s36_s5 }
  0x5b   :  { %p8915_p7 = scmp.ne.s32.totalorder %s36_s5, %s8914_s12  ;;  %p8920_p9 = scmp.lt.s32.totalorder %s8914_s12, %s8914_s12 }
  0x5d   :  { %p8921_p10 = por %p8920_p9, %p8919_p8 }
  0x5f   :  { %p8922_p11 = pnand %p8921_p10, %p8915_p7 }
  0x61   :  { %8925 = shalt.err (!%p8922_p11)
}
  0x62   :  { %38 = dma.hbm_to_vmem [thread:$0]  %s10613_s23, 256, %s36_s5, [#allocation5]  }
  0x63   :  { %s8926_s19 = scalar_lea.hbm %s10595_s4, 64 }
  0x64   :  { %p8927_p12 = scmp.ne.s32.totalorder %s10595_s4, %s8926_s19  ;;  %p8930_p13 = scmp.lt.u32.totalorder %s8926_s19, %s10595_s4 }
  0x66   :  { %p8932_p0 = pnand %p8930_p13, %p8927_p12 }
  0x68   :  { %8935 = shalt.err (!%p8932_p0)
}
  0x69   :  { %s8936_s28 = scalar_lea.vmem %s62_s1, 64  ;;  %p8941_p2 = scmp.lt.s32.totalorder %s62_s1, %s62_s1 }
  0x6a   :  { %p8937_p1 = scmp.ne.s32.totalorder %s62_s1, %s8936_s28  ;;  %p8942_p3 = scmp.lt.s32.totalorder %s8936_s28, %s8936_s28 }
  0x6c   :  { %p8943_p4 = por %p8942_p3, %p8941_p2 }
  0x6e   :  { %p8944_p5 = pnand %p8943_p4, %p8937_p1 }
  0x70   :  { %8947 = shalt.err (!%p8944_p5)
}
  0x71   :  { %64 = dma.hbm_to_vmem [thread:$0]  %s10595_s4, 64, %s62_s1, [#allocation8]  }
  0x72   :  { %s9106_s29 = smov [#allocation12]   ;;  %s8948_s26 = scalar_lea.hbm %s10598_s7, 16128 }
  0x73   :  { %s84_s0 = sshll.u32 %s9106_s29, 4  ;;  %p8949_p6 = scmp.ne.s32.totalorder %s10598_s7, %s8948_s26  ;;  %s85_s0 = int_to_ptr.vmem [resolvable:$true] %s84_s0 }
  0x74   :  { %p8952_p7 = scmp.lt.u32.totalorder %s8948_s26, %s10598_s7 }
  0x76   :  { %p8954_p8 = pnand %p8952_p7, %p8949_p6 }
  0x78   :  { %8957 = shalt.err (!%p8954_p8)
}
  0x79   :  { %s8958_s24 = scalar_lea.vmem %s85_s0, 16128  ;;  %p8963_p10 = scmp.lt.s32.totalorder %s85_s0, %s85_s0 }
  0x7a   :  { %p8959_p9 = scmp.ne.s32.totalorder %s85_s0, %s8958_s24  ;;  %p8964_p11 = scmp.lt.s32.totalorder %s8958_s24, %s8958_s24 }
  0x7c   :  { %p8965_p12 = por %p8964_p11, %p8963_p10 }
  0x7e   :  { %p8966_p13 = pnand %p8965_p12, %p8959_p9 }
  0x80   :  { %8969 = shalt.err (!%p8966_p13)
}
  0x81   :  { %s9107_s4 = smov 256   ;;  %s9108_s1 = smov 16  }
  0x82   :  { %90 = dma.hbm_to_vmem [thread:$0]  %s10598_s7, 16128, %s85_s0, [#allocation11], %s9107_s4, %s9107_s4, %s9108_s1  }
  0x83   :  { %s9109_s27 = smov [#allocation15]   ;;  %s9110_s5 = smov [#allocation18]  }
  0x84   :  { %s110_s28 = sshll.u32 %s9109_s27, 4  ;;  %s132_s23 = sshll.u32 %s9110_s5, 4  ;;  %s111_s28 = int_to_ptr.vmem [resolvable:$true] %s110_s28  ;;  %s133_s23 = int_to_ptr.vmem [resolvable:$true] %s132_s23 }
  0x85   :  { %s8970_s12 = scalar_lea.hbm %s10602_s11, 4096 }
  0x86   :  { %p8971_p0 = scmp.ne.s32.totalorder %s10602_s11, %s8970_s12  ;;  %p8974_p1 = scmp.lt.u32.totalorder %s8970_s12, %s10602_s11 }
  0x88   :  { %p8976_p2 = pnand %p8974_p1, %p8971_p0 }
  0x8a   :  { %8979 = shalt.err (!%p8976_p2)
}
  0x8b   :  { %s8980_s7 = scalar_lea.vmem %s111_s28, 4096  ;;  %p8985_p4 = scmp.lt.s32.totalorder %s111_s28, %s111_s28 }
  0x8c   :  { %p8981_p3 = scmp.ne.s32.totalorder %s111_s28, %s8980_s7  ;;  %p8986_p5 = scmp.lt.s32.totalorder %s8980_s7, %s8980_s7 }
  0x8e   :  { %p8987_p6 = por %p8986_p5, %p8985_p4 }
  0x90   :  { %p8988_p7 = pnand %p8987_p6, %p8981_p3 }
  0x92   :  { %8991 = shalt.err (!%p8988_p7)
}
  0x93   :  { %116 = dma.hbm_to_vmem [thread:$0]  %s10602_s11, 4096, %s111_s28, [#allocation14], %s9100_s3, %s9100_s3, %s9101_s25  }
  0x94   :  { %s8992_s1 = scalar_lea.hbm %s10604_s13, 256 }
  0x95   :  { %p8993_p8 = scmp.ne.s32.totalorder %s10604_s13, %s8992_s1  ;;  %p8996_p9 = scmp.lt.u32.totalorder %s8992_s1, %s10604_s13 }
  0x97   :  { %p8998_p10 = pnand %p8996_p9, %p8993_p8 }
  0x99   :  { %9001 = shalt.err (!%p8998_p10)
}
  0x9a   :  { %s9002_s29 = scalar_lea.vmem %s133_s23, 256  ;;  %p9007_p12 = scmp.lt.s32.totalorder %s133_s23, %s133_s23 }
  0x9b   :  { %p9003_p11 = scmp.ne.s32.totalorder %s133_s23, %s9002_s29  ;;  %p9008_p13 = scmp.lt.s32.totalorder %s9002_s29, %s9002_s29 }
  0x9d   :  { %p9009_p0 = por %p9008_p13, %p9007_p12 }
  0x9f   :  { %p9010_p1 = pnand %p9009_p0, %p9003_p11 }
  0xa1   :  { %9013 = shalt.err (!%p9010_p1)
}
  0xa2   :  { %138 = dma.hbm_to_vmem [thread:$0]  %s10604_s13, 256, %s133_s23, [#allocation17], %s9100_s3, %s9100_s3, %s9101_s25  }
  0xa3   :  { %s9111_s30 = smov [#allocation19]   ;;  %s9014_s8 = scalar_lea.hbm %s10607_s16, 128 }
  0xa4   :  { %s147_s12 = sshll.u32 %s9111_s30, 4  ;;  %p9015_p2 = scmp.ne.s32.totalorder %s10607_s16, %s9014_s8  ;;  %s148_s12 = int_to_ptr.vmem [resolvable:$true] %s147_s12 }
  0xa5   :  { %p9018_p3 = scmp.lt.u32.totalorder %s9014_s8, %s10607_s16 }
  0xa7   :  { %p9020_p4 = pnand %p9018_p3, %p9015_p2 }
  0xa9   :  { %9023 = shalt.err (!%p9020_p4)
}
  0xaa   :  { %s9024_s24 = scalar_lea.vmem %s148_s12, 128  ;;  %p9029_p6 = scmp.lt.s32.totalorder %s148_s12, %s148_s12 }
  0xab   :  { %p9025_p5 = scmp.ne.s32.totalorder %s148_s12, %s9024_s24  ;;  %p9030_p7 = scmp.lt.s32.totalorder %s9024_s24, %s9024_s24 }
  0xad   :  { %p9031_p8 = por %p9030_p7, %p9029_p6 }
  0xaf   :  { %p9032_p9 = pnand %p9031_p8, %p9025_p5 }
  0xb1   :  { %9035 = shalt.err (!%p9032_p9)
}
  0xb2   :  { %150 = dma.hbm_to_vmem [thread:$0]  %s10607_s16, 128, %s148_s12, [#allocation20]  }
  0xb3   :  { %9080 = dma.done.wait [#allocation5], 256  }
  0xb4   :  { %9081 = vsyncadd [#allocation5], 4294967040 }
  0xb5   :  { %9082 = dma.done.wait [#allocation8], 64064  }
  0xb6   :  { %9083 = vsyncadd [#allocation8], 4294903232 }
  0xb7   :  { %9084 = dma.done.wait [#allocation11], 17152  }
  0xb8   :  { %9085 = vsyncadd [#allocation11], 4294950144 }
  0xb9   :  { %9086 = dma.done.wait [#allocation14], 4128  }
  0xba   :  { %9087 = vsyncadd [#allocation14], 4294963168 }
  0xbb   :  { %9088 = dma.done.wait [#allocation17], 272  }
  0xbc   :  { %9089 = vsyncadd [#allocation17], 4294967024 }
  0xbd   :  { %9090 = dma.done.wait [#allocation20], 128  }
  0xbe   :  { %9091 = vsyncadd [#allocation20], 4294967168  ;;  %v200_v0 = vlaneseq  ;;  %v9112_v1 = vmov 1983009808   ;;  %v192_v6 = vld [vmem:[#allocation4] sm:$0xff]  ;;  %s9113_s16 = smov 1  }
  0xbf   :  { %v198_v2 = vunpack.c.l.s4 %v9112_v1  ;;  %v196_v8 = vcombine.high %v192_v6, %v192_v6  ;;  %v290_v9 = vcombine.low %v192_v6, %v192_v6  ;;  %s9114_s25 = smov 127   ;;  %v9115_v13 = vmov 0.0   ;;  %v193_v15 = vld [vmem:[#allocation4 + $0x8] sm:$0xff]  ;;  %v355_v23 = vld [vmem:[%s10593_s2] sm:$0xff]  ;;  %v358_v26 = vld [vmem:[%s10593_s2 + $0x18] sm:$0xff]  ;;  %s10614_s28 = sld [smem:[#allocation35_spill]] }
  0xc0   :  { %v9346_v3 = vshrl.u32 %v200_v0, 7  ;;  %481 = vmatprep.mubr.f32.mxu1 %v9115_v13  ;;  %659 = vmatprep.mubr.f32.mxu0 %v9115_v13  ;;  %v299_v16 = vcombine.low %v193_v15, %v193_v15  ;;  %v213_v20 = vcombine.high %v193_v15, %v193_v15  ;;  %v356_v24 = vld [vmem:[%s10593_s2 + $0x8] sm:$0xff]  ;;  %v9116_v25 = vmov 0   ;;  %v357_v27 = vld [vmem:[%s10593_s2 + $0x10] sm:$0xff]  ;;  %s9119_s23 = smov 113   ;;  %s9120_s4 = smov [#allocation2]  }
  0xc1   :  { %v199_v4 = vunpack.c.0.s8 %v198_v2  ;;  %8650 = vset.pattern.permute.xlu0 %v9116_v25  ;;  %8651 = vset.pattern.permute.xlu1 %v9116_v25  ;;  %vm246_vm0 = vcmask 7168   ;;  %vm279_vm1 = vcmask 1039360   ;;  %vm333_vm2 = vcmask 1041408   ;;  %v873_v25 = vld [vmem:[#allocation7 + $0x20] sm:$0xff]  ;;  %s188_s1 = sshll.u32 %s9120_s4, 4  ;;  %s9121_s20 = smov 122   ;;  %s189_s1 = int_to_ptr.vmem [resolvable:$true] %s188_s1 }
  0xc2   :  { %vm342_vm3 = vcmask 1043456   ;;  %vm392_vm4 = vcmask 1045504   ;;  %vm379_vm5 = vcmask 48128   ;;  %vm288_vm6 = vcmask 842752   ;;  %s9036_s5 = scalar_lea.hbm %s10606_s15, 128000 }
  0xc3   :  { %v9349_v5 = vsub.s32 %v199_v4, %v9346_v3  ;;  %p9037_p10 = scmp.ne.s32.totalorder %s10606_s15, %s9036_s5  ;;  %p9040_p11 = scmp.lt.u32.totalorder %s9036_s5, %s10606_s15 }
  0xc5   :  { %v9352_v7 = vrot.slane %v192_v6, %v9349_v5  ;;  %v210_v11 = vrot.slane %v196_v8, %v9349_v5  ;;  %v9362_v12 = vrot.slane %v290_v9, %v9349_v5  ;;  %v9375_v17 = vrot.slane %v193_v15, %v9349_v5  ;;  %v9425_v45 = vld [vmem:[%s10614_s28] sm:$0xff]  ;;  %v9438_v53 = vld [vmem:[%s10614_s28 + $0x8] sm:$0xff]  ;;  %v9453_v62 = vld [vmem:[%s10614_s28 + $0x10] sm:$0xff]  ;;  %p9042_p12 = pnand %p9040_p11, %p9037_p10 }
  0xc6   :  { %v9378_v18 = vrot.slane %v299_v16, %v9349_v5  ;;  %v227_v21 = vrot.slane %v213_v20, %v9349_v5  ;;  %v9468_v9 = vld [vmem:[%s10614_s28 + $0x18] sm:$0xff] }
  0xc7   :  { %230 = vrot.lane.b32.xlu1 %v9352_v7, %s9113_s16  ;;  %v9358_v10 = vcombine.high %v9352_v7, %v9352_v7  ;;  %v212_v14 = vcombine.high %v210_v11, %v210_v11  ;;  %v9383_v19 = vcombine.high %v9375_v17, %v9375_v17  ;;  %v298_v30 = vcombine.high %v9362_v12, %v9362_v12  ;;  %v870_v16 = vld [vmem:[#allocation7 + $0x8] sm:$0xff] }
  0xc8   :  { %v229_v22 = vcombine.high %v227_v21, %v227_v21  ;;  %v307_v6 = vcombine.high %v9378_v18, %v9378_v18  ;;  %v874_v20 = vld [vmem:[#allocation7 + $0x28] sm:$0xff] }
  0xc9   :  { %265 = vrot.lane.b32.xlu0 %v9358_v10, %s9114_s25 }
  0xcb   :  { %232 = vrot.lane.b32.xlu1 %v9358_v10, %s9113_s16 }
  0xcd   :  { %267 = vrot.lane.b32.xlu0 %v210_v11, %s9114_s25 }
  0xcf   :  { %269 = vrot.lane.b32.xlu1 %v212_v14, %s9114_s25 }
  0xd1   :  { %263 = vrot.lane.b32.xlu0 %v9352_v7, %s9114_s25 }
  0xd3   :  { %234 = vrot.lane.b32.xlu1 %v210_v11, %s9113_s16 }
  0xd5   :  { %271 = vrot.lane.b32.xlu0 %v9375_v17, %s9114_s25 }
  0xd7   :  { %273 = vrot.lane.b32.xlu1 %v9383_v19, %s9114_s25 }
  0xd9   :  { %236 = vrot.lane.b32.xlu0 %v212_v14, %s9113_s16 }
  0xdb   :  { %238 = vrot.lane.b32.xlu1 %v9375_v17, %s9113_s16 }
  0xdd   :  { %275 = vrot.lane.b32.xlu0 %v227_v21, %s9114_s25 }
  0xdf   :  { %277 = vrot.lane.b32.xlu1 %v229_v22, %s9114_s25 }
  0xe1   :  { %240 = vrot.lane.b32.xlu0 %v9383_v19, %s9113_s16 }
  0xe3   :  { %244 = vrot.lane.b32.xlu1 %v229_v22, %s9113_s16 }
  0xe5   :  { %242 = vrot.lane.b32.xlu0 %v227_v21, %s9113_s16 }
  0xe7   :  { %366 = vperm.xlu1 %8651, %v356_v24   ;;  %v869_v24 = vld [vmem:[#allocation7] sm:$0xff] }
  0xe9   :  { %361 = vperm.xlu0 %8650, %v355_v23  }
  0xeb   :  { %371 = vperm.xlu1 %8651, %v357_v27  }
  0xed   :  { %376 = vperm.xlu0 %8650, %v358_v26  }
 0x139   :  { %v231_v28 = vpop.permute.xlu1 %230 }
 0x13a   :  { %v262_v38 = vsel %vm246_vm0, 0.0, %v231_v28 }
 0x13b   :  { %v266_v29 = vpop.permute.xlu0 %265  ;;  %v334_v44 = vsel %vm333_vm2, %v262_v38, %v9362_v12 }
 0x13d   :  { %v233_v31 = vpop.permute.xlu1 %232 }
 0x13e   :  { %v247_v32 = vsel %vm246_vm0, %v231_v28, %v233_v31 }
 0x13f   :  { %v268_v33 = vpop.permute.xlu0 %267  ;;  %v335_v35 = vsel %vm333_vm2, %v247_v32, %v298_v30  ;;  %v872_v30 = vld [vmem:[#allocation7 + $0x18] sm:$0xff] }
 0x140   :  { %v281_v34 = vsel %vm279_vm1, %v266_v29, %v268_v33 }
 0x141   :  { %v318_v36 = vrot.slane %v281_v34, 4  ;;  %v270_v37 = vpop.permute.xlu1 %269  ;;  %v6708_v34 = vpack.c.bf16 %v873_v25, %v869_v24  ;;  %v918_v24 = vld [vmem:[#allocation7 + $0x188] sm:$0xff] }
 0x142   :  { %v282_v51 = vsel %vm279_vm1, %v268_v33, %v270_v37  ;;  %v876_v33 = vld [vmem:[#allocation7 + $0x38] sm:$0xff]  ;;  %v922_v25 = vld [vmem:[#allocation7 + $0x1a8] sm:$0xff] }
 0x143   :  { %v264_v39 = vpop.permute.xlu0 %263  ;;  %v344_v40 = vsel %vm342_vm3, %v335_v35, %v318_v36  ;;  %v319_v57 = vrot.slane %v282_v51, 4  ;;  %v878_v35 = vld [vmem:[#allocation7 + $0x48] sm:$0xff] }
 0x144   :  { %v280_v41 = vsel %vm279_vm1, %v264_v39, %v266_v29  ;;  %6440 = vmatprep.subr.msk.mxu1 %vm392_vm4, %v344_v40  ;;  %v6706_v29 = vpack.c.bf16 %v874_v20, %v870_v16  ;;  %v882_v36 = vld [vmem:[#allocation7 + $0x68] sm:$0xff]  ;;  %v877_v39 = vld [vmem:[#allocation7 + $0x40] sm:$0xff] }
 0x145   :  { %v317_v42 = vrot.slane %v280_v41, 4  ;;  %v235_v43 = vpop.permute.xlu1 %234  ;;  %v881_v40 = vld [vmem:[#allocation7 + $0x60] sm:$0xff]  ;;  %v898_v51 = vld [vmem:[#allocation7 + $0xe8] sm:$0xff] }
 0x146   :  { %v248_v49 = vsel %vm246_vm0, %v233_v31, %v235_v43 }
 0x147   :  { %v272_v46 = vpop.permute.xlu0 %271  ;;  %v343_v47 = vsel %vm342_vm3, %v334_v44, %v317_v42  ;;  %v336_v55 = vsel %vm333_vm2, %v248_v49, %v9352_v7  ;;  %v6710_v44 = vpack.c.bf16 %v882_v36, %v878_v35  ;;  %v930_v35 = vld [vmem:[#allocation7 + $0x1e8] sm:$0xff] }
 0x148   :  { %v283_v48 = vsel %vm279_vm1, %v270_v37, %v272_v46  ;;  %6441 = vmatpush1.msk.msra.mxu1 %vm392_vm4, %v343_v47  ;;  %v345_v0 = vsel %vm342_vm3, %v336_v55, %v319_v57  ;;  %v885_v47 = vld [vmem:[#allocation7 + $0x80] sm:$0xff]  ;;  %v902_v57 = vld [vmem:[#allocation7 + $0x108] sm:$0xff] }
 0x149   :  { %6442 = vmatmul.mubr.msk.f32.vlgmr.msra.gmra.mrb[0].mxu1 %vm379_vm5, %v9425_v45  ;;  %v274_v50 = vpop.permute.xlu1 %273  ;;  %v320_v52 = vrot.slane %v283_v48, 4  ;;  %v889_v48 = vld [vmem:[#allocation7 + $0xa0] sm:$0xff] }
 0x14a   :  { %487 = vmatprep.mubr.f32.mxu1 %v9115_v13  ;;  %v284_v61 = vsel %vm279_vm1, %v272_v46, %v274_v50  ;;  %v890_v46 = vld [vmem:[#allocation7 + $0xa8] sm:$0xff]  ;;  %v897_v55 = vld [vmem:[#allocation7 + $0xe0] sm:$0xff] }
 0x14b   :  { %v237_v54 = vpop.permute.xlu0 %236  ;;  %v321_v4 = vrot.slane %v284_v61, 4  ;;  %v880_v61 = vld [vmem:[#allocation7 + $0x58] sm:$0xff] }
 0x14c   :  { %v249_v56 = vsel %vm246_vm0, %v235_v43, %v237_v54  ;;  %v6954_v43 = vpack.c.bf16 %v876_v33, %v872_v30 }
 0x14d   :  { %v337_v58 = vsel %vm333_vm2, %v249_v56, %v9358_v10  ;;  %6443 = vmatmul.mubr.msk.f32.gmra.mrb[2].mxu1 %vm379_vm5, %v9438_v53  ;;  %v239_v59 = vpop.permute.xlu1 %238 }
 0x14e   :  { %v346_v60 = vsel %vm342_vm3, %v337_v58, %v320_v52  ;;  %493 = vmatprep.mubr.f32.mxu1 %v9115_v13  ;;  %v250_v1 = vsel %vm246_vm0, %v237_v54, %v239_v59  ;;  %v6716_v52 = vpack.c.bf16 %v889_v48, %v885_v47  ;;  %v893_v54 = vld [vmem:[#allocation7 + $0xc0] sm:$0xff]  ;;  %v906_v58 = vld [vmem:[#allocation7 + $0x128] sm:$0xff]  ;;  %v903_v47 = vld [vmem:[#allocation7 + $0x110] sm:$0xff] }
 0x14f   :  { %v276_v63 = vpop.permute.xlu0 %275  ;;  %6446 = vmatprep.subr.msk.mxu1 %vm392_vm4, %v346_v60  ;;  %v338_v10 = vsel %vm333_vm2, %v250_v1, %v9378_v18  ;;  %v875_v60 = vld [vmem:[#allocation7 + $0x30] sm:$0xff]  ;;  %v6722_v1 = vpack.c.bf16 %v906_v58, %v902_v57  ;;  %v946_v57 = vld [vmem:[#allocation7 + $0x268] sm:$0xff] }
 0x150   :  { %v285_v2 = vsel %vm279_vm1, %v274_v50, %v276_v63  ;;  %6447 = vmatpush1.msk.msra.mxu1 %vm392_vm4, %v345_v0  ;;  %v347_v22 = vsel %vm342_vm3, %v338_v10, %v321_v4  ;;  %v894_v50 = vld [vmem:[#allocation7 + $0xc8] sm:$0xff]  ;;  %v6720_v0 = vpack.c.bf16 %v897_v55, %v893_v54  ;;  %v905_v4 = vld [vmem:[#allocation7 + $0x120] sm:$0xff]  ;;  %v907_v48 = vld [vmem:[#allocation7 + $0x130] sm:$0xff] }
 0x151   :  { %6444 = vmatmul.mubr.msk.f32.gmra.mrb[4].mxu1 %vm379_vm5, %v9453_v62  ;;  %v278_v7 = vpop.permute.xlu1 %277  ;;  %v322_v8 = vrot.slane %v285_v2, 4  ;;  %v6718_v56 = vpack.c.bf16 %v898_v51, %v894_v50  ;;  %v901_v2 = vld [vmem:[#allocation7 + $0x100] sm:$0xff]  ;;  %v916_v50 = vld [vmem:[#allocation7 + $0x178] sm:$0xff]  ;;  %v6972_v55 = vpack.c.bf16 %v907_v48, %v903_v47  ;;  %v947_v47 = vld [vmem:[#allocation7 + $0x270] sm:$0xff] }
 0x152   :  { %499 = vmatprep.mubr.f32.mxu1 %v9115_v13  ;;  %v286_v12 = vsel %vm279_vm1, %v276_v63, %v278_v7  ;;  %v289_v14 = vsel %vm288_vm6, %v278_v7, 0.0  ;;  %v884_v63 = vld [vmem:[#allocation7 + $0x78] sm:$0xff]  ;;  %v910_v7 = vld [vmem:[#allocation7 + $0x148] sm:$0xff]  ;;  %v6724_v16 = vpack.c.bf16 %v905_v4, %v901_v2  ;;  %v937_v54 = vld [vmem:[#allocation7 + $0x220] sm:$0xff] }
 0x153   :  { %v241_v11 = vpop.permute.xlu0 %240  ;;  %v323_v26 = vrot.slane %v286_v12, 4  ;;  %v324_v27 = vrot.slane %v289_v14, 4  ;;  %v6958_v10 = vpack.c.bf16 %v884_v63, %v880_v61  ;;  %v883_v12 = vld [vmem:[#allocation7 + $0x70] sm:$0xff]  ;;  %v888_v14 = vld [vmem:[#allocation7 + $0x98] sm:$0xff]  ;;  %v941_v2 = vld [vmem:[#allocation7 + $0x240] sm:$0xff] }
 0x154   :  { %v251_v15 = vsel %vm246_vm0, %v239_v59, %v241_v11  ;;  %v871_v59 = vld [vmem:[#allocation7 + $0x10] sm:$0xff]  ;;  %v920_v61 = vld [vmem:[#allocation7 + $0x198] sm:$0xff] }
 0x155   :  { %6445 = vmatmul.mubr.msk.f32.gmra.mrb[6].mxu1 %vm379_vm5, %v9468_v9  ;;  %v339_v21 = vsel %vm333_vm2, %v251_v15, %v307_v6  ;;  %v245_v23 = vpop.permute.xlu1 %244  ;;  %v6956_v6 = vpack.c.bf16 %v875_v60, %v871_v59  ;;  %v892_v15 = vld [vmem:[#allocation7 + $0xb8] sm:$0xff]  ;;  %v911_v59 = vld [vmem:[#allocation7 + $0x150] sm:$0xff] }
 0x156   :  { %v348_v18 = vsel %vm342_vm3, %v339_v21, %v322_v8  ;;  %570 = vmatprep.mubr.f32.mxu1 %v9115_v13  ;;  %v914_v8 = vld [vmem:[#allocation7 + $0x168] sm:$0xff]  ;;  %v909_v21 = vld [vmem:[#allocation7 + $0x140] sm:$0xff]  ;;  %v915_v60 = vld [vmem:[#allocation7 + $0x170] sm:$0xff] }
 0x157   :  { %6452 = vmatprep.subr.msk.mxu0 %vm392_vm4, %v348_v18  ;;  %v243_v28 = vpop.permute.xlu0 %242  ;;  %v6726_v20 = vpack.c.bf16 %v914_v8, %v910_v7  ;;  %v6962_v18 = vpack.c.bf16 %v892_v15, %v888_v14  ;;  %v924_v63 = vld [vmem:[#allocation7 + $0x1b8] sm:$0xff]  ;;  %v6976_v4 = vpack.c.bf16 %v915_v60, %v911_v59  ;;  %v954_v7 = vld [vmem:[#allocation7 + $0x2a8] sm:$0xff]  ;;  %v955_v59 = vld [vmem:[#allocation7 + $0x2b0] sm:$0xff] }
 0x158   :  { %6453 = vmatpush1.msk.msra.mxu0 %vm392_vm4, %v347_v22  ;;  %v252_v31 = vsel %vm246_vm0, %v241_v11, %v243_v28  ;;  %v253_v32 = vsel %vm246_vm0, %v243_v28, %v245_v23  ;;  %v879_v11 = vld [vmem:[#allocation7 + $0x50] sm:$0xff]  ;;  %v913_v22 = vld [vmem:[#allocation7 + $0x160] sm:$0xff]  ;;  %v896_v28 = vld [vmem:[#allocation7 + $0xd8] sm:$0xff]  ;;  %v6978_v8 = vpack.c.bf16 %v924_v63, %v920_v61 }
 0x159   :  { %6448 = vmatmul.mubr.msk.f32.vlgmr.msra.gmra.mrb[8].mxu1 %vm379_vm5, %v9425_v45  ;;  %6454 = vmatmul.mubr.msk.f32.vlgmr.msra.gmra.mrb[0].mxu0 %vm379_vm5, %v9425_v45  ;;  %v340_v37 = vsel %vm333_vm2, %v252_v31, %v9375_v17  ;;  %v341_v38 = vsel %vm333_vm2, %v253_v32, %v9383_v19  ;;  %v6712_v17 = vpack.c.bf16 %v881_v40, %v877_v39  ;;  %v886_v19 = vld [vmem:[#allocation7 + $0x88] sm:$0xff]  ;;  %v917_v31 = vld [vmem:[#allocation7 + $0x180] sm:$0xff]  ;;  %v904_v39 = vld [vmem:[#allocation7 + $0x118] sm:$0xff] }
 0x15a   :  { %576 = vmatprep.mubr.f32.mxu1 %v9115_v13  ;;  %665 = vmatprep.mubr.f32.mxu0 %v9115_v13  ;;  %v350_v41 = vsel %vm342_vm3, %v341_v38, %v324_v27  ;;  %v349_v42 = vsel %vm342_vm3, %v340_v37, %v323_v26  ;;  %v6714_v49 = vpack.c.bf16 %v890_v46, %v886_v19  ;;  %v887_v26 = vld [vmem:[#allocation7 + $0x90] sm:$0xff]  ;;  %v921_v32 = vld [vmem:[#allocation7 + $0x1a0] sm:$0xff]  ;;  %v908_v40 = vld [vmem:[#allocation7 + $0x138] sm:$0xff] }
 0x15b   :  { %6458 = vmatprep.subr.msk.mxu1 %vm392_vm4, %v350_v41  ;;  %6707 = vmatprep.subr.bf16.mxu0 %v6706_v29  ;;  %v6960_v23 = vpack.c.bf16 %v883_v12, %v879_v11  ;;  %v891_v27 = vld [vmem:[#allocation7 + $0xb0] sm:$0xff]  ;;  %v900_v29 = vld [vmem:[#allocation7 + $0xf8] sm:$0xff]  ;;  %v6728_v30 = vpack.c.bf16 %v913_v22, %v909_v21  ;;  %v6732_v41 = vpack.c.bf16 %v921_v32, %v917_v31  ;;  %v938_v19 = vld [vmem:[#allocation7 + $0x228] sm:$0xff] }
 0x15c   :  { %6459 = vmatpush1.msk.msra.mxu1 %vm392_vm4, %v349_v42  ;;  %6709 = vmatpush1.bf16.msra.mxu0 %v6708_v34  ;;  %v6964_v33 = vpack.c.bf16 %v891_v27, %v887_v26  ;;  %v926_v34 = vld [vmem:[#allocation7 + $0x1c8] sm:$0xff]  ;;  %v6966_v36 = vpack.c.bf16 %v900_v29, %v896_v28  ;;  %v895_v37 = vld [vmem:[#allocation7 + $0xd0] sm:$0xff]  ;;  %v925_v42 = vld [vmem:[#allocation7 + $0x1c0] sm:$0xff]  ;;  %v6970_v46 = vpack.c.bf16 %v908_v40, %v904_v39 }
 0x15d   :  { %6449 = vmatmul.mubr.msk.f32.gmra.mrb[10].mxu1 %vm379_vm5, %v9438_v53  ;;  %6455 = vmatmul.mubr.msk.f32.gmra.mrb[2].mxu0 %vm379_vm5, %v9438_v53  ;;  %v899_v38 = vld [vmem:[#allocation7 + $0xf0] sm:$0xff]  ;;  %v928_v12 = vld [vmem:[#allocation7 + $0x1d8] sm:$0xff]  ;;  %v953_v21 = vld [vmem:[#allocation7 + $0x2a0] sm:$0xff] }
 0x15e   :  { %582 = vmatprep.mubr.f32.mxu1 %v9115_v13  ;;  %671 = vmatprep.mubr.f32.mxu0 %v9115_v13  ;;  %v923_v11 = vld [vmem:[#allocation7 + $0x1b0] sm:$0xff]  ;;  %v932_v14 = vld [vmem:[#allocation7 + $0x1f8] sm:$0xff]  ;;  %v961_v31 = vld [vmem:[#allocation7 + $0x2e0] sm:$0xff] }
 0x15f   :  { %6955 = vmatprep.subr.bf16.mxu1 %v6954_v43  ;;  %6711 = vmatprep.subr.bf16.mxu0 %v6710_v44  ;;  %v929_v43 = vld [vmem:[#allocation7 + $0x1e0] sm:$0xff]  ;;  %v6968_v44 = vpack.c.bf16 %v899_v38, %v895_v37  ;;  %v931_v26 = vld [vmem:[#allocation7 + $0x1f0] sm:$0xff]  ;;  %v936_v27 = vld [vmem:[#allocation7 + $0x218] sm:$0xff] }
 0x160   :  { %6713 = vmatpush1.bf16.msra.mxu0 %v6712_v17  ;;  %v934_v17 = vld [vmem:[#allocation7 + $0x208] sm:$0xff]  ;;  %v6736_v51 = vpack.c.bf16 %v929_v43, %v925_v42  ;;  %v940_v28 = vld [vmem:[#allocation7 + $0x238] sm:$0xff]  ;;  %v939_v37 = vld [vmem:[#allocation7 + $0x230] sm:$0xff] }
 0x161   :  { %6450 = vmatmul.mubr.msk.f32.gmra.mrb[12].mxu1 %vm379_vm5, %v9453_v62  ;;  %6456 = vmatmul.mubr.msk.f32.gmra.mrb[4].mxu0 %vm379_vm5, %v9453_v62  ;;  %v944_v38 = vld [vmem:[#allocation7 + $0x258] sm:$0xff]  ;;  %v969_v42 = vld [vmem:[#allocation7 + $0x320] sm:$0xff] }
 0x162   :  { %588 = vmatprep.mubr.f32.mxu1 %v9115_v13  ;;  %677 = vmatprep.mubr.f32.mxu0 %v9115_v13  ;;  %v948_v39 = vld [vmem:[#allocation7 + $0x278] sm:$0xff] }
 0x163   :  { %6715 = vmatprep.subr.bf16.mxu0 %v6714_v49  ;;  %v912_v49 = vld [vmem:[#allocation7 + $0x158] sm:$0xff] }
 0x164   :  { %6717 = vmatpush1.bf16.msra.mxu0 %v6716_v52  ;;  %v933_v52 = vld [vmem:[#allocation7 + $0x200] sm:$0xff]  ;;  %v6974_v58 = vpack.c.bf16 %v916_v50, %v912_v49  ;;  %v952_v48 = vld [vmem:[#allocation7 + $0x298] sm:$0xff] }
 0x165   :  { %6451 = vmatmul.mubr.msk.f32.gmra.mrb[14].mxu1 %vm379_vm5, %v9468_v9  ;;  %6457 = vmatmul.mubr.msk.f32.gmra.mrb[6].mxu0 %vm379_vm5, %v9468_v9  ;;  %v956_v49 = vld [vmem:[#allocation7 + $0x2b8] sm:$0xff] }
 0x166   :  { %748 = vmatprep.mubr.f32.mxu1 %v9115_v13  ;;  %6719 = vmatprep.subr.bf16.mxu0 %v6718_v56  ;;  %v942_v56 = vld [vmem:[#allocation7 + $0x248] sm:$0xff]  ;;  %v960_v60 = vld [vmem:[#allocation7 + $0x2d8] sm:$0xff] }
 0x167   :  { %v964_v61 = vld [vmem:[#allocation7 + $0x2f8] sm:$0xff] }
 0x168   :  { %6721 = vmatpush1.bf16.msra.mxu0 %v6720_v0  ;;  %v6740_v0 = vpack.c.bf16 %v937_v54, %v933_v52  ;;  %v977_v52 = vld [vmem:[#allocation7 + $0x360] sm:$0xff] }
 0x169   :  { %6460 = vmatmul.mubr.msk.f32.vlgmr.msra.gmra.mrb[16].mxu1 %vm379_vm5, %v9425_v45  ;;  %6723 = vmatprep.subr.bf16.mxu0 %v6722_v1  ;;  %v6730_v45 = vpack.c.bf16 %v922_v25, %v918_v24  ;;  %v6742_v1 = vpack.c.bf16 %v946_v57, %v942_v56  ;;  %v962_v24 = vld [vmem:[#allocation7 + $0x2e8] sm:$0xff]  ;;  %v6982_v25 = vpack.c.bf16 %v932_v14, %v928_v12  ;;  %v971_v12 = vld [vmem:[#allocation7 + $0x330] sm:$0xff]  ;;  %v976_v14 = vld [vmem:[#allocation7 + $0x358] sm:$0xff] }
 0x16a   :  { %754 = vmatprep.mubr.f32.mxu1 %v9115_v13  ;;  %6957 = vmatpush1.bf16.msra.mxu1 %v6956_v6  ;;  %v950_v6 = vld [vmem:[#allocation7 + $0x288] sm:$0xff]  ;;  %v6994_v57 = vpack.c.bf16 %v956_v49, %v952_v48  ;;  %v9528_v49 = vpop.permute.xlu1 %366 }
 0x16b   :  { %6959 = vmatprep.subr.bf16.mxu1 %v6958_v10  ;;  %v919_v10 = vld [vmem:[#allocation7 + $0x190] sm:$0xff]  ;;  %v986_v56 = vld [vmem:[#allocation7 + $0x3a8] sm:$0xff] }
 0x16c   :  { %6725 = vmatpush1.bf16.msra.mxu0 %v6724_v16  ;;  %v6746_v16 = vpack.c.bf16 %v954_v7, %v950_v6  ;;  %v6980_v22 = vpack.c.bf16 %v923_v11, %v919_v10  ;;  %v968_v6 = vld [vmem:[#allocation7 + $0x318] sm:$0xff]  ;;  %v967_v11 = vld [vmem:[#allocation7 + $0x310] sm:$0xff] }
 0x16d   :  { %6461 = vmatmul.mubr.msk.f32.gmra.mrb[18].mxu1 %vm379_vm5, %v9438_v53  ;;  %6727 = vmatprep.subr.bf16.mxu0 %v6726_v20  ;;  %v6734_v53 = vpack.c.bf16 %v930_v35, %v926_v34  ;;  %v949_v20 = vld [vmem:[#allocation7 + $0x280] sm:$0xff]  ;;  %v970_v34 = vld [vmem:[#allocation7 + $0x328] sm:$0xff]  ;;  %v6986_v35 = vpack.c.bf16 %v940_v28, %v936_v27  ;;  %v972_v7 = vld [vmem:[#allocation7 + $0x338] sm:$0xff] }
 0x16e   :  { %760 = vmatprep.mubr.f32.mxu1 %v9115_v13  ;;  %6961 = vmatpush1.bf16.msra.mxu1 %v6960_v23  ;;  %v958_v23 = vld [vmem:[#allocation7 + $0x2c8] sm:$0xff]  ;;  %v6748_v29 = vpack.c.bf16 %v953_v21, %v949_v20  ;;  %v7002_v10 = vpack.c.bf16 %v972_v7, %v968_v6  ;;  %v975_v21 = vld [vmem:[#allocation7 + $0x350] sm:$0xff]  ;;  %v1009_v7 = vld [vmem:[#allocation7 + $0x460] sm:$0xff] }
 0x16f   :  { %6963 = vmatprep.subr.bf16.mxu1 %v6962_v18  ;;  %v927_v18 = vld [vmem:[#allocation7 + $0x1d0] sm:$0xff] }
 0x170   :  { %6729 = vmatpush1.bf16.msra.mxu0 %v6728_v30  ;;  %v6750_v30 = vpack.c.bf16 %v962_v24, %v958_v23  ;;  %v6984_v32 = vpack.c.bf16 %v931_v26, %v927_v18  ;;  %v984_v23 = vld [vmem:[#allocation7 + $0x398] sm:$0xff]  ;;  %v985_v18 = vld [vmem:[#allocation7 + $0x3a0] sm:$0xff] }
 0x171   :  { %6462 = vmatmul.mubr.msk.f32.gmra.mrb[20].mxu1 %vm379_vm5, %v9453_v62  ;;  %6731 = vmatprep.subr.bf16.mxu0 %v6730_v45  ;;  %v6738_v62 = vpack.c.bf16 %v938_v19, %v934_v17  ;;  %v957_v45 = vld [vmem:[#allocation7 + $0x2c0] sm:$0xff]  ;;  %v978_v17 = vld [vmem:[#allocation7 + $0x368] sm:$0xff]  ;;  %v6990_v19 = vpack.c.bf16 %v948_v39, %v944_v38  ;;  %v988_v24 = vld [vmem:[#allocation7 + $0x3b8] sm:$0xff] }
 0x172   :  { %766 = vmatprep.mubr.f32.mxu1 %v9115_v13  ;;  %6965 = vmatpush1.bf16.msra.mxu1 %v6964_v33  ;;  %v966_v33 = vld [vmem:[#allocation7 + $0x308] sm:$0xff]  ;;  %v6752_v40 = vpack.c.bf16 %v961_v31, %v957_v45  ;;  %v7010_v28 = vpack.c.bf16 %v988_v24, %v984_v23  ;;  %v1016_v24 = vld [vmem:[#allocation7 + $0x498] sm:$0xff] }
 0x173   :  { %6967 = vmatprep.subr.bf16.mxu1 %v6966_v36  ;;  %v935_v36 = vld [vmem:[#allocation7 + $0x210] sm:$0xff]  ;;  %v990_v45 = vld [vmem:[#allocation7 + $0x3c8] sm:$0xff] }
 0x174   :  { %6733 = vmatpush1.bf16.msra.mxu0 %v6732_v41  ;;  %v6754_v41 = vpack.c.bf16 %v970_v34, %v966_v33  ;;  %v6988_v43 = vpack.c.bf16 %v939_v37, %v935_v36  ;;  %v994_v31 = vld [vmem:[#allocation7 + $0x3e8] sm:$0xff]  ;;  %v996_v34 = vld [vmem:[#allocation7 + $0x3f8] sm:$0xff]  ;;  %v993_v36 = vld [vmem:[#allocation7 + $0x3e0] sm:$0xff] }
 0x175   :  { %6463 = vmatmul.mubr.msk.f32.gmra.mrb[22].mxu1 %vm379_vm5, %v9468_v9  ;;  %6735 = vmatprep.subr.bf16.mxu0 %v6734_v53  ;;  %v945_v9 = vld [vmem:[#allocation7 + $0x260] sm:$0xff]  ;;  %v6766_v33 = vpack.c.bf16 %v994_v31, %v990_v45 }
 0x176   :  { %6969 = vmatpush1.bf16.msra.mxu1 %v6968_v44  ;;  %v6744_v15 = vpack.c.bf16 %v945_v9, %v941_v2  ;;  %v965_v53 = vld [vmem:[#allocation7 + $0x300] sm:$0xff]  ;;  %v974_v44 = vld [vmem:[#allocation7 + $0x348] sm:$0xff]  ;;  %v6998_v2 = vpack.c.bf16 %v964_v61, %v960_v60  ;;  %v959_v9 = vld [vmem:[#allocation7 + $0x2d0] sm:$0xff] }
 0x177   :  { %6971 = vmatprep.subr.bf16.mxu1 %v6970_v46  ;;  %v943_v46 = vld [vmem:[#allocation7 + $0x250] sm:$0xff]  ;;  %v6756_v50 = vpack.c.bf16 %v969_v42, %v965_v53  ;;  %v998_v53 = vld [vmem:[#allocation7 + $0x408] sm:$0xff]  ;;  %v1008_v60 = vld [vmem:[#allocation7 + $0x458] sm:$0xff] }
 0x178   :  { %6737 = vmatpush1.bf16.msra.mxu0 %v6736_v51  ;;  %v6758_v51 = vpack.c.bf16 %v978_v17, %v974_v44  ;;  %v6992_v54 = vpack.c.bf16 %v947_v47, %v943_v46  ;;  %v1002_v42 = vld [vmem:[#allocation7 + $0x428] sm:$0xff]  ;;  %v1004_v17 = vld [vmem:[#allocation7 + $0x438] sm:$0xff]  ;;  %v9526_v47 = vpop.permute.xlu0 %361 }
 0x179   :  { %6739 = vmatprep.subr.bf16.mxu0 %v6738_v62  ;;  %v973_v62 = vld [vmem:[#allocation7 + $0x340] sm:$0xff]  ;;  %v6770_v44 = vpack.c.bf16 %v1002_v42, %v998_v53  ;;  %v1012_v61 = vld [vmem:[#allocation7 + $0x478] sm:$0xff] }
 0x17a   :  { %6973 = vmatpush1.bf16.msra.mxu1 %v6972_v55  ;;  %v982_v55 = vld [vmem:[#allocation7 + $0x388] sm:$0xff]  ;;  %v6760_v63 = vpack.c.bf16 %v977_v52, %v973_v62  ;;  %v997_v62 = vld [vmem:[#allocation7 + $0x400] sm:$0xff]  ;;  %v1024_v53 = vld [vmem:[#allocation7 + $0x4d8] sm:$0xff] }
 0x17b   :  { %6975 = vmatprep.subr.bf16.mxu1 %v6974_v58  ;;  %v951_v58 = vld [vmem:[#allocation7 + $0x290] sm:$0xff]  ;;  %v1001_v52 = vld [vmem:[#allocation7 + $0x420] sm:$0xff]  ;;  %v1028_v42 = vld [vmem:[#allocation7 + $0x4f8] sm:$0xff] }
 0x17c   :  { %6741 = vmatpush1.bf16.msra.mxu0 %v6740_v0  ;;  %v6762_v0 = vpack.c.bf16 %v986_v56, %v982_v55  ;;  %v999_v55 = vld [vmem:[#allocation7 + $0x410] sm:$0xff] }
 0x17d   :  { %6743 = vmatprep.subr.bf16.mxu0 %v6742_v1  ;;  %v6996_v1 = vpack.c.bf16 %v955_v59, %v951_v58  ;;  %v1003_v56 = vld [vmem:[#allocation7 + $0x430] sm:$0xff]  ;;  %v1010_v59 = vld [vmem:[#allocation7 + $0x468] sm:$0xff] }
 0x17e   :  { %6977 = vmatpush1.bf16.msra.mxu1 %v6976_v4  ;;  %v963_v4 = vld [vmem:[#allocation7 + $0x2f0] sm:$0xff] }
 0x17f   :  { %6979 = vmatprep.subr.bf16.mxu1 %v6978_v8  ;;  %v7000_v8 = vpack.c.bf16 %v963_v4, %v959_v9  ;;  %v6772_v9 = vpack.c.bf16 %v1001_v52, %v997_v62  ;;  %v7020_v4 = vpack.c.bf16 %v1003_v56, %v999_v55  ;;  %v1021_v52 = vld [vmem:[#allocation7 + $0x4c0] sm:$0xff]  ;;  %v1023_v55 = vld [vmem:[#allocation7 + $0x4d0] sm:$0xff] }
 0x180   :  { %6745 = vmatpush1.bf16.msra.mxu0 %v6744_v15  ;;  %v980_v15 = vld [vmem:[#allocation7 + $0x378] sm:$0xff] }
 0x181   :  { %6747 = vmatprep.subr.bf16.mxu0 %v6746_v16  ;;  %v7004_v16 = vpack.c.bf16 %v971_v12, %v967_v11  ;;  %v7006_v20 = vpack.c.bf16 %v980_v15, %v976_v14  ;;  %v9533_v12 = vpop.permute.xlu1 %371 }
 0x182   :  { %6981 = vmatpush1.bf16.msra.mxu1 %v6980_v22  ;;  %v979_v22 = vld [vmem:[#allocation7 + $0x370] sm:$0xff] }
 0x183   :  { %6983 = vmatprep.subr.bf16.mxu1 %v6982_v25  ;;  %v981_v25 = vld [vmem:[#allocation7 + $0x380] sm:$0xff]  ;;  %v7008_v26 = vpack.c.bf16 %v979_v22, %v975_v21  ;;  %v1018_v21 = vld [vmem:[#allocation7 + $0x4a8] sm:$0xff] }
 0x184   :  { %6749 = vmatpush1.bf16.msra.mxu0 %v6748_v29  ;;  %v6764_v27 = vpack.c.bf16 %v985_v18, %v981_v25  ;;  %v983_v29 = vld [vmem:[#allocation7 + $0x390] sm:$0xff]  ;;  %v1020_v25 = vld [vmem:[#allocation7 + $0x4b8] sm:$0xff] }
 0x185   :  { %6751 = vmatprep.subr.bf16.mxu0 %v6750_v30  ;;  %v987_v30 = vld [vmem:[#allocation7 + $0x3b0] sm:$0xff] }
 0x186   :  { %6985 = vmatpush1.bf16.msra.mxu1 %v6984_v32  ;;  %v992_v32 = vld [vmem:[#allocation7 + $0x3d8] sm:$0xff]  ;;  %v7012_v37 = vpack.c.bf16 %v987_v30, %v983_v29  ;;  %v1013_v29 = vld [vmem:[#allocation7 + $0x480] sm:$0xff] }
 0x187   :  { %6987 = vmatprep.subr.bf16.mxu1 %v6986_v35  ;;  %v989_v35 = vld [vmem:[#allocation7 + $0x3c0] sm:$0xff]  ;;  %v7014_v39 = vpack.c.bf16 %v996_v34, %v992_v32  ;;  %v1015_v34 = vld [vmem:[#allocation7 + $0x490] sm:$0xff] }
 0x188   :  { %6753 = vmatpush1.bf16.msra.mxu0 %v6752_v40  ;;  %v6768_v38 = vpack.c.bf16 %v993_v36, %v989_v35  ;;  %v991_v40 = vld [vmem:[#allocation7 + $0x3d0] sm:$0xff] }
 0x189   :  { %6755 = vmatprep.subr.bf16.mxu0 %v6754_v41  ;;  %v995_v41 = vld [vmem:[#allocation7 + $0x3f0] sm:$0xff] }
 0x18a   :  { %6989 = vmatpush1.bf16.msra.mxu1 %v6988_v43  ;;  %v1000_v43 = vld [vmem:[#allocation7 + $0x418] sm:$0xff]  ;;  %v1019_v35 = vld [vmem:[#allocation7 + $0x4b0] sm:$0xff] }
 0x18b   :  { %6991 = vmatprep.subr.bf16.mxu1 %v6990_v19  ;;  %v7016_v19 = vpack.c.bf16 %v995_v41, %v991_v40  ;;  %v7018_v46 = vpack.c.bf16 %v1004_v17, %v1000_v43  ;;  %v1026_v40 = vld [vmem:[#allocation7 + $0x4e8] sm:$0xff]  ;;  %v9539_v43 = vpop.permute.xlu0 %376 }
 0x18c   :  { %6757 = vmatpush1.bf16.msra.mxu0 %v6756_v50 }
 0x18d   :  { %6759 = vmatprep.subr.bf16.mxu0 %v6758_v51 }
 0x18e   :  { %6993 = vmatpush1.bf16.msra.mxu1 %v6992_v54 }
 0x18f   :  { %6995 = vmatprep.subr.bf16.mxu1 %v6994_v57  ;;  %v1006_v57 = vld [vmem:[#allocation7 + $0x448] sm:$0xff] }
 0x190   :  { %6761 = vmatpush1.bf16.msra.mxu0 %v6760_v63  ;;  %v6774_v15 = vpack.c.bf16 %v1010_v59, %v1006_v57  ;;  %v1027_v59 = vld [vmem:[#allocation7 + $0x4f0] sm:$0xff] }
 0x191   :  { %6763 = vmatprep.subr.bf16.mxu0 %v6762_v0 }
 0x192   :  { %6997 = vmatpush1.bf16.msra.mxu1 %v6996_v1  ;;  %v1005_v1 = vld [vmem:[#allocation7 + $0x440] sm:$0xff] }
 0x193   :  { %6999 = vmatprep.subr.bf16.mxu1 %v6998_v2 }
 0x194   :  { %6765 = vmatpush1.bf16.msra.mxu0 %v6764_v27  ;;  %v6776_v27 = vpack.c.bf16 %v1009_v7, %v1005_v1  ;;  %v1036_v1 = vld [vmem:[#allocation7 + $0x538] sm:$0xff] }
 0x195   :  { %6767 = vmatprep.subr.bf16.mxu0 %v6766_v33  ;;  %v1017_v33 = vld [vmem:[#allocation7 + $0x4a0] sm:$0xff] }
 0x196   :  { %7001 = vmatpush1.bf16.msra.mxu1 %v7000_v8  ;;  %v1007_v8 = vld [vmem:[#allocation7 + $0x450] sm:$0xff] }
 0x197   :  { %7003 = vmatprep.subr.bf16.mxu1 %v7002_v10  ;;  %v1011_v10 = vld [vmem:[#allocation7 + $0x470] sm:$0xff] }
 0x198   :  { %6769 = vmatpush1.bf16.msra.mxu0 %v6768_v38  ;;  %v7026_v38 = vpack.c.bf16 %v1020_v25, %v1016_v24  ;;  %v1038_v24 = vld [vmem:[#allocation7 + $0x548] sm:$0xff] }
 0x199   :  { %6771 = vmatprep.subr.bf16.mxu0 %v6770_v44 }
 0x19a   :  { %7005 = vmatpush1.bf16.msra.mxu1 %v7004_v16  ;;  %v7022_v16 = vpack.c.bf16 %v1012_v61, %v1008_v60  ;;  %v1030_v60 = vld [vmem:[#allocation7 + $0x508] sm:$0xff] }
 0x19b   :  { %7007 = vmatprep.subr.bf16.mxu1 %v7006_v20  ;;  %v1014_v20 = vld [vmem:[#allocation7 + $0x488] sm:$0xff] }
 0x19c   :  { %v6778_v31 = vpack.c.bf16 %v1018_v21, %v1014_v20  ;;  %v1034_v61 = vld [vmem:[#allocation7 + $0x528] sm:$0xff] }
 0x19e   :  { %7009 = vmatpush1.bf16.msra.mxu1 %v7008_v26 }
 0x19f   :  { %7011 = vmatprep.subr.bf16.mxu1 %v7010_v28  ;;  %v7024_v28 = vpack.c.bf16 %v1011_v10, %v1007_v8  ;;  %v7032_v10 = vpack.c.bf16 %v1027_v59, %v1023_v55  ;;  %v1058_v59 = vld [vmem:[#allocation7 + $0x5e8] sm:$0xff] }
 0x1a2   :  { %7013 = vmatpush1.bf16.msra.mxu1 %v7012_v37 }
 0x1a3   :  { %7015 = vmatprep.subr.bf16.mxu1 %v7014_v39  ;;  %v1022_v39 = vld [vmem:[#allocation7 + $0x4c8] sm:$0xff] }
 0x1a4   :  { %v6782_v62 = vpack.c.bf16 %v1026_v40, %v1022_v39  ;;  %v1039_v39 = vld [vmem:[#allocation7 + $0x550] sm:$0xff] }
 0x1a5   :  { %v1043_v40 = vld [vmem:[#allocation7 + $0x570] sm:$0xff] }
 0x1a6   :  { %7017 = vmatpush1.bf16.msra.mxu1 %v7016_v19  ;;  %v6780_v19 = vpack.c.bf16 %v1017_v33, %v1013_v29  ;;  %v1037_v33 = vld [vmem:[#allocation7 + $0x540] sm:$0xff] }
 0x1a7   :  { %7019 = vmatprep.subr.bf16.mxu1 %v7018_v46  ;;  %v7028_v46 = vpack.c.bf16 %v1019_v35, %v1015_v34  ;;  %v1041_v34 = vld [vmem:[#allocation7 + $0x560] sm:$0xff] }
 0x21c   :  { %v483_v48 = vpop.f32.mrb[0].mxu1 }
 0x21d   :  { %v484_v50 = vadd.f32 %v483_v48, %v9526_v47  ;;  %v485_v51 = vpop.f32.mrb[1].mxu1 }
 0x21e   :  { %v486_v54 = vadd.f32 %v485_v51, %v9526_v47 }
 0x21f   :  { %v805_v58 = vmul.f32 0.01, %v484_v50  ;;  %vm773_vm7 = vcmp.gt.f32.partialorder %v484_v50, 0.0 }
 0x220   :  { %v806_v63 = vmul.f32 0.01, %v486_v54  ;;  %v489_v0 = vpop.f32.mrb[2].mxu1  ;;  %vm774_vm8 = vcmp.gt.f32.partialorder %v486_v54, 0.0 }
 0x221   :  { %v491_v2 = vpop.f32.mrb[3].mxu1  ;;  %v490_v6 = vadd.f32 %v489_v0, %v9528_v49  ;;  %v837_v22 = vsel %vm773_vm7, %v484_v50, %v805_v58  ;;  %v7030_v58 = vpack.c.bf16 %v1028_v42, %v1024_v53  ;;  %v1032_v0 = vld [vmem:[#allocation7 + $0x518] sm:$0xff]  ;;  %v1050_v53 = vld [vmem:[#allocation7 + $0x5a8] sm:$0xff] }
 0x222   :  { %v838_v11 = vsel %vm774_vm8, %v486_v54, %v806_v63  ;;  %v492_v14 = vadd.f32 %v491_v2, %v9528_v49  ;;  %v1025_v54 = vld [vmem:[#allocation7 + $0x4e0] sm:$0xff]  ;;  %v7034_v21 = vpack.c.bf16 %v1036_v1, %v1032_v0  ;;  %v1048_v42 = vld [vmem:[#allocation7 + $0x598] sm:$0xff] }
 0x223   :  { %1468 = vmatprep.mubr.f32.mxu0 %v838_v11  ;;  %1824 = vmatprep.mubr.f32.mxu1 %v838_v11  ;;  %vm781_vm9 = vcmp.gt.f32.partialorder %v490_v6, 0.0  ;;  %v813_v23 = vmul.f32 0.01, %v490_v6  ;;  %v6784_v8 = vpack.c.bf16 %v1025_v54, %v1021_v52  ;;  %v6786_v11 = vpack.c.bf16 %v1034_v61, %v1030_v60  ;;  %v1049_v52 = vld [vmem:[#allocation7 + $0x5a0] sm:$0xff]  ;;  %v1056_v60 = vld [vmem:[#allocation7 + $0x5d8] sm:$0xff] }
 0x224   :  { %v495_v18 = vpop.f32.mrb[4].mxu1  ;;  %1469 = vmatmul.mubr.f32.vlgmr.msra.gmra.mrb[8].mxu0 %v837_v22  ;;  %1825 = vmatmul.mubr.f32.vlgmr.msra.gmra.mrb[24].mxu1 %v837_v22  ;;  %vm782_vm10 = vcmp.gt.f32.partialorder %v492_v14, 0.0  ;;  %v814_v26 = vmul.f32 0.01, %v492_v14  ;;  %v1031_v22 = vld [vmem:[#allocation7 + $0x510] sm:$0xff]  ;;  %v1060_v61 = vld [vmem:[#allocation7 + $0x5f8] sm:$0xff] }
 0x225   :  { %6773 = vmatpush1.bf16.msra.mxu0 %v6772_v9  ;;  %7021 = vmatpush1.bf16.msra.mxu1 %v7020_v4  ;;  %v497_v30 = vpop.f32.mrb[5].mxu1  ;;  %v845_v45 = vsel %vm781_vm9, %v490_v6, %v813_v23  ;;  %v496_v32 = vadd.f32 %v495_v18, %v9533_v12  ;;  %v1035_v23 = vld [vmem:[#allocation7 + $0x530] sm:$0xff]  ;;  %v1042_v18 = vld [vmem:[#allocation7 + $0x568] sm:$0xff] }
 0x226   :  { %v846_v36 = vsel %vm782_vm10, %v492_v14, %v814_v26  ;;  %6775 = vmatprep.subr.bf16.mxu0 %v6774_v15  ;;  %7023 = vmatprep.subr.bf16.mxu1 %v7022_v16  ;;  %v498_v37 = vadd.f32 %v497_v30, %v9533_v12  ;;  %v1029_v14 = vld [vmem:[#allocation7 + $0x500] sm:$0xff]  ;;  %v1040_v26 = vld [vmem:[#allocation7 + $0x558] sm:$0xff] }
 0x227   :  { %1474 = vmatprep.mubr.f32.mxu0 %v846_v36  ;;  %1830 = vmatprep.mubr.f32.mxu1 %v846_v36  ;;  %vm789_vm11 = vcmp.gt.f32.partialorder %v496_v32, 0.0  ;;  %v821_v41 = vmul.f32 0.01, %v496_v32  ;;  %v1033_v15 = vld [vmem:[#allocation7 + $0x520] sm:$0xff] }
 0x228   :  { %v501_v44 = vpop.f32.mrb[6].mxu1  ;;  %1475 = vmatmul.mubr.f32.gmra.mrb[10].mxu0 %v845_v45  ;;  %1831 = vmatmul.mubr.f32.gmra.mrb[26].mxu1 %v845_v45  ;;  %vm790_vm12 = vcmp.gt.f32.partialorder %v498_v37, 0.0  ;;  %v822_v17 = vmul.f32 0.01, %v498_v37  ;;  %v6788_v45 = vpack.c.bf16 %v1033_v15, %v1029_v14  ;;  %v7046_v15 = vpack.c.bf16 %v1060_v61, %v1056_v60 }
 0x229   :  { %v502_v48 = vadd.f32 %v501_v44, %v9539_v43  ;;  %6777 = vmatpush1.bf16.msra.mxu0 %v6776_v27  ;;  %7025 = vmatpush1.bf16.msra.mxu1 %v7024_v28  ;;  %v503_v50 = vpop.f32.mrb[7].mxu1  ;;  %v853_v51 = vsel %vm789_vm11, %v496_v32, %v821_v41  ;;  %v1044_v27 = vld [vmem:[#allocation7 + $0x578] sm:$0xff]  ;;  %v1046_v41 = vld [vmem:[#allocation7 + $0x588] sm:$0xff] }
 0x22a   :  { %v504_v56 = vadd.f32 %v503_v50, %v9539_v43  ;;  %v854_v57 = vsel %vm790_vm12, %v498_v37, %v822_v17  ;;  %6779 = vmatprep.subr.bf16.mxu0 %v6778_v31  ;;  %7027 = vmatprep.subr.bf16.mxu1 %v7026_v38  ;;  %v7036_v31 = vpack.c.bf16 %v1035_v23, %v1031_v22  ;;  %v1052_v44 = vld [vmem:[#allocation7 + $0x5b8] sm:$0xff]  ;;  %v1066_v22 = vld [vmem:[#allocation7 + $0x628] sm:$0xff] }
 0x22b   :  { %v829_v63 = vmul.f32 0.01, %v502_v48  ;;  %1480 = vmatprep.mubr.f32.mxu0 %v854_v57  ;;  %1836 = vmatprep.mubr.f32.mxu1 %v854_v57  ;;  %vm797_vm14 = vcmp.gt.f32.partialorder %v502_v48, 0.0  ;;  %v6790_v37 = vpack.c.bf16 %v1042_v18, %v1038_v24  ;;  %v7038_v38 = vpack.c.bf16 %v1044_v27, %v1040_v26  ;;  %v1051_v57 = vld [vmem:[#allocation7 + $0x5b0] sm:$0xff]  ;;  %v1064_v23 = vld [vmem:[#allocation7 + $0x618] sm:$0xff] }
 0x22c   :  { %v830_v2 = vmul.f32 0.01, %v504_v56  ;;  %v9544_v9 = vpop.f32.mrb[8].mxu1  ;;  %v9546_v4 = vpop.f32.mrb[0].mxu0  ;;  %1481 = vmatmul.mubr.f32.gmra.mrb[12].mxu0 %v853_v51  ;;  %1837 = vmatmul.mubr.f32.gmra.mrb[28].mxu1 %v853_v51  ;;  %vm798_vm13 = vcmp.gt.f32.partialorder %v504_v56, 0.0  ;;  %v6792_v50 = vpack.c.bf16 %v1041_v34, %v1037_v33  ;;  %v7040_v51 = vpack.c.bf16 %v1043_v40, %v1039_v39  ;;  %v1068_v24 = vld [vmem:[#allocation7 + $0x638] sm:$0xff] }
 0x22d   :  { %6781 = vmatpush1.bf16.msra.mxu0 %v6780_v19  ;;  %7029 = vmatpush1.bf16.msra.mxu1 %v7028_v46  ;;  %v574_v6 = vpop.f32.mrb[9].mxu1  ;;  %v9548_v7 = vpop.f32.mrb[1].mxu0  ;;  %v861_v25 = vsel %vm797_vm14, %v502_v48, %v829_v63  ;;  %v6794_v54 = vpack.c.bf16 %v1050_v53, %v1046_v41  ;;  %v7042_v55 = vpack.c.bf16 %v1052_v44, %v1048_v42  ;;  %v1063_v34 = vld [vmem:[#allocation7 + $0x610] sm:$0xff]  ;;  %v1072_v39 = vld [vmem:[#allocation7 + $0x658] sm:$0xff] }
 0x22e   :  { %v575_v16 = vadd.f32 %v574_v6, %v9526_v47  ;;  %v862_v20 = vsel %vm798_vm13, %v504_v56, %v830_v2  ;;  %6783 = vmatprep.subr.bf16.mxu0 %v6782_v62  ;;  %7031 = vmatprep.subr.bf16.mxu1 %v7030_v58  ;;  %v1045_v62 = vld [vmem:[#allocation7 + $0x580] sm:$0xff]  ;;  %v1047_v56 = vld [vmem:[#allocation7 + $0x590] sm:$0xff]  ;;  %v1054_v58 = vld [vmem:[#allocation7 + $0x5c8] sm:$0xff]  ;;  %v7050_v33 = vpack.c.bf16 %v1068_v24, %v1064_v23 }
 0x22f   :  { %1486 = vmatprep.mubr.f32.mxu0 %v862_v20  ;;  %1842 = vmatprep.mubr.f32.mxu1 %v862_v20  ;;  %v6796_v6 = vpack.c.bf16 %v1049_v52, %v1045_v62  ;;  %v6798_v14 = vpack.c.bf16 %v1058_v59, %v1054_v58  ;;  %v1059_v20 = vld [vmem:[#allocation7 + $0x5f0] sm:$0xff]  ;;  %v1076_v40 = vld [vmem:[#allocation7 + $0x678] sm:$0xff] }
 0x230   :  { %v808_v28 = vmul.f32 0.01, %v575_v16  ;;  %1487 = vmatmul.mubr.f32.gmra.mrb[14].mxu0 %v861_v25  ;;  %1843 = vmatmul.mubr.f32.gmra.mrb[30].mxu1 %v861_v25  ;;  %vm776_vm15 = vcmp.gt.f32.partialorder %v575_v16, 0.0  ;;  %v9552_v29 = vpop.f32.mrb[10].mxu1  ;;  %v9554_v30 = vpop.f32.mrb[2].mxu0  ;;  %v7054_v52 = vpack.c.bf16 %v1076_v40, %v1072_v39  ;;  %v1080_v58 = vld [vmem:[#allocation7 + $0x698] sm:$0xff] }
 0x231   :  { %6785 = vmatpush1.bf16.msra.mxu0 %v6784_v8  ;;  %7033 = vmatpush1.bf16.msra.mxu1 %v7032_v10  ;;  %v9556_v32 = vpop.f32.mrb[11].mxu1  ;;  %v9558_v36 = vpop.f32.mrb[3].mxu0  ;;  %v7044_v8 = vpack.c.bf16 %v1051_v57, %v1047_v56  ;;  %v1053_v10 = vld [vmem:[#allocation7 + $0x5c0] sm:$0xff]  ;;  %v1078_v56 = vld [vmem:[#allocation7 + $0x688] sm:$0xff]  ;;  %v1084_v59 = vld [vmem:[#allocation7 + $0x6b8] sm:$0xff] }
 0x232   :  { %6787 = vmatprep.subr.bf16.mxu0 %v6786_v11  ;;  %v840_v35 = vsel %vm776_vm15, %v575_v16, %v808_v28  ;;  %7035 = vmatprep.subr.bf16.mxu1 %v7034_v21  ;;  %v1057_v11 = vld [vmem:[#allocation7 + $0x5e0] sm:$0xff]  ;;  %v1055_v16 = vld [vmem:[#allocation7 + $0x5d0] sm:$0xff]  ;;  %v1062_v21 = vld [vmem:[#allocation7 + $0x608] sm:$0xff] }
 0x233   :  { %1557 = vmatprep.mubr.f32.mxu0 %v840_v35  ;;  %1913 = vmatprep.mubr.f32.mxu1 %v840_v35  ;;  %v6800_v26 = vpack.c.bf16 %v1057_v11, %v1053_v10  ;;  %v7048_v27 = vpack.c.bf16 %v1059_v20, %v1055_v16  ;;  %v1061_v28 = vld [vmem:[#allocation7 + $0x600] sm:$0xff]  ;;  %v1067_v35 = vld [vmem:[#allocation7 + $0x630] sm:$0xff]  ;;  %v1082_v57 = vld [vmem:[#allocation7 + $0x6a8] sm:$0xff] }
 0x234   :  { %v9560_v17 = vpop.f32.mrb[12].mxu1  ;;  %v9562_v19 = vpop.f32.mrb[4].mxu0  ;;  %v7052_v42 = vpack.c.bf16 %v1067_v35, %v1063_v34  ;;  %v1077_v10 = vld [vmem:[#allocation7 + $0x680] sm:$0xff]  ;;  %v1079_v16 = vld [vmem:[#allocation7 + $0x690] sm:$0xff]  ;;  %v1088_v23 = vld [vmem:[#allocation7 + $0x6d8] sm:$0xff] }
 0x235   :  { %6789 = vmatpush1.bf16.msra.mxu0 %v6788_v45  ;;  %7037 = vmatpush1.bf16.msra.mxu1 %v7036_v31  ;;  %v9564_v46 = vpop.f32.mrb[13].mxu1  ;;  %v9566_v48 = vpop.f32.mrb[5].mxu0  ;;  %v1065_v45 = vld [vmem:[#allocation7 + $0x620] sm:$0xff]  ;;  %v6802_v31 = vpack.c.bf16 %v1066_v22, %v1062_v21  ;;  %v1083_v20 = vld [vmem:[#allocation7 + $0x6b0] sm:$0xff]  ;;  %v1086_v21 = vld [vmem:[#allocation7 + $0x6c8] sm:$0xff] }
 0x236   :  { %6791 = vmatprep.subr.bf16.mxu0 %v6790_v37  ;;  %7039 = vmatprep.subr.bf16.mxu1 %v7038_v38  ;;  %v1070_v37 = vld [vmem:[#allocation7 + $0x648] sm:$0xff]  ;;  %v6804_v53 = vpack.c.bf16 %v1065_v45, %v1061_v28  ;;  %v1081_v11 = vld [vmem:[#allocation7 + $0x6a0] sm:$0xff]  ;;  %v1092_v24 = vld [vmem:[#allocation7 + $0x6f8] sm:$0xff]  ;;  %v7060_v45 = vpack.c.bf16 %v1083_v20, %v1079_v16 }
 0x237   :  { %v1074_v38 = vld [vmem:[#allocation7 + $0x668] sm:$0xff]  ;;  %v6812_v28 = vpack.c.bf16 %v1081_v11, %v1077_v10  ;;  %v7062_v35 = vpack.c.bf16 %v1092_v24, %v1088_v23 }
 0x238   :  { %v9568_v63 = vpop.f32.mrb[14].mxu1  ;;  %v9570_v0 = vpop.f32.mrb[6].mxu0  ;;  %v6806_v62 = vpack.c.bf16 %v1074_v38, %v1070_v37  ;;  %v1090_v22 = vld [vmem:[#allocation7 + $0x6e8] sm:$0xff]  ;;  %v1087_v37 = vld [vmem:[#allocation7 + $0x6d0] sm:$0xff] }
 0x239   :  { %6793 = vmatpush1.bf16.msra.mxu0 %v6792_v50  ;;  %7041 = vmatpush1.bf16.msra.mxu1 %v7040_v51  ;;  %v9572_v1 = vpop.f32.mrb[15].mxu1  ;;  %v9574_v2 = vpop.f32.mrb[7].mxu0  ;;  %v1069_v50 = vld [vmem:[#allocation7 + $0x640] sm:$0xff]  ;;  %v6814_v34 = vpack.c.bf16 %v1090_v22, %v1086_v21  ;;  %v1091_v38 = vld [vmem:[#allocation7 + $0x6f0] sm:$0xff]  ;;  %v1094_v39 = vld [vmem:[#allocation7 + $0x708] sm:$0xff] }
 0x23a   :  { %6795 = vmatprep.subr.bf16.mxu0 %v6794_v54  ;;  %7043 = vmatprep.subr.bf16.mxu1 %v7042_v55  ;;  %v1073_v51 = vld [vmem:[#allocation7 + $0x660] sm:$0xff]  ;;  %v1071_v54 = vld [vmem:[#allocation7 + $0x650] sm:$0xff]  ;;  %v1098_v40 = vld [vmem:[#allocation7 + $0x728] sm:$0xff] }
 0x23b   :  { %v1075_v55 = vld [vmem:[#allocation7 + $0x670] sm:$0xff]  ;;  %v1110_v23 = vld [vmem:[#allocation7 + $0x788] sm:$0xff] }
 0x23c   :  { %v9576_v25 = vpop.f32.mrb[16].mxu1  ;;  %v1103_v21 = vld [vmem:[#allocation7 + $0x750] sm:$0xff]  ;;  %v1114_v24 = vld [vmem:[#allocation7 + $0x7a8] sm:$0xff] }
 0x23d   :  { %6797 = vmatpush1.bf16.msra.mxu0 %v6796_v6  ;;  %7045 = vmatpush1.bf16.msra.mxu1 %v7044_v8  ;;  %v9578_v18 = vpop.f32.mrb[17].mxu1  ;;  %v6808_v6 = vpack.c.bf16 %v1073_v51, %v1069_v50  ;;  %v7056_v8 = vpack.c.bf16 %v1075_v55, %v1071_v54  ;;  %v7064_v51 = vpack.c.bf16 %v1091_v38, %v1087_v37  ;;  %v1107_v22 = vld [vmem:[#allocation7 + $0x770] sm:$0xff] }
 0x23e   :  { %6799 = vmatprep.subr.bf16.mxu0 %v6798_v14  ;;  %7047 = vmatprep.subr.bf16.mxu1 %v7046_v15  ;;  %v6810_v14 = vpack.c.bf16 %v1082_v57, %v1078_v56  ;;  %v7058_v15 = vpack.c.bf16 %v1084_v59, %v1080_v58  ;;  %v6818_v54 = vpack.c.bf16 %v1098_v40, %v1094_v39  ;;  %v1095_v56 = vld [vmem:[#allocation7 + $0x710] sm:$0xff]  ;;  %v1102_v58 = vld [vmem:[#allocation7 + $0x748] sm:$0xff] }
 0x23f   :  { %v1099_v57 = vld [vmem:[#allocation7 + $0x730] sm:$0xff]  ;;  %v1106_v59 = vld [vmem:[#allocation7 + $0x768] sm:$0xff]  ;;  %v6826_v37 = vpack.c.bf16 %v1114_v24, %v1110_v23  ;;  %v1125_v23 = vld [vmem:[#allocation7 + $0x800] sm:$0xff] }
 0x240   :  { %v9580_v41 = vpop.f32.mrb[18].mxu1  ;;  %v7068_v11 = vpack.c.bf16 %v1099_v57, %v1095_v56  ;;  %v6822_v16 = vpack.c.bf16 %v1106_v59, %v1102_v58  ;;  %v1111_v39 = vld [vmem:[#allocation7 + $0x790] sm:$0xff]  ;;  %v1129_v24 = vld [vmem:[#allocation7 + $0x820] sm:$0xff] }
 0x241   :  { %6801 = vmatpush1.bf16.msra.mxu0 %v6800_v26  ;;  %7049 = vmatpush1.bf16.msra.mxu1 %v7048_v27  ;;  %v9582_v44 = vpop.f32.mrb[19].mxu1  ;;  %v1115_v40 = vld [vmem:[#allocation7 + $0x7b0] sm:$0xff] }
 0x242   :  { %6803 = vmatprep.subr.bf16.mxu0 %v6802_v31  ;;  %7051 = vmatprep.subr.bf16.mxu1 %v7050_v33  ;;  %v1085_v31 = vld [vmem:[#allocation7 + $0x6c0] sm:$0xff]  ;;  %v1119_v58 = vld [vmem:[#allocation7 + $0x7d0] sm:$0xff] }
 0x243   :  { %v1089_v33 = vld [vmem:[#allocation7 + $0x6e0] sm:$0xff]  ;;  %v1123_v59 = vld [vmem:[#allocation7 + $0x7f0] sm:$0xff] }
 0x244   :  { %v9584_v60 = vpop.f32.mrb[20].mxu1  ;;  %v6816_v50 = vpack.c.bf16 %v1089_v33, %v1085_v31  ;;  %v7072_v33 = vpack.c.bf16 %v1107_v22, %v1103_v21 }
 0x245   :  { %6805 = vmatpush1.bf16.msra.mxu0 %v6804_v53  ;;  %7053 = vmatpush1.bf16.msra.mxu1 %v7052_v42  ;;  %v9586_v61 = vpop.f32.mrb[21].mxu1  ;;  %v1096_v53 = vld [vmem:[#allocation7 + $0x718] sm:$0xff] }
 0x246   :  { %6807 = vmatprep.subr.bf16.mxu0 %v6806_v62  ;;  %7055 = vmatprep.subr.bf16.mxu1 %v7054_v52  ;;  %v1100_v42 = vld [vmem:[#allocation7 + $0x738] sm:$0xff]  ;;  %v1093_v62 = vld [vmem:[#allocation7 + $0x700] sm:$0xff] }
 0x247   :  { %v1097_v52 = vld [vmem:[#allocation7 + $0x720] sm:$0xff]  ;;  %v7066_v55 = vpack.c.bf16 %v1100_v42, %v1096_v53  ;;  %v1118_v53 = vld [vmem:[#allocation7 + $0x7c8] sm:$0xff] }
 0x248   :  { %v9588_v26 = vpop.f32.mrb[22].mxu1  ;;  %v6820_v10 = vpack.c.bf16 %v1097_v52, %v1093_v62  ;;  %v1122_v42 = vld [vmem:[#allocation7 + $0x7e8] sm:$0xff]  ;;  %v7076_v52 = vpack.c.bf16 %v1115_v40, %v1111_v39  ;;  %v6836_v39 = vpack.c.bf16 %v1129_v24, %v1125_v23  ;;  %v1147_v23 = vld [vmem:[#allocation7 + $0x8b0] sm:$0xff] }
 0x249   :  { %6809 = vmatpush1.bf16.msra.mxu0 %v6808_v6  ;;  %7057 = vmatpush1.bf16.msra.mxu1 %v7056_v8  ;;  %v9590_v27 = vpop.f32.mrb[23].mxu1  ;;  %v1104_v6 = vld [vmem:[#allocation7 + $0x758] sm:$0xff]  ;;  %v6830_v56 = vpack.c.bf16 %v1122_v42, %v1118_v53  ;;  %v1133_v42 = vld [vmem:[#allocation7 + $0x840] sm:$0xff]  ;;  %v1150_v24 = vld [vmem:[#allocation7 + $0x8c8] sm:$0xff] }
 0x24a   :  { %6811 = vmatprep.subr.bf16.mxu0 %v6810_v14  ;;  %7059 = vmatprep.subr.bf16.mxu1 %v7058_v15  ;;  %v1108_v8 = vld [vmem:[#allocation7 + $0x778] sm:$0xff]  ;;  %v1101_v14 = vld [vmem:[#allocation7 + $0x740] sm:$0xff] }
 0x24b   :  { %v1105_v15 = vld [vmem:[#allocation7 + $0x760] sm:$0xff]  ;;  %v7070_v20 = vpack.c.bf16 %v1108_v8, %v1104_v6  ;;  %v1126_v6 = vld [vmem:[#allocation7 + $0x808] sm:$0xff]  ;;  %v573_v8 = vadd.f32 %v9544_v9, %v9526_v47  ;;  %v579_v9 = vadd.f32 %v9552_v29, %v9528_v49 }
 0x24c   :  { %v6824_v31 = vpack.c.bf16 %v1105_v15, %v1101_v14  ;;  %v1132_v14 = vld [vmem:[#allocation7 + $0x838] sm:$0xff]  ;;  %v581_v15 = vadd.f32 %v9556_v32, %v9528_v49  ;;  %v1137_v29 = vld [vmem:[#allocation7 + $0x860] sm:$0xff] }
 0x24d   :  { %6813 = vmatpush1.bf16.msra.mxu0 %v6812_v28  ;;  %7061 = vmatpush1.bf16.msra.mxu1 %v7060_v45  ;;  %v1112_v28 = vld [vmem:[#allocation7 + $0x798] sm:$0xff]  ;;  %vm775_vm4 = vcmp.gt.f32.partialorder %v573_v8, 0.0  ;;  %vm783_vm6 = vcmp.gt.f32.partialorder %v579_v9, 0.0 }
 0x24e   :  { %6815 = vmatprep.subr.bf16.mxu0 %v6814_v34  ;;  %7063 = vmatprep.subr.bf16.mxu1 %v7062_v35  ;;  %v1116_v45 = vld [vmem:[#allocation7 + $0x7b8] sm:$0xff]  ;;  %v1109_v34 = vld [vmem:[#allocation7 + $0x780] sm:$0xff]  ;;  %v816_v32 = vmul.f32 0.01, %v581_v15  ;;  %vm784_vm5 = vcmp.gt.f32.partialorder %v581_v15, 0.0 }
 0x24f   :  { %v1113_v35 = vld [vmem:[#allocation7 + $0x7a0] sm:$0xff]  ;;  %v7074_v38 = vpack.c.bf16 %v1116_v45, %v1112_v28  ;;  %v1127_v28 = vld [vmem:[#allocation7 + $0x810] sm:$0xff]  ;;  %v807_v45 = vmul.f32 0.01, %v573_v8 }
 0x250   :  { %v6828_v62 = vpack.c.bf16 %v1113_v35, %v1109_v34  ;;  %v1138_v34 = vld [vmem:[#allocation7 + $0x868] sm:$0xff]  ;;  %v587_v35 = vadd.f32 %v9564_v46, %v9533_v12 }
 0x251   :  { %6817 = vmatpush1.bf16.msra.mxu0 %v6816_v50  ;;  %7065 = vmatpush1.bf16.msra.mxu1 %v7064_v51  ;;  %v1120_v50 = vld [vmem:[#allocation7 + $0x7d8] sm:$0xff] }
 0x252   :  { %6819 = vmatprep.subr.bf16.mxu0 %v6818_v54  ;;  %7067 = vmatprep.subr.bf16.mxu1 %v7066_v55  ;;  %v1124_v51 = vld [vmem:[#allocation7 + $0x7f8] sm:$0xff]  ;;  %v1117_v54 = vld [vmem:[#allocation7 + $0x7c0] sm:$0xff]  ;;  %vm792_vm7 = vcmp.gt.f32.partialorder %v587_v35, 0.0 }
 0x253   :  { %v1121_v55 = vld [vmem:[#allocation7 + $0x7e0] sm:$0xff]  ;;  %v7078_v57 = vpack.c.bf16 %v1124_v51, %v1120_v50  ;;  %v1135_v50 = vld [vmem:[#allocation7 + $0x850] sm:$0xff]  ;;  %v839_v51 = vsel %vm775_vm4, %v573_v8, %v807_v45  ;;  %v6840_v8 = vpack.c.bf16 %v1137_v29, %v1133_v42  ;;  %v1158_v29 = vld [vmem:[#allocation7 + $0x908] sm:$0xff] }
 0x254   :  { %v1155_v42 = vld [vmem:[#allocation7 + $0x8f0] sm:$0xff] }
 0x255   :  { %6821 = vmatpush1.bf16.msra.mxu0 %v6820_v10  ;;  %7069 = vmatpush1.bf16.msra.mxu1 %v7068_v11  ;;  %v1130_v10 = vld [vmem:[#allocation7 + $0x828] sm:$0xff]  ;;  %v1128_v11 = vld [vmem:[#allocation7 + $0x818] sm:$0xff] }
 0x256   :  { %6823 = vmatprep.subr.bf16.mxu0 %v6822_v16  ;;  %7071 = vmatprep.subr.bf16.mxu1 %v7070_v20  ;;  %v6832_v16 = vpack.c.bf16 %v1121_v55, %v1117_v54  ;;  %v7080_v20 = vpack.c.bf16 %v1123_v59, %v1119_v58  ;;  %v6834_v21 = vpack.c.bf16 %v1130_v10, %v1126_v6  ;;  %v1139_v54 = vld [vmem:[#allocation7 + $0x870] sm:$0xff]  ;;  %v1142_v55 = vld [vmem:[#allocation7 + $0x888] sm:$0xff]  ;;  %v1144_v6 = vld [vmem:[#allocation7 + $0x898] sm:$0xff] }
 0x257   :  { %v7082_v22 = vpack.c.bf16 %v1132_v14, %v1128_v11  ;;  %v593_v58 = vadd.f32 %v9572_v1, %v9539_v43  ;;  %v848_v59 = vsel %vm784_vm5, %v581_v15, %v816_v32  ;;  %v1148_v10 = vld [vmem:[#allocation7 + $0x8b8] sm:$0xff]  ;;  %v1141_v14 = vld [vmem:[#allocation7 + $0x880] sm:$0xff]  ;;  %v591_v1 = vadd.f32 %v9568_v63, %v9539_v43 }
 0x258   :  { %v7090_v15 = vpack.c.bf16 %v1148_v10, %v1144_v6  ;;  %v1156_v32 = vld [vmem:[#allocation7 + $0x8f8] sm:$0xff] }
 0x259   :  { %6825 = vmatpush1.bf16.msra.mxu0 %v6824_v31  ;;  %7073 = vmatpush1.bf16.msra.mxu1 %v7072_v33  ;;  %v1131_v31 = vld [vmem:[#allocation7 + $0x830] sm:$0xff]  ;;  %v1134_v33 = vld [vmem:[#allocation7 + $0x848] sm:$0xff]  ;;  %v832_v45 = vmul.f32 0.01, %v593_v58  ;;  %vm800_vm9 = vcmp.gt.f32.partialorder %v593_v58, 0.0  ;;  %vm799_vm10 = vcmp.gt.f32.partialorder %v591_v1, 0.0 }
 0x25a   :  { %6827 = vmatprep.subr.bf16.mxu0 %v6826_v37  ;;  %7075 = vmatprep.subr.bf16.mxu1 %v7074_v38  ;;  %v1136_v37 = vld [vmem:[#allocation7 + $0x858] sm:$0xff]  ;;  %v7084_v40 = vpack.c.bf16 %v1131_v31, %v1127_v28  ;;  %v6838_v53 = vpack.c.bf16 %v1138_v34, %v1134_v33  ;;  %v664_v28 = vadd.f32 %v9548_v7, %v9526_v47  ;;  %v1154_v33 = vld [vmem:[#allocation7 + $0x8e8] sm:$0xff] }
 0x25b   :  { %v1140_v38 = vld [vmem:[#allocation7 + $0x878] sm:$0xff] }
 0x25c   :  { %v7086_v46 = vpack.c.bf16 %v1140_v38, %v1136_v37  ;;  %v1152_v34 = vld [vmem:[#allocation7 + $0x8d8] sm:$0xff]  ;;  %v1149_v37 = vld [vmem:[#allocation7 + $0x8c0] sm:$0xff]  ;;  %vm778_vm11 = vcmp.gt.f32.partialorder %v664_v28, 0.0 }
 0x25d   :  { %6829 = vmatpush1.bf16.msra.mxu0 %v6828_v62  ;;  %7077 = vmatpush1.bf16.msra.mxu1 %v7076_v52  ;;  %v815_v62 = vmul.f32 0.01, %v579_v9  ;;  %v585_v52 = vadd.f32 %v9560_v17, %v9533_v12  ;;  %v7088_v17 = vpack.c.bf16 %v1139_v54, %v1135_v50  ;;  %v1153_v38 = vld [vmem:[#allocation7 + $0x8e0] sm:$0xff]  ;;  %v810_v50 = vmul.f32 0.01, %v664_v28  ;;  %v1164_v54 = vld [vmem:[#allocation7 + $0x938] sm:$0xff] }
 0x25e   :  { %6831 = vmatprep.subr.bf16.mxu0 %v6830_v56  ;;  %7079 = vmatprep.subr.bf16.mxu1 %v7078_v57  ;;  %v1146_v56 = vld [vmem:[#allocation7 + $0x8a8] sm:$0xff]  ;;  %v824_v57 = vmul.f32 0.01, %v587_v35 }
 0x25f   :  { %v6842_v11 = vpack.c.bf16 %v1146_v56, %v1142_v55  ;;  %vm791_vm8 = vcmp.gt.f32.partialorder %v585_v52, 0.0  ;;  %v6848_v55 = vpack.c.bf16 %v1153_v38, %v1149_v37  ;;  %v1157_v56 = vld [vmem:[#allocation7 + $0x900] sm:$0xff] }
 0x260   :  { %v856_v31 = vsel %vm792_vm7, %v587_v35, %v824_v57  ;;  %v1151_v35 = vld [vmem:[#allocation7 + $0x8d0] sm:$0xff]  ;;  %v1161_v57 = vld [vmem:[#allocation7 + $0x920] sm:$0xff] }
 0x261   :  { %6833 = vmatpush1.bf16.msra.mxu0 %v6832_v16  ;;  %7081 = vmatpush1.bf16.msra.mxu1 %v7080_v20  ;;  %v1145_v16 = vld [vmem:[#allocation7 + $0x8a0] sm:$0xff]  ;;  %v823_v20 = vmul.f32 0.01, %v585_v52 }
 0x262   :  { %6835 = vmatprep.subr.bf16.mxu0 %v6834_v21  ;;  %7083 = vmatprep.subr.bf16.mxu1 %v7082_v22  ;;  %v847_v21 = vsel %vm783_vm6, %v579_v9, %v815_v62  ;;  %v1143_v22 = vld [vmem:[#allocation7 + $0x890] sm:$0xff]  ;;  %v6844_v63 = vpack.c.bf16 %v1145_v16, %v1141_v14  ;;  %v1162_v62 = vld [vmem:[#allocation7 + $0x928] sm:$0xff]  ;;  %v842_v14 = vsel %vm778_vm11, %v664_v28, %v810_v50  ;;  %v1168_v16 = vld [vmem:[#allocation7 + $0x958] sm:$0xff] }
 0x263   :  { %v7092_v9 = vpack.c.bf16 %v1147_v23, %v1143_v22  ;;  %v855_v7 = vsel %vm791_vm8, %v585_v52, %v823_v20  ;;  %v7096_v52 = vpack.c.bf16 %v1155_v42, %v1151_v35  ;;  %v6850_v10 = vpack.c.bf16 %v1162_v62, %v1158_v29  ;;  %v1172_v20 = vld [vmem:[#allocation7 + $0x978] sm:$0xff]  ;;  %v1165_v22 = vld [vmem:[#allocation7 + $0x940] sm:$0xff]  ;;  %v1182_v35 = vld [vmem:[#allocation7 + $0x9c8] sm:$0xff] }
 0x264   :  { %1558 = vmatmul.mubr.f32.vlgmr.msra.gmra.mrb[8].mxu0 %v839_v51  ;;  %1914 = vmatmul.mubr.f32.vlgmr.msra.gmra.mrb[24].mxu1 %v839_v51  ;;  %v864_v51 = vsel %vm800_vm9, %v593_v58, %v832_v45  ;;  %v1163_v58 = vld [vmem:[#allocation7 + $0x930] sm:$0xff]  ;;  %v1169_v23 = vld [vmem:[#allocation7 + $0x960] sm:$0xff]  ;;  %v7102_v45 = vpack.c.bf16 %v1172_v20, %v1168_v16  ;;  %v1180_v28 = vld [vmem:[#allocation7 + $0x9b8] sm:$0xff]  ;;  %vm1391_vm8 = vcmask 850944  }
 0x265   :  { %1563 = vmatprep.mubr.f32.mxu0 %v848_v59  ;;  %6837 = vmatpush1.bf16.msra.mxu0 %v6836_v39  ;;  %v831_v39 = vmul.f32 0.01, %v591_v1  ;;  %v1173_v38 = vld [vmem:[#allocation7 + $0x980] sm:$0xff]  ;;  %v1186_v42 = vld [vmem:[#allocation7 + $0x9e8] sm:$0xff]  ;;  %v1184_v29 = vld [vmem:[#allocation7 + $0x9d8] sm:$0xff] }
 0x266   :  { %1919 = vmatprep.mubr.f32.mxu1 %v848_v59  ;;  %7085 = vmatpush1.bf16.msra.mxu1 %v7084_v40  ;;  %v6846_v40 = vpack.c.bf16 %v1154_v33, %v1150_v24  ;;  %v1159_v59 = vld [vmem:[#allocation7 + $0x910] sm:$0xff]  ;;  %v1174_v33 = vld [vmem:[#allocation7 + $0x988] sm:$0xff]  ;;  %v1188_v50 = vld [vmem:[#allocation7 + $0x9f8] sm:$0xff] }
 0x267   :  { %6839 = vmatprep.subr.bf16.mxu0 %v6838_v53  ;;  %7087 = vmatprep.subr.bf16.mxu1 %v7086_v46  ;;  %v7094_v53 = vpack.c.bf16 %v1156_v32, %v1152_v34  ;;  %v1160_v46 = vld [vmem:[#allocation7 + $0x918] sm:$0xff]  ;;  %v863_v6 = vsel %vm799_vm10, %v591_v1, %v831_v39  ;;  %v1167_v24 = vld [vmem:[#allocation7 + $0x950] sm:$0xff]  ;;  %v1178_v34 = vld [vmem:[#allocation7 + $0x9a8] sm:$0xff] }
 0x268   :  { %1564 = vmatmul.mubr.f32.gmra.mrb[10].mxu0 %v847_v21  ;;  %1920 = vmatmul.mubr.f32.gmra.mrb[26].mxu1 %v847_v21  ;;  %v6852_v21 = vpack.c.bf16 %v1161_v57, %v1157_v56  ;;  %v1176_v32 = vld [vmem:[#allocation7 + $0x998] sm:$0xff]  ;;  %v6858_v37 = vpack.c.bf16 %v1178_v34, %v1174_v33  ;;  %v1177_v39 = vld [vmem:[#allocation7 + $0x9a0] sm:$0xff]  ;;  %v7110_v56 = vpack.c.bf16 %v1188_v50, %v1184_v29  ;;  %v1187_v57 = vld [vmem:[#allocation7 + $0x9f0] sm:$0xff] }
 0x269   :  { %1569 = vmatprep.mubr.f32.mxu0 %v856_v31  ;;  %6841 = vmatpush1.bf16.msra.mxu0 %v6840_v8  ;;  %v7098_v8 = vpack.c.bf16 %v1164_v54, %v1160_v46  ;;  %v6862_v46 = vpack.c.bf16 %v1186_v42, %v1182_v35  ;;  %v1181_v54 = vld [vmem:[#allocation7 + $0x9c0] sm:$0xff]  ;;  %v1191_v20 = vld [vmem:[#allocation7 + $0xa10] sm:$0xff] }
 0x26a   :  { %1925 = vmatprep.mubr.f32.mxu1 %v856_v31  ;;  %7089 = vmatpush1.bf16.msra.mxu1 %v7088_v17  ;;  %v1166_v17 = vld [vmem:[#allocation7 + $0x948] sm:$0xff]  ;;  %v1171_v31 = vld [vmem:[#allocation7 + $0x970] sm:$0xff]  ;;  %v1193_v16 = vld [vmem:[#allocation7 + $0xa20] sm:$0xff] }
 0x26b   :  { %6843 = vmatprep.subr.bf16.mxu0 %v6842_v11  ;;  %7091 = vmatprep.subr.bf16.mxu1 %v7090_v15  ;;  %v1170_v11 = vld [vmem:[#allocation7 + $0x968] sm:$0xff]  ;;  %v7100_v15 = vpack.c.bf16 %v1163_v58, %v1159_v59  ;;  %v1197_v34 = vld [vmem:[#allocation7 + $0xa40] sm:$0xff]  ;;  %v1207_v50 = vld [vmem:[#allocation7 + $0xa90] sm:$0xff] }
 0x26c   :  { %1570 = vmatmul.mubr.f32.gmra.mrb[12].mxu0 %v855_v7  ;;  %1926 = vmatmul.mubr.f32.gmra.mrb[28].mxu1 %v855_v7  ;;  %v6854_v1 = vpack.c.bf16 %v1170_v11, %v1166_v17  ;;  %v1175_v7 = vld [vmem:[#allocation7 + $0x990] sm:$0xff]  ;;  %v1190_v59 = vld [vmem:[#allocation7 + $0xa08] sm:$0xff]  ;;  %v1205_v42 = vld [vmem:[#allocation7 + $0xa80] sm:$0xff] }
 0x26d   :  { %1575 = vmatprep.mubr.f32.mxu0 %v864_v51  ;;  %6845 = vmatpush1.bf16.msra.mxu0 %v6844_v63  ;;  %v6856_v63 = vpack.c.bf16 %v1169_v23, %v1165_v22  ;;  %v1202_v22 = vld [vmem:[#allocation7 + $0xa68] sm:$0xff]  ;;  %v1200_v23 = vld [vmem:[#allocation7 + $0xa58] sm:$0xff]  ;;  %v1209_v29 = vld [vmem:[#allocation7 + $0xaa0] sm:$0xff] }
 0x26e   :  { %1931 = vmatprep.mubr.f32.mxu1 %v864_v51  ;;  %7093 = vmatpush1.bf16.msra.mxu1 %v7092_v9  ;;  %v7104_v9 = vpack.c.bf16 %v1171_v31, %v1167_v24  ;;  %v6860_v51 = vpack.c.bf16 %v1177_v39, %v1173_v38  ;;  %v1204_v24 = vld [vmem:[#allocation7 + $0xa78] sm:$0xff]  ;;  %v1210_v38 = vld [vmem:[#allocation7 + $0xaa8] sm:$0xff] }
 0x26f   :  { %6847 = vmatprep.subr.bf16.mxu0 %v6846_v40  ;;  %7095 = vmatprep.subr.bf16.mxu1 %v7094_v53  ;;  %v7106_v40 = vpack.c.bf16 %v1180_v28, %v1176_v32  ;;  %v1179_v53 = vld [vmem:[#allocation7 + $0x9b0] sm:$0xff]  ;;  %v1201_v32 = vld [vmem:[#allocation7 + $0xa60] sm:$0xff]  ;;  %v1208_v39 = vld [vmem:[#allocation7 + $0xa98] sm:$0xff] }
 0x270   :  { %1576 = vmatmul.mubr.f32.gmra.mrb[14].mxu0 %v863_v6  ;;  %1932 = vmatmul.mubr.f32.gmra.mrb[30].mxu1 %v863_v6  ;;  %v7108_v62 = vpack.c.bf16 %v1179_v53, %v1175_v7  ;;  %v1194_v6 = vld [vmem:[#allocation7 + $0xa28] sm:$0xff]  ;;  %v1199_v28 = vld [vmem:[#allocation7 + $0xa50] sm:$0xff]  ;;  %v1212_v7 = vld [vmem:[#allocation7 + $0xab8] sm:$0xff] }
 0x271   :  { %6849 = vmatpush1.bf16.msra.mxu0 %v6848_v55  ;;  %1646 = vmatprep.mubr.f32.mxu0 %v842_v14  ;;  %v1185_v55 = vld [vmem:[#allocation7 + $0x9e0] sm:$0xff]  ;;  %v6866_v11 = vpack.c.bf16 %v1194_v6, %v1190_v59 }
 0x272   :  { %7097 = vmatpush1.bf16.msra.mxu1 %v7096_v52  ;;  %2002 = vmatprep.mubr.f32.mxu1 %v842_v14  ;;  %v1183_v52 = vld [vmem:[#allocation7 + $0x9d0] sm:$0xff]  ;;  %v6864_v58 = vpack.c.bf16 %v1185_v55, %v1181_v54  ;;  %v1189_v14 = vld [vmem:[#allocation7 + $0xa00] sm:$0xff]  ;;  %v1218_v54 = vld [vmem:[#allocation7 + $0xae8] sm:$0xff] }
 0x273   :  { %6851 = vmatprep.subr.bf16.mxu0 %v6850_v10  ;;  %7099 = vmatprep.subr.bf16.mxu1 %v7098_v8  ;;  %v1192_v10 = vld [vmem:[#allocation7 + $0xa18] sm:$0xff]  ;;  %v7112_v17 = vpack.c.bf16 %v1187_v57, %v1183_v52  ;;  %v1213_v6 = vld [vmem:[#allocation7 + $0xac0] sm:$0xff] }
 0x274   :  { %v1196_v8 = vld [vmem:[#allocation7 + $0xa38] sm:$0xff] }
 0x275   :  { %6853 = vmatpush1.bf16.msra.mxu0 %v6852_v21  ;;  %v7114_v21 = vpack.c.bf16 %v1196_v8, %v1192_v10  ;;  %v1216_v55 = vld [vmem:[#allocation7 + $0xad8] sm:$0xff]  ;;  %v1217_v10 = vld [vmem:[#allocation7 + $0xae0] sm:$0xff]  ;;  %v1215_v8 = vld [vmem:[#allocation7 + $0xad0] sm:$0xff] }
 0x276   :  { %7101 = vmatpush1.bf16.msra.mxu1 %v7100_v15  ;;  %6855 = vmatprep.subr.bf16.mxu0 %v6854_v1  ;;  %v1195_v15 = vld [vmem:[#allocation7 + $0xa30] sm:$0xff]  ;;  %v1198_v1 = vld [vmem:[#allocation7 + $0xa48] sm:$0xff]  ;;  %v1220_v52 = vld [vmem:[#allocation7 + $0xaf8] sm:$0xff] }
 0x277   :  { %7103 = vmatprep.subr.bf16.mxu1 %v7102_v45  ;;  %v6868_v45 = vpack.c.bf16 %v1193_v16, %v1189_v14  ;;  %v7116_v31 = vpack.c.bf16 %v1195_v15, %v1191_v20  ;;  %v6870_v33 = vpack.c.bf16 %v1202_v22, %v1198_v1  ;;  %v1226_v14 = vld [vmem:[#allocation7 + $0xb28] sm:$0xff]  ;;  %v1224_v16 = vld [vmem:[#allocation7 + $0xb18] sm:$0xff]  ;;  %v1221_v22 = vld [vmem:[#allocation7 + $0xb00] sm:$0xff] }
 0x278   :  { %v1228_v20 = vld [vmem:[#allocation7 + $0xb38] sm:$0xff] }
 0x279   :  { %6857 = vmatpush1.bf16.msra.mxu0 %v6856_v63  ;;  %v7118_v63 = vpack.c.bf16 %v1204_v24, %v1200_v23  ;;  %v1225_v23 = vld [vmem:[#allocation7 + $0xb20] sm:$0xff]  ;;  %v1223_v24 = vld [vmem:[#allocation7 + $0xb10] sm:$0xff] }
 0x27a   :  { %7105 = vmatpush1.bf16.msra.mxu1 %v7104_v9  ;;  %6859 = vmatprep.subr.bf16.mxu0 %v6858_v37  ;;  %v1203_v9 = vld [vmem:[#allocation7 + $0xa70] sm:$0xff]  ;;  %v1206_v37 = vld [vmem:[#allocation7 + $0xa88] sm:$0xff] }
 0x27b   :  { %7107 = vmatprep.subr.bf16.mxu1 %v7106_v40  ;;  %v6872_v40 = vpack.c.bf16 %v1201_v32, %v1197_v34  ;;  %v7120_v53 = vpack.c.bf16 %v1203_v9, %v1199_v28  ;;  %v6874_v35 = vpack.c.bf16 %v1210_v38, %v1206_v37  ;;  %v1234_v34 = vld [vmem:[#allocation7 + $0xb68] sm:$0xff]  ;;  %v1232_v32 = vld [vmem:[#allocation7 + $0xb58] sm:$0xff]  ;;  %v1229_v38 = vld [vmem:[#allocation7 + $0xb40] sm:$0xff] }
 0x27c   :  { %v1236_v28 = vld [vmem:[#allocation7 + $0xb78] sm:$0xff] }
 0x27d   :  { %6861 = vmatpush1.bf16.msra.mxu0 %v6860_v51  ;;  %v7122_v51 = vpack.c.bf16 %v1212_v7, %v1208_v39  ;;  %v1233_v39 = vld [vmem:[#allocation7 + $0xb60] sm:$0xff]  ;;  %v1231_v7 = vld [vmem:[#allocation7 + $0xb50] sm:$0xff] }
 0x27e   :  { %7109 = vmatpush1.bf16.msra.mxu1 %v7108_v62  ;;  %6863 = vmatprep.subr.bf16.mxu0 %v6862_v46  ;;  %v1211_v62 = vld [vmem:[#allocation7 + $0xab0] sm:$0xff]  ;;  %v1214_v46 = vld [vmem:[#allocation7 + $0xac8] sm:$0xff] }
 0x27f   :  { %7111 = vmatprep.subr.bf16.mxu1 %v7110_v56  ;;  %v6876_v56 = vpack.c.bf16 %v1209_v29, %v1205_v42  ;;  %v7124_v57 = vpack.c.bf16 %v1211_v62, %v1207_v50  ;;  %v6878_v59 = vpack.c.bf16 %v1218_v54, %v1214_v46  ;;  %v1242_v42 = vld [vmem:[#allocation7 + $0xba8] sm:$0xff]  ;;  %v1240_v29 = vld [vmem:[#allocation7 + $0xb98] sm:$0xff]  ;;  %v1237_v54 = vld [vmem:[#allocation7 + $0xb80] sm:$0xff] }
 0x280   :  { %v1244_v50 = vld [vmem:[#allocation7 + $0xbb8] sm:$0xff] }
 0x281   :  { %6865 = vmatpush1.bf16.msra.mxu0 %v6864_v58  ;;  %v7126_v58 = vpack.c.bf16 %v1220_v52, %v1216_v55  ;;  %v1241_v55 = vld [vmem:[#allocation7 + $0xba0] sm:$0xff]  ;;  %v1239_v52 = vld [vmem:[#allocation7 + $0xb90] sm:$0xff] }
 0x282   :  { %7113 = vmatpush1.bf16.msra.mxu1 %v7112_v17  ;;  %6867 = vmatprep.subr.bf16.mxu0 %v6866_v11  ;;  %v1219_v17 = vld [vmem:[#allocation7 + $0xaf0] sm:$0xff]  ;;  %v1222_v11 = vld [vmem:[#allocation7 + $0xb08] sm:$0xff] }
 0x283   :  { %7115 = vmatprep.subr.bf16.mxu1 %v7114_v21  ;;  %v6880_v21 = vpack.c.bf16 %v1217_v10, %v1213_v6  ;;  %v7128_v15 = vpack.c.bf16 %v1219_v17, %v1215_v8  ;;  %v6882_v1 = vpack.c.bf16 %v1226_v14, %v1222_v11  ;;  %v1250_v6 = vld [vmem:[#allocation7 + $0xbe8] sm:$0xff]  ;;  %v1248_v10 = vld [vmem:[#allocation7 + $0xbd8] sm:$0xff]  ;;  %v1245_v14 = vld [vmem:[#allocation7 + $0xbc0] sm:$0xff] }
 0x284   :  { %v1252_v8 = vld [vmem:[#allocation7 + $0xbf8] sm:$0xff] }
 0x285   :  { %6869 = vmatpush1.bf16.msra.mxu0 %v6868_v45  ;;  %v7130_v45 = vpack.c.bf16 %v1228_v20, %v1224_v16  ;;  %v1249_v16 = vld [vmem:[#allocation7 + $0xbe0] sm:$0xff]  ;;  %v1247_v20 = vld [vmem:[#allocation7 + $0xbd0] sm:$0xff] }
 0x286   :  { %7117 = vmatpush1.bf16.msra.mxu1 %v7116_v31  ;;  %6871 = vmatprep.subr.bf16.mxu0 %v6870_v33  ;;  %v1227_v31 = vld [vmem:[#allocation7 + $0xb30] sm:$0xff]  ;;  %v1230_v33 = vld [vmem:[#allocation7 + $0xb48] sm:$0xff] }
 0x287   :  { %7119 = vmatprep.subr.bf16.mxu1 %v7118_v63  ;;  %v6884_v63 = vpack.c.bf16 %v1225_v23, %v1221_v22  ;;  %v7132_v9 = vpack.c.bf16 %v1227_v31, %v1223_v24  ;;  %v6886_v37 = vpack.c.bf16 %v1234_v34, %v1230_v33  ;;  %v1254_v22 = vld [vmem:[#allocation7 + $0xc08] sm:$0xff]  ;;  %v670_v24 = vadd.f32 %v9558_v36, %v9528_v49  ;;  %v1260_v31 = vld [vmem:[#allocation7 + $0xc38] sm:$0xff] }
 0x288   :  { %v1258_v23 = vld [vmem:[#allocation7 + $0xc28] sm:$0xff]  ;;  %v6896_v33 = vpack.c.bf16 %v1249_v16, %v1245_v14 }
 0x289   :  { %6873 = vmatpush1.bf16.msra.mxu0 %v6872_v40  ;;  %v7134_v40 = vpack.c.bf16 %v1236_v28, %v1232_v32  ;;  %v6898_v32 = vpack.c.bf16 %v1258_v23, %v1254_v22  ;;  %v1253_v28 = vld [vmem:[#allocation7 + $0xc00] sm:$0xff]  ;;  %v1266_v36 = vld [vmem:[#allocation7 + $0xc68] sm:$0xff]  ;;  %vm786_vm13 = vcmp.gt.f32.partialorder %v670_v24, 0.0  ;;  %v1271_v22 = vld [vmem:[#allocation7 + $0xc90] sm:$0xff] }
 0x28a   :  { %7121 = vmatpush1.bf16.msra.mxu1 %v7120_v53  ;;  %6875 = vmatprep.subr.bf16.mxu0 %v6874_v35  ;;  %v1235_v53 = vld [vmem:[#allocation7 + $0xb70] sm:$0xff]  ;;  %v1238_v35 = vld [vmem:[#allocation7 + $0xb88] sm:$0xff] }
 0x28b   :  { %7123 = vmatprep.subr.bf16.mxu1 %v7122_v51  ;;  %v6888_v51 = vpack.c.bf16 %v1233_v39, %v1229_v38  ;;  %v7136_v62 = vpack.c.bf16 %v1235_v53, %v1231_v7  ;;  %v6890_v46 = vpack.c.bf16 %v1242_v42, %v1238_v35  ;;  %v1259_v39 = vld [vmem:[#allocation7 + $0xc30] sm:$0xff]  ;;  %v1262_v7 = vld [vmem:[#allocation7 + $0xc48] sm:$0xff]  ;;  %v676_v53 = vadd.f32 %v9566_v48, %v9533_v12  ;;  %v1264_v35 = vld [vmem:[#allocation7 + $0xc58] sm:$0xff] }
 0x28c   :  { %v1268_v42 = vld [vmem:[#allocation7 + $0xc78] sm:$0xff]  ;;  %v1267_v48 = vld [vmem:[#allocation7 + $0xc70] sm:$0xff] }
 0x28d   :  { %6877 = vmatpush1.bf16.msra.mxu0 %v6876_v56  ;;  %v7138_v56 = vpack.c.bf16 %v1244_v50, %v1240_v29  ;;  %vm794_vm15 = vcmp.gt.f32.partialorder %v676_v53, 0.0 }
 0x28e   :  { %7125 = vmatpush1.bf16.msra.mxu1 %v7124_v57  ;;  %6879 = vmatprep.subr.bf16.mxu0 %v6878_v59  ;;  %v1243_v57 = vld [vmem:[#allocation7 + $0xbb0] sm:$0xff]  ;;  %v1246_v59 = vld [vmem:[#allocation7 + $0xbc8] sm:$0xff] }
 0x28f   :  { %7127 = vmatprep.subr.bf16.mxu1 %v7126_v58  ;;  %v6892_v58 = vpack.c.bf16 %v1241_v55, %v1237_v54  ;;  %v7140_v17 = vpack.c.bf16 %v1243_v57, %v1239_v52  ;;  %v6894_v11 = vpack.c.bf16 %v1250_v6, %v1246_v59  ;;  %v674_v52 = vadd.f32 %v9562_v19, %v9533_v12  ;;  %v1270_v57 = vld [vmem:[#allocation7 + $0xc88] sm:$0xff] }
 0x290   :  { %v1274_v59 = vld [vmem:[#allocation7 + $0xca8] sm:$0xff]  ;;  %v826_v6 = vmul.f32 0.01, %v676_v53 }
 0x291   :  { %6881 = vmatpush1.bf16.msra.mxu0 %v6880_v21  ;;  %v662_v21 = vadd.f32 %v9546_v4, %v9526_v47  ;;  %v6906_v14 = vpack.c.bf16 %v1274_v59, %v1270_v57  ;;  %v825_v16 = vmul.f32 0.01, %v674_v52  ;;  %vm793_vm4 = vcmp.gt.f32.partialorder %v674_v52, 0.0  ;;  %v1291_v57 = vld [vmem:[#allocation7 + $0xd30] sm:$0xff]  ;;  %v1294_v59 = vld [vmem:[#allocation7 + $0xd48] sm:$0xff] }
 0x292   :  { %7129 = vmatpush1.bf16.msra.mxu1 %v7128_v15  ;;  %6883 = vmatprep.subr.bf16.mxu0 %v6882_v1  ;;  %v7142_v15 = vpack.c.bf16 %v1252_v8, %v1248_v10  ;;  %v1251_v1 = vld [vmem:[#allocation7 + $0xbf0] sm:$0xff]  ;;  %v682_v10 = vadd.f32 %v9574_v2, %v9539_v43 }
 0x293   :  { %7131 = vmatprep.subr.bf16.mxu1 %v7130_v45  ;;  %v1256_v45 = vld [vmem:[#allocation7 + $0xc18] sm:$0xff]  ;;  %v7144_v34 = vpack.c.bf16 %v1251_v1, %v1247_v20  ;;  %v809_v4 = vmul.f32 0.01, %v662_v21  ;;  %vm777_vm12 = vcmp.gt.f32.partialorder %v662_v21, 0.0  ;;  %v680_v20 = vadd.f32 %v9570_v0, %v9539_v43  ;;  %v1273_v1 = vld [vmem:[#allocation7 + $0xca0] sm:$0xff] }
 0x294   :  { %v7146_v38 = vpack.c.bf16 %v1260_v31, %v1256_v45  ;;  %v834_v23 = vmul.f32 0.01, %v682_v10  ;;  %v858_v45 = vsel %vm794_vm15, %v676_v53, %v826_v6  ;;  %v1275_v31 = vld [vmem:[#allocation7 + $0xcb0] sm:$0xff]  ;;  %vm802_vm5 = vcmp.gt.f32.partialorder %v682_v10, 0.0  ;;  %v1280_v0 = vld [vmem:[#allocation7 + $0xcd8] sm:$0xff]  ;;  %v1298_v6 = vld [vmem:[#allocation7 + $0xd68] sm:$0xff] }
 0x295   :  { %6885 = vmatpush1.bf16.msra.mxu0 %v6884_v63  ;;  %v1257_v63 = vld [vmem:[#allocation7 + $0xc20] sm:$0xff]  ;;  %v841_v54 = vsel %vm777_vm12, %v662_v21, %v809_v4  ;;  %vm801_vm6 = vcmp.gt.f32.partialorder %v680_v20, 0.0  ;;  %v1283_v53 = vld [vmem:[#allocation7 + $0xcf0] sm:$0xff] }
 0x296   :  { %7133 = vmatpush1.bf16.msra.mxu1 %v7132_v9  ;;  %6887 = vmatprep.subr.bf16.mxu0 %v6886_v37  ;;  %v1255_v9 = vld [vmem:[#allocation7 + $0xc10] sm:$0xff]  ;;  %v668_v37 = vadd.f32 %v9554_v30, %v9528_v49  ;;  %v6900_v29 = vpack.c.bf16 %v1257_v63, %v1253_v28  ;;  %v1261_v30 = vld [vmem:[#allocation7 + $0xc40] sm:$0xff]  ;;  %v833_v63 = vmul.f32 0.01, %v680_v20 }
 0x297   :  { %7135 = vmatprep.subr.bf16.mxu1 %v7134_v40  ;;  %v818_v40 = vmul.f32 0.01, %v670_v24  ;;  %v7148_v50 = vpack.c.bf16 %v1259_v39, %v1255_v9  ;;  %v857_v9 = vsel %vm793_vm4, %v674_v52, %v825_v16  ;;  %v1279_v39 = vld [vmem:[#allocation7 + $0xcd0] sm:$0xff] }
 0x298   :  { %v817_v55 = vmul.f32 0.01, %v668_v37  ;;  %vm785_vm14 = vcmp.gt.f32.partialorder %v668_v37, 0.0  ;;  %v1287_v52 = vld [vmem:[#allocation7 + $0xd10] sm:$0xff] }
 0x299   :  { %6889 = vmatpush1.bf16.msra.mxu0 %v6888_v51  ;;  %v6902_v51 = vpack.c.bf16 %v1266_v36, %v1262_v7  ;;  %v850_v8 = vsel %vm786_vm13, %v670_v24, %v818_v40  ;;  %v753_v24 = vadd.f32 %v9578_v18, %v9526_v47  ;;  %v7156_v18 = vpack.c.bf16 %v1275_v31, %v1271_v22  ;;  %v1295_v16 = vld [vmem:[#allocation7 + $0xd50] sm:$0xff]  ;;  %v1308_v22 = vld [vmem:[#allocation7 + $0xdb8] sm:$0xff]  ;;  %v1301_v31 = vld [vmem:[#allocation7 + $0xd80] sm:$0xff] }
 0x29a   :  { %7137 = vmatpush1.bf16.msra.mxu1 %v7136_v62  ;;  %6891 = vmatprep.subr.bf16.mxu0 %v6890_v46  ;;  %v1265_v62 = vld [vmem:[#allocation7 + $0xc60] sm:$0xff]  ;;  %v1263_v46 = vld [vmem:[#allocation7 + $0xc50] sm:$0xff]  ;;  %v849_v2 = vsel %vm785_vm14, %v668_v37, %v817_v55  ;;  %v866_v36 = vsel %vm802_vm5, %v682_v10, %v834_v23  ;;  %v1296_v10 = vld [vmem:[#allocation7 + $0xd58] sm:$0xff] }
 0x29b   :  { %7139 = vmatprep.subr.bf16.mxu1 %v7138_v56  ;;  %v7150_v56 = vpack.c.bf16 %v1268_v42, %v1264_v35  ;;  %v6904_v19 = vpack.c.bf16 %v1265_v62, %v1261_v30  ;;  %v1277_v37 = vld [vmem:[#allocation7 + $0xcc0] sm:$0xff]  ;;  %v812_v7 = vmul.f32 0.01, %v753_v24  ;;  %v1286_v35 = vld [vmem:[#allocation7 + $0xd08] sm:$0xff]  ;;  %vm780_vm7 = vcmp.gt.f32.partialorder %v753_v24, 0.0 }
 0x29c   :  { %v1290_v42 = vld [vmem:[#allocation7 + $0xd28] sm:$0xff]  ;;  %v865_v30 = vsel %vm801_vm6, %v680_v20, %v833_v63  ;;  %v7160_v62 = vpack.c.bf16 %v1283_v53, %v1279_v39  ;;  %v1289_v55 = vld [vmem:[#allocation7 + $0xd20] sm:$0xff]  ;;  %v1315_v53 = vld [vmem:[#allocation7 + $0xdf0] sm:$0xff] }
 0x29d   :  { %6893 = vmatpush1.bf16.msra.mxu0 %v6892_v58  ;;  %v1272_v58 = vld [vmem:[#allocation7 + $0xc98] sm:$0xff]  ;;  %v1314_v63 = vld [vmem:[#allocation7 + $0xde8] sm:$0xff]  ;;  %v1309_v39 = vld [vmem:[#allocation7 + $0xdc0] sm:$0xff] }
 0x29e   :  { %7141 = vmatpush1.bf16.msra.mxu1 %v7140_v17  ;;  %6895 = vmatprep.subr.bf16.mxu0 %v6894_v11  ;;  %v1276_v17 = vld [vmem:[#allocation7 + $0xcb8] sm:$0xff]  ;;  %v7152_v11 = vpack.c.bf16 %v1267_v48, %v1263_v46  ;;  %v6914_v46 = vpack.c.bf16 %v1290_v42, %v1286_v35  ;;  %v1318_v35 = vld [vmem:[#allocation7 + $0xe08] sm:$0xff] }
 0x29f   :  { %7143 = vmatprep.subr.bf16.mxu1 %v7142_v15  ;;  %v7154_v21 = vpack.c.bf16 %v1276_v17, %v1272_v58  ;;  %v1269_v15 = vld [vmem:[#allocation7 + $0xc80] sm:$0xff]  ;;  %v7164_v17 = vpack.c.bf16 %v1291_v57, %v1287_v52  ;;  %v1322_v42 = vld [vmem:[#allocation7 + $0xe28] sm:$0xff] }
 0x2a0   :  { %v6908_v28 = vpack.c.bf16 %v1273_v1, %v1269_v15  ;;  %v1306_v15 = vld [vmem:[#allocation7 + $0xda8] sm:$0xff]  ;;  %v1304_v1 = vld [vmem:[#allocation7 + $0xd98] sm:$0xff] }
 0x2a1   :  { %6897 = vmatpush1.bf16.msra.mxu0 %v6896_v33  ;;  %v1278_v33 = vld [vmem:[#allocation7 + $0xcc8] sm:$0xff] }
 0x2a2   :  { %7145 = vmatpush1.bf16.msra.mxu1 %v7144_v34  ;;  %6899 = vmatprep.subr.bf16.mxu0 %v6898_v32  ;;  %v1282_v34 = vld [vmem:[#allocation7 + $0xce8] sm:$0xff]  ;;  %v1284_v32 = vld [vmem:[#allocation7 + $0xcf8] sm:$0xff] }
 0x2a3   :  { %7147 = vmatprep.subr.bf16.mxu1 %v7146_v38  ;;  %v6910_v4 = vpack.c.bf16 %v1282_v34, %v1278_v33  ;;  %v1281_v38 = vld [vmem:[#allocation7 + $0xce0] sm:$0xff]  ;;  %v7158_v40 = vpack.c.bf16 %v1284_v32, %v1280_v0  ;;  %v1303_v34 = vld [vmem:[#allocation7 + $0xd90] sm:$0xff]  ;;  %v7170_v0 = vpack.c.bf16 %v1308_v22, %v1304_v1  ;;  %v1330_v57 = vld [vmem:[#allocation7 + $0xe68] sm:$0xff] }
 0x2a4   :  { %1647 = vmatmul.mubr.f32.vlgmr.msra.gmra.mrb[8].mxu0 %v841_v54  ;;  %v1305_v33 = vld [vmem:[#allocation7 + $0xda0] sm:$0xff]  ;;  %v1307_v32 = vld [vmem:[#allocation7 + $0xdb0] sm:$0xff] }
 0x2a5   :  { %2003 = vmatmul.mubr.f32.vlgmr.msra.gmra.mrb[24].mxu1 %v841_v54  ;;  %1652 = vmatprep.mubr.f32.mxu0 %v850_v8  ;;  %v1285_v54 = vld [vmem:[#allocation7 + $0xd00] sm:$0xff] }
 0x2a6   :  { %6901 = vmatpush1.bf16.msra.mxu0 %v6900_v29  ;;  %2008 = vmatprep.mubr.f32.mxu1 %v850_v8  ;;  %v1288_v29 = vld [vmem:[#allocation7 + $0xd18] sm:$0xff]  ;;  %v6916_v58 = vpack.c.bf16 %v1289_v55, %v1285_v54  ;;  %v1321_v54 = vld [vmem:[#allocation7 + $0xe20] sm:$0xff]  ;;  %v1319_v55 = vld [vmem:[#allocation7 + $0xe10] sm:$0xff] }
 0x2a7   :  { %7149 = vmatpush1.bf16.msra.mxu1 %v7148_v50  ;;  %6903 = vmatprep.subr.bf16.mxu0 %v6902_v51  ;;  %v1292_v50 = vld [vmem:[#allocation7 + $0xd38] sm:$0xff]  ;;  %v6912_v51 = vpack.c.bf16 %v1281_v38, %v1277_v37  ;;  %v7172_v37 = vpack.c.bf16 %v1307_v32, %v1303_v34  ;;  %v1339_v34 = vld [vmem:[#allocation7 + $0xeb0] sm:$0xff]  ;;  %v1346_v32 = vld [vmem:[#allocation7 + $0xee8] sm:$0xff] }
 0x2a8   :  { %1653 = vmatmul.mubr.f32.gmra.mrb[10].mxu0 %v849_v2  ;;  %7151 = vmatprep.subr.bf16.mxu1 %v7150_v56  ;;  %v844_v56 = vsel %vm780_vm7, %v753_v24, %v812_v7  ;;  %v7162_v48 = vpack.c.bf16 %v1292_v50, %v1288_v29  ;;  %v1300_v8 = vld [vmem:[#allocation7 + $0xd78] sm:$0xff]  ;;  %v1313_v7 = vld [vmem:[#allocation7 + $0xde0] sm:$0xff] }
 0x2a9   :  { %2009 = vmatmul.mubr.f32.gmra.mrb[26].mxu1 %v849_v2  ;;  %1658 = vmatprep.mubr.f32.mxu0 %v858_v45  ;;  %v7166_v20 = vpack.c.bf16 %v1300_v8, %v1296_v10  ;;  %v1299_v2 = vld [vmem:[#allocation7 + $0xd70] sm:$0xff]  ;;  %v1320_v29 = vld [vmem:[#allocation7 + $0xe18] sm:$0xff] }
 0x2aa   :  { %6905 = vmatpush1.bf16.msra.mxu0 %v6904_v19  ;;  %2014 = vmatprep.mubr.f32.mxu1 %v858_v45  ;;  %v6918_v19 = vpack.c.bf16 %v1298_v6, %v1294_v59  ;;  %v7168_v24 = vpack.c.bf16 %v1299_v2, %v1295_v16  ;;  %v1324_v50 = vld [vmem:[#allocation7 + $0xe38] sm:$0xff]  ;;  %v1331_v16 = vld [vmem:[#allocation7 + $0xe70] sm:$0xff]  ;;  %v1338_v2 = vld [vmem:[#allocation7 + $0xea8] sm:$0xff] }
 0x2ab   :  { %7153 = vmatpush1.bf16.msra.mxu1 %v7152_v11  ;;  %6907 = vmatprep.subr.bf16.mxu0 %v6906_v14  ;;  %v1293_v11 = vld [vmem:[#allocation7 + $0xd40] sm:$0xff]  ;;  %v7178_v52 = vpack.c.bf16 %v1324_v50, %v1320_v29  ;;  %v1328_v59 = vld [vmem:[#allocation7 + $0xe58] sm:$0xff] }
 0x2ac   :  { %1659 = vmatmul.mubr.f32.gmra.mrb[12].mxu0 %v857_v9  ;;  %7155 = vmatprep.subr.bf16.mxu1 %v7154_v21  ;;  %v1297_v14 = vld [vmem:[#allocation7 + $0xd60] sm:$0xff]  ;;  %v1302_v21 = vld [vmem:[#allocation7 + $0xd88] sm:$0xff]  ;;  %v1332_v6 = vld [vmem:[#allocation7 + $0xe78] sm:$0xff] }
 0x2ad   :  { %2015 = vmatmul.mubr.f32.gmra.mrb[28].mxu1 %v857_v9  ;;  %1664 = vmatprep.mubr.f32.mxu0 %v866_v36  ;;  %v6920_v23 = vpack.c.bf16 %v1297_v14, %v1293_v11  ;;  %v6922_v45 = vpack.c.bf16 %v1306_v15, %v1302_v21  ;;  %v1312_v9 = vld [vmem:[#allocation7 + $0xdd8] sm:$0xff]  ;;  %v1327_v11 = vld [vmem:[#allocation7 + $0xe50] sm:$0xff]  ;;  %v7182_v14 = vpack.c.bf16 %v1332_v6, %v1328_v59 }
 0x2ae   :  { %6909 = vmatpush1.bf16.msra.mxu0 %v6908_v28  ;;  %2020 = vmatprep.mubr.f32.mxu1 %v866_v36  ;;  %v1310_v28 = vld [vmem:[#allocation7 + $0xdc8] sm:$0xff]  ;;  %v1311_v36 = vld [vmem:[#allocation7 + $0xdd0] sm:$0xff]  ;;  %v1336_v21 = vld [vmem:[#allocation7 + $0xe98] sm:$0xff]  ;;  %v7184_v22 = vpack.c.bf16 %v1331_v16, %v1327_v11 }
 0x2af   :  { %7157 = vmatpush1.bf16.msra.mxu1 %v7156_v18  ;;  %6911 = vmatprep.subr.bf16.mxu0 %v6910_v4  ;;  %v1316_v18 = vld [vmem:[#allocation7 + $0xdf8] sm:$0xff]  ;;  %v6924_v4 = vpack.c.bf16 %v1305_v33, %v1301_v31  ;;  %v6926_v38 = vpack.c.bf16 %v1314_v63, %v1310_v28  ;;  %v1335_v31 = vld [vmem:[#allocation7 + $0xe90] sm:$0xff] }
 0x2b0   :  { %1665 = vmatmul.mubr.f32.gmra.mrb[14].mxu0 %v865_v30  ;;  %7159 = vmatprep.subr.bf16.mxu1 %v7158_v40  ;;  %v7174_v40 = vpack.c.bf16 %v1316_v18, %v1312_v9  ;;  %v1340_v15 = vld [vmem:[#allocation7 + $0xeb8] sm:$0xff]  ;;  %v7188_v18 = vpack.c.bf16 %v1339_v34, %v1335_v31  ;;  %v1363_v11 = vld [vmem:[#allocation7 + $0xf70] sm:$0xff]  ;;  %v763_v31 = vadd.f32 %v9584_v60, %v9533_v12 }
 0x2b1   :  { %2021 = vmatmul.mubr.f32.gmra.mrb[30].mxu1 %v865_v30  ;;  %6464 = vmatprep.mubr.msk.f32.mxu0 %vm1391_vm8, %v844_v56  ;;  %v7176_v30 = vpack.c.bf16 %v1315_v53, %v1311_v36  ;;  %v7186_v33 = vpack.c.bf16 %v1340_v15, %v1336_v21  ;;  %v1344_v28 = vld [vmem:[#allocation7 + $0xed8] sm:$0xff]  ;;  %v1347_v36 = vld [vmem:[#allocation7 + $0xef0] sm:$0xff]  ;;  %v1354_v53 = vld [vmem:[#allocation7 + $0xf28] sm:$0xff]  ;;  %v769_v34 = vadd.f32 %v9588_v26, %v9539_v43  ;;  %v9658_v26 = vsub.s32 0, %v9346_v3 }
 0x2b2   :  { %6913 = vmatpush1.bf16.msra.mxu0 %v6912_v51  ;;  %6468 = vmatprep.mubr.msk.f32.mxu1 %vm1391_vm8, %v844_v56  ;;  %v6928_v51 = vpack.c.bf16 %v1313_v7, %v1309_v39  ;;  %v1323_v56 = vld [vmem:[#allocation7 + $0xe30] sm:$0xff]  ;;  %v1348_v63 = vld [vmem:[#allocation7 + $0xef8] sm:$0xff]  ;;  %v1366_v21 = vld [vmem:[#allocation7 + $0xf88] sm:$0xff]  ;;  %vm795_vm13 = vcmp.gt.f32.partialorder %v763_v31, 0.0 }
 0x2b3   :  { %7161 = vmatpush1.bf16.msra.mxu1 %v7160_v62  ;;  %6915 = vmatprep.subr.bf16.mxu0 %v6914_v46  ;;  %v6930_v62 = vpack.c.bf16 %v1322_v42, %v1318_v35  ;;  %v1317_v46 = vld [vmem:[#allocation7 + $0xe00] sm:$0xff]  ;;  %v7180_v8 = vpack.c.bf16 %v1323_v56, %v1319_v55  ;;  %v1343_v39 = vld [vmem:[#allocation7 + $0xed0] sm:$0xff]  ;;  %v7190_v7 = vpack.c.bf16 %v1348_v63, %v1344_v28  ;;  %v1352_v35 = vld [vmem:[#allocation7 + $0xf18] sm:$0xff]  ;;  %vm803_vm15 = vcmp.gt.f32.partialorder %v769_v34, 0.0 }
 0x2b4   :  { %7163 = vmatprep.subr.bf16.mxu1 %v7162_v48  ;;  %v1326_v48 = vld [vmem:[#allocation7 + $0xe48] sm:$0xff]  ;;  %v6932_v10 = vpack.c.bf16 %v1321_v54, %v1317_v46  ;;  %v1356_v42 = vld [vmem:[#allocation7 + $0xf38] sm:$0xff]  ;;  %v7192_v50 = vpack.c.bf16 %v1347_v36, %v1343_v39  ;;  %v1351_v46 = vld [vmem:[#allocation7 + $0xf10] sm:$0xff] }
 0x2b5   :  { %v7194_v54 = vpack.c.bf16 %v1356_v42, %v1352_v35  ;;  %v1355_v55 = vld [vmem:[#allocation7 + $0xf30] sm:$0xff]  ;;  %v1362_v56 = vld [vmem:[#allocation7 + $0xf68] sm:$0xff]  ;;  %v1368_v15 = vld [vmem:[#allocation7 + $0xf98] sm:$0xff] }
 0x2b6   :  { %6917 = vmatpush1.bf16.msra.mxu0 %v6916_v58  ;;  %v6934_v58 = vpack.c.bf16 %v1330_v57, %v1326_v48  ;;  %v1360_v48 = vld [vmem:[#allocation7 + $0xf58] sm:$0xff]  ;;  %v7196_v6 = vpack.c.bf16 %v1355_v55, %v1351_v46  ;;  %v1369_v63 = vld [vmem:[#allocation9] sm:$0xf] }
 0x2b7   :  { %7165 = vmatpush1.bf16.msra.mxu1 %v7164_v17  ;;  %6919 = vmatprep.subr.bf16.mxu0 %v6918_v19  ;;  %v1325_v17 = vld [vmem:[#allocation7 + $0xe40] sm:$0xff]  ;;  %v1364_v57 = vld [vmem:[#allocation7 + $0xf78] sm:$0xff] }
 0x2b8   :  { %7167 = vmatprep.subr.bf16.mxu1 %v7166_v20  ;;  %v1329_v19 = vld [vmem:[#allocation7 + $0xe60] sm:$0xff]  ;;  %v1334_v20 = vld [vmem:[#allocation7 + $0xe88] sm:$0xff] }
 0x2b9   :  { %v6936_v1 = vpack.c.bf16 %v1329_v19, %v1325_v17  ;;  %v7198_v17 = vpack.c.bf16 %v1364_v57, %v1360_v48  ;;  %v1359_v19 = vld [vmem:[#allocation7 + $0xf50] sm:$0xff] }
 0x2ba   :  { %6921 = vmatpush1.bf16.msra.mxu0 %v6920_v23  ;;  %v6938_v23 = vpack.c.bf16 %v1338_v2, %v1334_v20  ;;  %v759_v20 = vadd.f32 %v9582_v44, %v9528_v49  ;;  %v7200_v2 = vpack.c.bf16 %v1363_v11, %v1359_v19  ;;  %v1367_v44 = vld [vmem:[#allocation7 + $0xf90] sm:$0xff] }
 0x2bb   :  { %7169 = vmatpush1.bf16.msra.mxu1 %v7168_v24  ;;  %6923 = vmatprep.subr.bf16.mxu0 %v6922_v45  ;;  %v1333_v24 = vld [vmem:[#allocation7 + $0xe80] sm:$0xff] }
 0x2bc   :  { %7171 = vmatprep.subr.bf16.mxu1 %v7170_v0  ;;  %v1337_v45 = vld [vmem:[#allocation7 + $0xea0] sm:$0xff]  ;;  %v1342_v0 = vld [vmem:[#allocation7 + $0xec8] sm:$0xff]  ;;  %vm788_vm10 = vcmp.gt.f32.partialorder %v759_v20, 0.0 }
 0x2bd   :  { %v6940_v9 = vpack.c.bf16 %v1337_v45, %v1333_v24 }
 0x2be   :  { %6925 = vmatpush1.bf16.msra.mxu0 %v6924_v4  ;;  %v6942_v4 = vpack.c.bf16 %v1346_v32, %v1342_v0 }
 0x2bf   :  { %7173 = vmatpush1.bf16.msra.mxu1 %v7172_v37  ;;  %6927 = vmatprep.subr.bf16.mxu0 %v6926_v38  ;;  %v1341_v37 = vld [vmem:[#allocation7 + $0xec0] sm:$0xff] }
 0x2c0   :  { %7175 = vmatprep.subr.bf16.mxu1 %v7174_v40  ;;  %v1345_v38 = vld [vmem:[#allocation7 + $0xee0] sm:$0xff]  ;;  %v1350_v40 = vld [vmem:[#allocation7 + $0xf08] sm:$0xff] }
 0x2c1   :  { %v6944_v29 = vpack.c.bf16 %v1345_v38, %v1341_v37  ;;  %v1374_v37 = vrot.slane %v1369_v63, %v9658_v26 }
 0x2c2   :  { %6929 = vmatpush1.bf16.msra.mxu0 %v6928_v51  ;;  %v6946_v51 = vpack.c.bf16 %v1354_v53, %v1350_v40 }
 0x2c3   :  { %7177 = vmatpush1.bf16.msra.mxu1 %v7176_v30  ;;  %6931 = vmatprep.subr.bf16.mxu0 %v6930_v62  ;;  %v1349_v30 = vld [vmem:[#allocation7 + $0xf00] sm:$0xff] }
 0x2c4   :  { %7179 = vmatprep.subr.bf16.mxu1 %v7178_v52  ;;  %v1353_v62 = vld [vmem:[#allocation7 + $0xf20] sm:$0xff]  ;;  %v1358_v52 = vld [vmem:[#allocation7 + $0xf48] sm:$0xff] }
 0x2c5   :  { %v6948_v59 = vpack.c.bf16 %v1353_v62, %v1349_v30 }
 0x2c6   :  { %6933 = vmatpush1.bf16.msra.mxu0 %v6932_v10  ;;  %v6950_v10 = vpack.c.bf16 %v1362_v56, %v1358_v52 }
 0x2c7   :  { %7181 = vmatpush1.bf16.msra.mxu1 %v7180_v8  ;;  %6935 = vmatprep.subr.bf16.mxu0 %v6934_v58  ;;  %v1357_v8 = vld [vmem:[#allocation7 + $0xf40] sm:$0xff] }
 0x2c8   :  { %7183 = vmatprep.subr.bf16.mxu1 %v7182_v14  ;;  %v1361_v58 = vld [vmem:[#allocation7 + $0xf60] sm:$0xff]  ;;  %v751_v14 = vadd.f32 %v9576_v25, %v9526_v47  ;;  %v765_v47 = vadd.f32 %v9586_v61, %v9533_v12  ;;  %v827_v61 = vmul.f32 0.01, %v763_v31 }
 0x2c9   :  { %v6952_v16 = vpack.c.bf16 %v1361_v58, %v1357_v8  ;;  %v1365_v25 = vld [vmem:[#allocation7 + $0xf80] sm:$0xff] }
 0x2ca   :  { %6937 = vmatpush1.bf16.msra.mxu0 %v6936_v1  ;;  %v811_v1 = vmul.f32 0.01, %v751_v14  ;;  %vm779_vm9 = vcmp.gt.f32.partialorder %v751_v14, 0.0  ;;  %vm796_vm12 = vcmp.gt.f32.partialorder %v765_v47, 0.0  ;;  %v859_v32 = vsel %vm795_vm13, %v763_v31, %v827_v61 }
 0x2cb   :  { %7185 = vmatpush1.bf16.msra.mxu1 %v7184_v22  ;;  %6939 = vmatprep.subr.bf16.mxu0 %v6938_v23  ;;  %v757_v22 = vadd.f32 %v9580_v41, %v9528_v49  ;;  %v820_v23 = vmul.f32 0.01, %v759_v20  ;;  %v771_v49 = vadd.f32 %v9590_v27, %v9539_v43  ;;  %v835_v27 = vmul.f32 0.01, %v769_v34 }
 0x2cc   :  { %7187 = vmatprep.subr.bf16.mxu1 %v7186_v33  ;;  %v843_v24 = vsel %vm779_vm9, %v751_v14, %v811_v1  ;;  %v828_v33 = vmul.f32 0.01, %v765_v47 }
 0x2cd   :  { %v819_v45 = vmul.f32 0.01, %v757_v22  ;;  %v852_v41 = vsel %vm788_vm10, %v759_v20, %v820_v23  ;;  %vm787_vm11 = vcmp.gt.f32.partialorder %v757_v22, 0.0  ;;  %v836_v60 = vmul.f32 0.01, %v771_v49 }
 0x2ce   :  { %6941 = vmatpush1.bf16.msra.mxu0 %v6940_v9  ;;  %v860_v0 = vsel %vm796_vm12, %v765_v47, %v828_v33  ;;  %vm804_vm14 = vcmp.gt.f32.partialorder %v771_v49, 0.0  ;;  %v867_v43 = vsel %vm803_vm15, %v769_v34, %v835_v27  ;;  %v1381_v9 = vsub.s32 2, %v9346_v3 }
 0x2cf   :  { %7189 = vmatpush1.bf16.msra.mxu1 %v7188_v18  ;;  %6943 = vmatprep.subr.bf16.mxu0 %v6942_v4  ;;  %v851_v12 = vsel %vm787_vm11, %v757_v22, %v819_v45  ;;  %v868_v28 = vsel %vm804_vm14, %v771_v49, %v836_v60  ;;  %v9662_v18 = vsub.s32 1, %v9346_v3  ;;  %v1385_v4 = vsub.s32 3, %v9346_v3 }
 0x2d0   :  { %7191 = vmatprep.subr.bf16.mxu1 %v7190_v7  ;;  %v9668_v38 = vrot.slane %v1369_v63, %v1381_v9 }
 0x2d1   :  { %v9671_v39 = vrot.slane %v1369_v63, %v9662_v18  ;;  %v9675_v7 = vrot.slane %v1369_v63, %v1385_v4 }
 0x2d2   :  { %6945 = vmatpush1.bf16.msra.mxu0 %v6944_v29 }
 0x2d3   :  { %7193 = vmatpush1.bf16.msra.mxu1 %v7192_v50  ;;  %6947 = vmatprep.subr.bf16.mxu0 %v6946_v51 }
 0x2d4   :  { %7195 = vmatprep.subr.bf16.mxu1 %v7194_v54 }
 0x2d6   :  { %6949 = vmatpush1.bf16.msra.mxu0 %v6948_v59 }
 0x2d7   :  { %7197 = vmatpush1.bf16.msra.mxu1 %v7196_v6  ;;  %6951 = vmatprep.subr.bf16.mxu0 %v6950_v10 }
 0x2d8   :  { %7199 = vmatprep.subr.bf16.mxu1 %v7198_v17 }
 0x2da   :  { %6953 = vmatpush1.bf16.msra.mxu0 %v6952_v16 }
 0x2db   :  { %7201 = vmatpush1.bf16.msra.mxu1 %v7200_v2  ;;  %1727 = vmatprep.subr.mxu0 %v1366_v21 }
 0x2dc   :  { %2083 = vmatprep.subr.mxu1 %v1368_v15 }
 0x2de   :  { %1728 = vmatpush1.msra.mxu0 %v1365_v25 }
 0x2df   :  { %2084 = vmatpush1.msra.mxu1 %v1367_v44  ;;  %1736 = vmatmul.mubr.f32.vlgmr.msra.gmra.mrb[8].mxu0 %v843_v24 }
 0x2e0   :  { %2092 = vmatmul.mubr.f32.vlgmr.msra.gmra.mrb[24].mxu1 %v843_v24  ;;  %6465 = vmatprep.mubr.msk.f32.mxu0 %vm1391_vm8, %v852_v41 }
 0x2e1   :  { %6469 = vmatprep.mubr.msk.f32.mxu1 %vm1391_vm8, %v852_v41 }
 0x2e3   :  { %1742 = vmatmul.mubr.f32.gmra.mrb[10].mxu0 %v851_v12 }
 0x2e4   :  { %2098 = vmatmul.mubr.f32.gmra.mrb[26].mxu1 %v851_v12  ;;  %6466 = vmatprep.mubr.msk.f32.mxu0 %vm1391_vm8, %v860_v0 }
 0x2e5   :  { %6470 = vmatprep.mubr.msk.f32.mxu1 %vm1391_vm8, %v860_v0 }
 0x2e7   :  { %1748 = vmatmul.mubr.f32.gmra.mrb[12].mxu0 %v859_v32 }
 0x2e8   :  { %2104 = vmatmul.mubr.f32.gmra.mrb[28].mxu1 %v859_v32  ;;  %6467 = vmatprep.mubr.msk.f32.mxu0 %vm1391_vm8, %v868_v28 }
 0x2e9   :  { %6471 = vmatprep.mubr.msk.f32.mxu1 %vm1391_vm8, %v868_v28 }
 0x2eb   :  { %1754 = vmatmul.mubr.f32.gmra.mrb[14].mxu0 %v867_v43 }
 0x2ec   :  { %2110 = vmatmul.mubr.f32.gmra.mrb[30].mxu1 %v867_v43  ;;  %2454 = vmatprep.mubr.f32.mxu0 %v9115_v13 }
 0x2ed   :  { %2567 = vmatprep.mubr.f32.mxu1 %v9115_v13 }
 0x3b2   :  { %v1737_v36 = vpop.f32.mrb[8].mxu0 }
 0x3b3   :  { %v8491_v40 = vadd.f32 %v1737_v36, %v1374_v37  ;;  %v2093_v53 = vpop.f32.mrb[24].mxu1  ;;  %v1739_v35 = vpop.f32.mrb[9].mxu0 }
 0x3b4   :  { %v8499_v42 = vadd.f32 %v2093_v53, %v9668_v38  ;;  %v8492_v29 = vadd.f32 %v1739_v35, %v9671_v39  ;;  %v2095_v50 = vpop.f32.mrb[25].mxu1 }
 0x3b5   :  { %vm2116_vm4 = vcmp.gt.f32.partialorder %v8491_v40, 0.0  ;;  %v2132_v51 = vmul.f32 0.01, %v8491_v40  ;;  %v8500_v30 = vadd.f32 %v2095_v50, %v9675_v7 }
 0x3b6   :  { %vm2118_vm5 = vcmp.gt.f32.partialorder %v8499_v42, 0.0  ;;  %v2134_v62 = vmul.f32 0.01, %v8499_v42  ;;  %vm2117_vm6 = vcmp.gt.f32.partialorder %v8492_v29, 0.0  ;;  %v2133_v46 = vmul.f32 0.01, %v8492_v29 }
 0x3b7   :  { %v9680_v54 = vsel %vm2116_vm4, %v8491_v40, %v2132_v51  ;;  %vm2119_vm7 = vcmp.gt.f32.partialorder %v8500_v30, 0.0  ;;  %v2135_v55 = vmul.f32 0.01, %v8500_v30  ;;  %v1743_v52 = vpop.f32.mrb[10].mxu0  ;;  %v2099_v56 = vpop.f32.mrb[26].mxu1 }
 0x3b8   :  { %v9682_v48 = vsel %vm2118_vm5, %v8499_v42, %v2134_v62  ;;  %v9684_v57 = vsel %vm2117_vm6, %v8492_v29, %v2133_v46  ;;  %v8493_v59 = vadd.f32 %v1743_v52, %v1374_v37  ;;  %v8501_v6 = vadd.f32 %v2099_v56, %v9668_v38  ;;  %v1745_v10 = vpop.f32.mrb[11].mxu0  ;;  %v2101_v8 = vpop.f32.mrb[27].mxu1 }
 0x3b9   :  { %v9687_v58 = vsel %vm2119_vm7, %v8500_v30, %v2135_v55  ;;  %v8494_v17 = vadd.f32 %v1745_v10, %v9671_v39  ;;  %v8502_v19 = vadd.f32 %v2101_v8, %v9675_v7  ;;  %v8652_v11 = vpack.i.bf16 %v9684_v57, %v9680_v54 }
 0x3ba   :  { %vm2120_vm9 = vcmp.gt.f32.partialorder %v8493_v59, 0.0  ;;  %v2136_v14 = vmul.f32 0.01, %v8493_v59  ;;  %vm2122_vm10 = vcmp.gt.f32.partialorder %v8501_v6, 0.0  ;;  %v2138_v16 = vmul.f32 0.01, %v8501_v6 }
 0x3bb   :  { %vm2121_vm11 = vcmp.gt.f32.partialorder %v8494_v17, 0.0  ;;  %v2137_v20 = vmul.f32 0.01, %v8494_v17  ;;  %vm2123_vm12 = vcmp.gt.f32.partialorder %v8502_v19, 0.0  ;;  %v2139_v2 = vmul.f32 0.01, %v8502_v19  ;;  %8653 = vrot.lane.b32.xlu1 %v8652_v11, %s9113_s16 }
 0x3bc   :  { %v9694_v21 = vsel %vm2120_vm9, %v8493_v59, %v2136_v14  ;;  %v9696_v15 = vsel %vm2122_vm10, %v8501_v6, %v2138_v16  ;;  %v1749_v1 = vpop.f32.mrb[12].mxu0  ;;  %v2105_v22 = vpop.f32.mrb[28].mxu1  ;;  %v8672_v23 = vpack.i.bf16 %v9682_v48, %v9684_v57  ;;  %v8702_v47 = vpack.i.bf16 %v9687_v58, %v9682_v48  ;;  %vm6472_vm10 = vmneg %vm246_vm0 }
 0x3bd   :  { %v7214_v25 = vpack.c.bf16 %v9694_v21, %v9680_v54  ;;  %v7238_v44 = vpack.c.bf16 %v9696_v15, %v9682_v48  ;;  %v9706_v24 = vsel %vm2121_vm11, %v8494_v17, %v2137_v20  ;;  %v9708_v45 = vsel %vm2123_vm12, %v8502_v19, %v2139_v2  ;;  %v1751_v31 = vpop.f32.mrb[13].mxu0  ;;  %v2107_v33 = vpop.f32.mrb[29].mxu1  ;;  %vm9827_vm11 = vmpackc.low %vm6472_vm10, %vm6472_vm10 }
 0x3be   :  { %v8495_v49 = vadd.f32 %v1749_v1, %v1374_v37  ;;  %v8503_v41 = vadd.f32 %v2105_v22, %v9668_v38  ;;  %v8496_v61 = vadd.f32 %v1751_v31, %v9671_v39  ;;  %v8504_v34 = vadd.f32 %v2107_v33, %v9675_v7  ;;  %v1755_v12 = vpop.f32.mrb[14].mxu0 }
 0x3bf   :  { %v8497_v60 = vadd.f32 %v1755_v12, %v1374_v37  ;;  %v2111_v0 = vpop.f32.mrb[30].mxu1  ;;  %v1757_v27 = vpop.f32.mrb[15].mxu0  ;;  %v8657_v32 = vpack.i.bf16 %v9706_v24, %v9694_v21  ;;  %v8677_v28 = vpack.i.bf16 %v9696_v15, %v9706_v24  ;;  %v8682_v43 = vpack.i.bf16 %v9694_v21, %v9680_v54  ;;  %v2320_v12 = vld [vmem:[%s10597_s6 + $0x18] sm:$0xff] }
 0x3c0   :  { %vm2124_vm13 = vcmp.gt.f32.partialorder %v8495_v49, 0.0  ;;  %v2140_v63 = vmul.f32 0.01, %v8495_v49  ;;  %vm2126_vm14 = vcmp.gt.f32.partialorder %v8503_v41, 0.0  ;;  %v2142_v36 = vmul.f32 0.01, %v8503_v41 }
 0x3c1   :  { %vm2125_vm15 = vcmp.gt.f32.partialorder %v8496_v61, 0.0  ;;  %v2141_v40 = vmul.f32 0.01, %v8496_v61  ;;  %vm2127_vm4 = vcmp.gt.f32.partialorder %v8504_v34, 0.0  ;;  %v2143_v53 = vmul.f32 0.01, %v8504_v34  ;;  %8658 = vrot.lane.b32.xlu0 %v8657_v32, %s9113_s16 }
 0x3c2   :  { %v9720_v37 = vsel %vm2124_vm13, %v8495_v49, %v2140_v63  ;;  %v9722_v35 = vsel %vm2126_vm14, %v8503_v41, %v2142_v36  ;;  %vm2128_vm5 = vcmp.gt.f32.partialorder %v8497_v60, 0.0  ;;  %v2144_v42 = vmul.f32 0.01, %v8497_v60  ;;  %v2113_v29 = vpop.f32.mrb[31].mxu1 }
 0x3c3   :  { %v9724_v50 = vsel %vm2125_vm15, %v8496_v61, %v2141_v40  ;;  %v9726_v51 = vsel %vm2127_vm4, %v8504_v34, %v2143_v53  ;;  %v8505_v30 = vadd.f32 %v2111_v0, %v9668_v38  ;;  %v8498_v62 = vadd.f32 %v1757_v27, %v9671_v39  ;;  %v2318_v61 = vld [vmem:[%s10597_s6 + $0x8] sm:$0xff]  ;;  %v2321_v34 = vld [vmem:[%s10597_s6 + $0x20] sm:$0xff]  ;;  %v2324_v27 = vld [vmem:[%s10597_s6 + $0x38] sm:$0xff] }
 0x3c4   :  { %v9730_v46 = vsel %vm2128_vm5, %v8497_v60, %v2144_v42  ;;  %v8506_v55 = vadd.f32 %v2113_v29, %v9675_v7  ;;  %v8662_v52 = vpack.i.bf16 %v9724_v50, %v9720_v37  ;;  %v8687_v56 = vpack.i.bf16 %v9722_v35, %v9724_v50  ;;  %v2323_v60 = vld [vmem:[%s10597_s6 + $0x30] sm:$0xff]  ;;  %v2322_v0 = vld [vmem:[%s10597_s6 + $0x28] sm:$0xff] }
 0x3c5   :  { %v7218_v59 = vpack.c.bf16 %v9730_v46, %v9720_v37  ;;  %vm2130_vm6 = vcmp.gt.f32.partialorder %v8505_v30, 0.0  ;;  %v2146_v6 = vmul.f32 0.01, %v8505_v30  ;;  %vm2129_vm7 = vcmp.gt.f32.partialorder %v8498_v62, 0.0 }
 0x3c6   :  { %v2145_v10 = vmul.f32 0.01, %v8498_v62  ;;  %vm2131_vm9 = vcmp.gt.f32.partialorder %v8506_v55, 0.0  ;;  %v2147_v38 = vmul.f32 0.01, %v8506_v55  ;;  %8663 = vrot.lane.b32.xlu1 %v8662_v52, %s9113_s16  ;;  %v8697_v39 = vpack.i.bf16 %v9730_v46, %v9720_v37 }
 0x3c7   :  { %v9742_v7 = vsel %vm2130_vm6, %v8505_v30, %v2146_v6  ;;  %v8707_v8 = vpack.i.bf16 %v9708_v45, %v9696_v15  ;;  %v8712_v17 = vpack.i.bf16 %v9726_v51, %v9722_v35  ;;  %v8722_v19 = vpack.i.bf16 %v9708_v45, %v9687_v58  ;;  %v2724_v15 = vld [vmem:[#allocation12 + $0x60] sm:$0xff] }
 0x3c8   :  { %v7242_v11 = vpack.c.bf16 %v9742_v7, %v9722_v35  ;;  %v9752_v14 = vsel %vm2129_vm7, %v8498_v62, %v2145_v10  ;;  %v9754_v16 = vsel %vm2131_vm9, %v8506_v55, %v2147_v38  ;;  %v7212_v20 = vpack.c.bf16 %v9706_v24, %v9684_v57 }
 0x3c9   :  { %v8667_v2 = vpack.i.bf16 %v9752_v14, %v9730_v46  ;;  %v8692_v1 = vpack.i.bf16 %v9742_v7, %v9752_v14  ;;  %v8717_v22 = vpack.i.bf16 %v9754_v16, %v9742_v7  ;;  %v8727_v31 = vpack.i.bf16 %v9754_v16, %v9726_v51 }
 0x3ca   :  { %8673 = vrot.lane.b32.xlu1 %v8672_v23, %s9114_s25  ;;  %v7216_v33 = vpack.c.bf16 %v9752_v14, %v9724_v50  ;;  %v7236_v49 = vpack.c.bf16 %v9708_v45, %v9687_v58  ;;  %v7240_v41 = vpack.c.bf16 %v9754_v16, %v9726_v51  ;;  %v2317_v23 = vld [vmem:[%s10597_s6] sm:$0xff]  ;;  %vm2365_vm12 = vcmask 785408  }
 0x3cb   :  { %8668 = vrot.lane.b32.xlu0 %v8667_v2, %s9113_s16  ;;  %vm2304_vm13 = vcmask 941056   ;;  %v9925_v58 = vld [vmem:[#allocation10 + $0x10] sm:$0xff] }
 0x3cc   :  { %vm9933_vm14 = vmpackc.low %vm2304_vm13, %vm2304_vm13 }
 0x3ce   :  { %8683 = vrot.lane.b32.xlu1 %v8682_v43, %s9114_s25 }
 0x3cf   :  { %8678 = vrot.lane.b32.xlu0 %v8677_v28, %s9114_s25 }
 0x3d2   :  { %8693 = vrot.lane.b32.xlu1 %v8692_v1, %s9114_s25 }
 0x3d3   :  { %8688 = vrot.lane.b32.xlu0 %v8687_v56, %s9114_s25 }
 0x3d6   :  { %8703 = vrot.lane.b32.xlu1 %v8702_v47, %s9113_s16  ;;  %v2319_v47 = vld [vmem:[%s10597_s6 + $0x10] sm:$0xff] }
 0x3d7   :  { %8698 = vrot.lane.b32.xlu0 %v8697_v39, %s9114_s25 }
 0x3da   :  { %8713 = vrot.lane.b32.xlu1 %v8712_v17, %s9113_s16 }
 0x3db   :  { %8708 = vrot.lane.b32.xlu0 %v8707_v8, %s9113_s16 }
 0x3de   :  { %8723 = vrot.lane.b32.xlu1 %v8722_v19, %s9114_s25 }
 0x3df   :  { %8718 = vrot.lane.b32.xlu0 %v8717_v22, %s9113_s16 }
 0x3e2   :  { %2327 = vperm.xlu1 %8651, %v2317_v23  }
 0x3e3   :  { %8728 = vrot.lane.b32.xlu0 %v8727_v31, %s9114_s25 }
 0x3e6   :  { %2337 = vperm.xlu1 %8651, %v2319_v47  }
 0x3e7   :  { %2332 = vperm.xlu0 %8650, %v2318_v61  }
 0x3ea   :  { %2347 = vperm.xlu1 %8651, %v2321_v34  }
 0x3eb   :  { %2342 = vperm.xlu0 %8650, %v2320_v12  }
 0x3ee   :  { %2357 = vperm.xlu1 %8651, %v2323_v60  }
 0x3ef   :  { %2352 = vperm.xlu0 %8650, %v2322_v0  }
 0x3f3   :  { %2362 = vperm.xlu0 %8650, %v2324_v27  }
 0x42d   :  { %v9812_v32 = vpop.permute.xlu1 %8653 }
 0x42e   :  { %v8656_v28 = vunpack.i.h.bf16 %v9812_v32  ;;  %v8655_v43 = vunpack.i.l.bf16 %v9812_v32 }
 0x430   :  { %v2212_v53 = vsel %vm246_vm0, %v8655_v43, %v8656_v28 }
 0x433   :  { %v9816_v63 = vpop.permute.xlu0 %8658 }
 0x434   :  { %v8661_v36 = vunpack.i.h.bf16 %v9816_v63  ;;  %v8660_v40 = vunpack.i.l.bf16 %v9816_v63 }
 0x436   :  { %v2215_v42 = vsel %vm246_vm0, %v8660_v40, %v8661_v36  ;;  %v7204_v62 = vpack.c.bf16 %v8660_v40, %v8655_v43 }
 0x437   :  { %v7202_v29 = vpack.c.bf16 %v2215_v42, %v2212_v53 }
 0x438   :  { %v9831_v55 = vpop.permute.xlu1 %8663 }
 0x439   :  { %7203 = vmatprep.subr.bf16.mxu0 %v7202_v29  ;;  %v8666_v52 = vunpack.i.h.bf16 %v9831_v55  ;;  %v8665_v56 = vunpack.i.l.bf16 %v9831_v55 }
 0x43a   :  { %7206 = vmatpush1.bf16.msk.msra.mxu0 %vm9827_vm11, %v7204_v62 }
 0x43b   :  { %v2218_v17 = vsel %vm246_vm0, %v8665_v56, %v8666_v52 }
 0x43c   :  { %v9837_v6 = vpop.permute.xlu1 %8673 }
 0x43d   :  { %v9839_v10 = vpop.permute.xlu0 %8668  ;;  %v8676_v61 = vunpack.i.h.bf16 %v9837_v6  ;;  %v8675_v34 = vunpack.i.l.bf16 %v9837_v6 }
 0x43e   :  { %v8671_v38 = vunpack.i.h.bf16 %v9839_v10  ;;  %v8670_v39 = vunpack.i.l.bf16 %v9839_v10  ;;  %v2721_v10 = vld [vmem:[#allocation12 + $0x48] sm:$0xff] }
 0x440   :  { %v8684_v8 = vpop.permute.xlu1 %8683  ;;  %v2221_v19 = vsel %vm246_vm0, %v8670_v39, %v8671_v38  ;;  %v7209_v22 = vpack.c.bf16 %v8670_v39, %v8665_v56 }
 0x441   :  { %v9849_v2 = vpop.permute.xlu0 %8678  ;;  %v7207_v1 = vpack.c.bf16 %v2221_v19, %v2218_v17  ;;  %v8686_v60 = vunpack.i.h.bf16 %v8684_v8  ;;  %v8685_v0 = vunpack.i.l.bf16 %v8684_v8 }
 0x442   :  { %v8681_v31 = vunpack.i.h.bf16 %v9849_v2  ;;  %v8680_v23 = vunpack.i.l.bf16 %v9849_v2  ;;  %v2729_v2 = vld [vmem:[#allocation12 + $0x88] sm:$0xff] }
 0x443   :  { %7208 = vmatprep.subr.bf16.mxu0 %v7207_v1  ;;  %v2276_v62 = vsel %vm279_vm1, %v8685_v0, %v8675_v34 }
 0x444   :  { %7211 = vmatpush1.bf16.msk.msra.mxu0 %vm9827_vm11, %v7209_v22  ;;  %v9855_v47 = vpop.permute.xlu1 %8693  ;;  %v2280_v42 = vsel %vm279_vm1, %v8680_v23, %v8681_v31  ;;  %v2279_v29 = vsel %vm279_vm1, %v8686_v60, %v8680_v23  ;;  %v2713_v23 = vld [vmem:[#allocation12 + $0x8] sm:$0xff] }
 0x445   :  { %v9859_v12 = vpop.permute.xlu0 %8688  ;;  %7213 = vmatprep.subr.bf16.mxu0 %v7212_v20  ;;  %v8696_v27 = vunpack.i.h.bf16 %v9855_v47  ;;  %v8695_v43 = vunpack.i.l.bf16 %v9855_v47  ;;  %v2277_v20 = vsel %vm279_vm1, %v8675_v34, %v8676_v61  ;;  %v7222_v17 = vpack.c.bf16 %v2279_v29, %v2276_v62  ;;  %v2715_v34 = vld [vmem:[#allocation12 + $0x18] sm:$0xff] }
 0x446   :  { %v8691_v40 = vunpack.i.h.bf16 %v9859_v12  ;;  %v8690_v53 = vunpack.i.l.bf16 %v9859_v12  ;;  %v7220_v56 = vpack.c.bf16 %v2280_v42, %v2277_v20 }
 0x447   :  { %v2286_v54 = vsel %vm279_vm1, %v8695_v43, %v8696_v27 }
 0x448   :  { %7215 = vmatpush1.bf16.msra.mxu0 %v7214_v25  ;;  %v8704_v57 = vpop.permute.xlu1 %8703  ;;  %v2283_v50 = vsel %vm279_vm1, %v8690_v53, %v8691_v40 }
 0x449   :  { %v8699_v24 = vpop.permute.xlu0 %8698  ;;  %7217 = vmatprep.subr.bf16.mxu0 %v7216_v33  ;;  %v8705_v39 = vunpack.i.l.bf16 %v8704_v57  ;;  %v8706_v14 = vunpack.i.h.bf16 %v8704_v57  ;;  %v7224_v22 = vpack.c.bf16 %v2286_v54, %v2283_v50  ;;  %v2714_v54 = vld [vmem:[#allocation12 + $0x10] sm:$0xff] }
 0x44a   :  { %v8701_v21 = vunpack.i.h.bf16 %v8699_v24  ;;  %v8700_v25 = vunpack.i.l.bf16 %v8699_v24 }
 0x44b   :  { %v2213_v42 = vsel %vm246_vm0, %v8656_v28, %v8705_v39  ;;  %v2712_v28 = vld [vmem:[#allocation12] sm:$0xff] }
 0x44c   :  { %7219 = vmatpush1.bf16.msra.mxu0 %v7218_v59  ;;  %v8714_v33 = vpop.permute.xlu1 %8713  ;;  %v2282_v60 = vsel %vm279_vm1, %v8700_v25, %v8690_v53  ;;  %v2285_v0 = vsel %vm279_vm1, %v8701_v21, %v8695_v43  ;;  %v2214_v59 = vsel %vm246_vm0, %v8705_v39, %v8706_v14  ;;  %v7254_v43 = vpack.c.bf16 %v2715_v34, %v2713_v23  ;;  %v2719_v21 = vld [vmem:[#allocation12 + $0x38] sm:$0xff]  ;;  %v9907_v39 = vld [vmem:[#allocation10] sm:$0xff] }
 0x44d   :  { %v8709_v8 = vpop.permute.xlu0 %8708  ;;  %7221 = vmatprep.subr.bf16.mxu0 %v7220_v56  ;;  %v8715_v57 = vunpack.i.l.bf16 %v8714_v33  ;;  %v8716_v46 = vunpack.i.h.bf16 %v8714_v33  ;;  %v7226_v62 = vpack.c.bf16 %v2285_v0, %v2282_v60  ;;  %v2720_v0 = vld [vmem:[#allocation12 + $0x40] sm:$0xff] }
 0x44e   :  { %v8711_v19 = vunpack.i.h.bf16 %v8709_v8  ;;  %v8710_v1 = vunpack.i.l.bf16 %v8709_v8 }
 0x44f   :  { %v2219_v63 = vsel %vm246_vm0, %v8666_v52, %v8715_v57  ;;  %v2220_v50 = vsel %vm246_vm0, %v8715_v57, %v8716_v46  ;;  %v7256_v52 = vpack.c.bf16 %v2714_v54, %v2712_v28  ;;  %v2727_v46 = vld [vmem:[#allocation12 + $0x78] sm:$0xff]  ;;  %v9959_v28 = vld [vmem:[#allocation10 + $0x20] sm:$0xff]  ;;  %v2734_v54 = vld [vmem:[#allocation12 + $0xb0] sm:$0xff] }
 0x450   :  { %v2216_v37 = vsel %vm246_vm0, %v8661_v36, %v8710_v1  ;;  %7223 = vmatpush1.bf16.msra.mxu0 %v7222_v17  ;;  %v2217_v24 = vsel %vm246_vm0, %v8710_v1, %v8711_v19  ;;  %v2717_v36 = vld [vmem:[#allocation12 + $0x28] sm:$0xff]  ;;  %v2716_v17 = vld [vmem:[#allocation12 + $0x20] sm:$0xff]  ;;  %v2718_v19 = vld [vmem:[#allocation12 + $0x30] sm:$0xff]  ;;  %v8724_v1 = vpop.permute.xlu1 %8723 }
 0x451   :  { %v7230_v20 = vpack.c.bf16 %v2216_v37, %v2213_v42  ;;  %v8719_v29 = vpop.permute.xlu0 %8718  ;;  %7225 = vmatprep.subr.bf16.mxu0 %v7224_v22  ;;  %v7228_v53 = vpack.c.bf16 %v2217_v24, %v2214_v59  ;;  %v7258_v8 = vpack.c.bf16 %v2719_v21, %v2717_v36  ;;  %v9914_v22 = vld [vmem:[#allocation10 + $0x8] sm:$0xff]  ;;  %v7260_v23 = vpack.c.bf16 %v2718_v19, %v2716_v17  ;;  %v2722_v42 = vld [vmem:[#allocation12 + $0x50] sm:$0xff]  ;;  %v2739_v36 = vld [vmem:[#allocation12 + $0xd8] sm:$0xff] }
 0x452   :  { %v8721_v32 = vunpack.i.h.bf16 %v8719_v29  ;;  %v8720_v56 = vunpack.i.l.bf16 %v8719_v29  ;;  %v8726_v34 = vunpack.i.h.bf16 %v8724_v1  ;;  %v8725_v57 = vunpack.i.l.bf16 %v8724_v1  ;;  %v2725_v37 = vld [vmem:[#allocation12 + $0x68] sm:$0xff]  ;;  %v9946_v29 = vld [vmem:[#allocation10 + $0x18] sm:$0xff]  ;;  %v2740_v1 = vld [vmem:[#allocation12 + $0xe0] sm:$0xff] }
 0x453   :  { %7229 = vmatprep.subr.bf16.mxu1 %v7228_v53  ;;  %v7264_v45 = vpack.c.bf16 %v2722_v42, %v2720_v0  ;;  %v7266_v48 = vpack.c.bf16 %v2727_v46, %v2725_v37  ;;  %v9966_v21 = vld [vmem:[#allocation10 + $0x28] sm:$0xff]  ;;  %v2744_v0 = vld [vmem:[#allocation12 + $0x100] sm:$0xff]  ;;  %v2746_v42 = vld [vmem:[#allocation12 + $0x110] sm:$0xff] }
 0x454   :  { %v2222_v25 = vsel %vm246_vm0, %v8671_v38, %v8720_v56  ;;  %7227 = vmatpush1.bf16.msra.mxu0 %v7226_v62  ;;  %7231 = vmatpush1.bf16.msra.mxu1 %v7230_v20  ;;  %v2223_v14 = vsel %vm246_vm0, %v8720_v56, %v8721_v32  ;;  %v2723_v38 = vld [vmem:[#allocation12 + $0x58] sm:$0xff]  ;;  %v2278_v20 = vsel %vm279_vm1, %v8676_v61, %v8725_v57  ;;  %v2730_v62 = vld [vmem:[#allocation12 + $0x90] sm:$0xff] }
 0x455   :  { %v7234_v33 = vpack.c.bf16 %v2222_v25, %v2219_v63  ;;  %v7232_v55 = vpack.c.bf16 %v2223_v14, %v2220_v50  ;;  %7255 = vmatprep.subr.bf16.mxu0 %v7254_v43  ;;  %v7262_v60 = vpack.c.bf16 %v2723_v38, %v2721_v10  ;;  %v8729_v59 = vpop.permute.xlu0 %8728  ;;  %v7244_v51 = vpack.c.bf16 %v8726_v34, %v8725_v57  ;;  %v2728_v43 = vld [vmem:[#allocation12 + $0x80] sm:$0xff]  ;;  %v2735_v56 = vld [vmem:[#allocation12 + $0xb8] sm:$0xff]  ;;  %v2737_v63 = vld [vmem:[#allocation12 + $0xc8] sm:$0xff] }
 0x456   :  { %v8731_v16 = vunpack.i.h.bf16 %v8729_v59  ;;  %v7272_v12 = vpack.c.bf16 %v2730_v62, %v2728_v43  ;;  %v7278_v50 = vpack.c.bf16 %v2739_v36, %v2737_v63  ;;  %v2736_v14 = vld [vmem:[#allocation12 + $0xc0] sm:$0xff]  ;;  %v2742_v10 = vld [vmem:[#allocation12 + $0xf0] sm:$0xff]  ;;  %v2745_v38 = vld [vmem:[#allocation12 + $0x108] sm:$0xff]  ;;  %v7288_v37 = vpack.c.bf16 %v2746_v42, %v2744_v0 }
 0x457   :  { %6480 = vmatmul.mubr.msk.f32.vlgmr.msra.gmra.mrb[16].mxu0 %vm2365_vm12, %v9907_v39  ;;  %7233 = vmatprep.subr.bf16.mxu1 %v7232_v55  ;;  %v2741_v55 = vld [vmem:[#allocation12 + $0xe8] sm:$0xff]  ;;  %v2755_v24 = vld [vmem:[#allocation12 + $0x158] sm:$0xff]  ;;  %v2760_v43 = vld [vmem:[#allocation12 + $0x180] sm:$0xff] }
 0x458   :  { %7235 = vmatpush1.bf16.msra.mxu1 %v7234_v33  ;;  %2460 = vmatprep.mubr.f32.mxu0 %v9115_v13  ;;  %v2287_v35 = vsel %vm279_vm1, %v8696_v27, %v8731_v16  ;;  %v2732_v27 = vld [vmem:[#allocation12 + $0xa0] sm:$0xff]  ;;  %v2738_v33 = vld [vmem:[#allocation12 + $0xd0] sm:$0xff]  ;;  %v2749_v57 = vld [vmem:[#allocation12 + $0x128] sm:$0xff] }
 0x459   :  { %7237 = vmatprep.subr.bf16.mxu1 %v7236_v49  ;;  %7257 = vmatpush1.bf16.msra.mxu0 %v7256_v52  ;;  %v2281_v49 = vsel %vm279_vm1, %v8681_v31, %v8726_v34  ;;  %v2731_v31 = vld [vmem:[#allocation12 + $0x98] sm:$0xff]  ;;  %v7276_v25 = vpack.c.bf16 %v2734_v54, %v2732_v27  ;;  %v7280_v17 = vpack.c.bf16 %v2738_v33, %v2736_v14  ;;  %v2762_v62 = vld [vmem:[#allocation12 + $0x190] sm:$0xff]  ;;  %v2768_v54 = vld [vmem:[#allocation12 + $0x1c0] sm:$0xff] }
 0x45a   :  { %7259 = vmatprep.subr.bf16.mxu0 %v7258_v8  ;;  %v7247_v61 = vpack.c.bf16 %v2281_v49, %v2278_v20  ;;  %v7270_v53 = vpack.c.bf16 %v2731_v31, %v2729_v2  ;;  %v2743_v52 = vld [vmem:[#allocation12 + $0xf8] sm:$0xff]  ;;  %v2315_v8 = vld [vmem:[#allocation10 + $0x30] sm:$0xff]  ;;  %v7284_v34 = vpack.c.bf16 %v2742_v10, %v2740_v1  ;;  %v2753_v49 = vld [vmem:[#allocation12 + $0x148] sm:$0xff] }
 0x45b   :  { %6481 = vmatmul.mubr.msk.f32.gmra.mrb[18].mxu0 %vm2365_vm12, %v9914_v22  ;;  %v7282_v19 = vpack.c.bf16 %v2743_v52, %v2741_v55  ;;  %v2757_v20 = vld [vmem:[#allocation12 + $0x168] sm:$0xff]  ;;  %v2756_v2 = vld [vmem:[#allocation12 + $0x160] sm:$0xff]  ;;  %v2758_v31 = vld [vmem:[#allocation12 + $0x170] sm:$0xff] }
 0x45c   :  { %7239 = vmatpush1.bf16.msra.mxu1 %v7238_v44  ;;  %2466 = vmatprep.mubr.f32.mxu0 %v9115_v13  ;;  %v2726_v44 = vld [vmem:[#allocation12 + $0x70] sm:$0xff]  ;;  %v2773_v36 = vld [vmem:[#allocation12 + $0x1e8] sm:$0xff]  ;;  %v2779_v52 = vld [vmem:[#allocation12 + $0x218] sm:$0xff] }
 0x45d   :  { %7241 = vmatprep.subr.bf16.mxu1 %v7240_v41  ;;  %7261 = vmatpush1.bf16.msra.mxu0 %v7260_v23  ;;  %v8730_v41 = vunpack.i.l.bf16 %v8729_v59  ;;  %v7268_v6 = vpack.c.bf16 %v2726_v44, %v2724_v15  ;;  %v2316_v23 = vld [vmem:[#allocation10 + $0x38] sm:$0xff]  ;;  %v2748_v59 = vld [vmem:[#allocation12 + $0x120] sm:$0xff]  ;;  %v2754_v44 = vld [vmem:[#allocation12 + $0x150] sm:$0xff] }
 0x45e   :  { %7263 = vmatprep.subr.bf16.mxu0 %v7262_v60  ;;  %v2752_v15 = vld [vmem:[#allocation12 + $0x140] sm:$0xff]  ;;  %v2770_v63 = vld [vmem:[#allocation12 + $0x1d0] sm:$0xff]  ;;  %v2777_v55 = vld [vmem:[#allocation12 + $0x208] sm:$0xff] }
 0x45f   :  { %6482 = vmatmul.mubr.msk.f32.gmra.mrb[20].mxu0 %vm2365_vm12, %v9925_v58  ;;  %v2284_v32 = vsel %vm279_vm1, %v8691_v40, %v8730_v41  ;;  %v7249_v7 = vpack.c.bf16 %v8731_v16, %v8730_v41  ;;  %v7296_v16 = vpack.c.bf16 %v2754_v44, %v2752_v15  ;;  %v2774_v14 = vld [vmem:[#allocation12 + $0x1f0] sm:$0xff]  ;;  %v2783_v0 = vld [vmem:[#allocation12 + $0x238] sm:$0xff] }
 0x460   :  { %7243 = vmatpush1.bf16.msra.mxu1 %v7242_v11  ;;  %2472 = vmatprep.mubr.f32.mxu0 %v9115_v13  ;;  %v2733_v11 = vld [vmem:[#allocation12 + $0xa8] sm:$0xff]  ;;  %v7252_v40 = vpack.c.bf16 %v2287_v35, %v2284_v32  ;;  %v2767_v35 = vld [vmem:[#allocation12 + $0x1b8] sm:$0xff] }
 0x461   :  { %7246 = vmatprep.subr.msk.bf16.mxu1 %vm9933_vm14, %v7244_v51  ;;  %7265 = vmatpush1.bf16.msra.mxu0 %v7264_v45  ;;  %v7274_v47 = vpack.c.bf16 %v2735_v56, %v2733_v11  ;;  %v2750_v45 = vld [vmem:[#allocation12 + $0x130] sm:$0xff]  ;;  %v2759_v51 = vld [vmem:[#allocation12 + $0x178] sm:$0xff]  ;;  %v2765_v32 = vld [vmem:[#allocation12 + $0x1a8] sm:$0xff] }
 0x462   :  { %7267 = vmatprep.subr.bf16.mxu0 %v7266_v48  ;;  %v7292_v48 = vpack.c.bf16 %v2750_v45, %v2748_v59  ;;  %v7298_v41 = vpack.c.bf16 %v2759_v51, %v2757_v20  ;;  %v7306_v11 = vpack.c.bf16 %v2767_v35, %v2765_v32  ;;  %v2764_v56 = vld [vmem:[#allocation12 + $0x1a0] sm:$0xff]  ;;  %v2785_v20 = vld [vmem:[#allocation12 + $0x248] sm:$0xff]  ;;  %v2787_v51 = vld [vmem:[#allocation12 + $0x258] sm:$0xff] }
 0x463   :  { %6483 = vmatmul.mubr.msk.f32.gmra.mrb[22].mxu0 %vm2365_vm12, %v9946_v29  ;;  %v2786_v32 = vld [vmem:[#allocation12 + $0x250] sm:$0xff] }
 0x464   :  { %7248 = vmatpush1.bf16.msra.mxu1 %v7247_v61  ;;  %2478 = vmatprep.mubr.f32.mxu0 %v9115_v13  ;;  %v7300_v61 = vpack.c.bf16 %v2758_v31, %v2756_v2 }
 0x465   :  { %7251 = vmatprep.subr.msk.bf16.mxu1 %vm9933_vm14, %v7249_v7  ;;  %7269 = vmatpush1.bf16.msra.mxu0 %v7268_v6  ;;  %v2763_v6 = vld [vmem:[#allocation12 + $0x198] sm:$0xff]  ;;  %v7304_v7 = vpack.c.bf16 %v2762_v62, %v2760_v43  ;;  %v7326_v43 = vpack.c.bf16 %v2787_v51, %v2785_v20  ;;  %v2784_v62 = vld [vmem:[#allocation12 + $0x240] sm:$0xff] }
 0x466   :  { %7271 = vmatprep.subr.bf16.mxu0 %v7270_v53  ;;  %v9999_v42 = vpop.permute.xlu0 %2332 }
 0x467   :  { %6484 = vmatmul.mubr.msk.f32.gmra.mrb[24].mxu0 %vm2365_vm12, %v9959_v28 }
 0x468   :  { %7253 = vmatpush1.bf16.msra.mxu1 %v7252_v40  ;;  %2484 = vmatprep.mubr.f32.mxu0 %v9115_v13  ;;  %v2771_v40 = vld [vmem:[#allocation12 + $0x1d8] sm:$0xff] }
 0x469   :  { %7273 = vmatpush1.bf16.msra.mxu0 %v7272_v12  ;;  %v2769_v12 = vld [vmem:[#allocation12 + $0x1c8] sm:$0xff] }
 0x46a   :  { %7275 = vmatprep.subr.bf16.mxu0 %v7274_v47  ;;  %v7310_v27 = vpack.c.bf16 %v2771_v40, %v2769_v12 }
 0x46b   :  { %6485 = vmatmul.mubr.msk.f32.gmra.mrb[26].mxu0 %vm2365_vm12, %v9966_v21  ;;  %6492 = vmatmul.mubr.msk.f32.vlgmr.msra.gmra.mrb[32].mxu1 %vm2365_vm12, %v9907_v39  ;;  %v2747_v39 = vld [vmem:[#allocation12 + $0x118] sm:$0xff] }
 0x46c   :  { %2490 = vmatprep.mubr.f32.mxu0 %v9115_v13  ;;  %2573 = vmatprep.mubr.f32.mxu1 %v9115_v13  ;;  %v7286_v60 = vpack.c.bf16 %v2747_v39, %v2745_v38  ;;  %v2776_v39 = vld [vmem:[#allocation12 + $0x200] sm:$0xff] }
 0x46d   :  { %7277 = vmatpush1.bf16.msra.mxu0 %v7276_v25 }
 0x46e   :  { %7279 = vmatprep.subr.bf16.mxu0 %v7278_v50  ;;  %v2772_v50 = vld [vmem:[#allocation12 + $0x1e0] sm:$0xff] }
 0x46f   :  { %6486 = vmatmul.mubr.msk.f32.gmra.mrb[28].mxu0 %vm2365_vm12, %v2315_v8  ;;  %6493 = vmatmul.mubr.msk.f32.gmra.mrb[34].mxu1 %vm2365_vm12, %v9914_v22  ;;  %v2751_v22 = vld [vmem:[#allocation12 + $0x138] sm:$0xff]  ;;  %v7316_v33 = vpack.c.bf16 %v2774_v14, %v2772_v50 }
 0x470   :  { %2496 = vmatprep.mubr.f32.mxu0 %v9115_v13  ;;  %2579 = vmatprep.mubr.f32.mxu1 %v9115_v13  ;;  %v7290_v46 = vpack.c.bf16 %v2751_v22, %v2749_v57 }
 0x471   :  { %7281 = vmatpush1.bf16.msra.mxu0 %v7280_v17  ;;  %v9995_v17 = vpop.permute.xlu1 %2327 }
 0x472   :  { %7283 = vmatprep.subr.bf16.mxu0 %v7282_v19 }
 0x473   :  { %6487 = vmatmul.mubr.msk.f32.gmra.mrb[30].mxu0 %vm2365_vm12, %v2316_v23  ;;  %6494 = vmatmul.mubr.msk.f32.gmra.mrb[36].mxu1 %vm2365_vm12, %v9925_v58  ;;  %v7294_v58 = vpack.c.bf16 %v2755_v24, %v2753_v49 }
 0x474   :  { %2585 = vmatprep.mubr.f32.mxu1 %v9115_v13 }
 0x475   :  { %7285 = vmatpush1.bf16.msra.mxu0 %v7284_v34 }
 0x476   :  { %7287 = vmatprep.subr.bf16.mxu0 %v7286_v60  ;;  %v2781_v60 = vld [vmem:[#allocation12 + $0x228] sm:$0xff] }
 0x477   :  { %6495 = vmatmul.mubr.msk.f32.gmra.mrb[38].mxu1 %vm2365_vm12, %v9946_v29  ;;  %v2761_v29 = vld [vmem:[#allocation12 + $0x188] sm:$0xff]  ;;  %v7322_v24 = vpack.c.bf16 %v2783_v0, %v2781_v60  ;;  %v2792_v60 = vld [vmem:[#allocation12 + $0x280] sm:$0xff]  ;;  %v2794_v0 = vld [vmem:[#allocation12 + $0x290] sm:$0xff] }
 0x478   :  { %2591 = vmatprep.mubr.f32.mxu1 %v9115_v13  ;;  %v7302_v53 = vpack.c.bf16 %v2763_v6, %v2761_v29  ;;  %v7336_v20 = vpack.c.bf16 %v2794_v0, %v2792_v60 }
 0x479   :  { %7289 = vmatpush1.bf16.msra.mxu0 %v7288_v37 }
 0x47a   :  { %7291 = vmatprep.subr.bf16.mxu0 %v7290_v46 }
 0x47b   :  { %6496 = vmatmul.mubr.msk.f32.gmra.mrb[40].mxu1 %vm2365_vm12, %v9959_v28  ;;  %v2766_v28 = vld [vmem:[#allocation12 + $0x1b0] sm:$0xff] }
 0x47c   :  { %2597 = vmatprep.mubr.f32.mxu1 %v9115_v13  ;;  %v7308_v47 = vpack.c.bf16 %v2766_v28, %v2764_v56  ;;  %v2791_v56 = vld [vmem:[#allocation12 + $0x278] sm:$0xff]  ;;  %v10007_v28 = vpop.permute.xlu0 %2342 }
 0x47d   :  { %7293 = vmatpush1.bf16.msra.mxu0 %v7292_v48  ;;  %v2780_v48 = vld [vmem:[#allocation12 + $0x220] sm:$0xff] }
 0x47e   :  { %7295 = vmatprep.subr.bf16.mxu0 %v7294_v58  ;;  %v2782_v58 = vld [vmem:[#allocation12 + $0x230] sm:$0xff] }
 0x47f   :  { %6497 = vmatmul.mubr.msk.f32.gmra.mrb[42].mxu1 %vm2365_vm12, %v9966_v21  ;;  %v2775_v21 = vld [vmem:[#allocation12 + $0x1f8] sm:$0xff]  ;;  %v7324_v6 = vpack.c.bf16 %v2782_v58, %v2780_v48 }
 0x480   :  { %2603 = vmatprep.mubr.f32.mxu1 %v9115_v13  ;;  %v7314_v25 = vpack.c.bf16 %v2775_v21, %v2773_v36  ;;  %v2788_v21 = vld [vmem:[#allocation12 + $0x260] sm:$0xff] }
 0x481   :  { %7297 = vmatpush1.bf16.msra.mxu0 %v7296_v16  ;;  %v10003_v16 = vpop.permute.xlu1 %2337 }
 0x482   :  { %7299 = vmatprep.subr.bf16.mxu0 %v7298_v41 }
 0x483   :  { %6498 = vmatmul.mubr.msk.f32.gmra.mrb[44].mxu1 %vm2365_vm12, %v2315_v8  ;;  %v7318_v8 = vpack.c.bf16 %v2779_v52, %v2777_v55  ;;  %v2795_v55 = vld [vmem:[#allocation12 + $0x298] sm:$0xff] }
 0x484   :  { %2609 = vmatprep.mubr.f32.mxu1 %v9115_v13  ;;  %v7312_v13 = vpack.c.bf16 %v2770_v63, %v2768_v54  ;;  %v7328_v54 = vpack.c.bf16 %v2786_v32, %v2784_v62 }
 0x485   :  { %7301 = vmatpush1.bf16.msra.mxu0 %v7300_v61  ;;  %v10011_v52 = vpop.permute.xlu1 %2347 }
 0x486   :  { %7303 = vmatprep.subr.bf16.mxu0 %v7302_v53 }
 0x487   :  { %6499 = vmatmul.mubr.msk.f32.gmra.mrb[46].mxu1 %vm2365_vm12, %v2316_v23  ;;  %v2778_v23 = vld [vmem:[#allocation12 + $0x210] sm:$0xff] }
 0x488   :  { %v7320_v59 = vpack.c.bf16 %v2778_v23, %v2776_v39 }
 0x489   :  { %7305 = vmatpush1.bf16.msra.mxu0 %v7304_v7  ;;  %v10022_v62 = vpop.permute.xlu1 %2357 }
 0x48a   :  { %7307 = vmatprep.subr.bf16.mxu0 %v7306_v11  ;;  %v2789_v11 = vld [vmem:[#allocation12 + $0x268] sm:$0xff] }
 0x48d   :  { %7309 = vmatpush1.bf16.msra.mxu0 %v7308_v47 }
 0x48e   :  { %7311 = vmatprep.subr.bf16.mxu0 %v7310_v27 }
 0x491   :  { %7313 = vmatpush1.bf16.msra.mxu0 %v7312_v13  ;;  %v7330_v13 = vpack.c.bf16 %v2791_v56, %v2789_v11 }
 0x492   :  { %7315 = vmatprep.subr.bf16.mxu0 %v7314_v25  ;;  %v2790_v25 = vld [vmem:[#allocation12 + $0x270] sm:$0xff] }
 0x495   :  { %7317 = vmatpush1.bf16.msra.mxu0 %v7316_v33  ;;  %v2793_v33 = vld [vmem:[#allocation12 + $0x288] sm:$0xff] }
 0x496   :  { %7319 = vmatprep.subr.bf16.mxu0 %v7318_v8 }
 0x52a   :  { %v2456_v19 = vpop.f32.mrb[16].mxu0 }
 0x52b   :  { %v2457_v1 = vadd.f32 %v2456_v19, %v9995_v17  ;;  %v2458_v10 = vpop.f32.mrb[17].mxu0 }
 0x52c   :  { %v2459_v38 = vadd.f32 %v2458_v10, %v9995_v17 }
 0x52d   :  { %v2648_v34 = vmul.f32 0.01, %v2457_v1  ;;  %vm2616_vm15 = vcmp.gt.f32.partialorder %v2457_v1, 0.0 }
 0x52e   :  { %v2649_v57 = vmul.f32 0.01, %v2459_v38  ;;  %v2462_v22 = vpop.f32.mrb[18].mxu0  ;;  %vm2617_vm4 = vcmp.gt.f32.partialorder %v2459_v38, 0.0 }
 0x52f   :  { %v2463_v37 = vadd.f32 %v2462_v22, %v9999_v42  ;;  %v2464_v46 = vpop.f32.mrb[19].mxu0  ;;  %v2680_v15 = vsel %vm2616_vm15, %v2457_v1, %v2648_v34  ;;  %v7334_v34 = vpack.c.bf16 %v2795_v55, %v2793_v33 }
 0x530   :  { %v2465_v45 = vadd.f32 %v2464_v46, %v9999_v42  ;;  %v2681_v49 = vsel %vm2617_vm4, %v2459_v38, %v2649_v57  ;;  %v7332_v38 = vpack.c.bf16 %v2790_v25, %v2788_v21  ;;  %v10015_v57 = vpop.permute.xlu0 %2352  ;;  %v2797_v46 = vld [vmem:[#allocation12 + $0x2a8] sm:$0xff]  ;;  %v2802_v25 = vld [vmem:[#allocation12 + $0x2d0] sm:$0xff] }
 0x531   :  { %v2652_v44 = vmul.f32 0.01, %v2463_v37  ;;  %2945 = vmatprep.mubr.f32.mxu0 %v2681_v49  ;;  %vm2620_vm6 = vcmp.gt.f32.partialorder %v2463_v37, 0.0 }
 0x532   :  { %v2653_v41 = vmul.f32 0.01, %v2465_v45  ;;  %v2468_v2 = vpop.f32.mrb[20].mxu0  ;;  %2946 = vmatmul.mubr.f32.vlgmr.msra.gmra.mrb[32].mxu0 %v2680_v15  ;;  %vm2621_vm5 = vcmp.gt.f32.partialorder %v2465_v45, 0.0 }
 0x533   :  { %v2469_v31 = vadd.f32 %v2468_v2, %v10003_v16  ;;  %7321 = vmatpush1.bf16.msra.mxu0 %v7320_v59  ;;  %v2470_v29 = vpop.f32.mrb[21].mxu0  ;;  %v2684_v7 = vsel %vm2620_vm6, %v2463_v37, %v2652_v44  ;;  %v2799_v59 = vld [vmem:[#allocation12 + $0x2b8] sm:$0xff] }
 0x534   :  { %v2471_v61 = vadd.f32 %v2470_v29, %v10003_v16  ;;  %v2685_v53 = vsel %vm2621_vm5, %v2465_v45, %v2653_v41  ;;  %7323 = vmatprep.subr.bf16.mxu0 %v7322_v24  ;;  %v7338_v2 = vpack.c.bf16 %v2799_v59, %v2797_v46  ;;  %v2798_v29 = vld [vmem:[#allocation12 + $0x2b0] sm:$0xff] }
 0x535   :  { %v2656_v35 = vmul.f32 0.01, %v2469_v31  ;;  %2951 = vmatprep.mubr.f32.mxu0 %v2685_v53  ;;  %vm2624_vm9 = vcmp.gt.f32.partialorder %v2469_v31, 0.0  ;;  %v2801_v53 = vld [vmem:[#allocation12 + $0x2c8] sm:$0xff]  ;;  %v2806_v46 = vld [vmem:[#allocation12 + $0x2f0] sm:$0xff] }
 0x536   :  { %v2657_v12 = vmul.f32 0.01, %v2471_v61  ;;  %v2474_v40 = vpop.f32.mrb[22].mxu0  ;;  %2952 = vmatmul.mubr.f32.gmra.mrb[34].mxu0 %v2684_v7  ;;  %vm2625_vm7 = vcmp.gt.f32.partialorder %v2471_v61, 0.0 }
 0x537   :  { %v2475_v47 = vadd.f32 %v2474_v40, %v10007_v28  ;;  %7325 = vmatpush1.bf16.msra.mxu0 %v7324_v6  ;;  %v2476_v27 = vpop.f32.mrb[23].mxu0  ;;  %v2688_v14 = vsel %vm2624_vm9, %v2469_v31, %v2656_v35  ;;  %v2796_v31 = vld [vmem:[#allocation12 + $0x2a0] sm:$0xff] }
 0x538   :  { %v2477_v63 = vadd.f32 %v2476_v27, %v10007_v28  ;;  %v2689_v36 = vsel %vm2625_vm7, %v2471_v61, %v2657_v12  ;;  %7327 = vmatprep.subr.bf16.mxu0 %v7326_v43  ;;  %v2803_v43 = vld [vmem:[#allocation12 + $0x2d8] sm:$0xff]  ;;  %v7340_v12 = vpack.c.bf16 %v2798_v29, %v2796_v31  ;;  %v2808_v31 = vld [vmem:[#allocation12 + $0x300] sm:$0xff]  ;;  %v2810_v29 = vld [vmem:[#allocation12 + $0x310] sm:$0xff] }
 0x539   :  { %v2660_v50 = vmul.f32 0.01, %v2475_v47  ;;  %2957 = vmatprep.mubr.f32.mxu0 %v2689_v36  ;;  %vm2628_vm12 = vcmp.gt.f32.partialorder %v2475_v47, 0.0  ;;  %v2800_v36 = vld [vmem:[#allocation12 + $0x2c0] sm:$0xff] }
 0x53a   :  { %v2661_v8 = vmul.f32 0.01, %v2477_v63  ;;  %v2480_v19 = vpop.f32.mrb[24].mxu0  ;;  %2958 = vmatmul.mubr.f32.gmra.mrb[36].mxu0 %v2688_v14  ;;  %vm2629_vm10 = vcmp.gt.f32.partialorder %v2477_v63, 0.0  ;;  %v2807_v14 = vld [vmem:[#allocation12 + $0x2f8] sm:$0xff]  ;;  %v7344_v60 = vpack.c.bf16 %v2802_v25, %v2800_v36 }
 0x53b   :  { %v2481_v1 = vadd.f32 %v2480_v19, %v10011_v52  ;;  %7329 = vmatpush1.bf16.msra.mxu0 %v7328_v54  ;;  %v2482_v10 = vpop.f32.mrb[25].mxu0  ;;  %v2692_v37 = vsel %vm2628_vm12, %v2475_v47, %v2660_v50  ;;  %v2805_v50 = vld [vmem:[#allocation12 + $0x2e8] sm:$0xff]  ;;  %vm2850_vm12 = vcmask 949248   ;;  %v2819_v36 = vld [vmem:[#allocation12 + $0x358] sm:$0xff] }
 0x53c   :  { %v2483_v39 = vadd.f32 %v2482_v10, %v10011_v52  ;;  %v2693_v23 = vsel %vm2629_vm10, %v2477_v63, %v2661_v8  ;;  %7331 = vmatprep.subr.bf16.mxu0 %v7330_v13  ;;  %v7342_v63 = vpack.c.bf16 %v2803_v43, %v2801_v53  ;;  %v10031_v13 = vpop.permute.xlu0 %2362  ;;  %v2813_v53 = vld [vmem:[#allocation12 + $0x328] sm:$0xff]  ;;  %v2815_v43 = vld [vmem:[#allocation12 + $0x338] sm:$0xff] }
 0x53d   :  { %v2664_v22 = vmul.f32 0.01, %v2481_v1  ;;  %2963 = vmatprep.mubr.f32.mxu0 %v2693_v23  ;;  %vm2632_vm14 = vcmp.gt.f32.partialorder %v2481_v1, 0.0 }
 0x53e   :  { %v2665_v45 = vmul.f32 0.01, %v2483_v39  ;;  %v2486_v49 = vpop.f32.mrb[26].mxu0  ;;  %v2569_v24 = vpop.f32.mrb[32].mxu1  ;;  %2964 = vmatmul.mubr.f32.gmra.mrb[38].mxu0 %v2692_v37  ;;  %vm2633_vm13 = vcmp.gt.f32.partialorder %v2483_v39, 0.0  ;;  %v2804_v37 = vld [vmem:[#allocation12 + $0x2e0] sm:$0xff] }
 0x53f   :  { %v2487_v48 = vadd.f32 %v2486_v49, %v10015_v57  ;;  %v10019_v58 = vadd.f32 %v2569_v24, %v9995_v17  ;;  %7333 = vmatpush1.bf16.msra.mxu0 %v7332_v38  ;;  %v2488_v15 = vpop.f32.mrb[27].mxu0  ;;  %v2571_v44 = vpop.f32.mrb[33].mxu1  ;;  %v2696_v61 = vsel %vm2632_vm14, %v2481_v1, %v2664_v22  ;;  %v7346_v22 = vpack.c.bf16 %v2807_v14, %v2805_v50 }
 0x540   :  { %v2489_v51 = vadd.f32 %v2488_v15, %v10015_v57  ;;  %v2697_v41 = vsel %vm2633_vm13, %v2483_v39, %v2665_v45  ;;  %7335 = vmatprep.subr.bf16.mxu0 %v7334_v34  ;;  %v2572_v1 = vadd.f32 %v2571_v44, %v9995_v17  ;;  %v2809_v17 = vld [vmem:[#allocation12 + $0x308] sm:$0xff] }
 0x541   :  { %v2668_v6 = vmul.f32 0.01, %v2487_v48  ;;  %2969 = vmatprep.mubr.f32.mxu0 %v2697_v41  ;;  %vm2636_vm15 = vcmp.gt.f32.partialorder %v2487_v48, 0.0  ;;  %v7348_v41 = vpack.c.bf16 %v2806_v46, %v2804_v37  ;;  %v2825_v37 = vld [vmem:[#allocation12 + $0x388] sm:$0xff]  ;;  %v2827_v46 = vld [vmem:[#allocation12 + $0x398] sm:$0xff]  ;;  %vm2618_vm13 = vcmp.gt.f32.partialorder %v10019_v58, 0.0 }
 0x542   :  { %v2669_v32 = vmul.f32 0.01, %v2489_v51  ;;  %v2492_v35 = vpop.f32.mrb[28].mxu0  ;;  %2970 = vmatmul.mubr.f32.gmra.mrb[40].mxu0 %v2696_v61  ;;  %v2575_v11 = vpop.f32.mrb[34].mxu1  ;;  %vm2637_vm4 = vcmp.gt.f32.partialorder %v2489_v51, 0.0  ;;  %vm2619_vm10 = vcmp.gt.f32.partialorder %v2572_v1, 0.0 }
 0x543   :  { %v2493_v7 = vadd.f32 %v2492_v35, %v10022_v62  ;;  %7337 = vmatpush1.bf16.msra.mxu0 %v7336_v20  ;;  %v2494_v56 = vpop.f32.mrb[29].mxu0  ;;  %v10026_v40 = vadd.f32 %v2575_v11, %v9999_v42  ;;  %v10029_v27 = vpop.f32.mrb[35].mxu1  ;;  %v2700_v21 = vsel %vm2636_vm15, %v2487_v48, %v2668_v6  ;;  %v2811_v48 = vld [vmem:[#allocation12 + $0x318] sm:$0xff]  ;;  %v2651_v15 = vmul.f32 0.01, %v2572_v1 }
 0x544   :  { %v2495_v47 = vadd.f32 %v2494_v56, %v10022_v62  ;;  %v2701_v54 = vsel %vm2637_vm4, %v2489_v51, %v2669_v32  ;;  %7339 = vmatprep.subr.bf16.mxu0 %v7338_v2  ;;  %v7350_v2 = vpack.c.bf16 %v2811_v48, %v2809_v17  ;;  %v7352_v11 = vpack.c.bf16 %v2810_v29, %v2808_v31  ;;  %v2829_v48 = vld [vmem:[#allocation12 + $0x3a8] sm:$0xff]  ;;  %v2830_v31 = vld [vmem:[#allocation12 + $0x3b0] sm:$0xff] }
 0x545   :  { %2975 = vmatprep.mubr.f32.mxu0 %v2701_v54  ;;  %v2672_v33 = vmul.f32 0.01, %v2493_v7  ;;  %vm2640_vm5 = vcmp.gt.f32.partialorder %v2493_v7, 0.0  ;;  %v7354_v56 = vpack.c.bf16 %v2815_v43, %v2813_v53  ;;  %v2833_v29 = vld [vmem:[#allocation12 + $0x3c8] sm:$0xff]  ;;  %v2832_v43 = vld [vmem:[#allocation12 + $0x3c0] sm:$0xff]  ;;  %vm2622_vm15 = vcmp.gt.f32.partialorder %v10026_v40, 0.0 }
 0x546   :  { %v2673_v55 = vmul.f32 0.01, %v2495_v47  ;;  %v2498_v8 = vpop.f32.mrb[30].mxu0  ;;  %v2581_v19 = vpop.f32.mrb[36].mxu1  ;;  %2976 = vmatmul.mubr.f32.gmra.mrb[42].mxu0 %v2700_v21  ;;  %vm2641_vm6 = vcmp.gt.f32.partialorder %v2495_v47, 0.0 }
 0x547   :  { %v2499_v10 = vadd.f32 %v2498_v8, %v10031_v13  ;;  %v10037_v38 = vadd.f32 %v2581_v19, %v10003_v16  ;;  %7341 = vmatpush1.bf16.msra.mxu0 %v7340_v12  ;;  %v2500_v39 = vpop.f32.mrb[31].mxu0  ;;  %v10039_v23 = vpop.f32.mrb[37].mxu1  ;;  %v2704_v24 = vsel %vm2640_vm5, %v2493_v7, %v2672_v33  ;;  %v2683_v7 = vsel %vm2619_vm10, %v2572_v1, %v2651_v15  ;;  %v2812_v12 = vld [vmem:[#allocation12 + $0x320] sm:$0xff]  ;;  %v2821_v19 = vld [vmem:[#allocation12 + $0x368] sm:$0xff]  ;;  %v2823_v1 = vld [vmem:[#allocation12 + $0x378] sm:$0xff] }
 0x548   :  { %v2501_v34 = vadd.f32 %v2500_v39, %v10031_v13  ;;  %7343 = vmatprep.subr.bf16.mxu0 %v7342_v63  ;;  %v2705_v0 = vsel %vm2641_vm6, %v2495_v47, %v2673_v55  ;;  %v2814_v47 = vld [vmem:[#allocation12 + $0x330] sm:$0xff]  ;;  %v2817_v63 = vld [vmem:[#allocation12 + $0x348] sm:$0xff]  ;;  %v2816_v33 = vld [vmem:[#allocation12 + $0x340] sm:$0xff] }
 0x549   :  { %v2676_v59 = vmul.f32 0.01, %v2499_v10  ;;  %2981 = vmatprep.mubr.f32.mxu0 %v2705_v0  ;;  %vm2644_vm9 = vcmp.gt.f32.partialorder %v2499_v10, 0.0  ;;  %v7356_v50 = vpack.c.bf16 %v2814_v47, %v2812_v12  ;;  %v7358_v14 = vpack.c.bf16 %v2819_v36, %v2817_v63  ;;  %v2818_v55 = vld [vmem:[#allocation12 + $0x350] sm:$0xff]  ;;  %v2831_v15 = vld [vmem:[#allocation12 + $0x3b8] sm:$0xff] }
 0x54a   :  { %v2677_v45 = vmul.f32 0.01, %v2501_v34  ;;  %v2587_v49 = vpop.f32.mrb[38].mxu1  ;;  %2982 = vmatmul.mubr.f32.gmra.mrb[44].mxu0 %v2704_v24  ;;  %vm2645_vm7 = vcmp.gt.f32.partialorder %v2501_v34, 0.0  ;;  %v7360_v39 = vpack.c.bf16 %v2818_v55, %v2816_v33  ;;  %v2822_v0 = vld [vmem:[#allocation12 + $0x370] sm:$0xff]  ;;  %v2584_v63 = vadd.f32 %v10039_v23, %v10003_v16 }
 0x54b   :  { %v10043_v44 = vadd.f32 %v2587_v49, %v10007_v28  ;;  %v10045_v20 = vpop.f32.mrb[39].mxu1  ;;  %7345 = vmatpush1.bf16.msra.mxu0 %v7344_v60  ;;  %v2708_v61 = vsel %vm2644_vm9, %v2499_v10, %v2676_v59  ;;  %v2820_v60 = vld [vmem:[#allocation12 + $0x360] sm:$0xff]  ;;  %v2826_v24 = vld [vmem:[#allocation12 + $0x390] sm:$0xff]  ;;  %v2837_v12 = vld [vmem:[#allocation12 + $0x3e8] sm:$0xf] }
 0x54c   :  { %v2709_v51 = vsel %vm2645_vm7, %v2501_v34, %v2677_v45  ;;  %7347 = vmatprep.subr.bf16.mxu0 %v7346_v22  ;;  %v7362_v34 = vpack.c.bf16 %v2823_v1, %v2821_v19  ;;  %v7364_v59 = vpack.c.bf16 %v2822_v0, %v2820_v60  ;;  %v7366_v45 = vpack.c.bf16 %v2827_v46, %v2825_v37  ;;  %v2824_v49 = vld [vmem:[#allocation12 + $0x380] sm:$0xff] }
 0x54d   :  { %2987 = vmatprep.mubr.f32.mxu0 %v2709_v51  ;;  %v7368_v51 = vpack.c.bf16 %v2826_v24, %v2824_v49  ;;  %v2650_v47 = vmul.f32 0.01, %v10019_v58  ;;  %v2836_v36 = vld [vmem:[#allocation12 + $0x3e0] sm:$0xf]  ;;  %vm2627_vm4 = vcmp.gt.f32.partialorder %v2584_v63, 0.0  ;;  %vm2630_vm6 = vcmp.gt.f32.partialorder %v10043_v44, 0.0 }
 0x54e   :  { %v2593_v6 = vpop.f32.mrb[40].mxu1  ;;  %2988 = vmatmul.mubr.f32.gmra.mrb[46].mxu0 %v2708_v61  ;;  %v2658_v16 = vmul.f32 0.01, %v10037_v38 }
 0x54f   :  { %v10048_v32 = vadd.f32 %v2593_v6, %v10011_v52  ;;  %v10050_v35 = vpop.f32.mrb[41].mxu1  ;;  %7349 = vmatpush1.bf16.msra.mxu0 %v7348_v41  ;;  %6502 = vmatprep.mubr.msk.f32.mxu0 %vm2850_vm12, %v2683_v7  ;;  %v7370_v41 = vpack.c.bf16 %v2831_v15, %v2829_v48  ;;  %v2835_v6 = vld [vmem:[#allocation12 + $0x3d8] sm:$0xff]  ;;  %v2834_v7 = vld [vmem:[#allocation12 + $0x3d0] sm:$0xff] }
 0x550   :  { %7351 = vmatprep.subr.bf16.mxu0 %v7350_v2  ;;  %v2828_v2 = vld [vmem:[#allocation12 + $0x3a0] sm:$0xff]  ;;  %v7374_v53 = vpack.c.bf16 %v2835_v6, %v2833_v29  ;;  %v2596_v55 = vadd.f32 %v10050_v35, %v10011_v52  ;;  %v2838_v48 = vld [vmem:[#allocation13] sm:$0x3] }
 0x551   :  { %v7372_v61 = vpack.c.bf16 %v2830_v31, %v2828_v2  ;;  %v2666_v52 = vmul.f32 0.01, %v10048_v32  ;;  %vm2634_vm9 = vcmp.gt.f32.partialorder %v10048_v32, 0.0 }
 0x552   :  { %v2599_v54 = vpop.f32.mrb[42].mxu1  ;;  %v2667_v1 = vmul.f32 0.01, %v2596_v55  ;;  %vm2635_vm7 = vcmp.gt.f32.partialorder %v2596_v55, 0.0 }
 0x553   :  { %v10055_v21 = vadd.f32 %v2599_v54, %v10015_v57  ;;  %v10057_v25 = vpop.f32.mrb[43].mxu1  ;;  %7353 = vmatpush1.bf16.msra.mxu0 %v7352_v11  ;;  %v7376_v11 = vpack.c.bf16 %v2834_v7, %v2832_v43  ;;  %v2698_v0 = vsel %vm2634_vm9, %v10048_v32, %v2666_v52 }
 0x554   :  { %7355 = vmatprep.subr.bf16.mxu0 %v7354_v56  ;;  %v2578_v56 = vadd.f32 %v10029_v27, %v9999_v42  ;;  %v2659_v42 = vmul.f32 0.01, %v2584_v63  ;;  %v2590_v27 = vadd.f32 %v10045_v20, %v10007_v28  ;;  %v2662_v28 = vmul.f32 0.01, %v10043_v44 }
 0x556   :  { %v10059_v8 = vpop.f32.mrb[44].mxu1  ;;  %v2655_v54 = vmul.f32 0.01, %v2578_v56  ;;  %vm2623_vm14 = vcmp.gt.f32.partialorder %v2578_v56, 0.0  ;;  %v2691_v19 = vsel %vm2627_vm4, %v2584_v63, %v2659_v42  ;;  %vm2631_vm5 = vcmp.gt.f32.partialorder %v2590_v27, 0.0 }
 0x557   :  { %v10061_v10 = vpop.f32.mrb[45].mxu1  ;;  %7357 = vmatpush1.bf16.msra.mxu0 %v7356_v50  ;;  %v2682_v50 = vsel %vm2618_vm13, %v10019_v58, %v2650_v47  ;;  %v2663_v58 = vmul.f32 0.01, %v2590_v27  ;;  %v2694_v35 = vsel %vm2630_vm6, %v10043_v44, %v2662_v28  ;;  %vm2638_vm13 = vcmp.gt.f32.partialorder %v10055_v21, 0.0 }
 0x558   :  { %7359 = vmatprep.subr.bf16.mxu0 %v7358_v14  ;;  %v2654_v14 = vmul.f32 0.01, %v10026_v40  ;;  %v2687_v33 = vsel %vm2623_vm14, %v2578_v56, %v2655_v54  ;;  %v2608_v60 = vadd.f32 %v10061_v10, %v10022_v62 }
 0x55a   :  { %v10063_v22 = vpop.f32.mrb[46].mxu1  ;;  %v2686_v23 = vsel %vm2622_vm15, %v10026_v40, %v2654_v14  ;;  %v2695_v40 = vsel %vm2631_vm5, %v2590_v27, %v2663_v58  ;;  %v2675_v37 = vmul.f32 0.01, %v2608_v60  ;;  %vm2643_vm14 = vcmp.gt.f32.partialorder %v2608_v60, 0.0 }
 0x55b   :  { %v10065_v17 = vpop.f32.mrb[47].mxu1  ;;  %7361 = vmatpush1.bf16.msra.mxu0 %v7360_v39  ;;  %v2602_v39 = vadd.f32 %v10057_v25, %v10015_v57  ;;  %v2670_v57 = vmul.f32 0.01, %v10055_v21  ;;  %v2606_v25 = vadd.f32 %v10059_v8, %v10022_v62 }
 0x55c   :  { %7363 = vmatprep.subr.bf16.mxu0 %v7362_v34  ;;  %v2614_v44 = vadd.f32 %v10065_v17, %v10031_v13  ;;  %v2707_v32 = vsel %vm2643_vm14, %v2608_v60, %v2675_v37 }
 0x55d   :  { %v2671_v34 = vmul.f32 0.01, %v2602_v39  ;;  %vm2639_vm10 = vcmp.gt.f32.partialorder %v2602_v39, 0.0  ;;  %v2674_v46 = vmul.f32 0.01, %v2606_v25  ;;  %vm2642_vm15 = vcmp.gt.f32.partialorder %v2606_v25, 0.0 }
 0x55e   :  { %v2679_v62 = vmul.f32 0.01, %v2614_v44  ;;  %vm2647_vm4 = vcmp.gt.f32.partialorder %v2614_v44, 0.0 }
 0x55f   :  { %7365 = vmatpush1.bf16.msra.mxu0 %v7364_v59  ;;  %v2703_v10 = vsel %vm2639_vm10, %v2602_v39, %v2671_v34  ;;  %v2612_v59 = vadd.f32 %v10063_v22, %v10031_v13  ;;  %v2706_v17 = vsel %vm2642_vm15, %v2606_v25, %v2674_v46  ;;  %v10113_v13 = vrot.slane %v2838_v48, %v9658_v26 }
 0x560   :  { %7367 = vmatprep.subr.bf16.mxu0 %v7366_v45  ;;  %v2702_v45 = vsel %vm2638_vm13, %v10055_v21, %v2670_v57  ;;  %v2711_v49 = vsel %vm2647_vm4, %v2614_v44, %v2679_v62  ;;  %v10116_v21 = vrot.slane %v2838_v48, %v9662_v18 }
 0x561   :  { %v2678_v8 = vmul.f32 0.01, %v2612_v59 }
 0x563   :  { %7369 = vmatpush1.bf16.msra.mxu0 %v7368_v51 }
 0x564   :  { %7371 = vmatprep.subr.bf16.mxu0 %v7370_v41 }
 0x567   :  { %7373 = vmatpush1.bf16.msra.mxu0 %v7372_v61 }
 0x568   :  { %7375 = vmatprep.subr.bf16.mxu0 %v7374_v53 }
 0x56b   :  { %7377 = vmatpush1.bf16.msra.mxu0 %v7376_v11 }
 0x56c   :  { %6500 = vmatprep.subr.msk.mxu0 %vm342_vm3, %v2837_v12 }
 0x56f   :  { %6501 = vmatpush1.msk.msra.mxu0 %vm342_vm3, %v2836_v36  ;;  %vm2626_vm3 = vcmp.gt.f32.partialorder %v10037_v38, 0.0 }
 0x570   :  { %3059 = vmatmul.mubr.f32.vlgmr.msra.gmra.mrb[32].mxu0 %v2682_v50  ;;  %v2690_v20 = vsel %vm2626_vm3, %v10037_v38, %v2658_v16  ;;  %v2699_v38 = vsel %vm2635_vm7, %v2596_v55, %v2667_v1  ;;  %vm2646_vm3 = vcmp.gt.f32.partialorder %v2612_v59, 0.0 }
 0x571   :  { %6503 = vmatprep.mubr.msk.f32.mxu0 %vm2850_vm12, %v2687_v33  ;;  %v2710_v24 = vsel %vm2646_vm3, %v2612_v59, %v2678_v8 }
 0x574   :  { %3065 = vmatmul.mubr.f32.gmra.mrb[34].mxu0 %v2686_v23 }
 0x575   :  { %6504 = vmatprep.mubr.msk.f32.mxu0 %vm2850_vm12, %v2691_v19 }
 0x578   :  { %3071 = vmatmul.mubr.f32.gmra.mrb[36].mxu0 %v2690_v20 }
 0x579   :  { %6505 = vmatprep.mubr.msk.f32.mxu0 %vm2850_vm12, %v2695_v40 }
 0x57c   :  { %3077 = vmatmul.mubr.f32.gmra.mrb[38].mxu0 %v2694_v35 }
 0x57d   :  { %6506 = vmatprep.mubr.msk.f32.mxu0 %vm2850_vm12, %v2699_v38 }
 0x580   :  { %3083 = vmatmul.mubr.f32.gmra.mrb[40].mxu0 %v2698_v0 }
 0x581   :  { %6507 = vmatprep.mubr.msk.f32.mxu0 %vm2850_vm12, %v2703_v10 }
 0x584   :  { %3089 = vmatmul.mubr.f32.gmra.mrb[42].mxu0 %v2702_v45 }
 0x585   :  { %6508 = vmatprep.mubr.msk.f32.mxu0 %vm2850_vm12, %v2707_v32 }
 0x588   :  { %3095 = vmatmul.mubr.f32.gmra.mrb[44].mxu0 %v2706_v17 }
 0x589   :  { %6509 = vmatprep.mubr.msk.f32.mxu0 %vm2850_vm12, %v2711_v49 }
 0x58c   :  { %3101 = vmatmul.mubr.f32.gmra.mrb[46].mxu0 %v2710_v24 }
 0x643   :  { %v3060_v22 = vpop.f32.mrb[32].mxu0 }
 0x644   :  { %v8507_v15 = vadd.f32 %v3060_v22, %v10113_v13  ;;  %v3062_v51 = vpop.f32.mrb[33].mxu0 }
 0x645   :  { %v8508_v41 = vadd.f32 %v3062_v51, %v10116_v21 }
 0x646   :  { %vm3107_vm5 = vcmp.gt.f32.partialorder %v8507_v15, 0.0  ;;  %v3123_v2 = vmul.f32 0.01, %v8507_v15 }
 0x647   :  { %vm3108_vm6 = vcmp.gt.f32.partialorder %v8508_v41, 0.0  ;;  %v3124_v31 = vmul.f32 0.01, %v8508_v41  ;;  %v3066_v29 = vpop.f32.mrb[34].mxu0 }
 0x648   :  { %v10120_v6 = vsel %vm3107_vm5, %v8507_v15, %v3123_v2  ;;  %v8509_v61 = vadd.f32 %v3066_v29, %v10113_v13  ;;  %v3068_v53 = vpop.f32.mrb[35].mxu0 }
 0x649   :  { %v10123_v43 = vsel %vm3108_vm6, %v8508_v41, %v3124_v31  ;;  %v8510_v7 = vadd.f32 %v3068_v53, %v10116_v21 }
 0x64a   :  { %vm3109_vm7 = vcmp.gt.f32.partialorder %v8509_v61, 0.0  ;;  %v3125_v11 = vmul.f32 0.01, %v8509_v61  ;;  %v10128_v56 = vpack.i.bf16 %v10123_v43, %v10120_v6 }
 0x64b   :  { %vm3110_vm9 = vcmp.gt.f32.partialorder %v8510_v7, 0.0  ;;  %v3126_v12 = vmul.f32 0.01, %v8510_v7  ;;  %v3072_v47 = vpop.f32.mrb[36].mxu0 }
 0x64c   :  { %v10130_v54 = vsel %vm3109_vm7, %v8509_v61, %v3125_v11  ;;  %v8511_v63 = vadd.f32 %v3072_v47, %v10113_v13  ;;  %v3074_v36 = vpop.f32.mrb[37].mxu0  ;;  %8733 = vrot.lane.b32.xlu1 %v10128_v56, %s9113_s16 }
 0x64d   :  { %v7400_v50 = vpack.c.bf16 %v10130_v54, %v10120_v6  ;;  %v10137_v14 = vsel %vm3110_vm9, %v8510_v7, %v3126_v12  ;;  %v8512_v42 = vadd.f32 %v3074_v36, %v10116_v21 }
 0x64e   :  { %vm3111_vm10 = vcmp.gt.f32.partialorder %v8511_v63, 0.0  ;;  %v3127_v27 = vmul.f32 0.01, %v8511_v63  ;;  %v10142_v33 = vpack.i.bf16 %v10137_v14, %v10130_v54  ;;  %v7398_v58 = vpack.c.bf16 %v10137_v14, %v10123_v43 }
 0x64f   :  { %vm3112_vm13 = vcmp.gt.f32.partialorder %v8512_v42, 0.0  ;;  %v3128_v16 = vmul.f32 0.01, %v8512_v42  ;;  %v3078_v23 = vpop.f32.mrb[38].mxu0 }
 0x650   :  { %v10146_v55 = vsel %vm3111_vm10, %v8511_v63, %v3127_v27  ;;  %v8513_v19 = vadd.f32 %v3078_v23, %v10113_v13  ;;  %v3080_v28 = vpop.f32.mrb[39].mxu0  ;;  %8738 = vrot.lane.b32.xlu0 %v10142_v33, %s9113_s16 }
 0x651   :  { %v10151_v20 = vsel %vm3112_vm13, %v8512_v42, %v3128_v16  ;;  %v8514_v1 = vadd.f32 %v3080_v28, %v10116_v21 }
 0x652   :  { %vm3113_vm14 = vcmp.gt.f32.partialorder %v8513_v19, 0.0  ;;  %v3129_v39 = vmul.f32 0.01, %v8513_v19  ;;  %v10156_v40 = vpack.i.bf16 %v10151_v20, %v10146_v55 }
 0x653   :  { %vm3114_vm15 = vcmp.gt.f32.partialorder %v8514_v1, 0.0  ;;  %v3130_v52 = vmul.f32 0.01, %v8514_v1  ;;  %v3084_v35 = vpop.f32.mrb[40].mxu0 }
 0x654   :  { %v10158_v34 = vsel %vm3113_vm14, %v8513_v19, %v3129_v39  ;;  %v8515_v60 = vadd.f32 %v3084_v35, %v10113_v13  ;;  %v3086_v38 = vpop.f32.mrb[41].mxu0  ;;  %8743 = vrot.lane.b32.xlu1 %v10156_v40, %s9113_s16  ;;  %v3336_v35 = vld [vmem:[%s10601_s10 + $0x20] sm:$0xff]  ;;  %vm3428_vm14 = vcmask 523264  }
 0x655   :  { %v7404_v57 = vpack.c.bf16 %v10158_v34, %v10146_v55  ;;  %v10165_v25 = vsel %vm3114_vm15, %v8514_v1, %v3130_v52  ;;  %v8516_v0 = vadd.f32 %v3086_v38, %v10116_v21  ;;  %v3332_v52 = vld [vmem:[%s10601_s10] sm:$0xff]  ;;  %v3338_v38 = vld [vmem:[%s10601_s10 + $0x30] sm:$0xff] }
 0x656   :  { %vm3115_vm4 = vcmp.gt.f32.partialorder %v8515_v60, 0.0  ;;  %v3131_v37 = vmul.f32 0.01, %v8515_v60  ;;  %v8747_v44 = vpack.i.bf16 %v10165_v25, %v10158_v34  ;;  %v7402_v59 = vpack.c.bf16 %v10165_v25, %v10151_v20 }
 0x657   :  { %vm3116_vm3 = vcmp.gt.f32.partialorder %v8516_v0, 0.0  ;;  %v3132_v10 = vmul.f32 0.01, %v8516_v0  ;;  %v3090_v46 = vpop.f32.mrb[42].mxu0 }
 0x658   :  { %v10172_v45 = vsel %vm3115_vm4, %v8515_v60, %v3131_v37  ;;  %v8517_v62 = vadd.f32 %v3090_v46, %v10113_v13  ;;  %v3092_v32 = vpop.f32.mrb[43].mxu0  ;;  %8748 = vrot.lane.b32.xlu0 %v8747_v44, %s9113_s16  ;;  %v3337_v60 = vld [vmem:[%s10601_s10 + $0x28] sm:$0xff]  ;;  %v3339_v37 = vld [vmem:[%s10601_s10 + $0x38] sm:$0xff]  ;;  %v3342_v46 = vld [vmem:[%s10601_s10 + $0x50] sm:$0xff] }
 0x659   :  { %v10176_v8 = vsel %vm3116_vm3, %v8516_v0, %v3132_v10  ;;  %v8518_v17 = vadd.f32 %v3092_v32, %v10116_v21  ;;  %v3301_v0 = vld [vmem:[%s10600_s9 + $0x8] sm:$0xff]  ;;  %v3344_v32 = vld [vmem:[%s10601_s10 + $0x60] sm:$0xff] }
 0x65a   :  { %vm3117_vm5 = vcmp.gt.f32.partialorder %v8517_v62, 0.0  ;;  %v3133_v49 = vmul.f32 0.01, %v8517_v62  ;;  %v8752_v24 = vpack.i.bf16 %v10176_v8, %v10172_v45  ;;  %6534 = vmatprep.mubr.msk.f32.mxu1 %vm3428_vm14, %v3301_v0  ;;  %v3341_v10 = vld [vmem:[%s10601_s10 + $0x48] sm:$0xff] }
 0x65b   :  { %vm3118_vm6 = vcmp.gt.f32.partialorder %v8518_v17, 0.0  ;;  %v3134_v48 = vmul.f32 0.01, %v8518_v17  ;;  %v3096_v22 = vpop.f32.mrb[44].mxu0 }
 0x65c   :  { %v10181_v15 = vsel %vm3117_vm5, %v8517_v62, %v3133_v49  ;;  %v8519_v51 = vadd.f32 %v3096_v22, %v10113_v13  ;;  %v3098_v41 = vpop.f32.mrb[45].mxu0  ;;  %8753 = vrot.lane.b32.xlu1 %v8752_v24, %s9113_s16  ;;  %v3343_v62 = vld [vmem:[%s10601_s10 + $0x58] sm:$0xff]  ;;  %v3346_v49 = vld [vmem:[%s10601_s10 + $0x70] sm:$0xff]  ;;  %v4021_v22 = vld [vmem:[%s10605_s14 + $0x8] sm:$0xff]  ;;  %vm3773_vm5 = vcmask 998400  }
 0x65d   :  { %v7408_v2 = vpack.c.bf16 %v10181_v15, %v10172_v45  ;;  %v10187_v31 = vsel %vm3118_vm6, %v8518_v17, %v3134_v48  ;;  %v8520_v29 = vadd.f32 %v3098_v41, %v10116_v21  ;;  %v3345_v17 = vld [vmem:[%s10601_s10 + $0x68] sm:$0xff]  ;;  %v4020_v48 = vld [vmem:[%s10605_s14] sm:$0xff] }
 0x65e   :  { %vm3119_vm7 = vcmp.gt.f32.partialorder %v8519_v51, 0.0  ;;  %v3135_v61 = vmul.f32 0.01, %v8519_v51  ;;  %v8757_v53 = vpack.i.bf16 %v10187_v31, %v10181_v15  ;;  %v7406_v12 = vpack.c.bf16 %v10187_v31, %v10176_v8 }
 0x65f   :  { %vm3120_vm9 = vcmp.gt.f32.partialorder %v8520_v29, 0.0  ;;  %v3136_v7 = vmul.f32 0.01, %v8520_v29  ;;  %v3102_v11 = vpop.f32.mrb[46].mxu0 }
 0x660   :  { %v10194_v47 = vsel %vm3119_vm7, %v8519_v51, %v3135_v61  ;;  %v8521_v63 = vadd.f32 %v3102_v11, %v10113_v13  ;;  %v3104_v36 = vpop.f32.mrb[47].mxu0  ;;  %8758 = vrot.lane.b32.xlu0 %v8757_v53, %s9113_s16 }
 0x661   :  { %v10198_v42 = vsel %vm3120_vm9, %v8520_v29, %v3136_v7  ;;  %v8522_v27 = vadd.f32 %v3104_v36, %v10116_v21 }
 0x662   :  { %vm3121_vm10 = vcmp.gt.f32.partialorder %v8521_v63, 0.0  ;;  %v3137_v16 = vmul.f32 0.01, %v8521_v63  ;;  %v8762_v23 = vpack.i.bf16 %v10198_v42, %v10194_v47 }
 0x663   :  { %vm3122_vm13 = vcmp.gt.f32.partialorder %v8522_v27, 0.0  ;;  %v3138_v19 = vmul.f32 0.01, %v8522_v27 }
 0x664   :  { %v10203_v28 = vsel %vm3121_vm10, %v8521_v63, %v3137_v16  ;;  %8763 = vrot.lane.b32.xlu1 %v8762_v23, %s9113_s16 }
 0x665   :  { %v7412_v13 = vpack.c.bf16 %v10203_v28, %v10194_v47  ;;  %v10208_v1 = vsel %vm3122_vm13, %v8522_v27, %v3138_v19 }
 0x666   :  { %v8767_v39 = vpack.i.bf16 %v10208_v1, %v10203_v28  ;;  %v7410_v21 = vpack.c.bf16 %v10208_v1, %v10198_v42 }
 0x668   :  { %8768 = vrot.lane.b32.xlu0 %v8767_v39, %s9113_s16  ;;  %8773 = vrot.lane.b32.xlu1 %v10128_v56, %s9114_s25  ;;  %v3333_v56 = vld [vmem:[%s10601_s10 + $0x8] sm:$0xff] }
 0x66c   :  { %8778 = vrot.lane.b32.xlu0 %v10142_v33, %s9114_s25  ;;  %8783 = vrot.lane.b32.xlu1 %v10156_v40, %s9114_s25  ;;  %v3334_v33 = vld [vmem:[%s10601_s10 + $0x10] sm:$0xff]  ;;  %v3335_v40 = vld [vmem:[%s10601_s10 + $0x18] sm:$0xff] }
 0x670   :  { %8788 = vrot.lane.b32.xlu0 %v8747_v44, %s9114_s25  ;;  %8793 = vrot.lane.b32.xlu1 %v8752_v24, %s9114_s25  ;;  %v3340_v44 = vld [vmem:[%s10601_s10 + $0x40] sm:$0xff]  ;;  %v3347_v24 = vld [vmem:[%s10601_s10 + $0x78] sm:$0xff] }
 0x674   :  { %8798 = vrot.lane.b32.xlu0 %v8757_v53, %s9114_s25  ;;  %8803 = vrot.lane.b32.xlu1 %v8762_v23, %s9114_s25 }
 0x678   :  { %8808 = vrot.lane.b32.xlu0 %v8767_v39, %s9114_s25  ;;  %3350 = vperm.xlu1 %8651, %v3332_v52  }
 0x67c   :  { %3355 = vperm.xlu0 %8650, %v3333_v56   ;;  %3360 = vperm.xlu1 %8651, %v3334_v33  }
 0x680   :  { %3365 = vperm.xlu0 %8650, %v3335_v40   ;;  %3370 = vperm.xlu1 %8651, %v3336_v35  }
 0x684   :  { %3375 = vperm.xlu0 %8650, %v3337_v60   ;;  %3380 = vperm.xlu1 %8651, %v3338_v38  }
 0x688   :  { %3385 = vperm.xlu0 %8650, %v3339_v37   ;;  %3390 = vperm.xlu1 %8651, %v3340_v44  }
 0x68c   :  { %3395 = vperm.xlu0 %8650, %v3341_v10   ;;  %3400 = vperm.xlu1 %8651, %v3342_v46  }
 0x690   :  { %3405 = vperm.xlu0 %8650, %v3343_v62   ;;  %3410 = vperm.xlu1 %8651, %v3344_v32  }
 0x694   :  { %3415 = vperm.xlu0 %8650, %v3345_v17   ;;  %3420 = vperm.xlu1 %8651, %v3346_v49  }
 0x698   :  { %3425 = vperm.xlu0 %8650, %v3347_v24   ;;  %4024 = vperm.xlu1 %8651, %v4020_v48  }
 0x69c   :  { %4029 = vperm.xlu0 %8650, %v4021_v22  }
 0x6be   :  { %v8734_v51 = vpop.permute.xlu1 %8733 }
 0x6bf   :  { %v8736_v41 = vunpack.i.h.bf16 %v8734_v51  ;;  %v8735_v29 = vunpack.i.l.bf16 %v8734_v51 }
 0x6c1   :  { %v3203_v11 = vsel %vm246_vm0, %v8735_v29, %v8736_v41 }
 0x6c2   :  { %v8739_v61 = vpop.permute.xlu0 %8738 }
 0x6c3   :  { %v8741_v53 = vunpack.i.h.bf16 %v8739_v61  ;;  %v8740_v7 = vunpack.i.l.bf16 %v8739_v61 }
 0x6c5   :  { %v3204_v63 = vsel %vm246_vm0, %v8740_v7, %v8741_v53  ;;  %v7380_v16 = vpack.c.bf16 %v8740_v7, %v8735_v29 }
 0x6c6   :  { %v8744_v36 = vpop.permute.xlu1 %8743  ;;  %v7378_v27 = vpack.c.bf16 %v3204_v63, %v3203_v11 }
 0x6c7   :  { %v8746_v23 = vunpack.i.h.bf16 %v8744_v36  ;;  %v8745_v19 = vunpack.i.l.bf16 %v8744_v36 }
 0x6c8   :  { %7379 = vmatprep.subr.bf16.mxu1 %v7378_v27 }
 0x6c9   :  { %7382 = vmatpush1.bf16.msk.msra.mxu1 %vm9827_vm11, %v7380_v16  ;;  %v3205_v33 = vsel %vm246_vm0, %v8745_v19, %v8746_v23 }
 0x6ca   :  { %v8749_v39 = vpop.permute.xlu0 %8748 }
 0x6cb   :  { %v8751_v52 = vunpack.i.h.bf16 %v8749_v39  ;;  %v8750_v56 = vunpack.i.l.bf16 %v8749_v39 }
 0x6cd   :  { %v3206_v40 = vsel %vm246_vm0, %v8750_v56, %v8751_v52  ;;  %v7385_v38 = vpack.c.bf16 %v8750_v56, %v8745_v19 }
 0x6ce   :  { %v8754_v35 = vpop.permute.xlu1 %8753  ;;  %v7383_v60 = vpack.c.bf16 %v3206_v40, %v3205_v33 }
 0x6cf   :  { %v8756_v0 = vunpack.i.h.bf16 %v8754_v35  ;;  %v8755_v37 = vunpack.i.l.bf16 %v8754_v35 }
 0x6d0   :  { %7384 = vmatprep.subr.bf16.mxu1 %v7383_v60  ;;  %v3750_v60 = vld [vmem:[#allocation15 + $0x80] sm:$0xff] }
 0x6d1   :  { %7387 = vmatpush1.bf16.msk.msra.mxu1 %vm9827_vm11, %v7385_v38  ;;  %v3207_v62 = vsel %vm246_vm0, %v8755_v37, %v8756_v0  ;;  %v3751_v38 = vld [vmem:[#allocation15 + $0x88] sm:$0xff] }
 0x6d2   :  { %v8759_v44 = vpop.permute.xlu0 %8758 }
 0x6d3   :  { %v8761_v10 = vunpack.i.h.bf16 %v8759_v44  ;;  %v8760_v46 = vunpack.i.l.bf16 %v8759_v44 }
 0x6d5   :  { %v3208_v32 = vsel %vm246_vm0, %v8760_v46, %v8761_v10  ;;  %v7390_v24 = vpack.c.bf16 %v8760_v46, %v8755_v37  ;;  %v7434_v10 = vpack.c.bf16 %v3751_v38, %v3750_v60  ;;  %v3734_v46 = vld [vmem:[#allocation15] sm:$0xff]  ;;  %v3315_v38 = vld [vmem:[%s10600_s9 + $0x78] sm:$0xff] }
 0x6d6   :  { %v8764_v17 = vpop.permute.xlu1 %8763  ;;  %v7388_v49 = vpack.c.bf16 %v3208_v32, %v3207_v62  ;;  %v3735_v62 = vld [vmem:[#allocation15 + $0x8] sm:$0xff] }
 0x6d7   :  { %v8766_v48 = vunpack.i.h.bf16 %v8764_v17  ;;  %v8765_v22 = vunpack.i.l.bf16 %v8764_v17  ;;  %v3752_v17 = vld [vmem:[#allocation15 + $0x90] sm:$0xff] }
 0x6d8   :  { %7389 = vmatprep.subr.bf16.mxu1 %v7388_v49  ;;  %v3753_v49 = vld [vmem:[#allocation15 + $0x98] sm:$0xff] }
 0x6d9   :  { %7392 = vmatpush1.bf16.msk.msra.mxu1 %vm9827_vm11, %v7390_v24  ;;  %v3209_v61 = vsel %vm246_vm0, %v8765_v22, %v8766_v48  ;;  %v3300_v24 = vld [vmem:[%s10600_s9] sm:$0xff]  ;;  %v7436_v48 = vpack.c.bf16 %v3735_v62, %v3734_v46  ;;  %v3318_v46 = vld [vmem:[%s10600_s9 + $0x90] sm:$0xff]  ;;  %v3321_v62 = vld [vmem:[%s10600_s9 + $0xa8] sm:$0xff] }
 0x6da   :  { %v8769_v51 = vpop.permute.xlu0 %8768  ;;  %v8774_v36 = vpop.permute.xlu1 %8773 }
 0x6db   :  { %v8771_v41 = vunpack.i.h.bf16 %v8769_v51  ;;  %v8770_v29 = vunpack.i.l.bf16 %v8769_v51  ;;  %v8776_v6 = vunpack.i.h.bf16 %v8774_v36  ;;  %v8775_v54 = vunpack.i.l.bf16 %v8774_v36 }
 0x6dc   :  { %v7438_v51 = vpack.c.bf16 %v3753_v49, %v3752_v17  ;;  %v3323_v17 = vld [vmem:[%s10600_s9 + $0xb8] sm:$0xff]  ;;  %v3322_v49 = vld [vmem:[%s10600_s9 + $0xb0] sm:$0xff] }
 0x6dd   :  { %v3210_v53 = vsel %vm246_vm0, %v8770_v29, %v8771_v41  ;;  %v7395_v11 = vpack.c.bf16 %v8770_v29, %v8765_v22  ;;  %vm3291_vm0 = vcmask 990208   ;;  %v3303_v22 = vld [vmem:[%s10600_s9 + $0x18] sm:$0xff] }
 0x6de   :  { %v7393_v7 = vpack.c.bf16 %v3210_v53, %v3209_v61  ;;  %v8779_v63 = vpop.permute.xlu0 %8778  ;;  %v8784_v30 = vpop.permute.xlu1 %8783  ;;  %v3736_v41 = vld [vmem:[#allocation15 + $0x10] sm:$0xff]  ;;  %v3737_v29 = vld [vmem:[#allocation15 + $0x18] sm:$0xff]  ;;  %v3754_v61 = vld [vmem:[#allocation15 + $0xa0] sm:$0xff] }
 0x6df   :  { %v8781_v43 = vunpack.i.h.bf16 %v8779_v63  ;;  %v8780_v14 = vunpack.i.l.bf16 %v8779_v63  ;;  %v8786_v45 = vunpack.i.h.bf16 %v8784_v30  ;;  %v8785_v8 = vunpack.i.l.bf16 %v8784_v30  ;;  %v3755_v53 = vld [vmem:[#allocation15 + $0xa8] sm:$0xff] }
 0x6e0   :  { %7394 = vmatprep.subr.bf16.mxu1 %v7393_v7  ;;  %v3302_v7 = vld [vmem:[%s10600_s9 + $0x10] sm:$0xff]  ;;  %v3305_v63 = vld [vmem:[%s10600_s9 + $0x28] sm:$0xff]  ;;  %v7442_v36 = vpack.c.bf16 %v3755_v53, %v3754_v61  ;;  %v3331_v61 = vld [vmem:[%s10600_s9 + $0xf8] sm:$0xff] }
 0x6e1   :  { %7397 = vmatpush1.bf16.msk.msra.mxu1 %vm9827_vm11, %v7395_v11  ;;  %vm10321_vm11 = vmpackc.low %vm3291_vm0, %vm3291_vm0  ;;  %v3268_v55 = vsel %vm279_vm1, %v8780_v14, %v8781_v43  ;;  %v7414_v20 = vpack.c.bf16 %v8781_v43, %v8776_v6  ;;  %v7440_v11 = vpack.c.bf16 %v3737_v29, %v3736_v41  ;;  %v3739_v30 = vld [vmem:[#allocation15 + $0x28] sm:$0xff]  ;;  %v3756_v43 = vld [vmem:[#allocation15 + $0xb0] sm:$0xff] }
 0x6e2   :  { %7399 = vmatprep.subr.bf16.mxu1 %v7398_v58  ;;  %v8789_v27 = vpop.permute.xlu0 %8788  ;;  %v8794_v25 = vpop.permute.xlu1 %8793  ;;  %v3757_v14 = vld [vmem:[#allocation15 + $0xb8] sm:$0xff]  ;;  %v3329_v41 = vld [vmem:[%s10600_s9 + $0xe8] sm:$0xff]  ;;  %v3330_v53 = vld [vmem:[%s10600_s9 + $0xf0] sm:$0xff] }
 0x6e3   :  { %v8791_v34 = vunpack.i.h.bf16 %v8789_v27  ;;  %v8796_v16 = vunpack.i.h.bf16 %v8794_v25  ;;  %v8795_v47 = vunpack.i.l.bf16 %v8794_v25  ;;  %v7446_v58 = vpack.c.bf16 %v3757_v14, %v3756_v43  ;;  %v3306_v25 = vld [vmem:[%s10600_s9 + $0x30] sm:$0xff]  ;;  %v3328_v29 = vld [vmem:[%s10600_s9 + $0xe0] sm:$0xff] }
 0x6e5   :  { %7401 = vmatpush1.bf16.msra.mxu1 %v7400_v50  ;;  %v7419_v31 = vpack.c.bf16 %v8791_v34, %v8786_v45  ;;  %v3271_v56 = vsel %vm279_vm1, %v8795_v47, %v8796_v16  ;;  %v3744_v47 = vld [vmem:[#allocation15 + $0x50] sm:$0xff] }
 0x6e6   :  { %7403 = vmatprep.subr.bf16.mxu1 %v7402_v59  ;;  %v8799_v50 = vpop.permute.xlu0 %8798  ;;  %v3267_v59 = vsel %vm279_vm1, %v8775_v54, %v8776_v6  ;;  %v3304_v6 = vld [vmem:[%s10600_s9 + $0x20] sm:$0xff] }
 0x6e7   :  { %v7417_v15 = vpack.c.bf16 %v3268_v55, %v3267_v59  ;;  %v8800_v42 = vunpack.i.l.bf16 %v8799_v50  ;;  %v3740_v55 = vld [vmem:[#allocation15 + $0x30] sm:$0xff] }
 0x6e9   :  { %7405 = vmatpush1.bf16.msra.mxu1 %v7404_v57  ;;  %v8790_v57 = vunpack.i.l.bf16 %v8789_v27  ;;  %v3738_v27 = vld [vmem:[#allocation15 + $0x20] sm:$0xff] }
 0x6ea   :  { %7407 = vmatprep.subr.bf16.mxu1 %v7406_v12  ;;  %v8801_v12 = vunpack.i.h.bf16 %v8799_v50  ;;  %v8809_v1 = vpop.permute.xlu0 %8808  ;;  %v7444_v54 = vpack.c.bf16 %v3739_v30, %v3738_v27  ;;  %v3307_v50 = vld [vmem:[%s10600_s9 + $0x38] sm:$0xff] }
 0x6eb   :  { %v8811_v39 = vunpack.i.h.bf16 %v8809_v1  ;;  %v8810_v52 = vunpack.i.l.bf16 %v8809_v1  ;;  %v3749_v27 = vld [vmem:[#allocation15 + $0x78] sm:$0xff] }
 0x6ec   :  { %v3272_v23 = vsel %vm279_vm1, %v8800_v42, %v8801_v12  ;;  %v7424_v19 = vpack.c.bf16 %v8801_v12, %v8796_v16  ;;  %v3761_v12 = vld [vmem:[#allocation15 + $0xd8] sm:$0xff] }
 0x6ed   :  { %7409 = vmatpush1.bf16.msra.mxu1 %v7408_v2  ;;  %v3270_v2 = vsel %vm279_vm1, %v8790_v57, %v8791_v34  ;;  %v7427_v35 = vpack.c.bf16 %v3272_v23, %v3271_v56  ;;  %v3274_v0 = vsel %vm279_vm1, %v8810_v52, %v8811_v39  ;;  %v3758_v34 = vld [vmem:[#allocation15 + $0xc0] sm:$0xff]  ;;  %v3759_v57 = vld [vmem:[#allocation15 + $0xc8] sm:$0xff] }
 0x6ee   :  { %7411 = vmatprep.subr.bf16.mxu1 %v7410_v21  ;;  %v3269_v21 = vsel %vm279_vm1, %v8785_v8, %v8786_v45  ;;  %v3309_v45 = vld [vmem:[%s10600_s9 + $0x48] sm:$0xff]  ;;  %v7450_v8 = vpack.c.bf16 %v3759_v57, %v3758_v34  ;;  %v3308_v42 = vld [vmem:[%s10600_s9 + $0x40] sm:$0xff] }
 0x6ef   :  { %v7422_v28 = vpack.c.bf16 %v3270_v2, %v3269_v21  ;;  %v3743_v2 = vld [vmem:[#allocation15 + $0x48] sm:$0xff]  ;;  %v3311_v21 = vld [vmem:[%s10600_s9 + $0x58] sm:$0xff] }
 0x6f0   :  { %v3763_v23 = vld [vmem:[#allocation15 + $0xe8] sm:$0xff] }
 0x6f1   :  { %7413 = vmatpush1.bf16.msra.mxu1 %v7412_v13  ;;  %v8804_v13 = vpop.permute.xlu1 %8803  ;;  %v3313_v52 = vld [vmem:[%s10600_s9 + $0x68] sm:$0xff] }
 0x6f2   :  { %7416 = vmatprep.subr.msk.bf16.mxu1 %vm10321_vm11, %v7414_v20  ;;  %v8806_v33 = vunpack.i.h.bf16 %v8804_v13  ;;  %v8805_v40 = vunpack.i.l.bf16 %v8804_v13  ;;  %v3741_v20 = vld [vmem:[#allocation15 + $0x38] sm:$0xff]  ;;  %v3762_v13 = vld [vmem:[#allocation15 + $0xe0] sm:$0xff] }
 0x6f3   :  { %v7448_v59 = vpack.c.bf16 %v3741_v20, %v3740_v55  ;;  %v7458_v56 = vpack.c.bf16 %v3763_v23, %v3762_v13 }
 0x6f4   :  { %v7429_v37 = vpack.c.bf16 %v8811_v39, %v8806_v33  ;;  %v3273_v44 = vsel %vm279_vm1, %v8805_v40, %v8806_v33  ;;  %v3746_v33 = vld [vmem:[#allocation15 + $0x60] sm:$0xff]  ;;  %v3747_v40 = vld [vmem:[#allocation15 + $0x68] sm:$0xff]  ;;  %vm9117_vm1 = vmmov 1  }
 0x6f5   :  { %7418 = vmatpush1.bf16.msra.mxu1 %v7417_v15  ;;  %v7432_v32 = vpack.c.bf16 %v3274_v0, %v3273_v44  ;;  %v3742_v15 = vld [vmem:[#allocation15 + $0x40] sm:$0xff]  ;;  %v7460_v60 = vpack.c.bf16 %v3747_v40, %v3746_v33  ;;  %v3314_v0 = vld [vmem:[%s10600_s9 + $0x70] sm:$0xff]  ;;  %vm7463_vm15 = vmpackc.low %vm333_vm2, %vm9117_vm1 }
 0x6f6   :  { %7421 = vmatprep.subr.msk.bf16.mxu1 %vm10321_vm11, %v7419_v31  ;;  %v3760_v31 = vld [vmem:[#allocation15 + $0xd0] sm:$0xff]  ;;  %v7452_v1 = vpack.c.bf16 %v3743_v2, %v3742_v15  ;;  %v3316_v44 = vld [vmem:[%s10600_s9 + $0x80] sm:$0xff] }
 0x6f7   :  { %v7454_v16 = vpack.c.bf16 %v3761_v12, %v3760_v31  ;;  %v3351_v43 = vpop.permute.xlu1 %3350 }
 0x6f9   :  { %7423 = vmatpush1.bf16.msra.mxu1 %v7422_v28  ;;  %v3745_v28 = vld [vmem:[#allocation15 + $0x58] sm:$0xff] }
 0x6fa   :  { %7426 = vmatprep.subr.msk.bf16.mxu1 %vm10321_vm11, %v7424_v19  ;;  %v3310_v19 = vld [vmem:[%s10600_s9 + $0x50] sm:$0xff]  ;;  %v7456_v39 = vpack.c.bf16 %v3745_v28, %v3744_v47 }
 0x6fb   :  { %v3356_v55 = vpop.permute.xlu0 %3355  ;;  %v3361_v2 = vpop.permute.xlu1 %3360 }
 0x6fd   :  { %7428 = vmatpush1.bf16.msra.mxu1 %v7427_v35  ;;  %v3312_v35 = vld [vmem:[%s10600_s9 + $0x60] sm:$0xff] }
 0x6fe   :  { %7431 = vmatprep.subr.msk.bf16.mxu1 %vm10321_vm11, %v7429_v37  ;;  %v3317_v37 = vld [vmem:[%s10600_s9 + $0x88] sm:$0xff] }
 0x6ff   :  { %v3366_v13 = vpop.permute.xlu0 %3365 }
 0x701   :  { %7433 = vmatpush1.bf16.msra.mxu1 %v7432_v32  ;;  %v3320_v32 = vld [vmem:[%s10600_s9 + $0xa0] sm:$0xff] }
 0x702   :  { %7435 = vmatprep.subr.bf16.mxu1 %v7434_v10  ;;  %v3319_v10 = vld [vmem:[%s10600_s9 + $0x98] sm:$0xff] }
 0x704   :  { %3542 = vmatmul.mubr.f32.vlgmr.msra.gmra.mrb[48].mxu1 %v3300_v24  ;;  %v3325_v24 = vld [vmem:[%s10600_s9 + $0xc8] sm:$0xff] }
 0x705   :  { %6535 = vmatprep.mubr.msk.f32.mxu1 %vm3428_vm14, %v3303_v22  ;;  %7437 = vmatpush3.bf16.msra.mxu1 %v7436_v48  ;;  %v3324_v48 = vld [vmem:[%s10600_s9 + $0xc0] sm:$0xff]  ;;  %v3327_v22 = vld [vmem:[%s10600_s9 + $0xd8] sm:$0xff] }
 0x706   :  { %7439 = vmatprep.subr.bf16.mxu1 %v7438_v51  ;;  %v3326_v51 = vld [vmem:[%s10600_s9 + $0xd0] sm:$0xff]  ;;  %s9118_s9 = smov 116  }
 0x708   :  { %3548 = vmatmul.mubr.f32.gmra.mrb[50].mxu1 %v3302_v7  ;;  %v3764_v7 = vld [vmem:[#allocation15 + $0xf0] sm:$0xff] }
 0x709   :  { %6536 = vmatprep.mubr.msk.f32.mxu1 %vm3428_vm14, %v3305_v63  ;;  %7441 = vmatpush3.bf16.msra.mxu1 %v7440_v11  ;;  %v3765_v11 = vld [vmem:[#allocation15 + $0xf8] sm:$0x3]  ;;  %v3748_v63 = vld [vmem:[#allocation15 + $0x70] sm:$0xff] }
 0x70a   :  { %7443 = vmatprep.subr.bf16.mxu1 %v7442_v36  ;;  %v7462_v36 = vpack.c.bf16 %v3765_v11, %v3764_v7  ;;  %v7465_v30 = vpack.c.bf16 %v3749_v27, %v3748_v63 }
 0x70c   :  { %3554 = vmatmul.mubr.f32.gmra.mrb[52].mxu1 %v3304_v6 }
 0x70d   :  { %6537 = vmatprep.mubr.msk.f32.mxu1 %vm3428_vm14, %v3307_v50  ;;  %7445 = vmatpush3.bf16.msra.mxu1 %v7444_v54 }
 0x70e   :  { %7447 = vmatprep.subr.bf16.mxu1 %v7446_v58 }
 0x710   :  { %3560 = vmatmul.mubr.f32.gmra.mrb[54].mxu1 %v3306_v25 }
 0x711   :  { %6538 = vmatprep.mubr.msk.f32.mxu1 %vm3428_vm14, %v3309_v45  ;;  %7449 = vmatpush3.bf16.msra.mxu1 %v7448_v59 }
 0x712   :  { %7451 = vmatprep.subr.bf16.mxu1 %v7450_v8 }
 0x714   :  { %3566 = vmatmul.mubr.f32.gmra.mrb[56].mxu1 %v3308_v42 }
 0x715   :  { %6539 = vmatprep.mubr.msk.f32.mxu1 %vm3428_vm14, %v3311_v21  ;;  %7453 = vmatpush3.bf16.msra.mxu1 %v7452_v1 }
 0x716   :  { %7455 = vmatprep.subr.bf16.mxu1 %v7454_v16 }
 0x718   :  { %3572 = vmatmul.mubr.f32.gmra.mrb[58].mxu1 %v3310_v19 }
 0x719   :  { %6540 = vmatprep.mubr.msk.f32.mxu1 %vm3428_vm14, %v3313_v52  ;;  %7457 = vmatpush3.bf16.msra.mxu1 %v7456_v39 }
 0x71a   :  { %7459 = vmatprep.subr.bf16.mxu1 %v7458_v56 }
 0x71c   :  { %3578 = vmatmul.mubr.f32.gmra.mrb[60].mxu1 %v3312_v35 }
 0x71d   :  { %6541 = vmatprep.mubr.msk.f32.mxu1 %vm3428_vm14, %v3315_v38  ;;  %7461 = vmatpush3.bf16.msra.mxu1 %v7460_v60  ;;  %v3371_v60 = vpop.permute.xlu1 %3370 }
 0x71e   :  { %7464 = vmatprep.subr.msk.bf16.mxu1 %vm7463_vm15, %v7462_v36 }
 0x720   :  { %3584 = vmatmul.mubr.f32.gmra.mrb[62].mxu1 %v3314_v0 }
 0x721   :  { %6542 = vmatprep.mubr.msk.f32.mxu1 %vm3428_vm14, %v3317_v37  ;;  %7466 = vmatpush3.bf16.msra.mxu1 %v7465_v30 }
 0x724   :  { %3590 = vmatmul.mubr.f32.gmra.mrb[64].mxu1 %v3316_v44 }
 0x725   :  { %6543 = vmatprep.mubr.msk.f32.mxu1 %vm3428_vm14, %v3319_v10 }
 0x728   :  { %3596 = vmatmul.mubr.f32.gmra.mrb[66].mxu1 %v3318_v46 }
 0x729   :  { %6544 = vmatprep.mubr.msk.f32.mxu1 %vm3428_vm14, %v3321_v62 }
 0x72c   :  { %3602 = vmatmul.mubr.f32.gmra.mrb[68].mxu1 %v3320_v32 }
 0x72d   :  { %6545 = vmatprep.mubr.msk.f32.mxu1 %vm3428_vm14, %v3323_v17  ;;  %v3376_v17 = vpop.permute.xlu0 %3375 }
 0x730   :  { %3608 = vmatmul.mubr.f32.gmra.mrb[70].mxu1 %v3322_v49 }
 0x731   :  { %6546 = vmatprep.mubr.msk.f32.mxu1 %vm3428_vm14, %v3325_v24 }
 0x734   :  { %3614 = vmatmul.mubr.f32.gmra.mrb[72].mxu1 %v3324_v48 }
 0x735   :  { %6547 = vmatprep.mubr.msk.f32.mxu1 %vm3428_vm14, %v3327_v22 }
 0x738   :  { %3620 = vmatmul.mubr.f32.gmra.mrb[74].mxu1 %v3326_v51 }
 0x739   :  { %6548 = vmatprep.mubr.msk.f32.mxu1 %vm3428_vm14, %v3329_v41 }
 0x73c   :  { %3626 = vmatmul.mubr.f32.gmra.mrb[76].mxu1 %v3328_v29 }
 0x73d   :  { %6549 = vmatprep.mubr.msk.f32.mxu1 %vm3428_vm14, %v3331_v61 }
 0x740   :  { %3632 = vmatmul.mubr.f32.gmra.mrb[78].mxu1 %v3330_v53  ;;  %v3381_v53 = vpop.permute.xlu1 %3380 }
 0x7d7   :  { %v3543_v14 = vpop.f32.mrb[48].mxu1 }
 0x7d8   :  { %v3544_v6 = vadd.f32 %v3543_v14, %v3351_v43  ;;  %v3545_v54 = vpop.f32.mrb[49].mxu1 }
 0x7d9   :  { %v3546_v50 = vadd.f32 %v3545_v54, %v3351_v43 }
 0x7da   :  { %v3670_v58 = vmul.f32 0.01, %v3544_v6  ;;  %vm3638_vm4 = vcmp.gt.f32.partialorder %v3544_v6, 0.0 }
 0x7db   :  { %vm3639_vm3 = vcmp.gt.f32.partialorder %v3546_v50, 0.0  ;;  %v3671_v20 = vmul.f32 0.01, %v3546_v50  ;;  %v3549_v34 = vpop.f32.mrb[50].mxu1 }
 0x7dc   :  { %v3550_v57 = vadd.f32 %v3549_v34, %v3356_v55  ;;  %v3551_v25 = vpop.f32.mrb[51].mxu1  ;;  %v3702_v8 = vsel %vm3638_vm4, %v3544_v6, %v3670_v58  ;;  %v3386_v6 = vpop.permute.xlu0 %3385 }
 0x7dd   :  { %v3552_v59 = vadd.f32 %v3551_v25, %v3356_v55  ;;  %v3703_v45 = vsel %vm3639_vm3, %v3546_v50, %v3671_v20 }
 0x7de   :  { %v3672_v15 = vmul.f32 0.01, %v3550_v57  ;;  %6552 = vmatprep.mubr.msk.f32.mxu1 %vm3773_vm5, %v3703_v45  ;;  %vm3640_vm7 = vcmp.gt.f32.partialorder %v3550_v57, 0.0 }
 0x7df   :  { %vm3641_vm6 = vcmp.gt.f32.partialorder %v3552_v59, 0.0  ;;  %v3673_v31 = vmul.f32 0.01, %v3552_v59  ;;  %v3555_v12 = vpop.f32.mrb[52].mxu1  ;;  %3890 = vmatmul.mubr.f32.vlgmr.msra.gmra.mrb[80].mxu1 %v3702_v8 }
 0x7e0   :  { %v3556_v42 = vadd.f32 %v3555_v12, %v3361_v2  ;;  %v3557_v1 = vpop.f32.mrb[53].mxu1  ;;  %v3704_v28 = vsel %vm3640_vm7, %v3550_v57, %v3672_v15 }
 0x7e1   :  { %v3558_v21 = vadd.f32 %v3557_v1, %v3361_v2  ;;  %v3705_v16 = vsel %vm3641_vm6, %v3552_v59, %v3673_v31  ;;  %v3391_v59 = vpop.permute.xlu1 %3390 }
 0x7e2   :  { %v3674_v47 = vmul.f32 0.01, %v3556_v42  ;;  %6553 = vmatprep.mubr.msk.f32.mxu1 %vm3773_vm5, %v3705_v16  ;;  %vm3642_vm10 = vcmp.gt.f32.partialorder %v3556_v42, 0.0 }
 0x7e3   :  { %vm3643_vm9 = vcmp.gt.f32.partialorder %v3558_v21, 0.0  ;;  %v3675_v23 = vmul.f32 0.01, %v3558_v21  ;;  %v3561_v19 = vpop.f32.mrb[54].mxu1  ;;  %3895 = vmatmul.mubr.f32.gmra.mrb[82].mxu1 %v3704_v28 }
 0x7e4   :  { %v3562_v39 = vadd.f32 %v3561_v19, %v3366_v13  ;;  %v3563_v52 = vpop.f32.mrb[55].mxu1  ;;  %v3706_v35 = vsel %vm3642_vm10, %v3556_v42, %v3674_v47 }
 0x7e5   :  { %v3564_v56 = vadd.f32 %v3563_v52, %v3366_v13  ;;  %v3707_v33 = vsel %vm3643_vm9, %v3558_v21, %v3675_v23  ;;  %v3396_v21 = vpop.permute.xlu0 %3395 }
 0x7e6   :  { %v3676_v40 = vmul.f32 0.01, %v3562_v39  ;;  %6554 = vmatprep.mubr.msk.f32.mxu1 %vm3773_vm5, %v3707_v33  ;;  %vm3644_vm14 = vcmp.gt.f32.partialorder %v3562_v39, 0.0 }
 0x7e7   :  { %vm3645_vm13 = vcmp.gt.f32.partialorder %v3564_v56, 0.0  ;;  %v3677_v38 = vmul.f32 0.01, %v3564_v56  ;;  %v3567_v0 = vpop.f32.mrb[56].mxu1  ;;  %3900 = vmatmul.mubr.f32.gmra.mrb[84].mxu1 %v3706_v35 }
 0x7e8   :  { %v3568_v37 = vadd.f32 %v3567_v0, %v3371_v60  ;;  %v3569_v44 = vpop.f32.mrb[57].mxu1  ;;  %v3708_v32 = vsel %vm3644_vm14, %v3562_v39, %v3676_v40 }
 0x7e9   :  { %v3570_v10 = vadd.f32 %v3569_v44, %v3371_v60  ;;  %v3709_v46 = vsel %vm3645_vm13, %v3564_v56, %v3677_v38  ;;  %v3401_v56 = vpop.permute.xlu1 %3400 }
 0x7ea   :  { %v3678_v62 = vmul.f32 0.01, %v3568_v37  ;;  %6555 = vmatprep.mubr.msk.f32.mxu1 %vm3773_vm5, %v3709_v46  ;;  %vm3646_vm11 = vcmp.gt.f32.partialorder %v3568_v37, 0.0 }
 0x7eb   :  { %vm3647_vm0 = vcmp.gt.f32.partialorder %v3570_v10, 0.0  ;;  %v3679_v49 = vmul.f32 0.01, %v3570_v10  ;;  %v3573_v24 = vpop.f32.mrb[58].mxu1  ;;  %3905 = vmatmul.mubr.f32.gmra.mrb[86].mxu1 %v3708_v32 }
 0x7ec   :  { %v3574_v48 = vadd.f32 %v3573_v24, %v3376_v17  ;;  %v3575_v22 = vpop.f32.mrb[59].mxu1  ;;  %v3710_v61 = vsel %vm3646_vm11, %v3568_v37, %v3678_v62 }
 0x7ed   :  { %v3576_v51 = vadd.f32 %v3575_v22, %v3376_v17  ;;  %v3711_v41 = vsel %vm3647_vm0, %v3570_v10, %v3679_v49  ;;  %v3406_v10 = vpop.permute.xlu0 %3405 }
 0x7ee   :  { %v3680_v29 = vmul.f32 0.01, %v3574_v48  ;;  %6556 = vmatprep.mubr.msk.f32.mxu1 %vm3773_vm5, %v3711_v41  ;;  %vm3648_vm15 = vcmp.gt.f32.partialorder %v3574_v48, 0.0 }
 0x7ef   :  { %vm3649_vm1 = vcmp.gt.f32.partialorder %v3576_v51, 0.0  ;;  %v3681_v7 = vmul.f32 0.01, %v3576_v51  ;;  %v3579_v11 = vpop.f32.mrb[60].mxu1  ;;  %3910 = vmatmul.mubr.f32.gmra.mrb[88].mxu1 %v3710_v61 }
 0x7f0   :  { %v3580_v63 = vadd.f32 %v3579_v11, %v3381_v53  ;;  %v3581_v36 = vpop.f32.mrb[61].mxu1  ;;  %v3712_v14 = vsel %vm3648_vm15, %v3574_v48, %v3680_v29 }
 0x7f1   :  { %v3582_v27 = vadd.f32 %v3581_v36, %v3381_v53  ;;  %v3713_v30 = vsel %vm3649_vm1, %v3576_v51, %v3681_v7  ;;  %v3411_v51 = vpop.permute.xlu1 %3410 }
 0x7f2   :  { %v3682_v43 = vmul.f32 0.01, %v3580_v63  ;;  %6557 = vmatprep.mubr.msk.f32.mxu1 %vm3773_vm5, %v3713_v30  ;;  %vm3650_vm3 = vcmp.gt.f32.partialorder %v3580_v63, 0.0 }
 0x7f3   :  { %vm3651_vm4 = vcmp.gt.f32.partialorder %v3582_v27, 0.0  ;;  %v3683_v54 = vmul.f32 0.01, %v3582_v27  ;;  %v3585_v50 = vpop.f32.mrb[62].mxu1  ;;  %3915 = vmatmul.mubr.f32.gmra.mrb[90].mxu1 %v3712_v14 }
 0x7f4   :  { %v3586_v58 = vadd.f32 %v3585_v50, %v3386_v6  ;;  %v3587_v55 = vpop.f32.mrb[63].mxu1  ;;  %v3714_v25 = vsel %vm3650_vm3, %v3580_v63, %v3682_v43 }
 0x7f5   :  { %v3588_v20 = vadd.f32 %v3587_v55, %v3386_v6  ;;  %v3715_v34 = vsel %vm3651_vm4, %v3582_v27, %v3683_v54  ;;  %v3416_v27 = vpop.permute.xlu0 %3415 }
 0x7f6   :  { %v3684_v57 = vmul.f32 0.01, %v3586_v58  ;;  %6558 = vmatprep.mubr.msk.f32.mxu1 %vm3773_vm5, %v3715_v34  ;;  %vm3652_vm7 = vcmp.gt.f32.partialorder %v3586_v58, 0.0 }
 0x7f7   :  { %vm3653_vm6 = vcmp.gt.f32.partialorder %v3588_v20, 0.0  ;;  %v3685_v45 = vmul.f32 0.01, %v3588_v20  ;;  %v3591_v8 = vpop.f32.mrb[64].mxu1  ;;  %3920 = vmatmul.mubr.f32.gmra.mrb[92].mxu1 %v3714_v25 }
 0x7f8   :  { %v3592_v15 = vadd.f32 %v3591_v8, %v3391_v59  ;;  %v3593_v2 = vpop.f32.mrb[65].mxu1  ;;  %v3716_v1 = vsel %vm3652_vm7, %v3586_v58, %v3684_v57 }
 0x7f9   :  { %v3594_v31 = vadd.f32 %v3593_v2, %v3391_v59  ;;  %v3717_v12 = vsel %vm3653_vm6, %v3588_v20, %v3685_v45  ;;  %v3421_v20 = vpop.permute.xlu1 %3420 }
 0x7fa   :  { %v3686_v42 = vmul.f32 0.01, %v3592_v15  ;;  %6559 = vmatprep.mubr.msk.f32.mxu1 %vm3773_vm5, %v3717_v12  ;;  %vm3654_vm10 = vcmp.gt.f32.partialorder %v3592_v15, 0.0 }
 0x7fb   :  { %vm3655_vm9 = vcmp.gt.f32.partialorder %v3594_v31, 0.0  ;;  %v3687_v16 = vmul.f32 0.01, %v3594_v31  ;;  %v3597_v47 = vpop.f32.mrb[66].mxu1  ;;  %3925 = vmatmul.mubr.f32.gmra.mrb[94].mxu1 %v3716_v1 }
 0x7fc   :  { %v3598_v28 = vadd.f32 %v3597_v47, %v3396_v21  ;;  %v3599_v13 = vpop.f32.mrb[67].mxu1  ;;  %v3718_v52 = vsel %vm3654_vm10, %v3592_v15, %v3686_v42 }
 0x7fd   :  { %v3600_v23 = vadd.f32 %v3599_v13, %v3396_v21  ;;  %v3719_v19 = vsel %vm3655_vm9, %v3594_v31, %v3687_v16  ;;  %v3426_v31 = vpop.permute.xlu0 %3425 }
 0x7fe   :  { %v3688_v39 = vmul.f32 0.01, %v3598_v28  ;;  %6560 = vmatprep.mubr.msk.f32.mxu1 %vm3773_vm5, %v3719_v19  ;;  %vm3656_vm14 = vcmp.gt.f32.partialorder %v3598_v28, 0.0 }
 0x7ff   :  { %vm3657_vm13 = vcmp.gt.f32.partialorder %v3600_v23, 0.0  ;;  %v3689_v33 = vmul.f32 0.01, %v3600_v23  ;;  %v3603_v40 = vpop.f32.mrb[68].mxu1  ;;  %3930 = vmatmul.mubr.f32.gmra.mrb[96].mxu1 %v3718_v52  ;;  %v4018_v52 = vld [vmem:[#allocation18] sm:$0xff] }
 0x800   :  { %v3604_v35 = vadd.f32 %v3603_v40, %v3401_v56  ;;  %v3605_v60 = vpop.f32.mrb[69].mxu1  ;;  %v3720_v44 = vsel %vm3656_vm14, %v3598_v28, %v3688_v39  ;;  %6703 = vmatprep.mubr.f32.mxu0 %v4018_v52 }
 0x801   :  { %v3606_v38 = vadd.f32 %v3605_v60, %v3401_v56  ;;  %v3721_v0 = vsel %vm3657_vm13, %v3600_v23, %v3689_v33  ;;  %v10469_v33 = vld [vmem:[#allocation16] ss:$0 sm:$0xff] }
 0x802   :  { %v3690_v37 = vmul.f32 0.01, %v3604_v35  ;;  %6561 = vmatprep.mubr.msk.f32.mxu1 %vm3773_vm5, %v3721_v0  ;;  %vm3658_vm11 = vcmp.gt.f32.partialorder %v3604_v35, 0.0 }
 0x803   :  { %vm3659_vm0 = vcmp.gt.f32.partialorder %v3606_v38, 0.0  ;;  %v3691_v46 = vmul.f32 0.01, %v3606_v38  ;;  %v3609_v62 = vpop.f32.mrb[70].mxu1  ;;  %3935 = vmatmul.mubr.f32.gmra.mrb[98].mxu1 %v3720_v44 }
 0x804   :  { %v3610_v32 = vadd.f32 %v3609_v62, %v3406_v10  ;;  %v3611_v17 = vpop.f32.mrb[71].mxu1  ;;  %v3722_v22 = vsel %vm3658_vm11, %v3604_v35, %v3690_v37 }
 0x805   :  { %v3612_v49 = vadd.f32 %v3611_v17, %v3406_v10  ;;  %v3723_v24 = vsel %vm3659_vm0, %v3606_v38, %v3691_v46 }
 0x806   :  { %v3692_v48 = vmul.f32 0.01, %v3610_v32  ;;  %6562 = vmatprep.mubr.msk.f32.mxu1 %vm3773_vm5, %v3723_v24  ;;  %vm3660_vm15 = vcmp.gt.f32.partialorder %v3610_v32, 0.0 }
 0x807   :  { %vm3661_vm1 = vcmp.gt.f32.partialorder %v3612_v49, 0.0  ;;  %v3693_v41 = vmul.f32 0.01, %v3612_v49  ;;  %v3615_v29 = vpop.f32.mrb[72].mxu1  ;;  %3940 = vmatmul.mubr.f32.gmra.mrb[100].mxu1 %v3722_v22 }
 0x808   :  { %v3616_v61 = vadd.f32 %v3615_v29, %v3411_v51  ;;  %v3617_v53 = vpop.f32.mrb[73].mxu1  ;;  %v3724_v36 = vsel %vm3660_vm15, %v3610_v32, %v3692_v48 }
 0x809   :  { %v3618_v7 = vadd.f32 %v3617_v53, %v3411_v51  ;;  %v3725_v11 = vsel %vm3661_vm1, %v3612_v49, %v3693_v41 }
 0x80a   :  { %v3694_v63 = vmul.f32 0.01, %v3616_v61  ;;  %6563 = vmatprep.mubr.msk.f32.mxu1 %vm3773_vm5, %v3725_v11  ;;  %vm3662_vm3 = vcmp.gt.f32.partialorder %v3616_v61, 0.0 }
 0x80b   :  { %vm3663_vm4 = vcmp.gt.f32.partialorder %v3618_v7, 0.0  ;;  %v3695_v30 = vmul.f32 0.01, %v3618_v7  ;;  %v3621_v43 = vpop.f32.mrb[74].mxu1  ;;  %3945 = vmatmul.mubr.f32.gmra.mrb[102].mxu1 %v3724_v36 }
 0x80c   :  { %v3622_v14 = vadd.f32 %v3621_v43, %v3416_v27  ;;  %v3623_v6 = vpop.f32.mrb[75].mxu1  ;;  %v3726_v55 = vsel %vm3662_vm3, %v3616_v61, %v3694_v63 }
 0x80d   :  { %v3624_v54 = vadd.f32 %v3623_v6, %v3416_v27  ;;  %v3727_v50 = vsel %vm3663_vm4, %v3618_v7, %v3695_v30 }
 0x80e   :  { %v3696_v58 = vmul.f32 0.01, %v3622_v14  ;;  %6564 = vmatprep.mubr.msk.f32.mxu1 %vm3773_vm5, %v3727_v50  ;;  %vm3664_vm7 = vcmp.gt.f32.partialorder %v3622_v14, 0.0 }
 0x80f   :  { %vm3665_vm6 = vcmp.gt.f32.partialorder %v3624_v54, 0.0  ;;  %v3697_v34 = vmul.f32 0.01, %v3624_v54  ;;  %v3627_v57 = vpop.f32.mrb[76].mxu1  ;;  %3950 = vmatmul.mubr.f32.gmra.mrb[104].mxu1 %v3726_v55 }
 0x810   :  { %v3628_v25 = vadd.f32 %v3627_v57, %v3421_v20  ;;  %v3629_v59 = vpop.f32.mrb[77].mxu1  ;;  %v3728_v2 = vsel %vm3664_vm7, %v3622_v14, %v3696_v58 }
 0x811   :  { %v3630_v45 = vadd.f32 %v3629_v59, %v3421_v20  ;;  %v3729_v8 = vsel %vm3665_vm6, %v3624_v54, %v3697_v34 }
 0x812   :  { %v3698_v15 = vmul.f32 0.01, %v3628_v25  ;;  %6565 = vmatprep.mubr.msk.f32.mxu1 %vm3773_vm5, %v3729_v8  ;;  %vm3666_vm10 = vcmp.gt.f32.partialorder %v3628_v25, 0.0 }
 0x813   :  { %vm3667_vm9 = vcmp.gt.f32.partialorder %v3630_v45, 0.0  ;;  %v3699_v12 = vmul.f32 0.01, %v3630_v45  ;;  %v3633_v42 = vpop.f32.mrb[78].mxu1  ;;  %3955 = vmatmul.mubr.f32.gmra.mrb[106].mxu1 %v3728_v2 }
 0x814   :  { %v3634_v1 = vadd.f32 %v3633_v42, %v3426_v31  ;;  %v3635_v21 = vpop.f32.mrb[79].mxu1  ;;  %v3730_v13 = vsel %vm3666_vm10, %v3628_v25, %v3698_v15 }
 0x815   :  { %v3636_v16 = vadd.f32 %v3635_v21, %v3426_v31  ;;  %v3731_v47 = vsel %vm3667_vm9, %v3630_v45, %v3699_v12 }
 0x816   :  { %v3700_v28 = vmul.f32 0.01, %v3634_v1  ;;  %6566 = vmatprep.mubr.msk.f32.mxu1 %vm3773_vm5, %v3731_v47  ;;  %vm3668_vm14 = vcmp.gt.f32.partialorder %v3634_v1, 0.0 }
 0x817   :  { %vm3669_vm13 = vcmp.gt.f32.partialorder %v3636_v16, 0.0  ;;  %v3701_v23 = vmul.f32 0.01, %v3636_v16  ;;  %3960 = vmatmul.mubr.f32.gmra.mrb[108].mxu1 %v3730_v13 }
 0x818   :  { %v3732_v39 = vsel %vm3668_vm14, %v3634_v1, %v3700_v28 }
 0x819   :  { %v3733_v19 = vsel %vm3669_vm13, %v3636_v16, %v3701_v23 }
 0x81a   :  { %6567 = vmatprep.mubr.msk.f32.mxu1 %vm3773_vm5, %v3733_v19 }
 0x81b   :  { %3965 = vmatmul.mubr.f32.gmra.mrb[110].mxu1 %v3732_v39 }
 0x8b2   :  { %v6605_v56 = vpop.f32.mrb[80].mxu1 }
 0x8b3   :  { %v6606_v40 = vpop.f32.mrb[81].mxu1 }
 0x8b4   :  { %v6607_v35 = vadd.f32 %v6606_v40, %v6605_v56 }
 0x8b6   :  { %v3892_v60 = vadd.f32 %v6607_v35, %v10469_v33  ;;  %v6608_v38 = vpop.f32.mrb[82].mxu1 }
 0x8b7   :  { %v6609_v0 = vpop.f32.mrb[83].mxu1 }
 0x8b8   :  { %v6610_v37 = vadd.f32 %v6609_v0, %v6608_v38  ;;  %v3986_v44 = vmul.f32 0.01, %v3892_v60  ;;  %vm3970_vm0 = vcmp.gt.f32.partialorder %v3892_v60, 0.0 }
 0x8ba   :  { %v3897_v10 = vadd.f32 %v6610_v37, %v10469_v33  ;;  %v6611_v46 = vpop.f32.mrb[84].mxu1  ;;  %v4002_v48 = vsel %vm3970_vm0, %v3892_v60, %v3986_v44 }
 0x8bb   :  { %v6612_v62 = vpop.f32.mrb[85].mxu1 }
 0x8bc   :  { %vm3971_vm11 = vcmp.gt.f32.partialorder %v3897_v10, 0.0  ;;  %v3987_v32 = vmul.f32 0.01, %v3897_v10  ;;  %v6613_v17 = vadd.f32 %v6612_v62, %v6611_v46 }
 0x8be   :  { %v3902_v49 = vadd.f32 %v6613_v17, %v10469_v33  ;;  %v6614_v24 = vpop.f32.mrb[86].mxu1  ;;  %v4003_v22 = vsel %vm3971_vm11, %v3897_v10, %v3987_v32 }
 0x8bf   :  { %v6615_v51 = vpop.f32.mrb[87].mxu1  ;;  %v7467_v41 = vpack.c.bf16 %v4003_v22, %v4002_v48 }
 0x8c0   :  { %v6616_v29 = vadd.f32 %v6615_v51, %v6614_v24  ;;  %v3988_v61 = vmul.f32 0.01, %v3902_v49  ;;  %vm3972_vm1 = vcmp.gt.f32.partialorder %v3902_v49, 0.0 }
 0x8c1   :  { %7468 = vmatprep.subr.bf16.mxu0 %v7467_v41 }
 0x8c2   :  { %v3907_v53 = vadd.f32 %v6616_v29, %v10469_v33  ;;  %v6617_v7 = vpop.f32.mrb[88].mxu1  ;;  %7470 = vmatpush3.bf16.msra.mxu0 %v7467_v41  ;;  %v4004_v43 = vsel %vm3972_vm1, %v3902_v49, %v3988_v61 }
 0x8c3   :  { %v6618_v11 = vpop.f32.mrb[89].mxu1 }
 0x8c4   :  { %vm3973_vm15 = vcmp.gt.f32.partialorder %v3907_v53, 0.0  ;;  %v3989_v63 = vmul.f32 0.01, %v3907_v53  ;;  %v6619_v36 = vadd.f32 %v6618_v11, %v6617_v7 }
 0x8c6   :  { %v3912_v27 = vadd.f32 %v6619_v36, %v10469_v33  ;;  %v6620_v30 = vpop.f32.mrb[90].mxu1  ;;  %v4005_v14 = vsel %vm3973_vm15, %v3907_v53, %v3989_v63 }
 0x8c7   :  { %v6621_v6 = vpop.f32.mrb[91].mxu1  ;;  %v7471_v54 = vpack.c.bf16 %v4005_v14, %v4004_v43 }
 0x8c8   :  { %v6622_v50 = vadd.f32 %v6621_v6, %v6620_v30  ;;  %v3990_v58 = vmul.f32 0.01, %v3912_v27  ;;  %vm3974_vm4 = vcmp.gt.f32.partialorder %v3912_v27, 0.0 }
 0x8c9   :  { %7472 = vmatprep.subr.bf16.mxu0 %v7471_v54 }
 0x8ca   :  { %v3917_v55 = vadd.f32 %v6622_v50, %v10469_v33  ;;  %v6623_v20 = vpop.f32.mrb[92].mxu1  ;;  %7474 = vmatpush3.bf16.msra.mxu0 %v7471_v54  ;;  %v4006_v8 = vsel %vm3974_vm4, %v3912_v27, %v3990_v58 }
 0x8cb   :  { %v6624_v34 = vpop.f32.mrb[93].mxu1 }
 0x8cc   :  { %vm3975_vm3 = vcmp.gt.f32.partialorder %v3917_v55, 0.0  ;;  %v3991_v57 = vmul.f32 0.01, %v3917_v55  ;;  %v6625_v25 = vadd.f32 %v6624_v34, %v6623_v20 }
 0x8ce   :  { %v3922_v59 = vadd.f32 %v6625_v25, %v10469_v33  ;;  %v6626_v45 = vpop.f32.mrb[94].mxu1  ;;  %v4007_v15 = vsel %vm3975_vm3, %v3917_v55, %v3991_v57 }
 0x8cf   :  { %v6627_v2 = vpop.f32.mrb[95].mxu1  ;;  %v7475_v31 = vpack.c.bf16 %v4007_v15, %v4006_v8 }
 0x8d0   :  { %v6628_v12 = vadd.f32 %v6627_v2, %v6626_v45  ;;  %v3992_v42 = vmul.f32 0.01, %v3922_v59  ;;  %vm3976_vm6 = vcmp.gt.f32.partialorder %v3922_v59, 0.0 }
 0x8d1   :  { %7476 = vmatprep.subr.bf16.mxu0 %v7475_v31 }
 0x8d2   :  { %v3927_v1 = vadd.f32 %v6628_v12, %v10469_v33  ;;  %v6629_v21 = vpop.f32.mrb[96].mxu1  ;;  %7478 = vmatpush3.bf16.msra.mxu0 %v7475_v31  ;;  %v4008_v19 = vsel %vm3976_vm6, %v3922_v59, %v3992_v42 }
 0x8d3   :  { %v6630_v16 = vpop.f32.mrb[97].mxu1 }
 0x8d4   :  { %vm3977_vm7 = vcmp.gt.f32.partialorder %v3927_v1, 0.0  ;;  %v3993_v47 = vmul.f32 0.01, %v3927_v1  ;;  %v6631_v28 = vadd.f32 %v6630_v16, %v6629_v21  ;;  %v4030_v21 = vpop.permute.xlu0 %4029 }
 0x8d6   :  { %v3932_v13 = vadd.f32 %v6631_v28, %v10469_v33  ;;  %v6632_v23 = vpop.f32.mrb[98].mxu1  ;;  %v4009_v39 = vsel %vm3977_vm7, %v3927_v1, %v3993_v47  ;;  %v4019_v1 = vld [vmem:[#allocation18 + $0x8] sm:$0xff]  ;;  %v4025_v47 = vpop.permute.xlu1 %4024 }
 0x8d7   :  { %v6633_v52 = vpop.f32.mrb[99].mxu1  ;;  %v7479_v56 = vpack.c.bf16 %v4009_v39, %v4008_v19 }
 0x8d8   :  { %v6634_v40 = vadd.f32 %v6633_v52, %v6632_v23  ;;  %v3994_v35 = vmul.f32 0.01, %v3932_v13  ;;  %vm3978_vm9 = vcmp.gt.f32.partialorder %v3932_v13, 0.0 }
 0x8d9   :  { %7480 = vmatprep.subr.bf16.mxu0 %v7479_v56 }
 0x8da   :  { %v3937_v60 = vadd.f32 %v6634_v40, %v10469_v33  ;;  %v6635_v38 = vpop.f32.mrb[100].mxu1  ;;  %7482 = vmatpush3.bf16.msra.mxu0 %v7479_v56  ;;  %v4010_v62 = vsel %vm3978_vm9, %v3932_v13, %v3994_v35 }
 0x8db   :  { %v6636_v0 = vpop.f32.mrb[101].mxu1 }
 0x8dc   :  { %vm3979_vm10 = vcmp.gt.f32.partialorder %v3937_v60, 0.0  ;;  %v3995_v37 = vmul.f32 0.01, %v3937_v60  ;;  %v6637_v44 = vadd.f32 %v6636_v0, %v6635_v38 }
 0x8de   :  { %v3942_v10 = vadd.f32 %v6637_v44, %v10469_v33  ;;  %v6638_v46 = vpop.f32.mrb[102].mxu1  ;;  %v4011_v32 = vsel %vm3979_vm10, %v3937_v60, %v3995_v37 }
 0x8df   :  { %v6639_v17 = vpop.f32.mrb[103].mxu1  ;;  %v7483_v49 = vpack.c.bf16 %v4011_v32, %v4010_v62 }
 0x8e0   :  { %v6640_v24 = vadd.f32 %v6639_v17, %v6638_v46  ;;  %v3996_v48 = vmul.f32 0.01, %v3942_v10  ;;  %vm3980_vm13 = vcmp.gt.f32.partialorder %v3942_v10, 0.0 }
 0x8e1   :  { %7484 = vmatprep.subr.bf16.mxu0 %v7483_v49 }
 0x8e2   :  { %v3947_v22 = vadd.f32 %v6640_v24, %v10469_v33  ;;  %v6641_v51 = vpop.f32.mrb[104].mxu1  ;;  %7486 = vmatpush3.bf16.msra.mxu0 %v7483_v49  ;;  %v4012_v11 = vsel %vm3980_vm13, %v3942_v10, %v3996_v48 }
 0x8e3   :  { %v6642_v41 = vpop.f32.mrb[105].mxu1 }
 0x8e4   :  { %vm3981_vm14 = vcmp.gt.f32.partialorder %v3947_v22, 0.0  ;;  %v3997_v29 = vmul.f32 0.01, %v3947_v22  ;;  %v6643_v61 = vadd.f32 %v6642_v41, %v6641_v51 }
 0x8e6   :  { %v3952_v53 = vadd.f32 %v6643_v61, %v10469_v33  ;;  %v6644_v7 = vpop.f32.mrb[106].mxu1  ;;  %v4013_v63 = vsel %vm3981_vm14, %v3947_v22, %v3997_v29 }
 0x8e7   :  { %v6645_v36 = vpop.f32.mrb[107].mxu1  ;;  %v7487_v27 = vpack.c.bf16 %v4013_v63, %v4012_v11 }
 0x8e8   :  { %v6646_v30 = vadd.f32 %v6645_v36, %v6644_v7  ;;  %v3998_v43 = vmul.f32 0.01, %v3952_v53  ;;  %vm3982_vm0 = vcmp.gt.f32.partialorder %v3952_v53, 0.0 }
 0x8e9   :  { %7488 = vmatprep.subr.bf16.mxu0 %v7487_v27 }
 0x8ea   :  { %v3957_v14 = vadd.f32 %v6646_v30, %v10469_v33  ;;  %v6647_v6 = vpop.f32.mrb[108].mxu1  ;;  %7490 = vmatpush3.bf16.msra.mxu0 %v7487_v27  ;;  %v4014_v34 = vsel %vm3982_vm0, %v3952_v53, %v3998_v43 }
 0x8eb   :  { %v6648_v54 = vpop.f32.mrb[109].mxu1 }
 0x8ec   :  { %vm3983_vm11 = vcmp.gt.f32.partialorder %v3957_v14, 0.0  ;;  %v3999_v50 = vmul.f32 0.01, %v3957_v14  ;;  %v6649_v58 = vadd.f32 %v6648_v54, %v6647_v6 }
 0x8ee   :  { %v3962_v55 = vadd.f32 %v6649_v58, %v10469_v33  ;;  %v6650_v20 = vpop.f32.mrb[110].mxu1  ;;  %v4015_v57 = vsel %vm3983_vm11, %v3957_v14, %v3999_v50 }
 0x8ef   :  { %v6651_v25 = vpop.f32.mrb[111].mxu1  ;;  %v7491_v59 = vpack.c.bf16 %v4015_v57, %v4014_v34 }
 0x8f0   :  { %v6652_v45 = vadd.f32 %v6651_v25, %v6650_v20  ;;  %v4000_v8 = vmul.f32 0.01, %v3962_v55  ;;  %vm3984_vm1 = vcmp.gt.f32.partialorder %v3962_v55, 0.0 }
 0x8f1   :  { %7492 = vmatprep.subr.bf16.mxu0 %v7491_v59 }
 0x8f2   :  { %v3967_v15 = vadd.f32 %v6652_v45, %v10469_v33  ;;  %7494 = vmatpush3.bf16.msra.mxu0 %v7491_v59  ;;  %v4016_v31 = vsel %vm3984_vm1, %v3962_v55, %v4000_v8 }
 0x8f4   :  { %vm3985_vm15 = vcmp.gt.f32.partialorder %v3967_v15, 0.0  ;;  %v4001_v2 = vmul.f32 0.01, %v3967_v15 }
 0x8f6   :  { %v4017_v12 = vsel %vm3985_vm15, %v3967_v15, %v4001_v2 }
 0x8f7   :  { %v7495_v42 = vpack.c.bf16 %v4017_v12, %v4016_v31 }
 0x8f9   :  { %7496 = vmatprep.subr.bf16.mxu0 %v7495_v42 }
 0x8fa   :  { %7498 = vmatpush3.bf16.msra.mxu0 %v7495_v42 }
 0x8fd   :  { %6704 = vmatmul.mubr.f32.vlgmr.msra.gmra.mrb[48].mxu0 %v4019_v1 }
 0x9d0   :  { %v6705_v16 = vpop.f32.mrb[48].mxu0 }
 0x9d1   :  { %v4104_v28 = vadd.f32 %v6705_v16, %v4030_v21  ;;  %v4098_v13 = vpop.f32.mrb[49].mxu0 }
 0x9d2   :  { %v4099_v23 = vadd.f32 %v4098_v13, %v4025_v47 }
 0x9d3   :  { %vm4108_vm4 = vcmp.gt.f32.partialorder %v4104_v28, 0.0  ;;  %v4110_v19 = vmul.f32 0.01, %v4104_v28 }
 0x9d4   :  { %vm4107_vm3 = vcmp.gt.f32.partialorder %v4099_v23, 0.0  ;;  %v4109_v33 = vmul.f32 0.01, %v4099_v23 }
 0x9d5   :  { %v4112_v39 = vsel %vm4108_vm4, %v4104_v28, %v4110_v19 }
 0x9d6   :  { %v4111_v52 = vsel %vm4107_vm3, %v4099_v23, %v4109_v33  ;;  %4127 = vrot.lane.b32.xlu0 %v4112_v39, %s9118_s9  ;;  %v4130_v56 = vrot.slane %v4112_v39, 2 }
 0x9d7   :  { %v4118_v40 = vrot.slane %v4111_v52, 4  ;;  %v4114_v35 = vrot.slane %v4111_v52, 2 }
 0x9d8   :  { %4131 = vrot.lane.b32.xlu1 %v4130_v56, %s9119_s23 }
 0x9da   :  { %4119 = vrot.lane.b32.xlu0 %v4118_v40, %s9121_s20 }
 0x9db   :  { %9045 = shalt.err (!%p9042_p12)  }
 0x9dc   :  { %s9046_s28 = scalar_lea.vmem %s189_s1, 128000  ;;  %p9051_p0 = scmp.lt.s32.totalorder %s189_s1, %s189_s1 }
 0x9dd   :  { %p9047_p13 = scmp.ne.s32.totalorder %s189_s1, %s9046_s28  ;;  %p9052_p1 = scmp.lt.s32.totalorder %s9046_s28, %s9046_s28 }
 0x9df   :  { %p9053_p2 = por %p9052_p1, %p9051_p0 }
 0x9e1   :  { %p9054_p3 = pnand %p9053_p2, %p9047_p13 }
 0x9e3   :  { %9057 = shalt.err (!%p9054_p3)  }
 0x9e4   :  { %191 = dma.hbm_to_vmem [thread:$0]  %s10606_s15, 128000, %s189_s1, [#allocation3]  ;;  %v4134_v60 = vrot.slane %v4112_v39, 4  ;;  %v4122_v38 = vrot.slane %v4111_v52, 6  ;;  %v4138_v0 = vrot.slane %v4112_v39, 6  ;;  %vm4148_vm6 = vcmask 924672  }
 0x9e5   :  { %s9122_s12 = smov 125   ;;  %s9123_s26 = smov 110   ;;  %vm4142_vm7 = vcmask 1022976   ;;  %vm4150_vm9 = vcmask 900096   ;;  %vm4145_vm10 = vcmask 973824   ;;  %vm4152_vm13 = vcmask 875520  }
 0x9e6   :  { %4115 = vrot.lane.b32.xlu1 %v4114_v35, %s9122_s12  ;;  %4135 = vrot.lane.b32.xlu0 %v4134_v60, %s9123_s26  ;;  %s9124_s18 = smov 119   ;;  %s9125_s8 = smov 107  }
 0x9ea   :  { %4123 = vrot.lane.b32.xlu1 %v4122_v38, %s9124_s18 }
 0x9ee   :  { %4139 = vrot.lane.b32.xlu1 %v4138_v0, %s9125_s8 }
 0xa48   :  { %v4128_v37 = vpop.permute.xlu0 %4127 }
 0xa4a   :  { %v4132_v44 = vpop.permute.xlu1 %4131 }
 0xa4b   :  { %v10499_v10 = vsel %vm4148_vm6, %v4128_v37, %v4132_v44 }
 0xa4c   :  { %v4120_v46 = vpop.permute.xlu0 %4119 }
 0xa58   :  { %v4116_v62 = vpop.permute.xlu1 %4115  ;;  %v4136_v49 = vpop.permute.xlu0 %4135 }
 0xa59   :  { %v10501_v32 = vsel %vm4142_vm7, %v4111_v52, %v4116_v62  ;;  %v10504_v17 = vsel %vm3773_vm5, %v4116_v62, %v4120_v46  ;;  %v10506_v24 = vsel %vm4150_vm9, %v4132_v44, %v4136_v49 }
 0xa5c   :  { %v4124_v48 = vpop.permute.xlu1 %4123 }
 0xa5d   :  { %v10508_v22 = vsel %vm4145_vm10, %v4120_v46, %v4124_v48  ;;  %v10511_v51 = vsel %vm2850_vm12, %v4124_v48, %v4128_v37 }
 0xa60   :  { %v10513_v41 = vpop.permute.xlu1 %4139 }
 0xa61   :  { %v10516_v29 = vsel %vm4152_vm13, %v4136_v49, %v10513_v41 }
 0xa62   :  { %9092 = dma.done.wait [#allocation3], 128000 }
 0xa63   :  { %9093 = vsyncadd [#allocation3], 4294839296  ;;  %5266 = vmatprep.mubr.f32.mxu1 %v10504_v17  ;;  %5550 = vmatprep.mubr.f32.mxu0 %v10504_v17  ;;  %v4159_v61 = vld [vmem:[#allocation2 + $0x8] sm:$0xff]  ;;  %v4161_v7 = vld [vmem:[#allocation2 + $0x18] sm:$0xff]  ;;  %vm6407_vm0 = vcmask 1043458   ;;  %vm6409_vm6 = vcmask 1045508  }
 0xa64   :  { %v4167_v53 = vld [vmem:[#allocation2 + $0x48] sm:$0xff]  ;;  %v4169_v63 = vld [vmem:[#allocation2 + $0x58] sm:$0xff]  ;;  %v4158_v36 = vld [vmem:[#allocation2] sm:$0xff]  ;;  %vm6411_vm9 = vcmask 850950   ;;  %s9126_s15 = smov [#allocation21]  }
 0xa65   :  { %v7499_v11 = vpack.c.bf16 %v4167_v53, %v4159_v61  ;;  %v4166_v27 = vld [vmem:[#allocation2 + $0x40] sm:$0xff]  ;;  %v7747_v30 = vpack.c.bf16 %v4169_v63, %v4161_v7  ;;  %v4160_v14 = vld [vmem:[#allocation2 + $0x10] sm:$0xff]  ;;  %v4175_v54 = vld [vmem:[#allocation2 + $0x88] sm:$0xff]  ;;  %s6420_s22 = sshll.u32 %s9126_s15, 4  ;;  %s6421_s22 = int_to_ptr.vmem [resolvable:$true] %s6420_s22 }
 0xa66   :  { %v7501_v43 = vpack.c.bf16 %v4166_v27, %v4158_v36  ;;  %v4168_v6 = vld [vmem:[#allocation2 + $0x50] sm:$0xff]  ;;  %v4183_v58 = vld [vmem:[#allocation2 + $0xc8] sm:$0xff]  ;;  %v4177_v55 = vld [vmem:[#allocation2 + $0x98] sm:$0xff]  ;;  %s9058_s7 = scalar_lea.vmem %s6421_s22, 256  ;;  %p9063_p5 = scmp.lt.s32.totalorder %s6421_s22, %s6421_s22 }
 0xa67   :  { %7500 = vmatprep.subr.bf16.mxu1 %v7499_v11  ;;  %v7749_v50 = vpack.c.bf16 %v4168_v6, %v4160_v14  ;;  %v4185_v20 = vld [vmem:[#allocation2 + $0xd8] sm:$0xff]  ;;  %7748 = vmatprep.subr.bf16.mxu0 %v7747_v30  ;;  %v7503_v34 = vpack.c.bf16 %v4183_v58, %v4175_v54  ;;  %v4174_v25 = vld [vmem:[#allocation2 + $0x80] sm:$0xff]  ;;  %v4176_v45 = vld [vmem:[#allocation2 + $0x90] sm:$0xff]  ;;  %p9059_p4 = scmp.ne.s32.totalorder %s6421_s22, %s9058_s7  ;;  %p9064_p6 = scmp.lt.s32.totalorder %s9058_s7, %s9058_s7 }
 0xa68   :  { %7502 = vmatpush1.bf16.msra.mxu1 %v7501_v43  ;;  %v7751_v57 = vpack.c.bf16 %v4185_v20, %v4177_v55  ;;  %v4182_v59 = vld [vmem:[#allocation2 + $0xc0] sm:$0xff]  ;;  %v4184_v15 = vld [vmem:[#allocation2 + $0xd0] sm:$0xff]  ;;  %v4191_v2 = vld [vmem:[#allocation2 + $0x108] sm:$0xff] }
 0xa69   :  { %7750 = vmatpush1.bf16.msra.mxu0 %v7749_v50  ;;  %v7505_v8 = vpack.c.bf16 %v4182_v59, %v4174_v25  ;;  %v4199_v31 = vld [vmem:[#allocation2 + $0x148] sm:$0xff]  ;;  %7504 = vmatprep.subr.bf16.mxu1 %v7503_v34  ;;  %v7753_v12 = vpack.c.bf16 %v4184_v15, %v4176_v45  ;;  %v4193_v1 = vld [vmem:[#allocation2 + $0x118] sm:$0xff]  ;;  %v4190_v16 = vld [vmem:[#allocation2 + $0x100] sm:$0xff]  ;;  %p9065_p7 = por %p9064_p6, %p9063_p5 }
 0xa6a   :  { %7752 = vmatprep.subr.bf16.mxu0 %v7751_v57  ;;  %v7507_v42 = vpack.c.bf16 %v4199_v31, %v4191_v2  ;;  %v4201_v21 = vld [vmem:[#allocation2 + $0x158] sm:$0xff]  ;;  %v4198_v28 = vld [vmem:[#allocation2 + $0x140] sm:$0xff]  ;;  %v4192_v13 = vld [vmem:[#allocation2 + $0x110] sm:$0xff] }
 0xa6b   :  { %v7755_v47 = vpack.c.bf16 %v4201_v21, %v4193_v1  ;;  %v4200_v23 = vld [vmem:[#allocation2 + $0x150] sm:$0xff]  ;;  %v7509_v19 = vpack.c.bf16 %v4198_v28, %v4190_v16  ;;  %v4207_v33 = vld [vmem:[#allocation2 + $0x188] sm:$0xff]  ;;  %v4209_v52 = vld [vmem:[#allocation2 + $0x198] sm:$0xff]  ;;  %p9066_p8 = pnand %p9065_p7, %p9059_p4 }
 0xa6c   :  { %7506 = vmatpush1.bf16.msra.mxu1 %v7505_v8  ;;  %v4215_v39 = vld [vmem:[#allocation2 + $0x1c8] sm:$0xff]  ;;  %v7757_v56 = vpack.c.bf16 %v4200_v23, %v4192_v13  ;;  %v4217_v35 = vld [vmem:[#allocation2 + $0x1d8] sm:$0xff]  ;;  %v4206_v60 = vld [vmem:[#allocation2 + $0x180] sm:$0xff] }
 0xa6d   :  { %7754 = vmatpush1.bf16.msra.mxu0 %v7753_v12  ;;  %7508 = vmatprep.subr.bf16.mxu1 %v7507_v42  ;;  %v7511_v40 = vpack.c.bf16 %v4215_v39, %v4207_v33  ;;  %v4214_v38 = vld [vmem:[#allocation2 + $0x1c0] sm:$0xff]  ;;  %v7759_v0 = vpack.c.bf16 %v4217_v35, %v4209_v52  ;;  %v4208_v37 = vld [vmem:[#allocation2 + $0x190] sm:$0xff]  ;;  %v4223_v46 = vld [vmem:[#allocation2 + $0x208] sm:$0xff] }
 0xa6e   :  { %7756 = vmatprep.subr.bf16.mxu0 %v7755_v47  ;;  %v4216_v44 = vld [vmem:[#allocation2 + $0x1d0] sm:$0xff]  ;;  %v4231_v62 = vld [vmem:[#allocation2 + $0x248] sm:$0xff]  ;;  %v4225_v49 = vld [vmem:[#allocation2 + $0x218] sm:$0xff]  ;;  %v7513_v61 = vpack.c.bf16 %v4214_v38, %v4206_v60 }
 0xa6f   :  { %v4233_v48 = vld [vmem:[#allocation2 + $0x258] sm:$0xff]  ;;  %v7761_v53 = vpack.c.bf16 %v4216_v44, %v4208_v37  ;;  %v7515_v7 = vpack.c.bf16 %v4231_v62, %v4223_v46  ;;  %v4222_v11 = vld [vmem:[#allocation2 + $0x200] sm:$0xff]  ;;  %v4224_v36 = vld [vmem:[#allocation2 + $0x210] sm:$0xff] }
 0xa70   :  { %7510 = vmatpush1.bf16.msra.mxu1 %v7509_v19  ;;  %v4230_v63 = vld [vmem:[#allocation2 + $0x240] sm:$0xff]  ;;  %v7763_v27 = vpack.c.bf16 %v4233_v48, %v4225_v49  ;;  %v4232_v30 = vld [vmem:[#allocation2 + $0x250] sm:$0xff]  ;;  %v4239_v43 = vld [vmem:[#allocation2 + $0x288] sm:$0xff] }
 0xa71   :  { %7758 = vmatpush1.bf16.msra.mxu0 %v7757_v56  ;;  %7512 = vmatprep.subr.bf16.mxu1 %v7511_v40  ;;  %v4247_v14 = vld [vmem:[#allocation2 + $0x2c8] sm:$0xff]  ;;  %v4241_v6 = vld [vmem:[#allocation2 + $0x298] sm:$0xff]  ;;  %v7517_v50 = vpack.c.bf16 %v4230_v63, %v4222_v11  ;;  %v7765_v58 = vpack.c.bf16 %v4232_v30, %v4224_v36  ;;  %v4238_v20 = vld [vmem:[#allocation2 + $0x280] sm:$0xff] }
 0xa72   :  { %7760 = vmatprep.subr.bf16.mxu0 %v7759_v0  ;;  %v4249_v54 = vld [vmem:[#allocation2 + $0x2d8] sm:$0xff]  ;;  %v7519_v55 = vpack.c.bf16 %v4247_v14, %v4239_v43  ;;  %v4246_v34 = vld [vmem:[#allocation2 + $0x2c0] sm:$0xff]  ;;  %v4240_v57 = vld [vmem:[#allocation2 + $0x290] sm:$0xff] }
 0xa73   :  { %v7767_v25 = vpack.c.bf16 %v4249_v54, %v4241_v6  ;;  %v4248_v59 = vld [vmem:[#allocation2 + $0x2d0] sm:$0xff]  ;;  %v4255_v45 = vld [vmem:[#allocation2 + $0x308] sm:$0xff]  ;;  %v4257_v15 = vld [vmem:[#allocation2 + $0x318] sm:$0xff]  ;;  %v7521_v31 = vpack.c.bf16 %v4246_v34, %v4238_v20 }
 0xa74   :  { %7514 = vmatpush1.bf16.msra.mxu1 %v7513_v61  ;;  %v4263_v8 = vld [vmem:[#allocation2 + $0x348] sm:$0xff]  ;;  %v4265_v2 = vld [vmem:[#allocation2 + $0x358] sm:$0xff]  ;;  %v7769_v12 = vpack.c.bf16 %v4248_v59, %v4240_v57  ;;  %v4254_v1 = vld [vmem:[#allocation2 + $0x300] sm:$0xff] }
 0xa75   :  { %7762 = vmatpush1.bf16.msra.mxu0 %v7761_v53  ;;  %7516 = vmatprep.subr.bf16.mxu1 %v7515_v7  ;;  %v7523_v42 = vpack.c.bf16 %v4263_v8, %v4255_v45  ;;  %v4262_v21 = vld [vmem:[#allocation2 + $0x340] sm:$0xff]  ;;  %v4256_v16 = vld [vmem:[#allocation2 + $0x310] sm:$0xff]  ;;  %v7771_v47 = vpack.c.bf16 %v4265_v2, %v4257_v15  ;;  %v4271_v13 = vld [vmem:[#allocation2 + $0x388] sm:$0xff] }
 0xa76   :  { %7764 = vmatprep.subr.bf16.mxu0 %v7763_v27  ;;  %v4264_v28 = vld [vmem:[#allocation2 + $0x350] sm:$0xff]  ;;  %v4279_v23 = vld [vmem:[#allocation2 + $0x3c8] sm:$0xff]  ;;  %v4273_v19 = vld [vmem:[#allocation2 + $0x398] sm:$0xff]  ;;  %v7525_v39 = vpack.c.bf16 %v4262_v21, %v4254_v1 }
 0xa77   :  { %v4281_v33 = vld [vmem:[#allocation2 + $0x3d8] sm:$0xff]  ;;  %v7773_v52 = vpack.c.bf16 %v4264_v28, %v4256_v16  ;;  %v7527_v56 = vpack.c.bf16 %v4279_v23, %v4271_v13  ;;  %v4270_v40 = vld [vmem:[#allocation2 + $0x380] sm:$0xff]  ;;  %v4272_v60 = vld [vmem:[#allocation2 + $0x390] sm:$0xff] }
 0xa78   :  { %7518 = vmatpush1.bf16.msra.mxu1 %v7517_v50  ;;  %v4278_v35 = vld [vmem:[#allocation2 + $0x3c0] sm:$0xff]  ;;  %v7775_v38 = vpack.c.bf16 %v4281_v33, %v4273_v19  ;;  %v4280_v0 = vld [vmem:[#allocation2 + $0x3d0] sm:$0xff]  ;;  %v4287_v37 = vld [vmem:[#allocation2 + $0x408] sm:$0xff] }
 0xa79   :  { %7766 = vmatpush1.bf16.msra.mxu0 %v7765_v58  ;;  %7520 = vmatprep.subr.bf16.mxu1 %v7519_v55  ;;  %v4295_v44 = vld [vmem:[#allocation2 + $0x448] sm:$0xff]  ;;  %v4289_v46 = vld [vmem:[#allocation2 + $0x418] sm:$0xff]  ;;  %v7529_v49 = vpack.c.bf16 %v4278_v35, %v4270_v40  ;;  %v7777_v48 = vpack.c.bf16 %v4280_v0, %v4272_v60  ;;  %v4286_v53 = vld [vmem:[#allocation2 + $0x400] sm:$0xff] }
 0xa7a   :  { %7768 = vmatprep.subr.bf16.mxu0 %v7767_v25  ;;  %v4297_v62 = vld [vmem:[#allocation2 + $0x458] sm:$0xff]  ;;  %v7531_v61 = vpack.c.bf16 %v4295_v44, %v4287_v37  ;;  %v4294_v7 = vld [vmem:[#allocation2 + $0x440] sm:$0xff]  ;;  %v4288_v11 = vld [vmem:[#allocation2 + $0x410] sm:$0xff] }
 0xa7b   :  { %v7779_v63 = vpack.c.bf16 %v4297_v62, %v4289_v46  ;;  %v4296_v36 = vld [vmem:[#allocation2 + $0x450] sm:$0xff]  ;;  %v4303_v27 = vld [vmem:[#allocation2 + $0x488] sm:$0xff]  ;;  %v4305_v43 = vld [vmem:[#allocation2 + $0x498] sm:$0xff]  ;;  %v7533_v6 = vpack.c.bf16 %v4294_v7, %v4286_v53 }
 0xa7c   :  { %7522 = vmatpush1.bf16.msra.mxu1 %v7521_v31  ;;  %v4311_v30 = vld [vmem:[#allocation2 + $0x4c8] sm:$0xff]  ;;  %v4313_v14 = vld [vmem:[#allocation2 + $0x4d8] sm:$0xff]  ;;  %v7781_v54 = vpack.c.bf16 %v4296_v36, %v4288_v11  ;;  %v4302_v58 = vld [vmem:[#allocation2 + $0x480] sm:$0xff] }
 0xa7d   :  { %7770 = vmatpush1.bf16.msra.mxu0 %v7769_v12  ;;  %7524 = vmatprep.subr.bf16.mxu1 %v7523_v42  ;;  %v7535_v50 = vpack.c.bf16 %v4311_v30, %v4303_v27  ;;  %v4310_v55 = vld [vmem:[#allocation2 + $0x4c0] sm:$0xff]  ;;  %v4304_v20 = vld [vmem:[#allocation2 + $0x490] sm:$0xff]  ;;  %v7783_v34 = vpack.c.bf16 %v4313_v14, %v4305_v43  ;;  %v4319_v25 = vld [vmem:[#allocation2 + $0x508] sm:$0xff] }
 0xa7e   :  { %7772 = vmatprep.subr.bf16.mxu0 %v7771_v47  ;;  %v4312_v57 = vld [vmem:[#allocation2 + $0x4d0] sm:$0xff]  ;;  %v4327_v59 = vld [vmem:[#allocation2 + $0x548] sm:$0xff]  ;;  %v4321_v45 = vld [vmem:[#allocation2 + $0x518] sm:$0xff]  ;;  %v7537_v15 = vpack.c.bf16 %v4310_v55, %v4302_v58 }
 0xa7f   :  { %v4329_v8 = vld [vmem:[#allocation2 + $0x558] sm:$0xff]  ;;  %v7785_v2 = vpack.c.bf16 %v4312_v57, %v4304_v20  ;;  %v7539_v31 = vpack.c.bf16 %v4327_v59, %v4319_v25  ;;  %v4318_v12 = vld [vmem:[#allocation2 + $0x500] sm:$0xff]  ;;  %v4320_v1 = vld [vmem:[#allocation2 + $0x510] sm:$0xff] }
 0xa80   :  { %7526 = vmatpush1.bf16.msra.mxu1 %v7525_v39  ;;  %v4326_v42 = vld [vmem:[#allocation2 + $0x540] sm:$0xff]  ;;  %v7787_v21 = vpack.c.bf16 %v4329_v8, %v4321_v45  ;;  %v4328_v16 = vld [vmem:[#allocation2 + $0x550] sm:$0xff]  ;;  %v4335_v47 = vld [vmem:[#allocation2 + $0x588] sm:$0xff] }
 0xa81   :  { %7774 = vmatpush1.bf16.msra.mxu0 %v7773_v52  ;;  %7528 = vmatprep.subr.bf16.mxu1 %v7527_v56  ;;  %v4343_v28 = vld [vmem:[#allocation2 + $0x5c8] sm:$0xff]  ;;  %v4337_v13 = vld [vmem:[#allocation2 + $0x598] sm:$0xff]  ;;  %v7541_v19 = vpack.c.bf16 %v4326_v42, %v4318_v12  ;;  %v7789_v33 = vpack.c.bf16 %v4328_v16, %v4320_v1  ;;  %v4334_v52 = vld [vmem:[#allocation2 + $0x580] sm:$0xff] }
 0xa82   :  { %7776 = vmatprep.subr.bf16.mxu0 %v7775_v38  ;;  %v4345_v23 = vld [vmem:[#allocation2 + $0x5d8] sm:$0xff]  ;;  %v7543_v39 = vpack.c.bf16 %v4343_v28, %v4335_v47  ;;  %v4342_v56 = vld [vmem:[#allocation2 + $0x5c0] sm:$0xff]  ;;  %v4336_v40 = vld [vmem:[#allocation2 + $0x590] sm:$0xff] }
 0xa83   :  { %v7791_v35 = vpack.c.bf16 %v4345_v23, %v4337_v13  ;;  %v4344_v60 = vld [vmem:[#allocation2 + $0x5d0] sm:$0xff]  ;;  %v4351_v38 = vld [vmem:[#allocation2 + $0x608] sm:$0xff]  ;;  %v4353_v37 = vld [vmem:[#allocation2 + $0x618] sm:$0xff]  ;;  %v7545_v46 = vpack.c.bf16 %v4342_v56, %v4334_v52 }
 0xa84   :  { %7530 = vmatpush1.bf16.msra.mxu1 %v7529_v49  ;;  %v4359_v0 = vld [vmem:[#allocation2 + $0x648] sm:$0xff]  ;;  %v4361_v44 = vld [vmem:[#allocation2 + $0x658] sm:$0xff]  ;;  %v7793_v62 = vpack.c.bf16 %v4344_v60, %v4336_v40  ;;  %v4352_v53 = vld [vmem:[#allocation2 + $0x610] sm:$0xff] }
 0xa85   :  { %7778 = vmatpush1.bf16.msra.mxu0 %v7777_v48  ;;  %7532 = vmatprep.subr.bf16.mxu1 %v7531_v61  ;;  %v7547_v49 = vpack.c.bf16 %v4359_v0, %v4351_v38  ;;  %v4350_v48 = vld [vmem:[#allocation2 + $0x600] sm:$0xff]  ;;  %v7795_v7 = vpack.c.bf16 %v4361_v44, %v4353_v37  ;;  %v4360_v11 = vld [vmem:[#allocation2 + $0x650] sm:$0xff]  ;;  %v4375_v36 = vld [vmem:[#allocation2 + $0x6c8] sm:$0xff] }
 0xa86   :  { %7780 = vmatprep.subr.bf16.mxu0 %v7779_v63  ;;  %v4358_v61 = vld [vmem:[#allocation2 + $0x640] sm:$0xff]  ;;  %v4367_v63 = vld [vmem:[#allocation2 + $0x688] sm:$0xff]  ;;  %v4369_v27 = vld [vmem:[#allocation2 + $0x698] sm:$0xff]  ;;  %v7797_v14 = vpack.c.bf16 %v4360_v11, %v4352_v53 }
 0xa87   :  { %v4377_v30 = vld [vmem:[#allocation2 + $0x6d8] sm:$0xff]  ;;  %v7549_v43 = vpack.c.bf16 %v4358_v61, %v4350_v48  ;;  %v4368_v58 = vld [vmem:[#allocation2 + $0x690] sm:$0xff]  ;;  %v4391_v57 = vld [vmem:[#allocation2 + $0x748] sm:$0xff] }
 0xa88   :  { %7534 = vmatpush1.bf16.msra.mxu1 %v7533_v6  ;;  %v7551_v6 = vpack.c.bf16 %v4375_v36, %v4367_v63  ;;  %v7799_v55 = vpack.c.bf16 %v4377_v30, %v4369_v27  ;;  %v4376_v20 = vld [vmem:[#allocation2 + $0x6d0] sm:$0xff]  ;;  %v4385_v25 = vld [vmem:[#allocation2 + $0x718] sm:$0xff]  ;;  %v4407_v16 = vld [vmem:[#allocation2 + $0x7c8] sm:$0xff] }
 0xa89   :  { %7782 = vmatpush1.bf16.msra.mxu0 %v7781_v54  ;;  %7536 = vmatprep.subr.bf16.mxu1 %v7535_v50  ;;  %v4366_v54 = vld [vmem:[#allocation2 + $0x680] sm:$0xff]  ;;  %v4393_v59 = vld [vmem:[#allocation2 + $0x758] sm:$0xff]  ;;  %v7801_v8 = vpack.c.bf16 %v4376_v20, %v4368_v58  ;;  %v4384_v12 = vld [vmem:[#allocation2 + $0x710] sm:$0xff] }
 0xa8a   :  { %7784 = vmatprep.subr.bf16.mxu0 %v7783_v34  ;;  %v4374_v50 = vld [vmem:[#allocation2 + $0x6c0] sm:$0xff]  ;;  %v4383_v34 = vld [vmem:[#allocation2 + $0x708] sm:$0xff]  ;;  %v7803_v42 = vpack.c.bf16 %v4393_v59, %v4385_v25  ;;  %v4392_v1 = vld [vmem:[#allocation2 + $0x750] sm:$0xff] }
 0xa8b   :  { %v7553_v45 = vpack.c.bf16 %v4374_v50, %v4366_v54  ;;  %v4401_v47 = vld [vmem:[#allocation2 + $0x798] sm:$0xff]  ;;  %v7805_v23 = vpack.c.bf16 %v4392_v1, %v4384_v12  ;;  %v4400_v52 = vld [vmem:[#allocation2 + $0x790] sm:$0xff]  ;;  %v4423_v60 = vld [vmem:[#allocation2 + $0x848] sm:$0xff] }
 0xa8c   :  { %7538 = vmatpush1.bf16.msra.mxu1 %v7537_v15  ;;  %v7555_v15 = vpack.c.bf16 %v4391_v57, %v4383_v34  ;;  %v4409_v28 = vld [vmem:[#allocation2 + $0x7d8] sm:$0xff]  ;;  %v4408_v40 = vld [vmem:[#allocation2 + $0x7d0] sm:$0xff]  ;;  %v4439_v11 = vld [vmem:[#allocation2 + $0x8c8] sm:$0xff] }
 0xa8d   :  { %7786 = vmatpush1.bf16.msra.mxu0 %v7785_v2  ;;  %7540 = vmatprep.subr.bf16.mxu1 %v7539_v31  ;;  %v4382_v2 = vld [vmem:[#allocation2 + $0x700] sm:$0xff]  ;;  %v7807_v56 = vpack.c.bf16 %v4409_v28, %v4401_v47  ;;  %v4417_v38 = vld [vmem:[#allocation2 + $0x818] sm:$0xff]  ;;  %v7809_v44 = vpack.c.bf16 %v4408_v40, %v4400_v52  ;;  %v4416_v48 = vld [vmem:[#allocation2 + $0x810] sm:$0xff] }
 0xa8e   :  { %7788 = vmatprep.subr.bf16.mxu0 %v7787_v21  ;;  %v4390_v31 = vld [vmem:[#allocation2 + $0x740] sm:$0xff]  ;;  %v4399_v21 = vld [vmem:[#allocation2 + $0x788] sm:$0xff]  ;;  %v4425_v0 = vld [vmem:[#allocation2 + $0x858] sm:$0xff] }
 0xa8f   :  { %v7557_v13 = vpack.c.bf16 %v4390_v31, %v4382_v2  ;;  %v7811_v61 = vpack.c.bf16 %v4425_v0, %v4417_v38  ;;  %v4424_v53 = vld [vmem:[#allocation2 + $0x850] sm:$0xff]  ;;  %v4433_v63 = vld [vmem:[#allocation2 + $0x898] sm:$0xff]  ;;  %v4455_v20 = vld [vmem:[#allocation2 + $0x948] sm:$0xff] }
 0xa90   :  { %7542 = vmatpush1.bf16.msra.mxu1 %v7541_v19  ;;  %v7559_v19 = vpack.c.bf16 %v4407_v16, %v4399_v21  ;;  %v4441_v36 = vld [vmem:[#allocation2 + $0x8d8] sm:$0xff]  ;;  %v7813_v30 = vpack.c.bf16 %v4424_v53, %v4416_v48  ;;  %v4432_v54 = vld [vmem:[#allocation2 + $0x890] sm:$0xff]  ;;  %v4471_v1 = vld [vmem:[#allocation2 + $0x9c8] sm:$0xff] }
 0xa91   :  { %7790 = vmatpush1.bf16.msra.mxu0 %v7789_v33  ;;  %7544 = vmatprep.subr.bf16.mxu1 %v7543_v39  ;;  %v4398_v33 = vld [vmem:[#allocation2 + $0x780] sm:$0xff]  ;;  %v7815_v50 = vpack.c.bf16 %v4441_v36, %v4433_v63  ;;  %v4440_v58 = vld [vmem:[#allocation2 + $0x8d0] sm:$0xff]  ;;  %v4449_v34 = vld [vmem:[#allocation2 + $0x918] sm:$0xff] }
 0xa92   :  { %7792 = vmatprep.subr.bf16.mxu0 %v7791_v35  ;;  %v4406_v39 = vld [vmem:[#allocation2 + $0x7c0] sm:$0xff]  ;;  %v4415_v35 = vld [vmem:[#allocation2 + $0x808] sm:$0xff]  ;;  %v4457_v57 = vld [vmem:[#allocation2 + $0x958] sm:$0xff]  ;;  %v7817_v59 = vpack.c.bf16 %v4440_v58, %v4432_v54 }
 0xa93   :  { %v7561_v37 = vpack.c.bf16 %v4406_v39, %v4398_v33  ;;  %v4448_v2 = vld [vmem:[#allocation2 + $0x910] sm:$0xff]  ;;  %v7819_v31 = vpack.c.bf16 %v4457_v57, %v4449_v34  ;;  %v4465_v21 = vld [vmem:[#allocation2 + $0x998] sm:$0xff]  ;;  %v4487_v40 = vld [vmem:[#allocation2 + $0xa48] sm:$0xff] }
 0xa94   :  { %7546 = vmatpush1.bf16.msra.mxu1 %v7545_v46  ;;  %v7563_v46 = vpack.c.bf16 %v4423_v60, %v4415_v35  ;;  %v4456_v12 = vld [vmem:[#allocation2 + $0x950] sm:$0xff]  ;;  %v4473_v16 = vld [vmem:[#allocation2 + $0x9d8] sm:$0xff]  ;;  %v4503_v53 = vld [vmem:[#allocation2 + $0xac8] sm:$0xff] }
 0xa95   :  { %7794 = vmatpush1.bf16.msra.mxu0 %v7793_v62  ;;  %7548 = vmatprep.subr.bf16.mxu1 %v7547_v49  ;;  %v4414_v62 = vld [vmem:[#allocation2 + $0x800] sm:$0xff]  ;;  %v7821_v28 = vpack.c.bf16 %v4456_v12, %v4448_v2  ;;  %v4464_v33 = vld [vmem:[#allocation2 + $0x990] sm:$0xff]  ;;  %v7823_v39 = vpack.c.bf16 %v4473_v16, %v4465_v21  ;;  %v4481_v35 = vld [vmem:[#allocation2 + $0xa18] sm:$0xff] }
 0xa96   :  { %7796 = vmatprep.subr.bf16.mxu0 %v7795_v7  ;;  %v4422_v49 = vld [vmem:[#allocation2 + $0x840] sm:$0xff]  ;;  %v4431_v7 = vld [vmem:[#allocation2 + $0x888] sm:$0xff]  ;;  %v4472_v52 = vld [vmem:[#allocation2 + $0x9d0] sm:$0xff] }
 0xa97   :  { %v7565_v27 = vpack.c.bf16 %v4422_v49, %v4414_v62  ;;  %v4489_v60 = vld [vmem:[#allocation2 + $0xa58] sm:$0xff]  ;;  %v7825_v0 = vpack.c.bf16 %v4472_v52, %v4464_v33  ;;  %v4480_v62 = vld [vmem:[#allocation2 + $0xa10] sm:$0xff]  ;;  %v4519_v58 = vld [vmem:[#allocation2 + $0xb48] sm:$0xff] }
 0xa98   :  { %7550 = vmatpush1.bf16.msra.mxu1 %v7549_v43  ;;  %v7567_v43 = vpack.c.bf16 %v4439_v11, %v4431_v7  ;;  %v7827_v49 = vpack.c.bf16 %v4489_v60, %v4481_v35  ;;  %v4488_v48 = vld [vmem:[#allocation2 + $0xa50] sm:$0xff]  ;;  %v4497_v7 = vld [vmem:[#allocation2 + $0xa98] sm:$0xff]  ;;  %v4535_v12 = vld [vmem:[#allocation2 + $0xbc8] sm:$0xff] }
 0xa99   :  { %7798 = vmatpush1.bf16.msra.mxu0 %v7797_v14  ;;  %7552 = vmatprep.subr.bf16.mxu1 %v7551_v6  ;;  %v4430_v14 = vld [vmem:[#allocation2 + $0x880] sm:$0xff]  ;;  %v4505_v11 = vld [vmem:[#allocation2 + $0xad8] sm:$0xff]  ;;  %v7829_v36 = vpack.c.bf16 %v4488_v48, %v4480_v62  ;;  %v4504_v54 = vld [vmem:[#allocation2 + $0xad0] sm:$0xff] }
 0xa9a   :  { %7800 = vmatprep.subr.bf16.mxu0 %v7799_v55  ;;  %v4438_v6 = vld [vmem:[#allocation2 + $0x8c0] sm:$0xff]  ;;  %v4447_v55 = vld [vmem:[#allocation2 + $0x908] sm:$0xff]  ;;  %v4520_v2 = vld [vmem:[#allocation2 + $0xb50] sm:$0xff] }
 0xa9b   :  { %v7569_v25 = vpack.c.bf16 %v4438_v6, %v4430_v14  ;;  %v4496_v14 = vld [vmem:[#allocation2 + $0xa90] sm:$0xff]  ;;  %v7831_v6 = vpack.c.bf16 %v4505_v11, %v4497_v7  ;;  %v4551_v52 = vld [vmem:[#allocation2 + $0xc48] sm:$0xff]  ;;  %vm6408_vm3 = vmor %vm6407_vm0, %vm333_vm2 }
 0xa9c   :  { %7554 = vmatpush1.bf16.msra.mxu1 %v7553_v45  ;;  %v7571_v45 = vpack.c.bf16 %v4455_v20, %v4447_v55  ;;  %v4513_v55 = vld [vmem:[#allocation2 + $0xb18] sm:$0xff]  ;;  %v7833_v57 = vpack.c.bf16 %v4504_v54, %v4496_v14  ;;  %v4536_v33 = vld [vmem:[#allocation2 + $0xbd0] sm:$0xff]  ;;  %v4567_v48 = vld [vmem:[#allocation2 + $0xcc8] sm:$0xff] }
 0xa9d   :  { %7802 = vmatpush1.bf16.msra.mxu0 %v7801_v8  ;;  %7556 = vmatprep.subr.bf16.mxu1 %v7555_v15  ;;  %v4446_v8 = vld [vmem:[#allocation2 + $0x900] sm:$0xff]  ;;  %v4521_v20 = vld [vmem:[#allocation2 + $0xb58] sm:$0xff]  ;;  %v4552_v62 = vld [vmem:[#allocation2 + $0xc50] sm:$0xff] }
 0xa9e   :  { %7804 = vmatprep.subr.bf16.mxu0 %v7803_v42  ;;  %v4454_v15 = vld [vmem:[#allocation2 + $0x940] sm:$0xff]  ;;  %v4463_v42 = vld [vmem:[#allocation2 + $0x988] sm:$0xff]  ;;  %v4568_v14 = vld [vmem:[#allocation2 + $0xcd0] sm:$0xff] }
 0xa9f   :  { %v7573_v47 = vpack.c.bf16 %v4454_v15, %v4446_v8  ;;  %v4512_v8 = vld [vmem:[#allocation2 + $0xb10] sm:$0xff]  ;;  %v7835_v15 = vpack.c.bf16 %v4521_v20, %v4513_v55  ;;  %v4583_v54 = vld [vmem:[#allocation2 + $0xd48] sm:$0xff]  ;;  %vm6410_vm7 = vmor %vm6409_vm6, %vm6408_vm3 }
 0xaa0   :  { %7558 = vmatpush1.bf16.msra.mxu1 %v7557_v13  ;;  %v7575_v13 = vpack.c.bf16 %v4471_v1, %v4463_v42  ;;  %v4529_v42 = vld [vmem:[#allocation2 + $0xb98] sm:$0xff]  ;;  %v7837_v16 = vpack.c.bf16 %v4520_v2, %v4512_v8  ;;  %v4584_v8 = vld [vmem:[#allocation2 + $0xd50] sm:$0xff]  ;;  %v4599_v2 = vld [vmem:[#allocation2 + $0xdc8] sm:$0xff] }
 0xaa1   :  { %7806 = vmatpush1.bf16.msra.mxu0 %v7805_v23  ;;  %7560 = vmatprep.subr.bf16.mxu1 %v7559_v19  ;;  %v4462_v23 = vld [vmem:[#allocation2 + $0x980] sm:$0xff]  ;;  %v4537_v1 = vld [vmem:[#allocation2 + $0xbd8] sm:$0xff]  ;;  %vm6412_vm10 = vmor %vm6411_vm9, %vm6410_vm7 }
 0xaa2   :  { %7808 = vmatprep.subr.bf16.mxu0 %v7807_v56  ;;  %v4470_v19 = vld [vmem:[#allocation2 + $0x9c0] sm:$0xff]  ;;  %v4479_v56 = vld [vmem:[#allocation2 + $0xa08] sm:$0xff] }
 0xaa3   :  { %v7577_v38 = vpack.c.bf16 %v4470_v19, %v4462_v23  ;;  %v4528_v23 = vld [vmem:[#allocation2 + $0xb90] sm:$0xff]  ;;  %v7839_v19 = vpack.c.bf16 %v4537_v1, %v4529_v42 }
 0xaa4   :  { %7562 = vmatpush1.bf16.msra.mxu1 %v7561_v37  ;;  %v7579_v37 = vpack.c.bf16 %v4487_v40, %v4479_v56  ;;  %v4545_v56 = vld [vmem:[#allocation2 + $0xc18] sm:$0xff]  ;;  %v7841_v60 = vpack.c.bf16 %v4536_v33, %v4528_v23  ;;  %v4600_v23 = vld [vmem:[#allocation2 + $0xdd0] sm:$0xff]  ;;  %v4615_v33 = vld [vmem:[#allocation2 + $0xe48] sm:$0xff] }
 0xaa5   :  { %7810 = vmatpush1.bf16.msra.mxu0 %v7809_v44  ;;  %7564 = vmatprep.subr.bf16.mxu1 %v7563_v46  ;;  %v4478_v44 = vld [vmem:[#allocation2 + $0xa00] sm:$0xff]  ;;  %v4553_v40 = vld [vmem:[#allocation2 + $0xc58] sm:$0xff] }
 0xaa6   :  { %7812 = vmatprep.subr.bf16.mxu0 %v7811_v61  ;;  %v4486_v46 = vld [vmem:[#allocation2 + $0xa40] sm:$0xff]  ;;  %v4495_v61 = vld [vmem:[#allocation2 + $0xa88] sm:$0xff] }
 0xaa7   :  { %5267 = vmatmul.mubr.f32.vlgmr.msra.gmra.mrb[112].mxu1 %v10501_v32  ;;  %v7581_v63 = vpack.c.bf16 %v4486_v46, %v4478_v44  ;;  %v4544_v44 = vld [vmem:[#allocation2 + $0xc10] sm:$0xff]  ;;  %v7843_v46 = vpack.c.bf16 %v4553_v40, %v4545_v56 }
 0xaa8   :  { %7566 = vmatpush1.bf16.msra.mxu1 %v7565_v27  ;;  %5551 = vmatmul.mubr.f32.vlgmr.msra.gmra.mrb[50].mxu0 %v10501_v32  ;;  %v7583_v27 = vpack.c.bf16 %v4503_v53, %v4495_v61  ;;  %v4561_v61 = vld [vmem:[#allocation2 + $0xc98] sm:$0xff]  ;;  %v7845_v11 = vpack.c.bf16 %v4552_v62, %v4544_v44  ;;  %v4616_v44 = vld [vmem:[#allocation2 + $0xe50] sm:$0xff]  ;;  %v4631_v62 = vld [vmem:[#allocation2 + $0xec8] sm:$0xff] }
 0xaa9   :  { %7814 = vmatpush1.bf16.msra.mxu0 %v7813_v30  ;;  %7568 = vmatprep.subr.bf16.mxu1 %v7567_v43  ;;  %v4494_v30 = vld [vmem:[#allocation2 + $0xa80] sm:$0xff]  ;;  %v4569_v53 = vld [vmem:[#allocation2 + $0xcd8] sm:$0xff] }
 0xaaa   :  { %7816 = vmatprep.subr.bf16.mxu0 %v7815_v50  ;;  %5337 = vmatprep.mubr.f32.mxu1 %v10511_v51  ;;  %v4502_v43 = vld [vmem:[#allocation2 + $0xac0] sm:$0xff]  ;;  %v4511_v50 = vld [vmem:[#allocation2 + $0xb08] sm:$0xff] }
 0xaab   :  { %5621 = vmatprep.mubr.f32.mxu0 %v10511_v51  ;;  %v7585_v34 = vpack.c.bf16 %v4502_v43, %v4494_v30  ;;  %v4560_v30 = vld [vmem:[#allocation2 + $0xc90] sm:$0xff]  ;;  %v7847_v43 = vpack.c.bf16 %v4569_v53, %v4561_v61 }
 0xaac   :  { %7570 = vmatpush1.bf16.msra.mxu1 %v7569_v25  ;;  %v7587_v25 = vpack.c.bf16 %v4519_v58, %v4511_v50  ;;  %v4577_v50 = vld [vmem:[#allocation2 + $0xd18] sm:$0xff]  ;;  %v7849_v20 = vpack.c.bf16 %v4568_v14, %v4560_v30  ;;  %v4632_v30 = vld [vmem:[#allocation2 + $0xed0] sm:$0xff]  ;;  %v4647_v14 = vld [vmem:[#allocation2 + $0xf48] sm:$0xff] }
 0xaad   :  { %7818 = vmatpush1.bf16.msra.mxu0 %v7817_v59  ;;  %7572 = vmatprep.subr.bf16.mxu1 %v7571_v45  ;;  %v4510_v59 = vld [vmem:[#allocation2 + $0xb00] sm:$0xff]  ;;  %v4585_v58 = vld [vmem:[#allocation2 + $0xd58] sm:$0xff] }
 0xaae   :  { %7820 = vmatprep.subr.bf16.mxu0 %v7819_v31  ;;  %v4518_v45 = vld [vmem:[#allocation2 + $0xb40] sm:$0xff]  ;;  %v4527_v31 = vld [vmem:[#allocation2 + $0xb88] sm:$0xff] }
 0xaaf   :  { %v7589_v21 = vpack.c.bf16 %v4518_v45, %v4510_v59  ;;  %v4576_v59 = vld [vmem:[#allocation2 + $0xd10] sm:$0xff]  ;;  %v7851_v45 = vpack.c.bf16 %v4585_v58, %v4577_v50 }
 0xab0   :  { %7574 = vmatpush1.bf16.msra.mxu1 %v7573_v47  ;;  %v7591_v47 = vpack.c.bf16 %v4535_v12, %v4527_v31  ;;  %v4593_v31 = vld [vmem:[#allocation2 + $0xd98] sm:$0xff]  ;;  %v7853_v1 = vpack.c.bf16 %v4584_v8, %v4576_v59  ;;  %v4648_v59 = vld [vmem:[#allocation2 + $0xf50] sm:$0xff]  ;;  %v4663_v8 = vld [vmem:[#allocation2 + $0xfc8] sm:$0xff] }
 0xab1   :  { %7822 = vmatpush1.bf16.msra.mxu0 %v7821_v28  ;;  %7576 = vmatprep.subr.bf16.mxu1 %v7575_v13  ;;  %v4526_v28 = vld [vmem:[#allocation2 + $0xb80] sm:$0xff]  ;;  %v4601_v12 = vld [vmem:[#allocation2 + $0xdd8] sm:$0xff] }
 0xab2   :  { %7824 = vmatprep.subr.bf16.mxu0 %v7823_v39  ;;  %v4534_v13 = vld [vmem:[#allocation2 + $0xbc0] sm:$0xff]  ;;  %v4543_v39 = vld [vmem:[#allocation2 + $0xc08] sm:$0xff] }
 0xab3   :  { %v7593_v35 = vpack.c.bf16 %v4534_v13, %v4526_v28  ;;  %v4592_v28 = vld [vmem:[#allocation2 + $0xd90] sm:$0xff]  ;;  %v7855_v13 = vpack.c.bf16 %v4601_v12, %v4593_v31 }
 0xab4   :  { %7578 = vmatpush1.bf16.msra.mxu1 %v7577_v38  ;;  %v7595_v38 = vpack.c.bf16 %v4551_v52, %v4543_v39  ;;  %v4609_v39 = vld [vmem:[#allocation2 + $0xe18] sm:$0xff]  ;;  %v7857_v40 = vpack.c.bf16 %v4600_v23, %v4592_v28  ;;  %v4664_v28 = vld [vmem:[#allocation2 + $0xfd0] sm:$0xff]  ;;  %v4679_v23 = vld [vmem:[#allocation2 + $0x1048] sm:$0xff] }
 0xab5   :  { %7826 = vmatpush1.bf16.msra.mxu0 %v7825_v0  ;;  %7580 = vmatprep.subr.bf16.mxu1 %v7579_v37  ;;  %v4542_v0 = vld [vmem:[#allocation2 + $0xc00] sm:$0xff]  ;;  %v4617_v52 = vld [vmem:[#allocation2 + $0xe58] sm:$0xff] }
 0xab6   :  { %7828 = vmatprep.subr.bf16.mxu0 %v7827_v49  ;;  %v4550_v37 = vld [vmem:[#allocation2 + $0xc40] sm:$0xff]  ;;  %v4559_v49 = vld [vmem:[#allocation2 + $0xc88] sm:$0xff] }
 0xab7   :  { %v7597_v7 = vpack.c.bf16 %v4550_v37, %v4542_v0  ;;  %v4608_v0 = vld [vmem:[#allocation2 + $0xe10] sm:$0xff]  ;;  %v7859_v37 = vpack.c.bf16 %v4617_v52, %v4609_v39 }
 0xab8   :  { %7582 = vmatpush1.bf16.msra.mxu1 %v7581_v63  ;;  %v7599_v63 = vpack.c.bf16 %v4567_v48, %v4559_v49  ;;  %v4625_v49 = vld [vmem:[#allocation2 + $0xe98] sm:$0xff]  ;;  %v7861_v53 = vpack.c.bf16 %v4616_v44, %v4608_v0  ;;  %v4680_v0 = vld [vmem:[#allocation2 + $0x1050] sm:$0xff]  ;;  %v4695_v44 = vld [vmem:[#allocation2 + $0x10c8] sm:$0xff] }
 0xab9   :  { %7830 = vmatpush1.bf16.msra.mxu0 %v7829_v36  ;;  %7584 = vmatprep.subr.bf16.mxu1 %v7583_v27  ;;  %v4558_v36 = vld [vmem:[#allocation2 + $0xc80] sm:$0xff]  ;;  %v4633_v48 = vld [vmem:[#allocation2 + $0xed8] sm:$0xff] }
 0xaba   :  { %7832 = vmatprep.subr.bf16.mxu0 %v7831_v6  ;;  %v4566_v27 = vld [vmem:[#allocation2 + $0xcc0] sm:$0xff]  ;;  %v4575_v6 = vld [vmem:[#allocation2 + $0xd08] sm:$0xff] }
 0xabb   :  { %v7601_v55 = vpack.c.bf16 %v4566_v27, %v4558_v36  ;;  %v4624_v36 = vld [vmem:[#allocation2 + $0xe90] sm:$0xff]  ;;  %v7863_v27 = vpack.c.bf16 %v4633_v48, %v4625_v49 }
 0xabc   :  { %7586 = vmatpush1.bf16.msra.mxu1 %v7585_v34  ;;  %v7603_v34 = vpack.c.bf16 %v4583_v54, %v4575_v6  ;;  %v4641_v6 = vld [vmem:[#allocation2 + $0xf18] sm:$0xff]  ;;  %v7865_v58 = vpack.c.bf16 %v4632_v30, %v4624_v36  ;;  %v4696_v36 = vld [vmem:[#allocation2 + $0x10d0] sm:$0xff]  ;;  %v4711_v30 = vld [vmem:[#allocation2 + $0x1148] sm:$0xff] }
 0xabd   :  { %7834 = vmatpush1.bf16.msra.mxu0 %v7833_v57  ;;  %7588 = vmatprep.subr.bf16.mxu1 %v7587_v25  ;;  %v4574_v57 = vld [vmem:[#allocation2 + $0xd00] sm:$0xff]  ;;  %v4649_v54 = vld [vmem:[#allocation2 + $0xf58] sm:$0xff] }
 0xabe   :  { %7836 = vmatprep.subr.bf16.mxu0 %v7835_v15  ;;  %v4582_v25 = vld [vmem:[#allocation2 + $0xd40] sm:$0xff]  ;;  %v4591_v15 = vld [vmem:[#allocation2 + $0xd88] sm:$0xff] }
 0xabf   :  { %v7605_v42 = vpack.c.bf16 %v4582_v25, %v4574_v57  ;;  %v4640_v57 = vld [vmem:[#allocation2 + $0xf10] sm:$0xff]  ;;  %v7867_v25 = vpack.c.bf16 %v4649_v54, %v4641_v6 }
 0xac0   :  { %7590 = vmatpush1.bf16.msra.mxu1 %v7589_v21  ;;  %v7607_v21 = vpack.c.bf16 %v4599_v2, %v4591_v15  ;;  %v4657_v15 = vld [vmem:[#allocation2 + $0xf98] sm:$0xff]  ;;  %v7869_v12 = vpack.c.bf16 %v4648_v59, %v4640_v57  ;;  %v4712_v57 = vld [vmem:[#allocation2 + $0x1150] sm:$0xff]  ;;  %v4727_v59 = vld [vmem:[#allocation2 + $0x11c8] sm:$0xff] }
 0xac1   :  { %7838 = vmatpush1.bf16.msra.mxu0 %v7837_v16  ;;  %7592 = vmatprep.subr.bf16.mxu1 %v7591_v47  ;;  %v4590_v16 = vld [vmem:[#allocation2 + $0xd80] sm:$0xff]  ;;  %v4665_v2 = vld [vmem:[#allocation2 + $0xfd8] sm:$0xff] }
 0xac2   :  { %7840 = vmatprep.subr.bf16.mxu0 %v7839_v19  ;;  %v4598_v47 = vld [vmem:[#allocation2 + $0xdc0] sm:$0xff]  ;;  %v4607_v19 = vld [vmem:[#allocation2 + $0xe08] sm:$0xff] }
 0xac3   :  { %v7609_v56 = vpack.c.bf16 %v4598_v47, %v4590_v16  ;;  %v4656_v16 = vld [vmem:[#allocation2 + $0xf90] sm:$0xff]  ;;  %v7871_v47 = vpack.c.bf16 %v4665_v2, %v4657_v15 }
 0xac4   :  { %7594 = vmatpush1.bf16.msra.mxu1 %v7593_v35  ;;  %v7611_v35 = vpack.c.bf16 %v4615_v33, %v4607_v19  ;;  %v4673_v19 = vld [vmem:[#allocation2 + $0x1018] sm:$0xff]  ;;  %v7873_v52 = vpack.c.bf16 %v4664_v28, %v4656_v16  ;;  %v4728_v16 = vld [vmem:[#allocation2 + $0x11d0] sm:$0xff]  ;;  %v4743_v28 = vld [vmem:[#allocation2 + $0x1248] sm:$0xff] }
 0xac5   :  { %7842 = vmatpush1.bf16.msra.mxu0 %v7841_v60  ;;  %7596 = vmatprep.subr.bf16.mxu1 %v7595_v38  ;;  %v4606_v60 = vld [vmem:[#allocation2 + $0xe00] sm:$0xff]  ;;  %v4681_v33 = vld [vmem:[#allocation2 + $0x1058] sm:$0xff] }
 0xac6   :  { %7844 = vmatprep.subr.bf16.mxu0 %v7843_v46  ;;  %v4614_v38 = vld [vmem:[#allocation2 + $0xe40] sm:$0xff]  ;;  %v4623_v46 = vld [vmem:[#allocation2 + $0xe88] sm:$0xff] }
 0xac7   :  { %v7613_v61 = vpack.c.bf16 %v4614_v38, %v4606_v60  ;;  %v4672_v60 = vld [vmem:[#allocation2 + $0x1010] sm:$0xff]  ;;  %v7875_v38 = vpack.c.bf16 %v4681_v33, %v4673_v19 }
 0xac8   :  { %7598 = vmatpush1.bf16.msra.mxu1 %v7597_v7  ;;  %v7615_v7 = vpack.c.bf16 %v4631_v62, %v4623_v46  ;;  %v4689_v46 = vld [vmem:[#allocation2 + $0x1098] sm:$0xff]  ;;  %v7877_v48 = vpack.c.bf16 %v4680_v0, %v4672_v60  ;;  %v4744_v60 = vld [vmem:[#allocation2 + $0x1250] sm:$0xff]  ;;  %v4759_v0 = vld [vmem:[#allocation2 + $0x12c8] sm:$0xff] }
 0xac9   :  { %7846 = vmatpush1.bf16.msra.mxu0 %v7845_v11  ;;  %7600 = vmatprep.subr.bf16.mxu1 %v7599_v63  ;;  %v4622_v11 = vld [vmem:[#allocation2 + $0xe80] sm:$0xff]  ;;  %v4697_v62 = vld [vmem:[#allocation2 + $0x10d8] sm:$0xff] }
 0xaca   :  { %7848 = vmatprep.subr.bf16.mxu0 %v7847_v43  ;;  %v4630_v63 = vld [vmem:[#allocation2 + $0xec0] sm:$0xff]  ;;  %v4639_v43 = vld [vmem:[#allocation2 + $0xf08] sm:$0xff] }
 0xacb   :  { %v7617_v50 = vpack.c.bf16 %v4630_v63, %v4622_v11  ;;  %v4688_v11 = vld [vmem:[#allocation2 + $0x1090] sm:$0xff]  ;;  %v7879_v63 = vpack.c.bf16 %v4697_v62, %v4689_v46 }
 0xacc   :  { %7602 = vmatpush1.bf16.msra.mxu1 %v7601_v55  ;;  %v7619_v55 = vpack.c.bf16 %v4647_v14, %v4639_v43  ;;  %v4705_v43 = vld [vmem:[#allocation2 + $0x1118] sm:$0xff]  ;;  %v7881_v54 = vpack.c.bf16 %v4696_v36, %v4688_v11  ;;  %v4760_v11 = vld [vmem:[#allocation2 + $0x12d0] sm:$0xff]  ;;  %v4775_v36 = vld [vmem:[#allocation2 + $0x1348] sm:$0xff] }
 0xacd   :  { %7850 = vmatpush1.bf16.msra.mxu0 %v7849_v20  ;;  %7604 = vmatprep.subr.bf16.mxu1 %v7603_v34  ;;  %v4638_v20 = vld [vmem:[#allocation2 + $0xf00] sm:$0xff]  ;;  %v4713_v14 = vld [vmem:[#allocation2 + $0x1158] sm:$0xff] }
 0xace   :  { %7852 = vmatprep.subr.bf16.mxu0 %v7851_v45  ;;  %v4646_v34 = vld [vmem:[#allocation2 + $0xf40] sm:$0xff]  ;;  %v4655_v45 = vld [vmem:[#allocation2 + $0xf88] sm:$0xff] }
 0xacf   :  { %v7621_v31 = vpack.c.bf16 %v4646_v34, %v4638_v20  ;;  %v4704_v20 = vld [vmem:[#allocation2 + $0x1110] sm:$0xff]  ;;  %v7883_v34 = vpack.c.bf16 %v4713_v14, %v4705_v43 }
 0xad0   :  { %7606 = vmatpush1.bf16.msra.mxu1 %v7605_v42  ;;  %v7623_v42 = vpack.c.bf16 %v4663_v8, %v4655_v45  ;;  %v4721_v45 = vld [vmem:[#allocation2 + $0x1198] sm:$0xff]  ;;  %v7885_v2 = vpack.c.bf16 %v4712_v57, %v4704_v20  ;;  %v4776_v20 = vld [vmem:[#allocation2 + $0x1350] sm:$0xff]  ;;  %v4791_v57 = vld [vmem:[#allocation2 + $0x13c8] sm:$0xff] }
 0xad1   :  { %7854 = vmatpush1.bf16.msra.mxu0 %v7853_v1  ;;  %7608 = vmatprep.subr.bf16.mxu1 %v7607_v21  ;;  %v4654_v1 = vld [vmem:[#allocation2 + $0xf80] sm:$0xff]  ;;  %v4729_v8 = vld [vmem:[#allocation2 + $0x11d8] sm:$0xff] }
 0xad2   :  { %7856 = vmatprep.subr.bf16.mxu0 %v7855_v13  ;;  %v4662_v21 = vld [vmem:[#allocation2 + $0xfc0] sm:$0xff]  ;;  %v4671_v13 = vld [vmem:[#allocation2 + $0x1008] sm:$0xff] }
 0xad3   :  { %v7625_v39 = vpack.c.bf16 %v4662_v21, %v4654_v1  ;;  %v4720_v1 = vld [vmem:[#allocation2 + $0x1190] sm:$0xff]  ;;  %v7887_v21 = vpack.c.bf16 %v4729_v8, %v4721_v45 }
 0xad4   :  { %7610 = vmatpush1.bf16.msra.mxu1 %v7609_v56  ;;  %v7627_v56 = vpack.c.bf16 %v4679_v23, %v4671_v13  ;;  %v4737_v13 = vld [vmem:[#allocation2 + $0x1218] sm:$0xff]  ;;  %v7889_v33 = vpack.c.bf16 %v4728_v16, %v4720_v1  ;;  %v4792_v1 = vld [vmem:[#allocation2 + $0x13d0] sm:$0xff]  ;;  %v4807_v16 = vld [vmem:[#allocation2 + $0x1448] sm:$0xff] }
 0xad5   :  { %7858 = vmatpush1.bf16.msra.mxu0 %v7857_v40  ;;  %7612 = vmatprep.subr.bf16.mxu1 %v7611_v35  ;;  %v4670_v40 = vld [vmem:[#allocation2 + $0x1000] sm:$0xff]  ;;  %v4745_v23 = vld [vmem:[#allocation2 + $0x1258] sm:$0xff] }
 0xad6   :  { %7860 = vmatprep.subr.bf16.mxu0 %v7859_v37  ;;  %v4678_v35 = vld [vmem:[#allocation2 + $0x1040] sm:$0xff]  ;;  %v4687_v37 = vld [vmem:[#allocation2 + $0x1088] sm:$0xff] }
 0xad7   :  { %v7629_v49 = vpack.c.bf16 %v4678_v35, %v4670_v40  ;;  %v4736_v40 = vld [vmem:[#allocation2 + $0x1210] sm:$0xff]  ;;  %v7891_v35 = vpack.c.bf16 %v4745_v23, %v4737_v13 }
 0xad8   :  { %7614 = vmatpush1.bf16.msra.mxu1 %v7613_v61  ;;  %v7631_v61 = vpack.c.bf16 %v4695_v44, %v4687_v37  ;;  %v4753_v37 = vld [vmem:[#allocation2 + $0x1298] sm:$0xff]  ;;  %v7893_v62 = vpack.c.bf16 %v4744_v60, %v4736_v40  ;;  %v4808_v40 = vld [vmem:[#allocation2 + $0x1450] sm:$0xff]  ;;  %v4823_v60 = vld [vmem:[#allocation2 + $0x14c8] sm:$0xff] }
 0xad9   :  { %7862 = vmatpush1.bf16.msra.mxu0 %v7861_v53  ;;  %7616 = vmatprep.subr.bf16.mxu1 %v7615_v7  ;;  %v4686_v53 = vld [vmem:[#allocation2 + $0x1080] sm:$0xff]  ;;  %v4761_v44 = vld [vmem:[#allocation2 + $0x12d8] sm:$0xff] }
 0xada   :  { %7864 = vmatprep.subr.bf16.mxu0 %v7863_v27  ;;  %v4694_v7 = vld [vmem:[#allocation2 + $0x10c0] sm:$0xff]  ;;  %v4703_v27 = vld [vmem:[#allocation2 + $0x1108] sm:$0xff] }
 0xadb   :  { %v7633_v6 = vpack.c.bf16 %v4694_v7, %v4686_v53  ;;  %v4752_v53 = vld [vmem:[#allocation2 + $0x1290] sm:$0xff]  ;;  %v7895_v7 = vpack.c.bf16 %v4761_v44, %v4753_v37 }
 0xadc   :  { %7618 = vmatpush1.bf16.msra.mxu1 %v7617_v50  ;;  %v7635_v50 = vpack.c.bf16 %v4711_v30, %v4703_v27  ;;  %v4769_v27 = vld [vmem:[#allocation2 + $0x1318] sm:$0xff]  ;;  %v7897_v14 = vpack.c.bf16 %v4760_v11, %v4752_v53  ;;  %v4824_v53 = vld [vmem:[#allocation2 + $0x14d0] sm:$0xff]  ;;  %v4839_v11 = vld [vmem:[#allocation2 + $0x1548] sm:$0xff] }
 0xadd   :  { %7866 = vmatpush1.bf16.msra.mxu0 %v7865_v58  ;;  %7620 = vmatprep.subr.bf16.mxu1 %v7619_v55  ;;  %v4702_v58 = vld [vmem:[#allocation2 + $0x1100] sm:$0xff]  ;;  %v4777_v30 = vld [vmem:[#allocation2 + $0x1358] sm:$0xff] }
 0xade   :  { %7868 = vmatprep.subr.bf16.mxu0 %v7867_v25  ;;  %v4710_v55 = vld [vmem:[#allocation2 + $0x1140] sm:$0xff]  ;;  %v4719_v25 = vld [vmem:[#allocation2 + $0x1188] sm:$0xff] }
 0xadf   :  { %v7637_v15 = vpack.c.bf16 %v4710_v55, %v4702_v58  ;;  %v4768_v58 = vld [vmem:[#allocation2 + $0x1310] sm:$0xff]  ;;  %v7899_v55 = vpack.c.bf16 %v4777_v30, %v4769_v27 }
 0xae0   :  { %7622 = vmatpush1.bf16.msra.mxu1 %v7621_v31  ;;  %v7639_v31 = vpack.c.bf16 %v4727_v59, %v4719_v25  ;;  %v4785_v25 = vld [vmem:[#allocation2 + $0x1398] sm:$0xff]  ;;  %v7901_v8 = vpack.c.bf16 %v4776_v20, %v4768_v58  ;;  %v4840_v58 = vld [vmem:[#allocation2 + $0x1550] sm:$0xff]  ;;  %v4855_v20 = vld [vmem:[#allocation2 + $0x15c8] sm:$0xff] }
 0xae1   :  { %7870 = vmatpush1.bf16.msra.mxu0 %v7869_v12  ;;  %7624 = vmatprep.subr.bf16.mxu1 %v7623_v42  ;;  %v4718_v12 = vld [vmem:[#allocation2 + $0x1180] sm:$0xff]  ;;  %v4793_v59 = vld [vmem:[#allocation2 + $0x13d8] sm:$0xff] }
 0xae2   :  { %7872 = vmatprep.subr.bf16.mxu0 %v7871_v47  ;;  %v4726_v42 = vld [vmem:[#allocation2 + $0x11c0] sm:$0xff]  ;;  %v4735_v47 = vld [vmem:[#allocation2 + $0x1208] sm:$0xff] }
 0xae3   :  { %v7641_v19 = vpack.c.bf16 %v4726_v42, %v4718_v12  ;;  %v4784_v12 = vld [vmem:[#allocation2 + $0x1390] sm:$0xff]  ;;  %v7903_v42 = vpack.c.bf16 %v4793_v59, %v4785_v25 }
 0xae4   :  { %7626 = vmatpush1.bf16.msra.mxu1 %v7625_v39  ;;  %v7643_v39 = vpack.c.bf16 %v4743_v28, %v4735_v47  ;;  %v4801_v47 = vld [vmem:[#allocation2 + $0x1418] sm:$0xff]  ;;  %v7905_v23 = vpack.c.bf16 %v4792_v1, %v4784_v12  ;;  %v4856_v12 = vld [vmem:[#allocation2 + $0x15d0] sm:$0xff]  ;;  %v4871_v1 = vld [vmem:[#allocation2 + $0x1648] sm:$0xff] }
 0xae5   :  { %7874 = vmatpush1.bf16.msra.mxu0 %v7873_v52  ;;  %7628 = vmatprep.subr.bf16.mxu1 %v7627_v56  ;;  %v4734_v52 = vld [vmem:[#allocation2 + $0x1200] sm:$0xff]  ;;  %v4809_v28 = vld [vmem:[#allocation2 + $0x1458] sm:$0xff] }
 0xae6   :  { %7876 = vmatprep.subr.bf16.mxu0 %v7875_v38  ;;  %v4742_v56 = vld [vmem:[#allocation2 + $0x1240] sm:$0xff]  ;;  %v4751_v38 = vld [vmem:[#allocation2 + $0x1288] sm:$0xff] }
 0xae7   :  { %5338 = vmatmul.mubr.f32.vlgmr.msra.gmra.mrb[112].mxu1 %v10508_v22  ;;  %v7645_v46 = vpack.c.bf16 %v4742_v56, %v4734_v52  ;;  %v4800_v52 = vld [vmem:[#allocation2 + $0x1410] sm:$0xff]  ;;  %v7907_v56 = vpack.c.bf16 %v4809_v28, %v4801_v47 }
 0xae8   :  { %7630 = vmatpush1.bf16.msra.mxu1 %v7629_v49  ;;  %5622 = vmatmul.mubr.f32.vlgmr.msra.gmra.mrb[50].mxu0 %v10508_v22  ;;  %v7647_v49 = vpack.c.bf16 %v4759_v0, %v4751_v38  ;;  %v4817_v38 = vld [vmem:[#allocation2 + $0x1498] sm:$0xff]  ;;  %v7909_v44 = vpack.c.bf16 %v4808_v40, %v4800_v52  ;;  %v4872_v52 = vld [vmem:[#allocation2 + $0x1650] sm:$0xff]  ;;  %v4887_v40 = vld [vmem:[#allocation2 + $0x16c8] sm:$0xff] }
 0xae9   :  { %7878 = vmatpush1.bf16.msra.mxu0 %v7877_v48  ;;  %7632 = vmatprep.subr.bf16.mxu1 %v7631_v61  ;;  %v4750_v48 = vld [vmem:[#allocation2 + $0x1280] sm:$0xff]  ;;  %v4825_v0 = vld [vmem:[#allocation2 + $0x14d8] sm:$0xff] }
 0xaea   :  { %7880 = vmatprep.subr.bf16.mxu0 %v7879_v63  ;;  %5408 = vmatprep.mubr.f32.mxu1 %v10506_v24  ;;  %v4758_v61 = vld [vmem:[#allocation2 + $0x12c0] sm:$0xff]  ;;  %v4767_v63 = vld [vmem:[#allocation2 + $0x1308] sm:$0xff] }
 0xaeb   :  { %5692 = vmatprep.mubr.f32.mxu0 %v10506_v24  ;;  %v7649_v43 = vpack.c.bf16 %v4758_v61, %v4750_v48  ;;  %v4816_v48 = vld [vmem:[#allocation2 + $0x1490] sm:$0xff]  ;;  %v7911_v61 = vpack.c.bf16 %v4825_v0, %v4817_v38 }
 0xaec   :  { %7634 = vmatpush1.bf16.msra.mxu1 %v7633_v6  ;;  %v7651_v6 = vpack.c.bf16 %v4775_v36, %v4767_v63  ;;  %v4833_v63 = vld [vmem:[#allocation2 + $0x1518] sm:$0xff]  ;;  %v7913_v30 = vpack.c.bf16 %v4824_v53, %v4816_v48  ;;  %v4888_v48 = vld [vmem:[#allocation2 + $0x16d0] sm:$0xff]  ;;  %v4903_v53 = vld [vmem:[#allocation2 + $0x1748] sm:$0xff] }
 0xaed   :  { %7882 = vmatpush1.bf16.msra.mxu0 %v7881_v54  ;;  %7636 = vmatprep.subr.bf16.mxu1 %v7635_v50  ;;  %v4766_v54 = vld [vmem:[#allocation2 + $0x1300] sm:$0xff]  ;;  %v4841_v36 = vld [vmem:[#allocation2 + $0x1558] sm:$0xff] }
 0xaee   :  { %7884 = vmatprep.subr.bf16.mxu0 %v7883_v34  ;;  %v4774_v50 = vld [vmem:[#allocation2 + $0x1340] sm:$0xff]  ;;  %v4783_v34 = vld [vmem:[#allocation2 + $0x1388] sm:$0xff] }
 0xaef   :  { %v7653_v45 = vpack.c.bf16 %v4774_v50, %v4766_v54  ;;  %v4832_v54 = vld [vmem:[#allocation2 + $0x1510] sm:$0xff]  ;;  %v7915_v50 = vpack.c.bf16 %v4841_v36, %v4833_v63 }
 0xaf0   :  { %7638 = vmatpush1.bf16.msra.mxu1 %v7637_v15  ;;  %v7655_v15 = vpack.c.bf16 %v4791_v57, %v4783_v34  ;;  %v4849_v34 = vld [vmem:[#allocation2 + $0x1598] sm:$0xff]  ;;  %v7917_v59 = vpack.c.bf16 %v4840_v58, %v4832_v54  ;;  %v4904_v54 = vld [vmem:[#allocation2 + $0x1750] sm:$0xff]  ;;  %v4919_v58 = vld [vmem:[#allocation2 + $0x17c8] sm:$0xff] }
 0xaf1   :  { %7886 = vmatpush1.bf16.msra.mxu0 %v7885_v2  ;;  %7640 = vmatprep.subr.bf16.mxu1 %v7639_v31  ;;  %v4782_v2 = vld [vmem:[#allocation2 + $0x1380] sm:$0xff]  ;;  %v4857_v57 = vld [vmem:[#allocation2 + $0x15d8] sm:$0xff] }
 0xaf2   :  { %7888 = vmatprep.subr.bf16.mxu0 %v7887_v21  ;;  %v4790_v31 = vld [vmem:[#allocation2 + $0x13c0] sm:$0xff]  ;;  %v4799_v21 = vld [vmem:[#allocation2 + $0x1408] sm:$0xff] }
 0xaf3   :  { %v7657_v13 = vpack.c.bf16 %v4790_v31, %v4782_v2  ;;  %v4848_v2 = vld [vmem:[#allocation2 + $0x1590] sm:$0xff]  ;;  %v7919_v31 = vpack.c.bf16 %v4857_v57, %v4849_v34 }
 0xaf4   :  { %7642 = vmatpush1.bf16.msra.mxu1 %v7641_v19  ;;  %v7659_v19 = vpack.c.bf16 %v4807_v16, %v4799_v21  ;;  %v4865_v21 = vld [vmem:[#allocation2 + $0x1618] sm:$0xff]  ;;  %v7921_v28 = vpack.c.bf16 %v4856_v12, %v4848_v2  ;;  %v4920_v2 = vld [vmem:[#allocation2 + $0x17d0] sm:$0xff]  ;;  %v4935_v12 = vld [vmem:[#allocation2 + $0x1848] sm:$0xff] }
 0xaf5   :  { %7890 = vmatpush1.bf16.msra.mxu0 %v7889_v33  ;;  %7644 = vmatprep.subr.bf16.mxu1 %v7643_v39  ;;  %v4798_v33 = vld [vmem:[#allocation2 + $0x1400] sm:$0xff]  ;;  %v4873_v16 = vld [vmem:[#allocation2 + $0x1658] sm:$0xff] }
 0xaf6   :  { %7892 = vmatprep.subr.bf16.mxu0 %v7891_v35  ;;  %v4806_v39 = vld [vmem:[#allocation2 + $0x1440] sm:$0xff]  ;;  %v4815_v35 = vld [vmem:[#allocation2 + $0x1488] sm:$0xff] }
 0xaf7   :  { %v7661_v37 = vpack.c.bf16 %v4806_v39, %v4798_v33  ;;  %v4864_v33 = vld [vmem:[#allocation2 + $0x1610] sm:$0xff]  ;;  %v7923_v39 = vpack.c.bf16 %v4873_v16, %v4865_v21 }
 0xaf8   :  { %7646 = vmatpush1.bf16.msra.mxu1 %v7645_v46  ;;  %v7663_v46 = vpack.c.bf16 %v4823_v60, %v4815_v35  ;;  %v4881_v35 = vld [vmem:[#allocation2 + $0x1698] sm:$0xff]  ;;  %v7925_v0 = vpack.c.bf16 %v4872_v52, %v4864_v33  ;;  %v4936_v33 = vld [vmem:[#allocation2 + $0x1850] sm:$0xff]  ;;  %v4951_v52 = vld [vmem:[#allocation2 + $0x18c8] sm:$0xff] }
 0xaf9   :  { %7894 = vmatpush1.bf16.msra.mxu0 %v7893_v62  ;;  %7648 = vmatprep.subr.bf16.mxu1 %v7647_v49  ;;  %v4814_v62 = vld [vmem:[#allocation2 + $0x1480] sm:$0xff]  ;;  %v4889_v60 = vld [vmem:[#allocation2 + $0x16d8] sm:$0xff] }
 0xafa   :  { %7896 = vmatprep.subr.bf16.mxu0 %v7895_v7  ;;  %v4822_v49 = vld [vmem:[#allocation2 + $0x14c0] sm:$0xff]  ;;  %v4831_v7 = vld [vmem:[#allocation2 + $0x1508] sm:$0xff] }
 0xafb   :  { %v7665_v27 = vpack.c.bf16 %v4822_v49, %v4814_v62  ;;  %v4880_v62 = vld [vmem:[#allocation2 + $0x1690] sm:$0xff]  ;;  %v7927_v49 = vpack.c.bf16 %v4889_v60, %v4881_v35 }
 0xafc   :  { %7650 = vmatpush1.bf16.msra.mxu1 %v7649_v43  ;;  %v7667_v43 = vpack.c.bf16 %v4839_v11, %v4831_v7  ;;  %v4897_v7 = vld [vmem:[#allocation2 + $0x1718] sm:$0xff]  ;;  %v7929_v36 = vpack.c.bf16 %v4888_v48, %v4880_v62  ;;  %v4952_v62 = vld [vmem:[#allocation2 + $0x18d0] sm:$0xff]  ;;  %v4967_v48 = vld [vmem:[#allocation2 + $0x1948] sm:$0xff] }
 0xafd   :  { %7898 = vmatpush1.bf16.msra.mxu0 %v7897_v14  ;;  %7652 = vmatprep.subr.bf16.mxu1 %v7651_v6  ;;  %v4830_v14 = vld [vmem:[#allocation2 + $0x1500] sm:$0xff]  ;;  %v4905_v11 = vld [vmem:[#allocation2 + $0x1758] sm:$0xff] }
 0xafe   :  { %7900 = vmatprep.subr.bf16.mxu0 %v7899_v55  ;;  %v4838_v6 = vld [vmem:[#allocation2 + $0x1540] sm:$0xff]  ;;  %v4847_v55 = vld [vmem:[#allocation2 + $0x1588] sm:$0xff] }
 0xaff   :  { %v7669_v25 = vpack.c.bf16 %v4838_v6, %v4830_v14  ;;  %v4896_v14 = vld [vmem:[#allocation2 + $0x1710] sm:$0xff]  ;;  %v7931_v6 = vpack.c.bf16 %v4905_v11, %v4897_v7 }
 0xb00   :  { %7654 = vmatpush1.bf16.msra.mxu1 %v7653_v45  ;;  %v7671_v45 = vpack.c.bf16 %v4855_v20, %v4847_v55  ;;  %v4913_v55 = vld [vmem:[#allocation2 + $0x1798] sm:$0xff]  ;;  %v7933_v57 = vpack.c.bf16 %v4904_v54, %v4896_v14  ;;  %v4968_v14 = vld [vmem:[#allocation2 + $0x1950] sm:$0xff]  ;;  %v4983_v54 = vld [vmem:[#allocation2 + $0x19c8] sm:$0xff] }
 0xb01   :  { %7902 = vmatpush1.bf16.msra.mxu0 %v7901_v8  ;;  %7656 = vmatprep.subr.bf16.mxu1 %v7655_v15  ;;  %v4846_v8 = vld [vmem:[#allocation2 + $0x1580] sm:$0xff]  ;;  %v4921_v20 = vld [vmem:[#allocation2 + $0x17d8] sm:$0xff] }
 0xb02   :  { %7904 = vmatprep.subr.bf16.mxu0 %v7903_v42  ;;  %v4854_v15 = vld [vmem:[#allocation2 + $0x15c0] sm:$0xff]  ;;  %v4863_v42 = vld [vmem:[#allocation2 + $0x1608] sm:$0xff] }
 0xb03   :  { %v7673_v47 = vpack.c.bf16 %v4854_v15, %v4846_v8  ;;  %v4912_v8 = vld [vmem:[#allocation2 + $0x1790] sm:$0xff]  ;;  %v7935_v15 = vpack.c.bf16 %v4921_v20, %v4913_v55 }
 0xb04   :  { %7658 = vmatpush1.bf16.msra.mxu1 %v7657_v13  ;;  %v7675_v13 = vpack.c.bf16 %v4871_v1, %v4863_v42  ;;  %v4929_v42 = vld [vmem:[#allocation2 + $0x1818] sm:$0xff]  ;;  %v7937_v16 = vpack.c.bf16 %v4920_v2, %v4912_v8  ;;  %v4984_v8 = vld [vmem:[#allocation2 + $0x19d0] sm:$0xff]  ;;  %v4999_v2 = vld [vmem:[#allocation2 + $0x1a48] sm:$0xff] }
 0xb05   :  { %7906 = vmatpush1.bf16.msra.mxu0 %v7905_v23  ;;  %7660 = vmatprep.subr.bf16.mxu1 %v7659_v19  ;;  %v4862_v23 = vld [vmem:[#allocation2 + $0x1600] sm:$0xff]  ;;  %v4937_v1 = vld [vmem:[#allocation2 + $0x1858] sm:$0xff] }
 0xb06   :  { %7908 = vmatprep.subr.bf16.mxu0 %v7907_v56  ;;  %v4870_v19 = vld [vmem:[#allocation2 + $0x1640] sm:$0xff]  ;;  %v4879_v56 = vld [vmem:[#allocation2 + $0x1688] sm:$0xff] }
 0xb07   :  { %v7677_v38 = vpack.c.bf16 %v4870_v19, %v4862_v23  ;;  %v4928_v23 = vld [vmem:[#allocation2 + $0x1810] sm:$0xff]  ;;  %v7939_v19 = vpack.c.bf16 %v4937_v1, %v4929_v42 }
 0xb08   :  { %7662 = vmatpush1.bf16.msra.mxu1 %v7661_v37  ;;  %v7679_v37 = vpack.c.bf16 %v4887_v40, %v4879_v56  ;;  %v4945_v56 = vld [vmem:[#allocation2 + $0x1898] sm:$0xff]  ;;  %v7941_v60 = vpack.c.bf16 %v4936_v33, %v4928_v23  ;;  %v5000_v23 = vld [vmem:[#allocation2 + $0x1a50] sm:$0xff]  ;;  %v5015_v33 = vld [vmem:[#allocation2 + $0x1ac8] sm:$0xff] }
 0xb09   :  { %7910 = vmatpush1.bf16.msra.mxu0 %v7909_v44  ;;  %7664 = vmatprep.subr.bf16.mxu1 %v7663_v46  ;;  %v4878_v44 = vld [vmem:[#allocation2 + $0x1680] sm:$0xff]  ;;  %v4953_v40 = vld [vmem:[#allocation2 + $0x18d8] sm:$0xff] }
 0xb0a   :  { %7912 = vmatprep.subr.bf16.mxu0 %v7911_v61  ;;  %v4886_v46 = vld [vmem:[#allocation2 + $0x16c0] sm:$0xff]  ;;  %v4895_v61 = vld [vmem:[#allocation2 + $0x1708] sm:$0xff] }
 0xb0b   :  { %v7681_v63 = vpack.c.bf16 %v4886_v46, %v4878_v44  ;;  %v4944_v44 = vld [vmem:[#allocation2 + $0x1890] sm:$0xff]  ;;  %v7943_v46 = vpack.c.bf16 %v4953_v40, %v4945_v56 }
 0xb0c   :  { %7666 = vmatpush1.bf16.msra.mxu1 %v7665_v27  ;;  %v7683_v27 = vpack.c.bf16 %v4903_v53, %v4895_v61  ;;  %v4961_v61 = vld [vmem:[#allocation2 + $0x1918] sm:$0xff]  ;;  %v7945_v11 = vpack.c.bf16 %v4952_v62, %v4944_v44  ;;  %v5016_v44 = vld [vmem:[#allocation2 + $0x1ad0] sm:$0xff]  ;;  %v5031_v62 = vld [vmem:[#allocation2 + $0x1b48] sm:$0xff] }
 0xb0d   :  { %7914 = vmatpush1.bf16.msra.mxu0 %v7913_v30  ;;  %7668 = vmatprep.subr.bf16.mxu1 %v7667_v43  ;;  %v4894_v30 = vld [vmem:[#allocation2 + $0x1700] sm:$0xff]  ;;  %v4969_v53 = vld [vmem:[#allocation2 + $0x1958] sm:$0xff] }
 0xb0e   :  { %7916 = vmatprep.subr.bf16.mxu0 %v7915_v50  ;;  %v4902_v43 = vld [vmem:[#allocation2 + $0x1740] sm:$0xff]  ;;  %v4911_v50 = vld [vmem:[#allocation2 + $0x1788] sm:$0xff] }
 0xb0f   :  { %v7685_v34 = vpack.c.bf16 %v4902_v43, %v4894_v30  ;;  %v4960_v30 = vld [vmem:[#allocation2 + $0x1910] sm:$0xff]  ;;  %v7947_v43 = vpack.c.bf16 %v4969_v53, %v4961_v61 }
 0xb10   :  { %7670 = vmatpush1.bf16.msra.mxu1 %v7669_v25  ;;  %v7687_v25 = vpack.c.bf16 %v4919_v58, %v4911_v50  ;;  %v4977_v50 = vld [vmem:[#allocation2 + $0x1998] sm:$0xff]  ;;  %v7949_v20 = vpack.c.bf16 %v4968_v14, %v4960_v30  ;;  %v5032_v30 = vld [vmem:[#allocation2 + $0x1b50] sm:$0xff]  ;;  %v5047_v14 = vld [vmem:[#allocation2 + $0x1bc8] sm:$0xff] }
 0xb11   :  { %7918 = vmatpush1.bf16.msra.mxu0 %v7917_v59  ;;  %7672 = vmatprep.subr.bf16.mxu1 %v7671_v45  ;;  %v4910_v59 = vld [vmem:[#allocation2 + $0x1780] sm:$0xff]  ;;  %v4985_v58 = vld [vmem:[#allocation2 + $0x19d8] sm:$0xff] }
 0xb12   :  { %7920 = vmatprep.subr.bf16.mxu0 %v7919_v31  ;;  %v4918_v45 = vld [vmem:[#allocation2 + $0x17c0] sm:$0xff]  ;;  %v4927_v31 = vld [vmem:[#allocation2 + $0x1808] sm:$0xff] }
 0xb13   :  { %v7689_v21 = vpack.c.bf16 %v4918_v45, %v4910_v59  ;;  %v4976_v59 = vld [vmem:[#allocation2 + $0x1990] sm:$0xff]  ;;  %v7951_v45 = vpack.c.bf16 %v4985_v58, %v4977_v50 }
 0xb14   :  { %7674 = vmatpush1.bf16.msra.mxu1 %v7673_v47  ;;  %v7691_v47 = vpack.c.bf16 %v4935_v12, %v4927_v31  ;;  %v4993_v31 = vld [vmem:[#allocation2 + $0x1a18] sm:$0xff]  ;;  %v7953_v1 = vpack.c.bf16 %v4984_v8, %v4976_v59  ;;  %v5048_v59 = vld [vmem:[#allocation2 + $0x1bd0] sm:$0xff]  ;;  %v5063_v8 = vld [vmem:[#allocation2 + $0x1c48] sm:$0xff] }
 0xb15   :  { %7922 = vmatpush1.bf16.msra.mxu0 %v7921_v28  ;;  %7676 = vmatprep.subr.bf16.mxu1 %v7675_v13  ;;  %v4926_v28 = vld [vmem:[#allocation2 + $0x1800] sm:$0xff]  ;;  %v5001_v12 = vld [vmem:[#allocation2 + $0x1a58] sm:$0xff] }
 0xb16   :  { %7924 = vmatprep.subr.bf16.mxu0 %v7923_v39  ;;  %v4934_v13 = vld [vmem:[#allocation2 + $0x1840] sm:$0xff]  ;;  %v4943_v39 = vld [vmem:[#allocation2 + $0x1888] sm:$0xff] }
 0xb17   :  { %v7693_v35 = vpack.c.bf16 %v4934_v13, %v4926_v28  ;;  %v4992_v28 = vld [vmem:[#allocation2 + $0x1a10] sm:$0xff]  ;;  %v7955_v13 = vpack.c.bf16 %v5001_v12, %v4993_v31 }
 0xb18   :  { %7678 = vmatpush1.bf16.msra.mxu1 %v7677_v38  ;;  %v7695_v38 = vpack.c.bf16 %v4951_v52, %v4943_v39  ;;  %v5009_v39 = vld [vmem:[#allocation2 + $0x1a98] sm:$0xff]  ;;  %v7957_v40 = vpack.c.bf16 %v5000_v23, %v4992_v28  ;;  %v5064_v28 = vld [vmem:[#allocation2 + $0x1c50] sm:$0xff]  ;;  %v5079_v23 = vld [vmem:[#allocation2 + $0x1cc8] sm:$0xff] }
 0xb19   :  { %7926 = vmatpush1.bf16.msra.mxu0 %v7925_v0  ;;  %7680 = vmatprep.subr.bf16.mxu1 %v7679_v37  ;;  %v4942_v0 = vld [vmem:[#allocation2 + $0x1880] sm:$0xff]  ;;  %v5017_v52 = vld [vmem:[#allocation2 + $0x1ad8] sm:$0xff] }
 0xb1a   :  { %7928 = vmatprep.subr.bf16.mxu0 %v7927_v49  ;;  %v4950_v37 = vld [vmem:[#allocation2 + $0x18c0] sm:$0xff]  ;;  %v4959_v49 = vld [vmem:[#allocation2 + $0x1908] sm:$0xff] }
 0xb1b   :  { %v7697_v7 = vpack.c.bf16 %v4950_v37, %v4942_v0  ;;  %v5008_v0 = vld [vmem:[#allocation2 + $0x1a90] sm:$0xff]  ;;  %v7959_v37 = vpack.c.bf16 %v5017_v52, %v5009_v39 }
 0xb1c   :  { %7682 = vmatpush1.bf16.msra.mxu1 %v7681_v63  ;;  %v7699_v63 = vpack.c.bf16 %v4967_v48, %v4959_v49  ;;  %v5025_v49 = vld [vmem:[#allocation2 + $0x1b18] sm:$0xff]  ;;  %v7961_v53 = vpack.c.bf16 %v5016_v44, %v5008_v0  ;;  %v5080_v0 = vld [vmem:[#allocation2 + $0x1cd0] sm:$0xff]  ;;  %v5095_v44 = vld [vmem:[#allocation2 + $0x1d48] sm:$0xff] }
 0xb1d   :  { %7930 = vmatpush1.bf16.msra.mxu0 %v7929_v36  ;;  %7684 = vmatprep.subr.bf16.mxu1 %v7683_v27  ;;  %v4958_v36 = vld [vmem:[#allocation2 + $0x1900] sm:$0xff]  ;;  %v5033_v48 = vld [vmem:[#allocation2 + $0x1b58] sm:$0xff] }
 0xb1e   :  { %7932 = vmatprep.subr.bf16.mxu0 %v7931_v6  ;;  %v4966_v27 = vld [vmem:[#allocation2 + $0x1940] sm:$0xff]  ;;  %v4975_v6 = vld [vmem:[#allocation2 + $0x1988] sm:$0xff] }
 0xb1f   :  { %v7701_v55 = vpack.c.bf16 %v4966_v27, %v4958_v36  ;;  %v5024_v36 = vld [vmem:[#allocation2 + $0x1b10] sm:$0xff]  ;;  %v7963_v27 = vpack.c.bf16 %v5033_v48, %v5025_v49 }
 0xb20   :  { %7686 = vmatpush1.bf16.msra.mxu1 %v7685_v34  ;;  %v7703_v34 = vpack.c.bf16 %v4983_v54, %v4975_v6  ;;  %v5041_v6 = vld [vmem:[#allocation2 + $0x1b98] sm:$0xff]  ;;  %v7965_v58 = vpack.c.bf16 %v5032_v30, %v5024_v36  ;;  %v5096_v36 = vld [vmem:[#allocation2 + $0x1d50] sm:$0xff]  ;;  %v5111_v30 = vld [vmem:[#allocation2 + $0x1dc8] sm:$0xff] }
 0xb21   :  { %7934 = vmatpush1.bf16.msra.mxu0 %v7933_v57  ;;  %7688 = vmatprep.subr.bf16.mxu1 %v7687_v25  ;;  %v4974_v57 = vld [vmem:[#allocation2 + $0x1980] sm:$0xff]  ;;  %v5049_v54 = vld [vmem:[#allocation2 + $0x1bd8] sm:$0xff] }
 0xb22   :  { %7936 = vmatprep.subr.bf16.mxu0 %v7935_v15  ;;  %v4982_v25 = vld [vmem:[#allocation2 + $0x19c0] sm:$0xff]  ;;  %v4991_v15 = vld [vmem:[#allocation2 + $0x1a08] sm:$0xff] }
 0xb23   :  { %v7705_v42 = vpack.c.bf16 %v4982_v25, %v4974_v57  ;;  %v5040_v57 = vld [vmem:[#allocation2 + $0x1b90] sm:$0xff]  ;;  %v7967_v25 = vpack.c.bf16 %v5049_v54, %v5041_v6 }
 0xb24   :  { %7690 = vmatpush1.bf16.msra.mxu1 %v7689_v21  ;;  %v7707_v21 = vpack.c.bf16 %v4999_v2, %v4991_v15  ;;  %v5057_v15 = vld [vmem:[#allocation2 + $0x1c18] sm:$0xff]  ;;  %v7969_v12 = vpack.c.bf16 %v5048_v59, %v5040_v57  ;;  %v5112_v57 = vld [vmem:[#allocation2 + $0x1dd0] sm:$0xff]  ;;  %v5127_v59 = vld [vmem:[#allocation2 + $0x1e48] sm:$0xff] }
 0xb25   :  { %7938 = vmatpush1.bf16.msra.mxu0 %v7937_v16  ;;  %7692 = vmatprep.subr.bf16.mxu1 %v7691_v47  ;;  %v4990_v16 = vld [vmem:[#allocation2 + $0x1a00] sm:$0xff]  ;;  %v5065_v2 = vld [vmem:[#allocation2 + $0x1c58] sm:$0xff] }
 0xb26   :  { %7940 = vmatprep.subr.bf16.mxu0 %v7939_v19  ;;  %v4998_v47 = vld [vmem:[#allocation2 + $0x1a40] sm:$0xff]  ;;  %v5007_v19 = vld [vmem:[#allocation2 + $0x1a88] sm:$0xff] }
 0xb27   :  { %5409 = vmatmul.mubr.f32.vlgmr.msra.gmra.mrb[112].mxu1 %v10499_v10  ;;  %v7709_v56 = vpack.c.bf16 %v4998_v47, %v4990_v16  ;;  %v5056_v16 = vld [vmem:[#allocation2 + $0x1c10] sm:$0xff]  ;;  %v7971_v47 = vpack.c.bf16 %v5065_v2, %v5057_v15 }
 0xb28   :  { %7694 = vmatpush1.bf16.msra.mxu1 %v7693_v35  ;;  %5693 = vmatmul.mubr.f32.vlgmr.msra.gmra.mrb[50].mxu0 %v10499_v10  ;;  %v7711_v35 = vpack.c.bf16 %v5015_v33, %v5007_v19  ;;  %v5073_v19 = vld [vmem:[#allocation2 + $0x1c98] sm:$0xff]  ;;  %v7973_v52 = vpack.c.bf16 %v5064_v28, %v5056_v16  ;;  %v5128_v16 = vld [vmem:[#allocation2 + $0x1e50] sm:$0xff]  ;;  %v5143_v28 = vld [vmem:[#allocation2 + $0x1ec8] sm:$0xff] }
 0xb29   :  { %7942 = vmatpush1.bf16.msra.mxu0 %v7941_v60  ;;  %7696 = vmatprep.subr.bf16.mxu1 %v7695_v38  ;;  %v5006_v60 = vld [vmem:[#allocation2 + $0x1a80] sm:$0xff]  ;;  %v5081_v33 = vld [vmem:[#allocation2 + $0x1cd8] sm:$0xff] }
 0xb2a   :  { %7944 = vmatprep.subr.bf16.mxu0 %v7943_v46  ;;  %6568 = vmatprep.mubr.msk.f32.mxu1 %vm1391_vm8, %v10513_v41  ;;  %v5014_v38 = vld [vmem:[#allocation2 + $0x1ac0] sm:$0xff]  ;;  %v5023_v46 = vld [vmem:[#allocation2 + $0x1b08] sm:$0xff] }
 0xb2b   :  { %6569 = vmatprep.mubr.msk.f32.mxu0 %vm1391_vm8, %v10513_v41  ;;  %v7713_v61 = vpack.c.bf16 %v5014_v38, %v5006_v60  ;;  %v5072_v60 = vld [vmem:[#allocation2 + $0x1c90] sm:$0xff]  ;;  %v7975_v38 = vpack.c.bf16 %v5081_v33, %v5073_v19 }
 0xb2c   :  { %7698 = vmatpush1.bf16.msra.mxu1 %v7697_v7  ;;  %v7715_v7 = vpack.c.bf16 %v5031_v62, %v5023_v46  ;;  %v5089_v46 = vld [vmem:[#allocation2 + $0x1d18] sm:$0xff]  ;;  %v7977_v48 = vpack.c.bf16 %v5080_v0, %v5072_v60  ;;  %v5144_v60 = vld [vmem:[#allocation2 + $0x1ed0] sm:$0xff] }
 0xb2d   :  { %7946 = vmatpush1.bf16.msra.mxu0 %v7945_v11  ;;  %7700 = vmatprep.subr.bf16.mxu1 %v7699_v63  ;;  %v5022_v11 = vld [vmem:[#allocation2 + $0x1b00] sm:$0xff]  ;;  %v5097_v62 = vld [vmem:[#allocation2 + $0x1d58] sm:$0xff] }
 0xb2e   :  { %7948 = vmatprep.subr.bf16.mxu0 %v7947_v43  ;;  %v5030_v63 = vld [vmem:[#allocation2 + $0x1b40] sm:$0xff]  ;;  %v5039_v43 = vld [vmem:[#allocation2 + $0x1b88] sm:$0xff] }
 0xb2f   :  { %v7717_v50 = vpack.c.bf16 %v5030_v63, %v5022_v11  ;;  %v5088_v11 = vld [vmem:[#allocation2 + $0x1d10] sm:$0xff]  ;;  %v7979_v63 = vpack.c.bf16 %v5097_v62, %v5089_v46  ;;  %v4163_v46 = vld [vmem:[#allocation2 + $0x28] sm:$0xff]  ;;  %v5150_v62 = vld [vmem:[#allocation2 + $0x1f00] sm:$0xff] }
 0xb30   :  { %7702 = vmatpush1.bf16.msra.mxu1 %v7701_v55  ;;  %v7719_v55 = vpack.c.bf16 %v5047_v14, %v5039_v43  ;;  %v5105_v43 = vld [vmem:[#allocation2 + $0x1d98] sm:$0xff]  ;;  %v7981_v54 = vpack.c.bf16 %v5096_v36, %v5088_v11  ;;  %v4164_v11 = vld [vmem:[#allocation2 + $0x30] sm:$0xff]  ;;  %v4179_v36 = vld [vmem:[#allocation2 + $0xa8] sm:$0xff] }
 0xb31   :  { %7950 = vmatpush1.bf16.msra.mxu0 %v7949_v20  ;;  %7704 = vmatprep.subr.bf16.mxu1 %v7703_v34  ;;  %v5038_v20 = vld [vmem:[#allocation2 + $0x1b80] sm:$0xff]  ;;  %v5113_v14 = vld [vmem:[#allocation2 + $0x1dd8] sm:$0xff] }
 0xb32   :  { %7952 = vmatprep.subr.bf16.mxu0 %v7951_v45  ;;  %v5046_v34 = vld [vmem:[#allocation2 + $0x1bc0] sm:$0xff]  ;;  %v5055_v45 = vld [vmem:[#allocation2 + $0x1c08] sm:$0xff] }
 0xb33   :  { %v7721_v31 = vpack.c.bf16 %v5046_v34, %v5038_v20  ;;  %v5104_v20 = vld [vmem:[#allocation2 + $0x1d90] sm:$0xff]  ;;  %v7983_v34 = vpack.c.bf16 %v5113_v14, %v5105_v43  ;;  %v4181_v14 = vld [vmem:[#allocation2 + $0xb8] sm:$0xff] }
 0xb34   :  { %7706 = vmatpush1.bf16.msra.mxu1 %v7705_v42  ;;  %v7723_v42 = vpack.c.bf16 %v5063_v8, %v5055_v45  ;;  %v5121_v45 = vld [vmem:[#allocation2 + $0x1e18] sm:$0xff]  ;;  %v7985_v2 = vpack.c.bf16 %v5112_v57, %v5104_v20  ;;  %v4178_v20 = vld [vmem:[#allocation2 + $0xa0] sm:$0xff]  ;;  %v4180_v57 = vld [vmem:[#allocation2 + $0xb0] sm:$0xff] }
 0xb35   :  { %7954 = vmatpush1.bf16.msra.mxu0 %v7953_v1  ;;  %7708 = vmatprep.subr.bf16.mxu1 %v7707_v21  ;;  %v5054_v1 = vld [vmem:[#allocation2 + $0x1c00] sm:$0xff]  ;;  %v5129_v8 = vld [vmem:[#allocation2 + $0x1e58] sm:$0xff] }
 0xb36   :  { %7956 = vmatprep.subr.bf16.mxu0 %v7955_v13  ;;  %v5062_v21 = vld [vmem:[#allocation2 + $0x1c40] sm:$0xff]  ;;  %v5071_v13 = vld [vmem:[#allocation2 + $0x1c88] sm:$0xff] }
 0xb37   :  { %v7725_v39 = vpack.c.bf16 %v5062_v21, %v5054_v1  ;;  %v5120_v1 = vld [vmem:[#allocation2 + $0x1e10] sm:$0xff]  ;;  %v7987_v21 = vpack.c.bf16 %v5129_v8, %v5121_v45  ;;  %v4195_v45 = vld [vmem:[#allocation2 + $0x128] sm:$0xff] }
 0xb38   :  { %7710 = vmatpush1.bf16.msra.mxu1 %v7709_v56  ;;  %v7727_v56 = vpack.c.bf16 %v5079_v23, %v5071_v13  ;;  %v5137_v13 = vld [vmem:[#allocation2 + $0x1e98] sm:$0xff]  ;;  %v7989_v33 = vpack.c.bf16 %v5128_v16, %v5120_v1  ;;  %v4203_v8 = vld [vmem:[#allocation2 + $0x168] sm:$0xff]  ;;  %v4194_v1 = vld [vmem:[#allocation2 + $0x120] sm:$0xff] }
 0xb39   :  { %7958 = vmatpush1.bf16.msra.mxu0 %v7957_v40  ;;  %7712 = vmatprep.subr.bf16.mxu1 %v7711_v35  ;;  %v5070_v40 = vld [vmem:[#allocation2 + $0x1c80] sm:$0xff]  ;;  %v5145_v23 = vld [vmem:[#allocation2 + $0x1ed8] sm:$0xff]  ;;  %v4196_v16 = vld [vmem:[#allocation2 + $0x130] sm:$0xff] }
 0xb3a   :  { %7960 = vmatprep.subr.bf16.mxu0 %v7959_v37  ;;  %v5078_v35 = vld [vmem:[#allocation2 + $0x1cc0] sm:$0xff]  ;;  %v5087_v37 = vld [vmem:[#allocation2 + $0x1d08] sm:$0xff] }
 0xb3b   :  { %v7729_v49 = vpack.c.bf16 %v5078_v35, %v5070_v40  ;;  %v7991_v40 = vpack.c.bf16 %v5145_v23, %v5137_v13  ;;  %v5136_v35 = vld [vmem:[#allocation2 + $0x1e90] sm:$0xff]  ;;  %v4211_v13 = vld [vmem:[#allocation2 + $0x1a8] sm:$0xff] }
 0xb3c   :  { %7714 = vmatpush1.bf16.msra.mxu1 %v7713_v61  ;;  %v7731_v61 = vpack.c.bf16 %v5095_v44, %v5087_v37  ;;  %v7993_v0 = vpack.c.bf16 %v5144_v60, %v5136_v35  ;;  %v5151_v37 = vld [vmem:[#allocation2 + $0x1f08] sm:$0xff]  ;;  %v5153_v44 = vld [vmem:[#allocation2 + $0x1f18] sm:$0xff]  ;;  %v4218_v35 = vld [vmem:[#allocation2 + $0x1e0] sm:$0xff] }
 0xb3d   :  { %7962 = vmatpush1.bf16.msra.mxu0 %v7961_v53  ;;  %7716 = vmatprep.subr.bf16.mxu1 %v7715_v7  ;;  %v5086_v53 = vld [vmem:[#allocation2 + $0x1d00] sm:$0xff]  ;;  %v4219_v23 = vld [vmem:[#allocation2 + $0x1e8] sm:$0xff]  ;;  %v4212_v60 = vld [vmem:[#allocation2 + $0x1b0] sm:$0xff] }
 0xb3e   :  { %7964 = vmatprep.subr.bf16.mxu0 %v7963_v27  ;;  %v5094_v7 = vld [vmem:[#allocation2 + $0x1d40] sm:$0xff]  ;;  %v5103_v27 = vld [vmem:[#allocation2 + $0x1d88] sm:$0xff] }
 0xb3f   :  { %v7733_v6 = vpack.c.bf16 %v5094_v7, %v5086_v53  ;;  %v4162_v53 = vld [vmem:[#allocation2 + $0x20] sm:$0xff] }
 0xb40   :  { %7718 = vmatpush1.bf16.msra.mxu1 %v7717_v50  ;;  %v7735_v50 = vpack.c.bf16 %v5111_v30, %v5103_v27  ;;  %v4170_v7 = vld [vmem:[#allocation2 + $0x60] sm:$0xff]  ;;  %v4187_v27 = vld [vmem:[#allocation2 + $0xe8] sm:$0xff]  ;;  %v5152_v30 = vld [vmem:[#allocation2 + $0x1f10] sm:$0xff] }
 0xb41   :  { %7966 = vmatpush1.bf16.msra.mxu0 %v7965_v58  ;;  %7720 = vmatprep.subr.bf16.mxu1 %v7719_v55  ;;  %v5102_v58 = vld [vmem:[#allocation2 + $0x1d80] sm:$0xff] }
 0xb42   :  { %7968 = vmatprep.subr.bf16.mxu0 %v7967_v25  ;;  %v5110_v55 = vld [vmem:[#allocation2 + $0x1dc0] sm:$0xff]  ;;  %v5119_v25 = vld [vmem:[#allocation2 + $0x1e08] sm:$0xff] }
 0xb43   :  { %v7737_v15 = vpack.c.bf16 %v5110_v55, %v5102_v58  ;;  %v7999_v55 = vpack.c.bf16 %v4187_v27, %v4179_v36  ;;  %v4243_v36 = vld [vmem:[#allocation2 + $0x2a8] sm:$0xff] }
 0xb44   :  { %7722 = vmatpush1.bf16.msra.mxu1 %v7721_v31  ;;  %v7739_v31 = vpack.c.bf16 %v5127_v59, %v5119_v25  ;;  %v4188_v59 = vld [vmem:[#allocation2 + $0xf0] sm:$0xff]  ;;  %v4251_v27 = vld [vmem:[#allocation2 + $0x2e8] sm:$0xff] }
 0xb45   :  { %7970 = vmatpush1.bf16.msra.mxu0 %v7969_v12  ;;  %7724 = vmatprep.subr.bf16.mxu1 %v7723_v42  ;;  %v5118_v12 = vld [vmem:[#allocation2 + $0x1e00] sm:$0xff] }
 0xb46   :  { %7972 = vmatprep.subr.bf16.mxu0 %v7971_v47  ;;  %v5126_v42 = vld [vmem:[#allocation2 + $0x1e40] sm:$0xff]  ;;  %v5135_v47 = vld [vmem:[#allocation2 + $0x1e88] sm:$0xff] }
 0xb47   :  { %v7741_v19 = vpack.c.bf16 %v5126_v42, %v5118_v12  ;;  %v8249_v12 = vpack.c.bf16 %v4188_v59, %v4180_v57  ;;  %v8003_v42 = vpack.c.bf16 %v4203_v8, %v4195_v45  ;;  %v4259_v57 = vld [vmem:[#allocation2 + $0x328] sm:$0xff]  ;;  %v4261_v59 = vld [vmem:[#allocation2 + $0x338] sm:$0xff] }
 0xb48   :  { %7726 = vmatpush1.bf16.msra.mxu1 %v7725_v39  ;;  %v7743_v39 = vpack.c.bf16 %v5143_v28, %v5135_v47  ;;  %v4204_v28 = vld [vmem:[#allocation2 + $0x170] sm:$0xff]  ;;  %v4269_v45 = vld [vmem:[#allocation2 + $0x378] sm:$0xff] }
 0xb49   :  { %7974 = vmatpush1.bf16.msra.mxu0 %v7973_v52  ;;  %7728 = vmatprep.subr.bf16.mxu1 %v7727_v56  ;;  %v5134_v52 = vld [vmem:[#allocation2 + $0x1e80] sm:$0xff] }
 0xb4a   :  { %7976 = vmatprep.subr.bf16.mxu0 %v7975_v38  ;;  %v5142_v56 = vld [vmem:[#allocation2 + $0x1ec0] sm:$0xff] }
 0xb4b   :  { %v7745_v38 = vpack.c.bf16 %v5142_v56, %v5134_v52  ;;  %v8253_v52 = vpack.c.bf16 %v4204_v28, %v4196_v16  ;;  %v8007_v56 = vpack.c.bf16 %v4219_v23, %v4211_v13  ;;  %v4275_v16 = vld [vmem:[#allocation2 + $0x3a8] sm:$0xff]  ;;  %v4277_v28 = vld [vmem:[#allocation2 + $0x3b8] sm:$0xff] }
 0xb4c   :  { %7730 = vmatpush1.bf16.msra.mxu1 %v7729_v49  ;;  %v4171_v49 = vld [vmem:[#allocation2 + $0x68] sm:$0xff]  ;;  %v4285_v13 = vld [vmem:[#allocation2 + $0x3f8] sm:$0xff] }
 0xb4d   :  { %7978 = vmatpush1.bf16.msra.mxu0 %v7977_v48  ;;  %7732 = vmatprep.subr.bf16.mxu1 %v7731_v61  ;;  %v4165_v48 = vld [vmem:[#allocation2 + $0x38] sm:$0xff]  ;;  %v7995_v43 = vpack.c.bf16 %v4171_v49, %v4163_v46 }
 0xb4e   :  { %7980 = vmatprep.subr.bf16.mxu0 %v7979_v63  ;;  %v4173_v61 = vld [vmem:[#allocation2 + $0x78] sm:$0xff]  ;;  %v4172_v63 = vld [vmem:[#allocation2 + $0x70] sm:$0xff] }
 0xb4f   :  { %v8245_v58 = vpack.c.bf16 %v4172_v63, %v4164_v11  ;;  %v4229_v46 = vld [vmem:[#allocation2 + $0x238] sm:$0xff]  ;;  %v4236_v63 = vld [vmem:[#allocation2 + $0x270] sm:$0xff] }
 0xb50   :  { %7734 = vmatpush1.bf16.msra.mxu1 %v7733_v6  ;;  %v4189_v6 = vld [vmem:[#allocation2 + $0xf8] sm:$0xff] }
 0xb51   :  { %7982 = vmatpush1.bf16.msra.mxu0 %v7981_v54  ;;  %7736 = vmatprep.subr.bf16.mxu1 %v7735_v50  ;;  %v8243_v54 = vpack.c.bf16 %v4173_v61, %v4165_v48  ;;  %v7997_v50 = vpack.c.bf16 %v4170_v7, %v4162_v53  ;;  %v8247_v25 = vpack.c.bf16 %v4189_v6, %v4181_v14  ;;  %v4226_v61 = vld [vmem:[#allocation2 + $0x220] sm:$0xff]  ;;  %v4228_v7 = vld [vmem:[#allocation2 + $0x230] sm:$0xff] }
 0xb52   :  { %7984 = vmatprep.subr.bf16.mxu0 %v7983_v34  ;;  %v4186_v34 = vld [vmem:[#allocation2 + $0xe0] sm:$0xff]  ;;  %v8261_v6 = vpack.c.bf16 %v4236_v63, %v4228_v7  ;;  %v4307_v7 = vld [vmem:[#allocation2 + $0x4a8] sm:$0xff]  ;;  %v4309_v63 = vld [vmem:[#allocation2 + $0x4b8] sm:$0xff] }
 0xb53   :  { %v4234_v53 = vld [vmem:[#allocation2 + $0x260] sm:$0xff] }
 0xb54   :  { %7738 = vmatpush1.bf16.msra.mxu1 %v7737_v15  ;;  %v4197_v15 = vld [vmem:[#allocation2 + $0x138] sm:$0xff]  ;;  %v8013_v14 = vpack.c.bf16 %v4234_v53, %v4226_v61  ;;  %v4300_v53 = vld [vmem:[#allocation2 + $0x470] sm:$0xff] }
 0xb55   :  { %7986 = vmatpush1.bf16.msra.mxu0 %v7985_v2  ;;  %7740 = vmatprep.subr.bf16.mxu1 %v7739_v31  ;;  %v4205_v2 = vld [vmem:[#allocation2 + $0x178] sm:$0xff]  ;;  %v8001_v31 = vpack.c.bf16 %v4186_v34, %v4178_v20  ;;  %v4252_v34 = vld [vmem:[#allocation2 + $0x2f0] sm:$0xff] }
 0xb56   :  { %7988 = vmatprep.subr.bf16.mxu0 %v7987_v21  ;;  %v4202_v21 = vld [vmem:[#allocation2 + $0x160] sm:$0xff]  ;;  %v8251_v47 = vpack.c.bf16 %v4205_v2, %v4197_v15 }
 0xb58   :  { %7742 = vmatpush1.bf16.msra.mxu1 %v7741_v19  ;;  %v4213_v19 = vld [vmem:[#allocation2 + $0x1b8] sm:$0xff] }
 0xb59   :  { %7990 = vmatpush1.bf16.msra.mxu0 %v7989_v33  ;;  %7744 = vmatprep.subr.bf16.mxu1 %v7743_v39  ;;  %v4221_v33 = vld [vmem:[#allocation2 + $0x1f8] sm:$0xff]  ;;  %v8005_v39 = vpack.c.bf16 %v4202_v21, %v4194_v1  ;;  %v8267_v1 = vpack.c.bf16 %v4269_v45, %v4261_v59  ;;  %v4268_v21 = vld [vmem:[#allocation2 + $0x370] sm:$0xff] }
 0xb5a   :  { %7992 = vmatprep.subr.bf16.mxu0 %v7991_v40  ;;  %v4210_v40 = vld [vmem:[#allocation2 + $0x1a0] sm:$0xff] }
 0xb5b   :  { %v8009_v49 = vpack.c.bf16 %v4218_v35, %v4210_v40  ;;  %v8271_v40 = vpack.c.bf16 %v4285_v13, %v4277_v28  ;;  %v4284_v35 = vld [vmem:[#allocation2 + $0x3f0] sm:$0xff] }
 0xb5c   :  { %7746 = vmatpush1.bf16.msra.mxu1 %v7745_v38  ;;  %v8255_v38 = vpack.c.bf16 %v4221_v33, %v4213_v19 }
 0xb5d   :  { %7994 = vmatpush1.bf16.msra.mxu0 %v7993_v0  ;;  %5471 = vmatprep.subr.mxu1 %v5151_v37  ;;  %v4220_v0 = vld [vmem:[#allocation2 + $0x1f0] sm:$0xff]  ;;  %v4227_v37 = vld [vmem:[#allocation2 + $0x228] sm:$0xff] }
 0xb5e   :  { %5755 = vmatprep.subr.mxu0 %v5153_v44  ;;  %v4235_v44 = vld [vmem:[#allocation2 + $0x268] sm:$0xff] }
 0xb5f   :  { %v8011_v48 = vpack.c.bf16 %v4235_v44, %v4227_v37  ;;  %v4301_v37 = vld [vmem:[#allocation2 + $0x478] sm:$0xff] }
 0xb60   :  { %5472 = vmatpush1.msra.mxu1 %v5150_v62  ;;  %v4237_v62 = vld [vmem:[#allocation2 + $0x278] sm:$0xff] }
 0xb61   :  { %5756 = vmatpush1.msra.mxu0 %v5152_v30  ;;  %5480 = vmatmul.mubr.f32.vlgmr.msra.gmra.mrb[112].mxu1 %v10516_v29  ;;  %v8259_v11 = vpack.c.bf16 %v4237_v62, %v4229_v46  ;;  %v4245_v30 = vld [vmem:[#allocation2 + $0x2b8] sm:$0xff] }
 0xb62   :  { %5764 = vmatmul.mubr.f32.vlgmr.msra.gmra.mrb[50].mxu0 %v10516_v29  ;;  %7996 = vmatprep.subr.bf16.mxu1 %v7995_v43  ;;  %v4253_v43 = vld [vmem:[#allocation2 + $0x2f8] sm:$0xff] }
 0xb63   :  { %8244 = vmatprep.subr.bf16.mxu0 %v8243_v54  ;;  %7998 = vmatpush1.bf16.msra.mxu1 %v7997_v50  ;;  %v8015_v54 = vpack.c.bf16 %v4251_v27, %v4243_v36  ;;  %v4242_v50 = vld [vmem:[#allocation2 + $0x2a0] sm:$0xff]  ;;  %v8263_v20 = vpack.c.bf16 %v4253_v43, %v4245_v30  ;;  %v4317_v36 = vld [vmem:[#allocation2 + $0x4f8] sm:$0xff] }
 0xb64   :  { %8246 = vmatpush1.bf16.msra.mxu0 %v8245_v58  ;;  %8000 = vmatprep.subr.bf16.mxu1 %v7999_v55  ;;  %v4250_v58 = vld [vmem:[#allocation2 + $0x2e0] sm:$0xff]  ;;  %v4244_v55 = vld [vmem:[#allocation2 + $0x2b0] sm:$0xff] }
 0xb65   :  { %8248 = vmatprep.subr.bf16.mxu0 %v8247_v25  ;;  %5834 = vmatprep.mubr.f32.mxu1 %v10504_v17  ;;  %v4267_v25 = vld [vmem:[#allocation2 + $0x368] sm:$0xff]  ;;  %v8017_v8 = vpack.c.bf16 %v4250_v58, %v4242_v50  ;;  %v8265_v15 = vpack.c.bf16 %v4252_v34, %v4244_v55  ;;  %v8279_v50 = vpack.c.bf16 %v4317_v36, %v4309_v63  ;;  %v4316_v58 = vld [vmem:[#allocation2 + $0x4f0] sm:$0xff]  ;;  %v4325_v34 = vld [vmem:[#allocation2 + $0x538] sm:$0xff] }
 0xb66   :  { %6118 = vmatprep.mubr.f32.mxu0 %v10504_v17  ;;  %v8257_v17 = vpack.c.bf16 %v4220_v0, %v4212_v60  ;;  %v8019_v2 = vpack.c.bf16 %v4267_v25, %v4259_v57  ;;  %v4291_v60 = vld [vmem:[#allocation2 + $0x428] sm:$0xff]  ;;  %v4293_v0 = vld [vmem:[#allocation2 + $0x438] sm:$0xff] }
 0xb67   :  { %8002 = vmatpush1.bf16.msra.mxu1 %v8001_v31  ;;  %v4258_v31 = vld [vmem:[#allocation2 + $0x320] sm:$0xff]  ;;  %v8275_v61 = vpack.c.bf16 %v4301_v37, %v4293_v0  ;;  %v4323_v55 = vld [vmem:[#allocation2 + $0x528] sm:$0xff]  ;;  %v4333_v57 = vld [vmem:[#allocation2 + $0x578] sm:$0xff] }
 0xb68   :  { %8250 = vmatpush1.bf16.msra.mxu0 %v8249_v12  ;;  %8004 = vmatprep.subr.bf16.mxu1 %v8003_v42  ;;  %v4266_v12 = vld [vmem:[#allocation2 + $0x360] sm:$0xff]  ;;  %v4260_v42 = vld [vmem:[#allocation2 + $0x330] sm:$0xff] }
 0xb69   :  { %8252 = vmatprep.subr.bf16.mxu0 %v8251_v47  ;;  %v4283_v47 = vld [vmem:[#allocation2 + $0x3e8] sm:$0xff]  ;;  %v8021_v23 = vpack.c.bf16 %v4266_v12, %v4258_v31  ;;  %v8269_v19 = vpack.c.bf16 %v4268_v21, %v4260_v42  ;;  %v8283_v31 = vpack.c.bf16 %v4333_v57, %v4325_v34  ;;  %v4332_v12 = vld [vmem:[#allocation2 + $0x570] sm:$0xff]  ;;  %v4341_v21 = vld [vmem:[#allocation2 + $0x5b8] sm:$0xff] }
 0xb6a   :  { %v8023_v33 = vpack.c.bf16 %v4283_v47, %v4275_v16  ;;  %v4339_v42 = vld [vmem:[#allocation2 + $0x5a8] sm:$0xff]  ;;  %v4349_v16 = vld [vmem:[#allocation2 + $0x5f8] sm:$0xff] }
 0xb6b   :  { %8006 = vmatpush1.bf16.msra.mxu1 %v8005_v39  ;;  %v4274_v39 = vld [vmem:[#allocation2 + $0x3a0] sm:$0xff] }
 0xb6c   :  { %8254 = vmatpush1.bf16.msra.mxu0 %v8253_v52  ;;  %8008 = vmatprep.subr.bf16.mxu1 %v8007_v56  ;;  %v4282_v52 = vld [vmem:[#allocation2 + $0x3e0] sm:$0xff]  ;;  %v4276_v56 = vld [vmem:[#allocation2 + $0x3b0] sm:$0xff] }
 0xb6d   :  { %8256 = vmatprep.subr.bf16.mxu0 %v8255_v38  ;;  %v4299_v38 = vld [vmem:[#allocation2 + $0x468] sm:$0xff]  ;;  %v8025_v44 = vpack.c.bf16 %v4282_v52, %v4274_v39  ;;  %v8273_v46 = vpack.c.bf16 %v4284_v35, %v4276_v56  ;;  %v8287_v39 = vpack.c.bf16 %v4349_v16, %v4341_v21  ;;  %v4348_v52 = vld [vmem:[#allocation2 + $0x5f0] sm:$0xff]  ;;  %v4357_v35 = vld [vmem:[#allocation2 + $0x638] sm:$0xff] }
 0xb6e   :  { %v8027_v62 = vpack.c.bf16 %v4299_v38, %v4291_v60  ;;  %v4355_v56 = vld [vmem:[#allocation2 + $0x628] sm:$0xff]  ;;  %v4365_v60 = vld [vmem:[#allocation2 + $0x678] sm:$0xff] }
 0xb6f   :  { %8010 = vmatpush1.bf16.msra.mxu1 %v8009_v49  ;;  %v4290_v49 = vld [vmem:[#allocation2 + $0x420] sm:$0xff] }
 0xb70   :  { %8258 = vmatpush1.bf16.msra.mxu0 %v8257_v17  ;;  %8012 = vmatprep.subr.bf16.mxu1 %v8011_v48  ;;  %v4298_v17 = vld [vmem:[#allocation2 + $0x460] sm:$0xff]  ;;  %v4292_v48 = vld [vmem:[#allocation2 + $0x430] sm:$0xff] }
 0xb71   :  { %8260 = vmatprep.subr.bf16.mxu0 %v8259_v11  ;;  %v4315_v11 = vld [vmem:[#allocation2 + $0x4e8] sm:$0xff]  ;;  %v8029_v27 = vpack.c.bf16 %v4298_v17, %v4290_v49  ;;  %v8277_v30 = vpack.c.bf16 %v4300_v53, %v4292_v48  ;;  %v8291_v49 = vpack.c.bf16 %v4365_v60, %v4357_v35  ;;  %v4364_v17 = vld [vmem:[#allocation2 + $0x670] sm:$0xff]  ;;  %v4373_v53 = vld [vmem:[#allocation2 + $0x6b8] sm:$0xff] }
 0xb72   :  { %v8031_v43 = vpack.c.bf16 %v4315_v11, %v4307_v7  ;;  %v4371_v48 = vld [vmem:[#allocation2 + $0x6a8] sm:$0xff]  ;;  %v4381_v7 = vld [vmem:[#allocation2 + $0x6f8] sm:$0xff] }
 0xb73   :  { %8014 = vmatpush1.bf16.msra.mxu1 %v8013_v14  ;;  %v4306_v14 = vld [vmem:[#allocation2 + $0x4a0] sm:$0xff] }
 0xb74   :  { %8262 = vmatpush1.bf16.msra.mxu0 %v8261_v6  ;;  %8016 = vmatprep.subr.bf16.mxu1 %v8015_v54  ;;  %v4314_v6 = vld [vmem:[#allocation2 + $0x4e0] sm:$0xff]  ;;  %v4308_v54 = vld [vmem:[#allocation2 + $0x4b0] sm:$0xff] }
 0xb75   :  { %8264 = vmatprep.subr.bf16.mxu0 %v8263_v20  ;;  %v4331_v20 = vld [vmem:[#allocation2 + $0x568] sm:$0xff]  ;;  %v8033_v25 = vpack.c.bf16 %v4314_v6, %v4306_v14  ;;  %v8281_v59 = vpack.c.bf16 %v4316_v58, %v4308_v54  ;;  %v8295_v14 = vpack.c.bf16 %v4381_v7, %v4373_v53  ;;  %v4380_v6 = vld [vmem:[#allocation2 + $0x6f0] sm:$0xff]  ;;  %v4389_v58 = vld [vmem:[#allocation2 + $0x738] sm:$0xff] }
 0xb76   :  { %v8035_v45 = vpack.c.bf16 %v4331_v20, %v4323_v55  ;;  %v4387_v54 = vld [vmem:[#allocation2 + $0x728] sm:$0xff]  ;;  %v4397_v55 = vld [vmem:[#allocation2 + $0x778] sm:$0xff] }
 0xb77   :  { %8018 = vmatpush1.bf16.msra.mxu1 %v8017_v8  ;;  %v4322_v8 = vld [vmem:[#allocation2 + $0x520] sm:$0xff] }
 0xb78   :  { %8266 = vmatpush1.bf16.msra.mxu0 %v8265_v15  ;;  %8020 = vmatprep.subr.bf16.mxu1 %v8019_v2  ;;  %v4330_v15 = vld [vmem:[#allocation2 + $0x560] sm:$0xff]  ;;  %v4324_v2 = vld [vmem:[#allocation2 + $0x530] sm:$0xff] }
 0xb79   :  { %8268 = vmatprep.subr.bf16.mxu0 %v8267_v1  ;;  %v4347_v1 = vld [vmem:[#allocation2 + $0x5e8] sm:$0xff]  ;;  %v8037_v47 = vpack.c.bf16 %v4330_v15, %v4322_v8  ;;  %v8285_v28 = vpack.c.bf16 %v4332_v12, %v4324_v2  ;;  %v8299_v8 = vpack.c.bf16 %v4397_v55, %v4389_v58  ;;  %v4396_v15 = vld [vmem:[#allocation2 + $0x770] sm:$0xff]  ;;  %v4405_v12 = vld [vmem:[#allocation2 + $0x7b8] sm:$0xff] }
 0xb7a   :  { %v8039_v13 = vpack.c.bf16 %v4347_v1, %v4339_v42  ;;  %v4403_v2 = vld [vmem:[#allocation2 + $0x7a8] sm:$0xff]  ;;  %v4413_v42 = vld [vmem:[#allocation2 + $0x7f8] sm:$0xff] }
 0xb7b   :  { %8022 = vmatpush1.bf16.msra.mxu1 %v8021_v23  ;;  %v4338_v23 = vld [vmem:[#allocation2 + $0x5a0] sm:$0xff] }
 0xb7c   :  { %8270 = vmatpush1.bf16.msra.mxu0 %v8269_v19  ;;  %8024 = vmatprep.subr.bf16.mxu1 %v8023_v33  ;;  %v4346_v19 = vld [vmem:[#allocation2 + $0x5e0] sm:$0xff]  ;;  %v4340_v33 = vld [vmem:[#allocation2 + $0x5b0] sm:$0xff] }
 0xb7d   :  { %8272 = vmatprep.subr.bf16.mxu0 %v8271_v40  ;;  %v4363_v40 = vld [vmem:[#allocation2 + $0x668] sm:$0xff]  ;;  %v8041_v38 = vpack.c.bf16 %v4346_v19, %v4338_v23  ;;  %v8289_v0 = vpack.c.bf16 %v4348_v52, %v4340_v33  ;;  %v8303_v23 = vpack.c.bf16 %v4413_v42, %v4405_v12  ;;  %v4412_v19 = vld [vmem:[#allocation2 + $0x7f0] sm:$0xff]  ;;  %v4421_v52 = vld [vmem:[#allocation2 + $0x838] sm:$0xff] }
 0xb7e   :  { %v8043_v37 = vpack.c.bf16 %v4363_v40, %v4355_v56  ;;  %v4419_v33 = vld [vmem:[#allocation2 + $0x828] sm:$0xff]  ;;  %v4429_v56 = vld [vmem:[#allocation2 + $0x878] sm:$0xff]  ;;  %v4466_v42 = vld [vmem:[#allocation2 + $0x9a0] sm:$0xff] }
 0xb7f   :  { %8026 = vmatpush1.bf16.msra.mxu1 %v8025_v44  ;;  %v4354_v44 = vld [vmem:[#allocation2 + $0x620] sm:$0xff] }
 0xb80   :  { %8274 = vmatpush1.bf16.msra.mxu0 %v8273_v46  ;;  %8028 = vmatprep.subr.bf16.mxu1 %v8027_v62  ;;  %v4362_v46 = vld [vmem:[#allocation2 + $0x660] sm:$0xff]  ;;  %v4356_v62 = vld [vmem:[#allocation2 + $0x630] sm:$0xff] }
 0xb81   :  { %8276 = vmatprep.subr.bf16.mxu0 %v8275_v61  ;;  %v4379_v61 = vld [vmem:[#allocation2 + $0x6e8] sm:$0xff]  ;;  %v8045_v11 = vpack.c.bf16 %v4362_v46, %v4354_v44  ;;  %v8293_v63 = vpack.c.bf16 %v4364_v17, %v4356_v62  ;;  %v8307_v44 = vpack.c.bf16 %v4429_v56, %v4421_v52  ;;  %v4428_v46 = vld [vmem:[#allocation2 + $0x870] sm:$0xff]  ;;  %v4437_v17 = vld [vmem:[#allocation2 + $0x8b8] sm:$0xff] }
 0xb82   :  { %v8047_v36 = vpack.c.bf16 %v4379_v61, %v4371_v48  ;;  %v4435_v62 = vld [vmem:[#allocation2 + $0x8a8] sm:$0xff]  ;;  %v4445_v48 = vld [vmem:[#allocation2 + $0x8f8] sm:$0xff]  ;;  %v4482_v52 = vld [vmem:[#allocation2 + $0xa20] sm:$0xff] }
 0xb83   :  { %8030 = vmatpush1.bf16.msra.mxu1 %v8029_v27  ;;  %v4370_v27 = vld [vmem:[#allocation2 + $0x6a0] sm:$0xff] }
 0xb84   :  { %8278 = vmatpush1.bf16.msra.mxu0 %v8277_v30  ;;  %8032 = vmatprep.subr.bf16.mxu1 %v8031_v43  ;;  %v4378_v30 = vld [vmem:[#allocation2 + $0x6e0] sm:$0xff]  ;;  %v4372_v43 = vld [vmem:[#allocation2 + $0x6b0] sm:$0xff] }
 0xb85   :  { %8280 = vmatprep.subr.bf16.mxu0 %v8279_v50  ;;  %v4395_v50 = vld [vmem:[#allocation2 + $0x768] sm:$0xff]  ;;  %v8049_v20 = vpack.c.bf16 %v4378_v30, %v4370_v27  ;;  %v8297_v34 = vpack.c.bf16 %v4380_v6, %v4372_v43  ;;  %v8311_v27 = vpack.c.bf16 %v4445_v48, %v4437_v17  ;;  %v4444_v30 = vld [vmem:[#allocation2 + $0x8f0] sm:$0xff]  ;;  %v4453_v6 = vld [vmem:[#allocation2 + $0x938] sm:$0xff] }
 0xb86   :  { %v8051_v57 = vpack.c.bf16 %v4395_v50, %v4387_v54  ;;  %v4451_v43 = vld [vmem:[#allocation2 + $0x928] sm:$0xff]  ;;  %v4461_v54 = vld [vmem:[#allocation2 + $0x978] sm:$0xff]  ;;  %v4490_v56 = vld [vmem:[#allocation2 + $0xa60] sm:$0xff] }
 0xb87   :  { %8034 = vmatpush1.bf16.msra.mxu1 %v8033_v25  ;;  %v4386_v25 = vld [vmem:[#allocation2 + $0x720] sm:$0xff] }
 0xb88   :  { %8282 = vmatpush1.bf16.msra.mxu0 %v8281_v59  ;;  %8036 = vmatprep.subr.bf16.mxu1 %v8035_v45  ;;  %v4394_v59 = vld [vmem:[#allocation2 + $0x760] sm:$0xff]  ;;  %v4388_v45 = vld [vmem:[#allocation2 + $0x730] sm:$0xff] }
 0xb89   :  { %8284 = vmatprep.subr.bf16.mxu0 %v8283_v31  ;;  %v4411_v31 = vld [vmem:[#allocation2 + $0x7e8] sm:$0xff]  ;;  %v8053_v1 = vpack.c.bf16 %v4394_v59, %v4386_v25  ;;  %v8301_v21 = vpack.c.bf16 %v4396_v15, %v4388_v45  ;;  %v8315_v25 = vpack.c.bf16 %v4461_v54, %v4453_v6  ;;  %v4460_v59 = vld [vmem:[#allocation2 + $0x970] sm:$0xff]  ;;  %v4469_v15 = vld [vmem:[#allocation2 + $0x9b8] sm:$0xff] }
 0xb8a   :  { %v8055_v16 = vpack.c.bf16 %v4411_v31, %v4403_v2  ;;  %v4467_v45 = vld [vmem:[#allocation2 + $0x9a8] sm:$0xff]  ;;  %v4477_v2 = vld [vmem:[#allocation2 + $0x9f8] sm:$0xff]  ;;  %v4498_v17 = vld [vmem:[#allocation2 + $0xaa0] sm:$0xff] }
 0xb8b   :  { %8038 = vmatpush1.bf16.msra.mxu1 %v8037_v47  ;;  %v4402_v47 = vld [vmem:[#allocation2 + $0x7a0] sm:$0xff] }
 0xb8c   :  { %8286 = vmatpush1.bf16.msra.mxu0 %v8285_v28  ;;  %8040 = vmatprep.subr.bf16.mxu1 %v8039_v13  ;;  %v4410_v28 = vld [vmem:[#allocation2 + $0x7e0] sm:$0xff]  ;;  %v4404_v13 = vld [vmem:[#allocation2 + $0x7b0] sm:$0xff] }
 0xb8d   :  { %8288 = vmatprep.subr.bf16.mxu0 %v8287_v39  ;;  %v4427_v39 = vld [vmem:[#allocation2 + $0x868] sm:$0xff]  ;;  %v8057_v40 = vpack.c.bf16 %v4410_v28, %v4402_v47  ;;  %v8305_v35 = vpack.c.bf16 %v4412_v19, %v4404_v13  ;;  %v4476_v47 = vld [vmem:[#allocation2 + $0x9f0] sm:$0xff]  ;;  %v4493_v19 = vld [vmem:[#allocation2 + $0xa78] sm:$0xff] }
 0xb8e   :  { %v8059_v60 = vpack.c.bf16 %v4427_v39, %v4419_v33  ;;  %v4483_v28 = vld [vmem:[#allocation2 + $0xa28] sm:$0xff]  ;;  %v4506_v48 = vld [vmem:[#allocation2 + $0xae0] sm:$0xff] }
 0xb8f   :  { %8042 = vmatpush1.bf16.msra.mxu1 %v8041_v38  ;;  %v4418_v38 = vld [vmem:[#allocation2 + $0x820] sm:$0xff]  ;;  %v4491_v13 = vld [vmem:[#allocation2 + $0xa68] sm:$0xff] }
 0xb90   :  { %8290 = vmatpush1.bf16.msra.mxu0 %v8289_v0  ;;  %8044 = vmatprep.subr.bf16.mxu1 %v8043_v37  ;;  %v4426_v0 = vld [vmem:[#allocation2 + $0x860] sm:$0xff]  ;;  %v4420_v37 = vld [vmem:[#allocation2 + $0x830] sm:$0xff]  ;;  %v8075_v39 = vpack.c.bf16 %v4491_v13, %v4483_v28 }
 0xb91   :  { %8292 = vmatprep.subr.bf16.mxu0 %v8291_v49  ;;  %v4443_v49 = vld [vmem:[#allocation2 + $0x8e8] sm:$0xff]  ;;  %v8061_v61 = vpack.c.bf16 %v4426_v0, %v4418_v38  ;;  %v8309_v53 = vpack.c.bf16 %v4428_v46, %v4420_v37  ;;  %v4501_v37 = vld [vmem:[#allocation2 + $0xab8] sm:$0xff]  ;;  %v8077_v46 = vpack.c.bf16 %v4490_v56, %v4482_v52  ;;  %v4514_v6 = vld [vmem:[#allocation2 + $0xb20] sm:$0xff] }
 0xb92   :  { %v8063_v7 = vpack.c.bf16 %v4443_v49, %v4435_v62  ;;  %v4499_v38 = vld [vmem:[#allocation2 + $0xaa8] sm:$0xff]  ;;  %v4522_v54 = vld [vmem:[#allocation2 + $0xb60] sm:$0xff] }
 0xb93   :  { %8046 = vmatpush1.bf16.msra.mxu1 %v8045_v11  ;;  %v4434_v11 = vld [vmem:[#allocation2 + $0x8a0] sm:$0xff]  ;;  %v4507_v0 = vld [vmem:[#allocation2 + $0xae8] sm:$0xff] }
 0xb94   :  { %8294 = vmatpush1.bf16.msra.mxu0 %v8293_v63  ;;  %8048 = vmatprep.subr.bf16.mxu1 %v8047_v36  ;;  %v4442_v63 = vld [vmem:[#allocation2 + $0x8e0] sm:$0xff]  ;;  %v4436_v36 = vld [vmem:[#allocation2 + $0x8b0] sm:$0xff]  ;;  %v8079_v49 = vpack.c.bf16 %v4507_v0, %v4499_v38  ;;  %v4563_v52 = vld [vmem:[#allocation2 + $0xca8] sm:$0xff] }
 0xb95   :  { %8296 = vmatprep.subr.bf16.mxu0 %v8295_v14  ;;  %v4459_v14 = vld [vmem:[#allocation2 + $0x968] sm:$0xff]  ;;  %v8065_v50 = vpack.c.bf16 %v4442_v63, %v4434_v11  ;;  %v8313_v58 = vpack.c.bf16 %v4444_v30, %v4436_v36  ;;  %v4517_v36 = vld [vmem:[#allocation2 + $0xb38] sm:$0xff]  ;;  %v8081_v30 = vpack.c.bf16 %v4506_v48, %v4498_v17 }
 0xb96   :  { %v8067_v55 = vpack.c.bf16 %v4459_v14, %v4451_v43  ;;  %v4515_v11 = vld [vmem:[#allocation2 + $0xb28] sm:$0xff] }
 0xb97   :  { %8050 = vmatpush1.bf16.msra.mxu1 %v8049_v20  ;;  %v4450_v20 = vld [vmem:[#allocation2 + $0x920] sm:$0xff]  ;;  %v4523_v63 = vld [vmem:[#allocation2 + $0xb68] sm:$0xff] }
 0xb98   :  { %8298 = vmatpush1.bf16.msra.mxu0 %v8297_v34  ;;  %8052 = vmatprep.subr.bf16.mxu1 %v8051_v57  ;;  %v4458_v34 = vld [vmem:[#allocation2 + $0x960] sm:$0xff]  ;;  %v4452_v57 = vld [vmem:[#allocation2 + $0x930] sm:$0xff]  ;;  %v8083_v14 = vpack.c.bf16 %v4523_v63, %v4515_v11  ;;  %v4571_v56 = vld [vmem:[#allocation2 + $0xce8] sm:$0xff] }
 0xb99   :  { %8300 = vmatprep.subr.bf16.mxu0 %v8299_v8  ;;  %v4475_v8 = vld [vmem:[#allocation2 + $0x9e8] sm:$0xff]  ;;  %v8317_v31 = vpack.c.bf16 %v4460_v59, %v4452_v57  ;;  %v4533_v57 = vld [vmem:[#allocation2 + $0xbb8] sm:$0xff]  ;;  %v8085_v59 = vpack.c.bf16 %v4522_v54, %v4514_v6  ;;  %v8095_v0 = vpack.c.bf16 %v4571_v56, %v4563_v52 }
 0xb9a   :  { %v8071_v12 = vpack.c.bf16 %v4475_v8, %v4467_v45  ;;  %v4579_v17 = vld [vmem:[#allocation2 + $0xd28] sm:$0xff] }
 0xb9b   :  { %8054 = vmatpush1.bf16.msra.mxu1 %v8053_v1  ;;  %v4474_v1 = vld [vmem:[#allocation2 + $0x9e0] sm:$0xff]  ;;  %v4587_v48 = vld [vmem:[#allocation2 + $0xd68] sm:$0xff] }
 0xb9c   :  { %8302 = vmatpush1.bf16.msra.mxu0 %v8301_v21  ;;  %8056 = vmatprep.subr.bf16.mxu1 %v8055_v16  ;;  %v4468_v21 = vld [vmem:[#allocation2 + $0x9b0] sm:$0xff]  ;;  %v8319_v16 = vpack.c.bf16 %v4477_v2, %v4469_v15  ;;  %v8073_v33 = vpack.c.bf16 %v4474_v1, %v4466_v42  ;;  %v4530_v15 = vld [vmem:[#allocation2 + $0xba0] sm:$0xff]  ;;  %v4547_v42 = vld [vmem:[#allocation2 + $0xc28] sm:$0xff]  ;;  %v8099_v63 = vpack.c.bf16 %v4587_v48, %v4579_v17 }
 0xb9d   :  { %8304 = vmatprep.subr.bf16.mxu0 %v8303_v23  ;;  %v4485_v23 = vld [vmem:[#allocation2 + $0xa38] sm:$0xff]  ;;  %v4538_v2 = vld [vmem:[#allocation2 + $0xbe0] sm:$0xff]  ;;  %v4555_v1 = vld [vmem:[#allocation2 + $0xc68] sm:$0xff] }
 0xb9e   :  { %v8091_v13 = vpack.c.bf16 %v4555_v1, %v4547_v42  ;;  %v4595_v6 = vld [vmem:[#allocation2 + $0xda8] sm:$0xff] }
 0xb9f   :  { %8058 = vmatpush1.bf16.msra.mxu1 %v8057_v40  ;;  %v4484_v40 = vld [vmem:[#allocation2 + $0xa30] sm:$0xff]  ;;  %v4603_v54 = vld [vmem:[#allocation2 + $0xde8] sm:$0xff] }
 0xba0   :  { %8306 = vmatpush1.bf16.msra.mxu0 %v8305_v35  ;;  %8060 = vmatprep.subr.bf16.mxu1 %v8059_v60  ;;  %v8323_v35 = vpack.c.bf16 %v4493_v19, %v4485_v23  ;;  %v4492_v60 = vld [vmem:[#allocation2 + $0xa70] sm:$0xff]  ;;  %v4546_v23 = vld [vmem:[#allocation2 + $0xc20] sm:$0xff] }
 0xba1   :  { %8308 = vmatprep.subr.bf16.mxu0 %v8307_v44  ;;  %v4509_v44 = vld [vmem:[#allocation2 + $0xaf8] sm:$0xff]  ;;  %v8325_v62 = vpack.c.bf16 %v4492_v60, %v4484_v40  ;;  %v4554_v19 = vld [vmem:[#allocation2 + $0xc60] sm:$0xff] }
 0xba2   :  { %5835 = vmatmul.mubr.f32.vlgmr.msra.gmra.mrb[114].mxu1 %v10501_v32  ;;  %v4565_v40 = vld [vmem:[#allocation2 + $0xcb8] sm:$0xff]  ;;  %v8093_v60 = vpack.c.bf16 %v4554_v19, %v4546_v23  ;;  %v4627_v23 = vld [vmem:[#allocation2 + $0xea8] sm:$0xff] }
 0xba3   :  { %8062 = vmatpush1.bf16.msra.mxu1 %v8061_v61  ;;  %6119 = vmatmul.mubr.f32.vlgmr.msra.gmra.mrb[52].mxu0 %v10501_v32  ;;  %v8069_v32 = vpack.c.bf16 %v4458_v34, %v4450_v20  ;;  %v4500_v61 = vld [vmem:[#allocation2 + $0xab0] sm:$0xff]  ;;  %v4531_v20 = vld [vmem:[#allocation2 + $0xba8] sm:$0xff] }
 0xba4   :  { %8310 = vmatpush1.bf16.msra.mxu0 %v8309_v53  ;;  %8064 = vmatprep.subr.bf16.mxu1 %v8063_v7  ;;  %v8327_v53 = vpack.c.bf16 %v4509_v44, %v4501_v37  ;;  %v4508_v7 = vld [vmem:[#allocation2 + $0xaf0] sm:$0xff]  ;;  %v4539_v34 = vld [vmem:[#allocation2 + $0xbe8] sm:$0xff]  ;;  %v4562_v37 = vld [vmem:[#allocation2 + $0xca0] sm:$0xff] }
 0xba5   :  { %8312 = vmatprep.subr.bf16.mxu0 %v8311_v27  ;;  %5905 = vmatprep.mubr.f32.mxu1 %v10511_v51  ;;  %v4525_v27 = vld [vmem:[#allocation2 + $0xb78] sm:$0xff]  ;;  %v8329_v43 = vpack.c.bf16 %v4508_v7, %v4500_v61  ;;  %v8087_v8 = vpack.c.bf16 %v4539_v34, %v4531_v20  ;;  %v4570_v44 = vld [vmem:[#allocation2 + $0xce0] sm:$0xff]  ;;  %v8103_v34 = vpack.c.bf16 %v4603_v54, %v4595_v6  ;;  %v4635_v19 = vld [vmem:[#allocation2 + $0xee8] sm:$0xff] }
 0xba6   :  { %6189 = vmatprep.mubr.f32.mxu0 %v10511_v51  ;;  %v8321_v51 = vpack.c.bf16 %v4476_v47, %v4468_v21  ;;  %v4549_v21 = vld [vmem:[#allocation2 + $0xc38] sm:$0xff]  ;;  %v8089_v47 = vpack.c.bf16 %v4538_v2, %v4530_v15  ;;  %v8097_v7 = vpack.c.bf16 %v4570_v44, %v4562_v37  ;;  %v4611_v15 = vld [vmem:[#allocation2 + $0xe28] sm:$0xff]  ;;  %v8111_v56 = vpack.c.bf16 %v4635_v19, %v4627_v23 }
 0xba7   :  { %8066 = vmatpush1.bf16.msra.mxu1 %v8065_v50  ;;  %v4516_v50 = vld [vmem:[#allocation2 + $0xb30] sm:$0xff]  ;;  %v4581_v61 = vld [vmem:[#allocation2 + $0xd38] sm:$0xff]  ;;  %v4619_v2 = vld [vmem:[#allocation2 + $0xe68] sm:$0xff] }
 0xba8   :  { %8314 = vmatpush1.bf16.msra.mxu0 %v8313_v58  ;;  %8068 = vmatprep.subr.bf16.mxu1 %v8067_v55  ;;  %v8331_v58 = vpack.c.bf16 %v4525_v27, %v4517_v36  ;;  %v4524_v55 = vld [vmem:[#allocation2 + $0xb70] sm:$0xff]  ;;  %v4578_v36 = vld [vmem:[#allocation2 + $0xd20] sm:$0xff]  ;;  %v8107_v1 = vpack.c.bf16 %v4619_v2, %v4611_v15  ;;  %v4643_v37 = vld [vmem:[#allocation2 + $0xf28] sm:$0xff] }
 0xba9   :  { %8316 = vmatprep.subr.bf16.mxu0 %v8315_v25  ;;  %v4541_v25 = vld [vmem:[#allocation2 + $0xbf8] sm:$0xff]  ;;  %v8333_v45 = vpack.c.bf16 %v4524_v55, %v4516_v50  ;;  %v4586_v27 = vld [vmem:[#allocation2 + $0xd60] sm:$0xff]  ;;  %v4651_v44 = vld [vmem:[#allocation2 + $0xf68] sm:$0xff] }
 0xbaa   :  { %v4597_v50 = vld [vmem:[#allocation2 + $0xdb8] sm:$0xff]  ;;  %v8101_v55 = vpack.c.bf16 %v4586_v27, %v4578_v36  ;;  %v8115_v48 = vpack.c.bf16 %v4651_v44, %v4643_v37  ;;  %v4659_v36 = vld [vmem:[#allocation2 + $0xfa8] sm:$0xff] }
 0xbab   :  { %8070 = vmatpush1.bf16.msra.mxu1 %v8069_v32  ;;  %v4532_v32 = vld [vmem:[#allocation2 + $0xbb0] sm:$0xff]  ;;  %v4667_v27 = vld [vmem:[#allocation2 + $0xfe8] sm:$0xff] }
 0xbac   :  { %8318 = vmatpush1.bf16.msra.mxu0 %v8317_v31  ;;  %8072 = vmatprep.subr.bf16.mxu1 %v8071_v12  ;;  %v8335_v31 = vpack.c.bf16 %v4541_v25, %v4533_v57  ;;  %v4540_v12 = vld [vmem:[#allocation2 + $0xbf0] sm:$0xff]  ;;  %v4594_v57 = vld [vmem:[#allocation2 + $0xda0] sm:$0xff]  ;;  %v8119_v54 = vpack.c.bf16 %v4667_v27, %v4659_v36 }
 0xbad   :  { %8320 = vmatprep.subr.bf16.mxu0 %v8319_v16  ;;  %v4557_v16 = vld [vmem:[#allocation2 + $0xc78] sm:$0xff]  ;;  %v8337_v28 = vpack.c.bf16 %v4540_v12, %v4532_v32  ;;  %v4602_v25 = vld [vmem:[#allocation2 + $0xde0] sm:$0xff] }
 0xbae   :  { %v4613_v32 = vld [vmem:[#allocation2 + $0xe38] sm:$0xff]  ;;  %v8105_v12 = vpack.c.bf16 %v4602_v25, %v4594_v57  ;;  %v4675_v57 = vld [vmem:[#allocation2 + $0x1028] sm:$0xff]  ;;  %v4722_v27 = vld [vmem:[#allocation2 + $0x11a0] sm:$0xff] }
 0xbaf   :  { %8074 = vmatpush1.bf16.msra.mxu1 %v8073_v33  ;;  %v4548_v33 = vld [vmem:[#allocation2 + $0xc30] sm:$0xff]  ;;  %v4683_v25 = vld [vmem:[#allocation2 + $0x1068] sm:$0xff] }
 0xbb0   :  { %8322 = vmatpush1.bf16.msra.mxu0 %v8321_v51  ;;  %8076 = vmatprep.subr.bf16.mxu1 %v8075_v39  ;;  %v8339_v51 = vpack.c.bf16 %v4557_v16, %v4549_v21  ;;  %v4556_v39 = vld [vmem:[#allocation2 + $0xc70] sm:$0xff]  ;;  %v4610_v21 = vld [vmem:[#allocation2 + $0xe20] sm:$0xff]  ;;  %v8123_v2 = vpack.c.bf16 %v4683_v25, %v4675_v57 }
 0xbb1   :  { %8324 = vmatprep.subr.bf16.mxu0 %v8323_v35  ;;  %v4573_v35 = vld [vmem:[#allocation2 + $0xcf8] sm:$0xff]  ;;  %v8341_v38 = vpack.c.bf16 %v4556_v39, %v4548_v33  ;;  %v4618_v16 = vld [vmem:[#allocation2 + $0xe60] sm:$0xff] }
 0xbb2   :  { %v4629_v33 = vld [vmem:[#allocation2 + $0xeb8] sm:$0xff]  ;;  %v8109_v39 = vpack.c.bf16 %v4618_v16, %v4610_v21  ;;  %v4691_v21 = vld [vmem:[#allocation2 + $0x10a8] sm:$0xff]  ;;  %v4738_v57 = vld [vmem:[#allocation2 + $0x1220] sm:$0xff] }
 0xbb3   :  { %8078 = vmatpush1.bf16.msra.mxu1 %v8077_v46  ;;  %v4564_v46 = vld [vmem:[#allocation2 + $0xcb0] sm:$0xff]  ;;  %v4699_v16 = vld [vmem:[#allocation2 + $0x10e8] sm:$0xff]  ;;  %v4746_v25 = vld [vmem:[#allocation2 + $0x1260] sm:$0xff] }
 0xbb4   :  { %8326 = vmatpush1.bf16.msra.mxu0 %v8325_v62  ;;  %8080 = vmatprep.subr.bf16.mxu1 %v8079_v49  ;;  %v8343_v62 = vpack.c.bf16 %v4573_v35, %v4565_v40  ;;  %v4572_v49 = vld [vmem:[#allocation2 + $0xcf0] sm:$0xff]  ;;  %v4626_v40 = vld [vmem:[#allocation2 + $0xea0] sm:$0xff]  ;;  %v8127_v19 = vpack.c.bf16 %v4699_v16, %v4691_v21 }
 0xbb5   :  { %8328 = vmatprep.subr.bf16.mxu0 %v8327_v53  ;;  %v4589_v53 = vld [vmem:[#allocation2 + $0xd78] sm:$0xff]  ;;  %v8345_v11 = vpack.c.bf16 %v4572_v49, %v4564_v46  ;;  %v4634_v35 = vld [vmem:[#allocation2 + $0xee0] sm:$0xff] }
 0xbb6   :  { %v4645_v46 = vld [vmem:[#allocation2 + $0xf38] sm:$0xff]  ;;  %v8113_v49 = vpack.c.bf16 %v4634_v35, %v4626_v40  ;;  %v4707_v40 = vld [vmem:[#allocation2 + $0x1128] sm:$0xff]  ;;  %v4754_v21 = vld [vmem:[#allocation2 + $0x12a0] sm:$0xff] }
 0xbb7   :  { %8082 = vmatpush1.bf16.msra.mxu1 %v8081_v30  ;;  %v4580_v30 = vld [vmem:[#allocation2 + $0xd30] sm:$0xff]  ;;  %v4715_v35 = vld [vmem:[#allocation2 + $0x1168] sm:$0xff]  ;;  %v4762_v16 = vld [vmem:[#allocation2 + $0x12e0] sm:$0xff] }
 0xbb8   :  { %8330 = vmatpush1.bf16.msra.mxu0 %v8329_v43  ;;  %8084 = vmatprep.subr.bf16.mxu1 %v8083_v14  ;;  %v8347_v43 = vpack.c.bf16 %v4589_v53, %v4581_v61  ;;  %v4588_v14 = vld [vmem:[#allocation2 + $0xd70] sm:$0xff]  ;;  %v4642_v61 = vld [vmem:[#allocation2 + $0xf20] sm:$0xff]  ;;  %v8131_v44 = vpack.c.bf16 %v4715_v35, %v4707_v40 }
 0xbb9   :  { %8332 = vmatprep.subr.bf16.mxu0 %v8331_v58  ;;  %v4605_v58 = vld [vmem:[#allocation2 + $0xdf8] sm:$0xff]  ;;  %v8349_v20 = vpack.c.bf16 %v4588_v14, %v4580_v30  ;;  %v4650_v53 = vld [vmem:[#allocation2 + $0xf60] sm:$0xff] }
 0xbba   :  { %v4661_v30 = vld [vmem:[#allocation2 + $0xfb8] sm:$0xff]  ;;  %v8117_v14 = vpack.c.bf16 %v4650_v53, %v4642_v61  ;;  %v4723_v61 = vld [vmem:[#allocation2 + $0x11a8] sm:$0xff]  ;;  %v4770_v40 = vld [vmem:[#allocation2 + $0x1320] sm:$0xff] }
 0xbbb   :  { %8086 = vmatpush1.bf16.msra.mxu1 %v8085_v59  ;;  %v4596_v59 = vld [vmem:[#allocation2 + $0xdb0] sm:$0xff]  ;;  %v4731_v53 = vld [vmem:[#allocation2 + $0x11e8] sm:$0xff]  ;;  %v4778_v35 = vld [vmem:[#allocation2 + $0x1360] sm:$0xff] }
 0xbbc   :  { %8334 = vmatpush1.bf16.msra.mxu0 %v8333_v45  ;;  %8088 = vmatprep.subr.bf16.mxu1 %v8087_v8  ;;  %v8351_v45 = vpack.c.bf16 %v4605_v58, %v4597_v50  ;;  %v4604_v8 = vld [vmem:[#allocation2 + $0xdf0] sm:$0xff]  ;;  %v4658_v50 = vld [vmem:[#allocation2 + $0xfa0] sm:$0xff]  ;;  %v8135_v36 = vpack.c.bf16 %v4731_v53, %v4723_v61 }
 0xbbd   :  { %8336 = vmatprep.subr.bf16.mxu0 %v8335_v31  ;;  %v4621_v31 = vld [vmem:[#allocation2 + $0xe78] sm:$0xff]  ;;  %v8353_v42 = vpack.c.bf16 %v4604_v8, %v4596_v59  ;;  %v4666_v58 = vld [vmem:[#allocation2 + $0xfe0] sm:$0xff] }
 0xbbe   :  { %v4677_v59 = vld [vmem:[#allocation2 + $0x1038] sm:$0xff]  ;;  %v8121_v8 = vpack.c.bf16 %v4666_v58, %v4658_v50  ;;  %v4747_v50 = vld [vmem:[#allocation2 + $0x1268] sm:$0xff]  ;;  %v4786_v61 = vld [vmem:[#allocation2 + $0x13a0] sm:$0xff] }
 0xbbf   :  { %8090 = vmatpush1.bf16.msra.mxu1 %v8089_v47  ;;  %v4612_v47 = vld [vmem:[#allocation2 + $0xe30] sm:$0xff]  ;;  %v4741_v58 = vld [vmem:[#allocation2 + $0x1238] sm:$0xff]  ;;  %v4794_v53 = vld [vmem:[#allocation2 + $0x13e0] sm:$0xff] }
 0xbc0   :  { %8338 = vmatpush1.bf16.msra.mxu0 %v8337_v28  ;;  %8092 = vmatprep.subr.bf16.mxu1 %v8091_v13  ;;  %v8355_v28 = vpack.c.bf16 %v4621_v31, %v4613_v32  ;;  %v4620_v13 = vld [vmem:[#allocation2 + $0xe70] sm:$0xff]  ;;  %v4674_v32 = vld [vmem:[#allocation2 + $0x1020] sm:$0xff] }
 0xbc1   :  { %8340 = vmatprep.subr.bf16.mxu0 %v8339_v51  ;;  %v4637_v51 = vld [vmem:[#allocation2 + $0xef8] sm:$0xff]  ;;  %v8357_v52 = vpack.c.bf16 %v4620_v13, %v4612_v47  ;;  %v4682_v31 = vld [vmem:[#allocation2 + $0x1060] sm:$0xff] }
 0xbc2   :  { %v4693_v47 = vld [vmem:[#allocation2 + $0x10b8] sm:$0xff]  ;;  %v8125_v13 = vpack.c.bf16 %v4682_v31, %v4674_v32 }
 0xbc3   :  { %8094 = vmatpush1.bf16.msra.mxu1 %v8093_v60  ;;  %v4628_v60 = vld [vmem:[#allocation2 + $0xeb0] sm:$0xff]  ;;  %v4757_v32 = vld [vmem:[#allocation2 + $0x12b8] sm:$0xff] }
 0xbc4   :  { %8342 = vmatpush1.bf16.msra.mxu0 %v8341_v38  ;;  %8096 = vmatprep.subr.bf16.mxu1 %v8095_v0  ;;  %v8359_v38 = vpack.c.bf16 %v4637_v51, %v4629_v33  ;;  %v4636_v0 = vld [vmem:[#allocation2 + $0xef0] sm:$0xff]  ;;  %v4690_v33 = vld [vmem:[#allocation2 + $0x10a0] sm:$0xff]  ;;  %v4765_v31 = vld [vmem:[#allocation2 + $0x12f8] sm:$0xff] }
 0xbc5   :  { %8344 = vmatprep.subr.bf16.mxu0 %v8343_v62  ;;  %v4653_v62 = vld [vmem:[#allocation2 + $0xf78] sm:$0xff]  ;;  %v8361_v17 = vpack.c.bf16 %v4636_v0, %v4628_v60  ;;  %v4698_v51 = vld [vmem:[#allocation2 + $0x10e0] sm:$0xff] }
 0xbc6   :  { %v4709_v60 = vld [vmem:[#allocation2 + $0x1138] sm:$0xff]  ;;  %v8129_v0 = vpack.c.bf16 %v4698_v51, %v4690_v33 }
 0xbc7   :  { %8098 = vmatpush1.bf16.msra.mxu1 %v8097_v7  ;;  %v4644_v7 = vld [vmem:[#allocation2 + $0xf30] sm:$0xff]  ;;  %v4773_v33 = vld [vmem:[#allocation2 + $0x1338] sm:$0xff] }
 0xbc8   :  { %8346 = vmatpush1.bf16.msra.mxu0 %v8345_v11  ;;  %8100 = vmatprep.subr.bf16.mxu1 %v8099_v63  ;;  %v8363_v11 = vpack.c.bf16 %v4653_v62, %v4645_v46  ;;  %v4652_v63 = vld [vmem:[#allocation2 + $0xf70] sm:$0xff]  ;;  %v4706_v46 = vld [vmem:[#allocation2 + $0x1120] sm:$0xff]  ;;  %v4781_v51 = vld [vmem:[#allocation2 + $0x1378] sm:$0xff] }
 0xbc9   :  { %8348 = vmatprep.subr.bf16.mxu0 %v8347_v43  ;;  %v4669_v43 = vld [vmem:[#allocation2 + $0xff8] sm:$0xff]  ;;  %v8365_v6 = vpack.c.bf16 %v4652_v63, %v4644_v7  ;;  %v4714_v62 = vld [vmem:[#allocation2 + $0x1160] sm:$0xff] }
 0xbca   :  { %v4725_v7 = vld [vmem:[#allocation2 + $0x11b8] sm:$0xff] }
 0xbcb   :  { %8102 = vmatpush1.bf16.msra.mxu1 %v8101_v55  ;;  %v4660_v55 = vld [vmem:[#allocation2 + $0xfb0] sm:$0xff] }
 0xbcc   :  { %8350 = vmatpush1.bf16.msra.mxu0 %v8349_v20  ;;  %8104 = vmatprep.subr.bf16.mxu1 %v8103_v34  ;;  %v8367_v20 = vpack.c.bf16 %v4669_v43, %v4661_v30  ;;  %v4668_v34 = vld [vmem:[#allocation2 + $0xff0] sm:$0xff]  ;;  %v4730_v30 = vld [vmem:[#allocation2 + $0x11e0] sm:$0xff] }
 0xbcd   :  { %8352 = vmatprep.subr.bf16.mxu0 %v8351_v45  ;;  %v4685_v45 = vld [vmem:[#allocation2 + $0x1078] sm:$0xff]  ;;  %v8369_v15 = vpack.c.bf16 %v4668_v34, %v4660_v55  ;;  %v4724_v43 = vld [vmem:[#allocation2 + $0x11b0] sm:$0xff] }
 0xbce   :  { %v4749_v55 = vld [vmem:[#allocation2 + $0x1278] sm:$0xff] }
 0xbcf   :  { %8106 = vmatpush1.bf16.msra.mxu1 %v8105_v12  ;;  %v4676_v12 = vld [vmem:[#allocation2 + $0x1030] sm:$0xff] }
 0xbd0   :  { %8354 = vmatpush1.bf16.msra.mxu0 %v8353_v42  ;;  %8108 = vmatprep.subr.bf16.mxu1 %v8107_v1  ;;  %v8371_v42 = vpack.c.bf16 %v4685_v45, %v4677_v59  ;;  %v4684_v1 = vld [vmem:[#allocation2 + $0x1070] sm:$0xff]  ;;  %v8387_v45 = vpack.c.bf16 %v4749_v55, %v4741_v58 }
 0xbd1   :  { %8356 = vmatprep.subr.bf16.mxu0 %v8355_v28  ;;  %v4701_v28 = vld [vmem:[#allocation2 + $0x10f8] sm:$0xff]  ;;  %v8373_v23 = vpack.c.bf16 %v4684_v1, %v4676_v12  ;;  %v4740_v59 = vld [vmem:[#allocation2 + $0x1230] sm:$0xff]  ;;  %v8141_v12 = vpack.c.bf16 %v4746_v25, %v4738_v57 }
 0xbd2   :  { %v4804_v58 = vld [vmem:[#allocation2 + $0x1430] sm:$0xff]  ;;  %v4821_v57 = vld [vmem:[#allocation2 + $0x14b8] sm:$0xff] }
 0xbd3   :  { %8110 = vmatpush1.bf16.msra.mxu1 %v8109_v39  ;;  %v4692_v39 = vld [vmem:[#allocation2 + $0x10b0] sm:$0xff]  ;;  %v4829_v25 = vld [vmem:[#allocation2 + $0x14f8] sm:$0xff] }
 0xbd4   :  { %8358 = vmatpush1.bf16.msra.mxu0 %v8357_v52  ;;  %8112 = vmatprep.subr.bf16.mxu1 %v8111_v56  ;;  %v8375_v52 = vpack.c.bf16 %v4701_v28, %v4693_v47  ;;  %v4700_v56 = vld [vmem:[#allocation2 + $0x10f0] sm:$0xff]  ;;  %v8391_v28 = vpack.c.bf16 %v4765_v31, %v4757_v32  ;;  %v8407_v31 = vpack.c.bf16 %v4829_v25, %v4821_v57 }
 0xbd5   :  { %8360 = vmatprep.subr.bf16.mxu0 %v8359_v38  ;;  %v4717_v38 = vld [vmem:[#allocation2 + $0x1178] sm:$0xff]  ;;  %v8377_v37 = vpack.c.bf16 %v4700_v56, %v4692_v39  ;;  %v4756_v47 = vld [vmem:[#allocation2 + $0x12b0] sm:$0xff]  ;;  %v8145_v39 = vpack.c.bf16 %v4762_v16, %v4754_v21 }
 0xbd6   :  { %v4820_v32 = vld [vmem:[#allocation2 + $0x14b0] sm:$0xff]  ;;  %v4837_v21 = vld [vmem:[#allocation2 + $0x1538] sm:$0xff] }
 0xbd7   :  { %8114 = vmatpush1.bf16.msra.mxu1 %v8113_v49  ;;  %v4708_v49 = vld [vmem:[#allocation2 + $0x1130] sm:$0xff]  ;;  %v4845_v16 = vld [vmem:[#allocation2 + $0x1578] sm:$0xff] }
 0xbd8   :  { %8362 = vmatpush1.bf16.msra.mxu0 %v8361_v17  ;;  %8116 = vmatprep.subr.bf16.mxu1 %v8115_v48  ;;  %v8379_v17 = vpack.c.bf16 %v4717_v38, %v4709_v60  ;;  %v4716_v48 = vld [vmem:[#allocation2 + $0x1170] sm:$0xff]  ;;  %v8395_v38 = vpack.c.bf16 %v4781_v51, %v4773_v33  ;;  %v8411_v51 = vpack.c.bf16 %v4845_v16, %v4837_v21 }
 0xbd9   :  { %8364 = vmatprep.subr.bf16.mxu0 %v8363_v11  ;;  %v4733_v11 = vld [vmem:[#allocation2 + $0x11f8] sm:$0xff]  ;;  %v8381_v63 = vpack.c.bf16 %v4716_v48, %v4708_v49  ;;  %v4772_v60 = vld [vmem:[#allocation2 + $0x1330] sm:$0xff]  ;;  %v8149_v49 = vpack.c.bf16 %v4778_v35, %v4770_v40 }
 0xbda   :  { %v4836_v33 = vld [vmem:[#allocation2 + $0x1530] sm:$0xff]  ;;  %v4853_v40 = vld [vmem:[#allocation2 + $0x15b8] sm:$0xff] }
 0xbdb   :  { %8118 = vmatpush1.bf16.msra.mxu1 %v8117_v14  ;;  %v8383_v14 = vpack.c.bf16 %v4733_v11, %v4725_v7  ;;  %v4788_v7 = vld [vmem:[#allocation2 + $0x13b0] sm:$0xff]  ;;  %v4861_v35 = vld [vmem:[#allocation2 + $0x15f8] sm:$0xff] }
 0xbdc   :  { %8366 = vmatpush1.bf16.msra.mxu0 %v8365_v6  ;;  %8120 = vmatprep.subr.bf16.mxu1 %v8119_v54  ;;  %v4732_v6 = vld [vmem:[#allocation2 + $0x11f0] sm:$0xff]  ;;  %v4739_v54 = vld [vmem:[#allocation2 + $0x1228] sm:$0xff] }
 0xbdd   :  { %8368 = vmatprep.subr.bf16.mxu0 %v8367_v20  ;;  %v8137_v20 = vpack.c.bf16 %v4730_v30, %v4722_v27  ;;  %v8139_v34 = vpack.c.bf16 %v4747_v50, %v4739_v54  ;;  %v4805_v27 = vld [vmem:[#allocation2 + $0x1438] sm:$0xff]  ;;  %v4802_v54 = vld [vmem:[#allocation2 + $0x1420] sm:$0xff]  ;;  %v4884_v57 = vld [vmem:[#allocation2 + $0x16b0] sm:$0xff] }
 0xbde   :  { %v4813_v30 = vld [vmem:[#allocation2 + $0x1478] sm:$0xff]  ;;  %v4810_v50 = vld [vmem:[#allocation2 + $0x1460] sm:$0xff]  ;;  %v4900_v21 = vld [vmem:[#allocation2 + $0x1730] sm:$0xff] }
 0xbdf   :  { %8122 = vmatpush1.bf16.msra.mxu1 %v8121_v8  ;;  %v4748_v8 = vld [vmem:[#allocation2 + $0x1270] sm:$0xff]  ;;  %v8403_v55 = vpack.c.bf16 %v4813_v30, %v4805_v27 }
 0xbe0   :  { %8370 = vmatpush1.bf16.msra.mxu0 %v8369_v15  ;;  %8124 = vmatprep.subr.bf16.mxu1 %v8123_v2  ;;  %v4755_v15 = vld [vmem:[#allocation2 + $0x12a8] sm:$0xff]  ;;  %v4868_v27 = vld [vmem:[#allocation2 + $0x1630] sm:$0xff] }
 0xbe1   :  { %8372 = vmatprep.subr.bf16.mxu0 %v8371_v42  ;;  %v4763_v2 = vld [vmem:[#allocation2 + $0x12e8] sm:$0xff]  ;;  %v8389_v42 = vpack.c.bf16 %v4748_v8, %v4740_v59  ;;  %v8157_v59 = vpack.c.bf16 %v4810_v50, %v4802_v54  ;;  %v4885_v54 = vld [vmem:[#allocation2 + $0x16b8] sm:$0xff] }
 0xbe2   :  { %5906 = vmatmul.mubr.f32.vlgmr.msra.gmra.mrb[114].mxu1 %v10508_v22  ;;  %v8143_v1 = vpack.c.bf16 %v4763_v2, %v4755_v15  ;;  %v4818_v15 = vld [vmem:[#allocation2 + $0x14a0] sm:$0xff]  ;;  %v4893_v50 = vld [vmem:[#allocation2 + $0x16f8] sm:$0xff] }
 0xbe3   :  { %8126 = vmatpush1.bf16.msra.mxu1 %v8125_v13  ;;  %6190 = vmatmul.mubr.f32.vlgmr.msra.gmra.mrb[52].mxu0 %v10508_v22  ;;  %v8133_v22 = vpack.c.bf16 %v4714_v62, %v4706_v46  ;;  %v4764_v13 = vld [vmem:[#allocation2 + $0x12f0] sm:$0xff]  ;;  %v4789_v46 = vld [vmem:[#allocation2 + $0x13b8] sm:$0xff]  ;;  %v4826_v2 = vld [vmem:[#allocation2 + $0x14e0] sm:$0xff]  ;;  %v8423_v25 = vpack.c.bf16 %v4893_v50, %v4885_v54 }
 0xbe4   :  { %8374 = vmatpush1.bf16.msra.mxu0 %v8373_v23  ;;  %8128 = vmatprep.subr.bf16.mxu1 %v8127_v19  ;;  %v4771_v23 = vld [vmem:[#allocation2 + $0x1328] sm:$0xff]  ;;  %v4797_v62 = vld [vmem:[#allocation2 + $0x13f8] sm:$0xff]  ;;  %v4948_v54 = vld [vmem:[#allocation2 + $0x18b0] sm:$0xff] }
 0xbe5   :  { %8376 = vmatprep.subr.bf16.mxu0 %v8375_v52  ;;  %5976 = vmatprep.mubr.f32.mxu1 %v10506_v24  ;;  %v4779_v19 = vld [vmem:[#allocation2 + $0x1368] sm:$0xff]  ;;  %v8393_v52 = vpack.c.bf16 %v4764_v13, %v4756_v47  ;;  %v8399_v11 = vpack.c.bf16 %v4797_v62, %v4789_v46  ;;  %v8161_v47 = vpack.c.bf16 %v4826_v2, %v4818_v15  ;;  %v4852_v46 = vld [vmem:[#allocation2 + $0x15b0] sm:$0xff]  ;;  %v4901_v15 = vld [vmem:[#allocation2 + $0x1738] sm:$0xff] }
 0xbe6   :  { %6260 = vmatprep.mubr.f32.mxu0 %v10506_v24  ;;  %v8385_v24 = vpack.c.bf16 %v4732_v6, %v4724_v43  ;;  %v8147_v56 = vpack.c.bf16 %v4779_v19, %v4771_v23  ;;  %v8153_v43 = vpack.c.bf16 %v4794_v53, %v4786_v61  ;;  %v4834_v23 = vld [vmem:[#allocation2 + $0x1520] sm:$0xff]  ;;  %v8415_v62 = vpack.c.bf16 %v4861_v35, %v4853_v40  ;;  %v4869_v61 = vld [vmem:[#allocation2 + $0x1638] sm:$0xff]  ;;  %v4916_v40 = vld [vmem:[#allocation2 + $0x17b0] sm:$0xff] }
 0xbe7   :  { %8130 = vmatpush1.bf16.msra.mxu1 %v8129_v0  ;;  %v4780_v0 = vld [vmem:[#allocation2 + $0x1370] sm:$0xff]  ;;  %v4842_v19 = vld [vmem:[#allocation2 + $0x1560] sm:$0xff]  ;;  %v4877_v53 = vld [vmem:[#allocation2 + $0x1678] sm:$0xff] }
 0xbe8   :  { %8378 = vmatpush1.bf16.msra.mxu0 %v8377_v37  ;;  %8132 = vmatprep.subr.bf16.mxu1 %v8131_v44  ;;  %v4787_v37 = vld [vmem:[#allocation2 + $0x13a8] sm:$0xff]  ;;  %v8419_v30 = vpack.c.bf16 %v4877_v53, %v4869_v61  ;;  %v4909_v2 = vld [vmem:[#allocation2 + $0x1778] sm:$0xff]  ;;  %v4932_v61 = vld [vmem:[#allocation2 + $0x1830] sm:$0xff] }
 0xbe9   :  { %8380 = vmatprep.subr.bf16.mxu0 %v8379_v17  ;;  %v4795_v44 = vld [vmem:[#allocation2 + $0x13e8] sm:$0xff]  ;;  %v8397_v17 = vpack.c.bf16 %v4780_v0, %v4772_v60  ;;  %v8165_v60 = vpack.c.bf16 %v4842_v19, %v4834_v23  ;;  %v8427_v16 = vpack.c.bf16 %v4909_v2, %v4901_v15  ;;  %v4917_v23 = vld [vmem:[#allocation2 + $0x17b8] sm:$0xff]  ;;  %v4964_v15 = vld [vmem:[#allocation2 + $0x1930] sm:$0xff] }
 0xbea   :  { %v8151_v48 = vpack.c.bf16 %v4795_v44, %v4787_v37  ;;  %v4850_v37 = vld [vmem:[#allocation2 + $0x15a0] sm:$0xff]  ;;  %v4925_v19 = vld [vmem:[#allocation2 + $0x17f8] sm:$0xff] }
 0xbeb   :  { %8134 = vmatpush1.bf16.msra.mxu1 %v8133_v22  ;;  %v4796_v22 = vld [vmem:[#allocation2 + $0x13f0] sm:$0xff]  ;;  %v4858_v44 = vld [vmem:[#allocation2 + $0x15e0] sm:$0xff]  ;;  %v8431_v35 = vpack.c.bf16 %v4925_v19, %v4917_v23 }
 0xbec   :  { %8382 = vmatpush1.bf16.msra.mxu0 %v8381_v63  ;;  %8136 = vmatprep.subr.bf16.mxu1 %v8135_v36  ;;  %v4803_v63 = vld [vmem:[#allocation2 + $0x1428] sm:$0xff]  ;;  %v4988_v19 = vld [vmem:[#allocation2 + $0x19f0] sm:$0xff] }
 0xbed   :  { %8384 = vmatprep.subr.bf16.mxu0 %v8383_v14  ;;  %v4811_v36 = vld [vmem:[#allocation2 + $0x1468] sm:$0xff]  ;;  %v8401_v14 = vpack.c.bf16 %v4796_v22, %v4788_v7  ;;  %v8169_v7 = vpack.c.bf16 %v4858_v44, %v4850_v37  ;;  %v4933_v37 = vld [vmem:[#allocation2 + $0x1838] sm:$0xff] }
 0xbee   :  { %v8155_v6 = vpack.c.bf16 %v4811_v36, %v4803_v63  ;;  %v4866_v63 = vld [vmem:[#allocation2 + $0x1620] sm:$0xff]  ;;  %v4941_v44 = vld [vmem:[#allocation2 + $0x1878] sm:$0xff] }
 0xbef   :  { %8138 = vmatpush1.bf16.msra.mxu1 %v8137_v20  ;;  %v4812_v20 = vld [vmem:[#allocation2 + $0x1470] sm:$0xff]  ;;  %v4874_v36 = vld [vmem:[#allocation2 + $0x1660] sm:$0xff]  ;;  %v8435_v53 = vpack.c.bf16 %v4941_v44, %v4933_v37  ;;  %v5011_v44 = vld [vmem:[#allocation2 + $0x1aa8] sm:$0xff] }
 0xbf0   :  { %8386 = vmatpush1.bf16.msra.mxu0 %v8385_v24  ;;  %8140 = vmatprep.subr.bf16.mxu1 %v8139_v34  ;;  %v4819_v24 = vld [vmem:[#allocation2 + $0x14a8] sm:$0xff]  ;;  %v5004_v37 = vld [vmem:[#allocation2 + $0x1a70] sm:$0xff] }
 0xbf1   :  { %8388 = vmatprep.subr.bf16.mxu0 %v8387_v45  ;;  %v4827_v34 = vld [vmem:[#allocation2 + $0x14e8] sm:$0xff]  ;;  %v8405_v45 = vpack.c.bf16 %v4812_v20, %v4804_v58  ;;  %v8173_v58 = vpack.c.bf16 %v4874_v36, %v4866_v63  ;;  %v4949_v63 = vld [vmem:[#allocation2 + $0x18b8] sm:$0xff] }
 0xbf2   :  { %v8159_v8 = vpack.c.bf16 %v4827_v34, %v4819_v24  ;;  %v4882_v24 = vld [vmem:[#allocation2 + $0x16a0] sm:$0xff]  ;;  %v4957_v36 = vld [vmem:[#allocation2 + $0x18f8] sm:$0xff] }
 0xbf3   :  { %8142 = vmatpush1.bf16.msra.mxu1 %v8141_v12  ;;  %v4828_v12 = vld [vmem:[#allocation2 + $0x14f0] sm:$0xff]  ;;  %v4890_v34 = vld [vmem:[#allocation2 + $0x16e0] sm:$0xff]  ;;  %v8439_v50 = vpack.c.bf16 %v4957_v36, %v4949_v63 }
 0xbf4   :  { %8390 = vmatpush1.bf16.msra.mxu0 %v8389_v42  ;;  %8144 = vmatprep.subr.bf16.mxu1 %v8143_v1  ;;  %v4835_v42 = vld [vmem:[#allocation2 + $0x1528] sm:$0xff] }
 0xbf5   :  { %8392 = vmatprep.subr.bf16.mxu0 %v8391_v28  ;;  %v4843_v1 = vld [vmem:[#allocation2 + $0x1568] sm:$0xff]  ;;  %v8409_v28 = vpack.c.bf16 %v4828_v12, %v4820_v32  ;;  %v8177_v32 = vpack.c.bf16 %v4890_v34, %v4882_v24  ;;  %v4965_v24 = vld [vmem:[#allocation2 + $0x1938] sm:$0xff] }
 0xbf6   :  { %v8163_v13 = vpack.c.bf16 %v4843_v1, %v4835_v42  ;;  %v4898_v42 = vld [vmem:[#allocation2 + $0x1720] sm:$0xff]  ;;  %v4973_v34 = vld [vmem:[#allocation2 + $0x1978] sm:$0xff] }
 0xbf7   :  { %8146 = vmatpush1.bf16.msra.mxu1 %v8145_v39  ;;  %v4844_v39 = vld [vmem:[#allocation2 + $0x1570] sm:$0xff]  ;;  %v4906_v1 = vld [vmem:[#allocation2 + $0x1760] sm:$0xff]  ;;  %v8443_v2 = vpack.c.bf16 %v4973_v34, %v4965_v24 }
 0xbf8   :  { %8394 = vmatpush1.bf16.msra.mxu0 %v8393_v52  ;;  %8148 = vmatprep.subr.bf16.mxu1 %v8147_v56  ;;  %v4851_v52 = vld [vmem:[#allocation2 + $0x15a8] sm:$0xff]  ;;  %v5028_v24 = vld [vmem:[#allocation2 + $0x1b30] sm:$0xff] }
 0xbf9   :  { %8396 = vmatprep.subr.bf16.mxu0 %v8395_v38  ;;  %v4859_v56 = vld [vmem:[#allocation2 + $0x15e8] sm:$0xff]  ;;  %v8413_v38 = vpack.c.bf16 %v4844_v39, %v4836_v33  ;;  %v8181_v33 = vpack.c.bf16 %v4906_v1, %v4898_v42  ;;  %v4981_v42 = vld [vmem:[#allocation2 + $0x19b8] sm:$0xff]  ;;  %v5036_v34 = vld [vmem:[#allocation2 + $0x1b70] sm:$0xff] }
 0xbfa   :  { %v8167_v0 = vpack.c.bf16 %v4859_v56, %v4851_v52  ;;  %v4914_v52 = vld [vmem:[#allocation2 + $0x17a0] sm:$0xff]  ;;  %v4989_v1 = vld [vmem:[#allocation2 + $0x19f8] sm:$0xff] }
 0xbfb   :  { %8150 = vmatpush1.bf16.msra.mxu1 %v8149_v49  ;;  %v4860_v49 = vld [vmem:[#allocation2 + $0x15f0] sm:$0xff]  ;;  %v4922_v56 = vld [vmem:[#allocation2 + $0x17e0] sm:$0xff]  ;;  %v8447_v23 = vpack.c.bf16 %v4989_v1, %v4981_v42  ;;  %v8461_v42 = vpack.c.bf16 %v5036_v34, %v5028_v24  ;;  %v5045_v1 = vld [vmem:[#allocation2 + $0x1bb8] sm:$0xff] }
 0xbfc   :  { %8398 = vmatpush1.bf16.msra.mxu0 %v8397_v17  ;;  %8152 = vmatprep.subr.bf16.mxu1 %v8151_v48  ;;  %v4867_v17 = vld [vmem:[#allocation2 + $0x1628] sm:$0xff]  ;;  %v5084_v34 = vld [vmem:[#allocation2 + $0x1cf0] sm:$0xff] }
 0xbfd   :  { %8400 = vmatprep.subr.bf16.mxu0 %v8399_v11  ;;  %v4875_v48 = vld [vmem:[#allocation2 + $0x1668] sm:$0xff]  ;;  %v8417_v11 = vpack.c.bf16 %v4860_v49, %v4852_v46  ;;  %v8185_v46 = vpack.c.bf16 %v4922_v56, %v4914_v52  ;;  %v5005_v52 = vld [vmem:[#allocation2 + $0x1a78] sm:$0xff] }
 0xbfe   :  { %v8171_v22 = vpack.c.bf16 %v4875_v48, %v4867_v17  ;;  %v4930_v17 = vld [vmem:[#allocation2 + $0x1820] sm:$0xff] }
 0xbff   :  { %8154 = vmatpush1.bf16.msra.mxu1 %v8153_v43  ;;  %v4876_v43 = vld [vmem:[#allocation2 + $0x1670] sm:$0xff]  ;;  %v4938_v48 = vld [vmem:[#allocation2 + $0x1860] sm:$0xff] }
 0xc00   :  { %8402 = vmatpush1.bf16.msra.mxu0 %v8401_v14  ;;  %8156 = vmatprep.subr.bf16.mxu1 %v8155_v6  ;;  %v4883_v14 = vld [vmem:[#allocation2 + $0x16a8] sm:$0xff] }
 0xc01   :  { %8404 = vmatprep.subr.bf16.mxu0 %v8403_v55  ;;  %v4891_v6 = vld [vmem:[#allocation2 + $0x16e8] sm:$0xff]  ;;  %v8421_v55 = vpack.c.bf16 %v4876_v43, %v4868_v27  ;;  %v8189_v27 = vpack.c.bf16 %v4938_v48, %v4930_v17  ;;  %v5021_v17 = vld [vmem:[#allocation2 + $0x1af8] sm:$0xff] }
 0xc02   :  { %v8175_v20 = vpack.c.bf16 %v4891_v6, %v4883_v14  ;;  %v4946_v14 = vld [vmem:[#allocation2 + $0x18a0] sm:$0xff] }
 0xc03   :  { %8158 = vmatpush1.bf16.msra.mxu1 %v8157_v59  ;;  %v4892_v59 = vld [vmem:[#allocation2 + $0x16f0] sm:$0xff]  ;;  %v4954_v6 = vld [vmem:[#allocation2 + $0x18e0] sm:$0xff] }
 0xc04   :  { %8406 = vmatpush1.bf16.msra.mxu0 %v8405_v45  ;;  %8160 = vmatprep.subr.bf16.mxu1 %v8159_v8  ;;  %v4899_v45 = vld [vmem:[#allocation2 + $0x1728] sm:$0xff] }
 0xc05   :  { %8408 = vmatprep.subr.bf16.mxu0 %v8407_v31  ;;  %v4907_v8 = vld [vmem:[#allocation2 + $0x1768] sm:$0xff]  ;;  %v8425_v31 = vpack.c.bf16 %v4892_v59, %v4884_v57  ;;  %v8193_v57 = vpack.c.bf16 %v4954_v6, %v4946_v14 }
 0xc06   :  { %v8179_v12 = vpack.c.bf16 %v4907_v8, %v4899_v45  ;;  %v4962_v45 = vld [vmem:[#allocation2 + $0x1920] sm:$0xff] }
 0xc07   :  { %8162 = vmatpush1.bf16.msra.mxu1 %v8161_v47  ;;  %v4908_v47 = vld [vmem:[#allocation2 + $0x1770] sm:$0xff]  ;;  %v4970_v8 = vld [vmem:[#allocation2 + $0x1960] sm:$0xff] }
 0xc08   :  { %8410 = vmatpush1.bf16.msra.mxu0 %v8409_v28  ;;  %8164 = vmatprep.subr.bf16.mxu1 %v8163_v13  ;;  %v4915_v28 = vld [vmem:[#allocation2 + $0x17a8] sm:$0xff] }
 0xc09   :  { %8412 = vmatprep.subr.bf16.mxu0 %v8411_v51  ;;  %v4923_v13 = vld [vmem:[#allocation2 + $0x17e8] sm:$0xff]  ;;  %v8429_v51 = vpack.c.bf16 %v4908_v47, %v4900_v21  ;;  %v4978_v47 = vld [vmem:[#allocation2 + $0x19a0] sm:$0xff] }
 0xc0a   :  { %v8183_v39 = vpack.c.bf16 %v4923_v13, %v4915_v28  ;;  %v4986_v28 = vld [vmem:[#allocation2 + $0x19e0] sm:$0xff]  ;;  %v4980_v13 = vld [vmem:[#allocation2 + $0x19b0] sm:$0xff] }
 0xc0b   :  { %8166 = vmatpush1.bf16.msra.mxu1 %v8165_v60  ;;  %v4924_v60 = vld [vmem:[#allocation2 + $0x17f0] sm:$0xff]  ;;  %v8201_v56 = vpack.c.bf16 %v4986_v28, %v4978_v47  ;;  %v5042_v28 = vld [vmem:[#allocation2 + $0x1ba0] sm:$0xff] }
 0xc0c   :  { %8414 = vmatpush1.bf16.msra.mxu0 %v8413_v38  ;;  %8168 = vmatprep.subr.bf16.mxu1 %v8167_v0  ;;  %v4931_v38 = vld [vmem:[#allocation2 + $0x1828] sm:$0xff] }
 0xc0d   :  { %8416 = vmatprep.subr.bf16.mxu0 %v8415_v62  ;;  %v4939_v0 = vld [vmem:[#allocation2 + $0x1868] sm:$0xff]  ;;  %v8433_v62 = vpack.c.bf16 %v4924_v60, %v4916_v40  ;;  %v5002_v60 = vld [vmem:[#allocation2 + $0x1a60] sm:$0xff] }
 0xc0e   :  { %v8187_v49 = vpack.c.bf16 %v4939_v0, %v4931_v38  ;;  %v4996_v38 = vld [vmem:[#allocation2 + $0x1a30] sm:$0xff] }
 0xc0f   :  { %8170 = vmatpush1.bf16.msra.mxu1 %v8169_v7  ;;  %v4940_v7 = vld [vmem:[#allocation2 + $0x1870] sm:$0xff] }
 0xc10   :  { %8418 = vmatpush1.bf16.msra.mxu0 %v8417_v11  ;;  %8172 = vmatprep.subr.bf16.mxu1 %v8171_v22  ;;  %v4947_v11 = vld [vmem:[#allocation2 + $0x18a8] sm:$0xff] }
 0xc11   :  { %8420 = vmatprep.subr.bf16.mxu0 %v8419_v30  ;;  %v4955_v22 = vld [vmem:[#allocation2 + $0x18e8] sm:$0xff]  ;;  %v8437_v30 = vpack.c.bf16 %v4940_v7, %v4932_v61  ;;  %v8453_v61 = vpack.c.bf16 %v5004_v37, %v4996_v38  ;;  %v5010_v7 = vld [vmem:[#allocation2 + $0x1aa0] sm:$0xff]  ;;  %v5061_v38 = vld [vmem:[#allocation2 + $0x1c38] sm:$0xff] }
 0xc12   :  { %v8191_v43 = vpack.c.bf16 %v4955_v22, %v4947_v11  ;;  %v5018_v11 = vld [vmem:[#allocation2 + $0x1ae0] sm:$0xff]  ;;  %v5012_v22 = vld [vmem:[#allocation2 + $0x1ab0] sm:$0xff] }
 0xc13   :  { %8174 = vmatpush1.bf16.msra.mxu1 %v8173_v58  ;;  %v4956_v58 = vld [vmem:[#allocation2 + $0x18f0] sm:$0xff] }
 0xc14   :  { %8422 = vmatpush1.bf16.msra.mxu0 %v8421_v55  ;;  %8176 = vmatprep.subr.bf16.mxu1 %v8175_v20  ;;  %v4963_v55 = vld [vmem:[#allocation2 + $0x1928] sm:$0xff] }
 0xc15   :  { %8424 = vmatprep.subr.bf16.mxu0 %v8423_v25  ;;  %v4971_v20 = vld [vmem:[#allocation2 + $0x1968] sm:$0xff]  ;;  %v8441_v25 = vpack.c.bf16 %v4956_v58, %v4948_v54  ;;  %v5029_v54 = vld [vmem:[#allocation2 + $0x1b38] sm:$0xff]  ;;  %v5026_v58 = vld [vmem:[#allocation2 + $0x1b20] sm:$0xff] }
 0xc16   :  { %v8195_v59 = vpack.c.bf16 %v4971_v20, %v4963_v55  ;;  %v5034_v20 = vld [vmem:[#allocation2 + $0x1b60] sm:$0xff] }
 0xc17   :  { %8178 = vmatpush1.bf16.msra.mxu1 %v8177_v32  ;;  %v4972_v32 = vld [vmem:[#allocation2 + $0x1970] sm:$0xff] }
 0xc18   :  { %8426 = vmatpush1.bf16.msra.mxu0 %v8425_v31  ;;  %8180 = vmatprep.subr.bf16.mxu1 %v8179_v12  ;;  %v4979_v31 = vld [vmem:[#allocation2 + $0x19a8] sm:$0xff]  ;;  %v8445_v21 = vpack.c.bf16 %v4972_v32, %v4964_v15 }
 0xc19   :  { %8428 = vmatprep.subr.bf16.mxu0 %v8427_v16  ;;  %v4987_v12 = vld [vmem:[#allocation2 + $0x19e8] sm:$0xff] }
 0xc1a   :  { %v8199_v16 = vpack.c.bf16 %v4987_v12, %v4979_v31 }
 0xc1b   :  { %8182 = vmatpush1.bf16.msra.mxu1 %v8181_v33  ;;  %v4995_v33 = vld [vmem:[#allocation2 + $0x1a28] sm:$0xff] }
 0xc1c   :  { %8430 = vmatpush1.bf16.msra.mxu0 %v8429_v51  ;;  %8184 = vmatprep.subr.bf16.mxu1 %v8183_v39  ;;  %v5003_v51 = vld [vmem:[#allocation2 + $0x1a68] sm:$0xff]  ;;  %v4997_v39 = vld [vmem:[#allocation2 + $0x1a38] sm:$0xff] }
 0xc1d   :  { %8432 = vmatprep.subr.bf16.mxu0 %v8431_v35  ;;  %v8203_v40 = vpack.c.bf16 %v5003_v51, %v4995_v33  ;;  %v4994_v35 = vld [vmem:[#allocation2 + $0x1a20] sm:$0xff]  ;;  %v8451_v0 = vpack.c.bf16 %v5005_v52, %v4997_v39 }
 0xc1e   :  { %v8205_v48 = vpack.c.bf16 %v5002_v60, %v4994_v35 }
 0xc1f   :  { %8186 = vmatpush1.bf16.msra.mxu1 %v8185_v46  ;;  %v5019_v46 = vld [vmem:[#allocation2 + $0x1ae8] sm:$0xff] }
 0xc20   :  { %8434 = vmatpush1.bf16.msra.mxu0 %v8433_v62  ;;  %8188 = vmatprep.subr.bf16.mxu1 %v8187_v49  ;;  %v10552_v62 = vld [vmem:[#allocation19] sm:$0xff] }
 0xc21   :  { %8436 = vmatprep.subr.bf16.mxu0 %v8435_v53  ;;  %v5013_v49 = vld [vmem:[#allocation2 + $0x1ab8] sm:$0xff]  ;;  %v8207_v53 = vpack.c.bf16 %v5019_v46, %v5011_v44  ;;  %v5163_v63 = vrot.slane %v10552_v62, %v9658_v26  ;;  %v5171_v14 = vrot.slane %v10552_v62, %v1381_v9  ;;  %v5167_v6 = vrot.slane %v10552_v62, %v9662_v18 }
 0xc22   :  { %5977 = vmatmul.mubr.f32.vlgmr.msra.gmra.mrb[114].mxu1 %v10499_v10  ;;  %v8455_v36 = vpack.c.bf16 %v5021_v17, %v5013_v49  ;;  %v5175_v55 = vrot.slane %v10552_v62, %v1385_v4  ;;  %v8209_v26 = vpack.c.bf16 %v5018_v11, %v5010_v7  ;;  %v8213_v4 = vpack.c.bf16 %v5034_v20, %v5026_v58  ;;  %v5060_v7 = vld [vmem:[#allocation2 + $0x1c30] sm:$0xff]  ;;  %v5074_v58 = vld [vmem:[#allocation2 + $0x1ca0] sm:$0xff] }
 0xc23   :  { %8190 = vmatpush1.bf16.msra.mxu1 %v8189_v27  ;;  %6261 = vmatmul.mubr.f32.vlgmr.msra.gmra.mrb[52].mxu0 %v10499_v10  ;;  %v8197_v10 = vpack.c.bf16 %v4970_v8, %v4962_v45  ;;  %v5020_v27 = vld [vmem:[#allocation2 + $0x1af0] sm:$0xff]  ;;  %v5051_v45 = vld [vmem:[#allocation2 + $0x1be8] sm:$0xff] }
 0xc24   :  { %8438 = vmatpush1.bf16.msra.mxu0 %v8437_v30  ;;  %8192 = vmatprep.subr.bf16.mxu1 %v8191_v43  ;;  %v5027_v30 = vld [vmem:[#allocation2 + $0x1b28] sm:$0xff] }
 0xc25   :  { %8440 = vmatprep.subr.bf16.mxu0 %v8439_v50  ;;  %6570 = vmatprep.mubr.msk.f32.mxu1 %vm1391_vm8, %v10513_v41  ;;  %v5035_v43 = vld [vmem:[#allocation2 + $0x1b68] sm:$0xff]  ;;  %v5037_v50 = vld [vmem:[#allocation2 + $0x1b78] sm:$0xff] }
 0xc26   :  { %6571 = vmatprep.mubr.msk.f32.mxu0 %vm1391_vm8, %v10513_v41  ;;  %v8449_v41 = vpack.c.bf16 %v4988_v19, %v4980_v13  ;;  %v8211_v9 = vpack.c.bf16 %v5035_v43, %v5027_v30  ;;  %v5050_v13 = vld [vmem:[#allocation2 + $0x1be0] sm:$0xff]  ;;  %v5077_v43 = vld [vmem:[#allocation2 + $0x1cb8] sm:$0xff] }
 0xc27   :  { %8194 = vmatpush1.bf16.msra.mxu1 %v8193_v57  ;;  %v8217_v46 = vpack.c.bf16 %v5050_v13, %v5042_v28  ;;  %v5106_v28 = vld [vmem:[#allocation2 + $0x1da0] sm:$0xff] }
 0xc28   :  { %8442 = vmatpush1.bf16.msra.mxu0 %v8441_v25  ;;  %8196 = vmatprep.subr.bf16.mxu1 %v8195_v59  ;;  %v8457_v25 = vpack.c.bf16 %v5020_v27, %v5012_v22  ;;  %v5043_v59 = vld [vmem:[#allocation2 + $0x1ba8] sm:$0xff]  ;;  %v5114_v13 = vld [vmem:[#allocation2 + $0x1de0] sm:$0xff] }
 0xc29   :  { %8444 = vmatprep.subr.bf16.mxu0 %v8443_v2  ;;  %v8459_v2 = vpack.c.bf16 %v5037_v50, %v5029_v54  ;;  %v8215_v47 = vpack.c.bf16 %v5051_v45, %v5043_v59  ;;  %v5083_v27 = vld [vmem:[#allocation2 + $0x1ce8] sm:$0xff]  ;;  %v5101_v59 = vld [vmem:[#allocation2 + $0x1d78] sm:$0xff] }
 0xc2b   :  { %8198 = vmatpush1.bf16.msra.mxu1 %v8197_v10  ;;  %v5053_v10 = vld [vmem:[#allocation2 + $0x1bf8] sm:$0xff] }
 0xc2c   :  { %8446 = vmatpush1.bf16.msra.mxu0 %v8445_v21  ;;  %8200 = vmatprep.subr.bf16.mxu1 %v8199_v16  ;;  %v8463_v52 = vpack.c.bf16 %v5053_v10, %v5045_v1  ;;  %v5109_v1 = vld [vmem:[#allocation2 + $0x1db8] sm:$0xff] }
 0xc2d   :  { %8448 = vmatprep.subr.bf16.mxu0 %v8447_v23  ;;  %v5044_v23 = vld [vmem:[#allocation2 + $0x1bb0] sm:$0xff]  ;;  %v5117_v10 = vld [vmem:[#allocation2 + $0x1df8] sm:$0xff] }
 0xc2f   :  { %8202 = vmatpush1.bf16.msra.mxu1 %v8201_v56  ;;  %v5052_v56 = vld [vmem:[#allocation2 + $0x1bf0] sm:$0xff] }
 0xc30   :  { %8450 = vmatpush1.bf16.msra.mxu0 %v8449_v41  ;;  %8204 = vmatprep.subr.bf16.mxu1 %v8203_v40  ;;  %v5059_v41 = vld [vmem:[#allocation2 + $0x1c28] sm:$0xff]  ;;  %v8465_v17 = vpack.c.bf16 %v5052_v56, %v5044_v23  ;;  %v5108_v23 = vld [vmem:[#allocation2 + $0x1db0] sm:$0xff]  ;;  %v5133_v56 = vld [vmem:[#allocation2 + $0x1e78] sm:$0xff] }
 0xc31   :  { %8452 = vmatprep.subr.bf16.mxu0 %v8451_v0  ;;  %v5067_v40 = vld [vmem:[#allocation2 + $0x1c68] sm:$0xff]  ;;  %v5069_v0 = vld [vmem:[#allocation2 + $0x1c78] sm:$0xff] }
 0xc32   :  { %v8467_v22 = vpack.c.bf16 %v5069_v0, %v5061_v38  ;;  %v5130_v38 = vld [vmem:[#allocation2 + $0x1e60] sm:$0xff]  ;;  %v5124_v0 = vld [vmem:[#allocation2 + $0x1e30] sm:$0xff] }
 0xc33   :  { %8206 = vmatpush1.bf16.msra.mxu1 %v8205_v48  ;;  %v8219_v48 = vpack.c.bf16 %v5067_v40, %v5059_v41  ;;  %v8233_v41 = vpack.c.bf16 %v5114_v13, %v5106_v28 }
 0xc34   :  { %8454 = vmatpush1.bf16.msra.mxu0 %v8453_v61  ;;  %v5481_v57 = vpop.f32.mrb[112].mxu1  ;;  %8208 = vmatprep.subr.bf16.mxu1 %v8207_v53  ;;  %v5058_v61 = vld [vmem:[#allocation2 + $0x1c20] sm:$0xff] }
 0xc35   :  { %v8523_v18 = vadd.f32 %v5481_v57, %v5163_v63  ;;  %v5765_v8 = vpop.f32.mrb[50].mxu0  ;;  %v5483_v15 = vpop.f32.mrb[113].mxu1  ;;  %8456 = vmatprep.subr.bf16.mxu0 %v8455_v36  ;;  %v5066_v53 = vld [vmem:[#allocation2 + $0x1c60] sm:$0xff]  ;;  %v5068_v63 = vld [vmem:[#allocation2 + $0x1c70] sm:$0xff]  ;;  %v5075_v36 = vld [vmem:[#allocation2 + $0x1ca8] sm:$0xff] }
 0xc36   :  { %v8525_v32 = vadd.f32 %v5765_v8, %v5171_v14  ;;  %v8524_v31 = vadd.f32 %v5483_v15, %v5167_v6  ;;  %v5767_v12 = vpop.f32.mrb[51].mxu0  ;;  %v5085_v14 = vld [vmem:[#allocation2 + $0x1cf8] sm:$0xff]  ;;  %v8221_v6 = vpack.c.bf16 %v5066_v53, %v5058_v61  ;;  %v8469_v54 = vpack.c.bf16 %v5068_v63, %v5060_v7  ;;  %v5091_v57 = vld [vmem:[#allocation2 + $0x1d28] sm:$0xff]  ;;  %v5090_v15 = vld [vmem:[#allocation2 + $0x1d20] sm:$0xff] }
 0xc37   :  { %vm6338_vm8 = vcmp.gt.f32.partialorder %v8523_v18, 0.0  ;;  %v6346_v21 = vmul.f32 0.01, %v8523_v18  ;;  %v8526_v16 = vadd.f32 %v5767_v12, %v5175_v55  ;;  %8210 = vmatpush1.bf16.msra.mxu1 %v8209_v26  ;;  %v8223_v50 = vpack.c.bf16 %v5083_v27, %v5075_v36  ;;  %v5082_v55 = vld [vmem:[#allocation2 + $0x1ce0] sm:$0xff]  ;;  %v5076_v26 = vld [vmem:[#allocation2 + $0x1cb0] sm:$0xff] }
 0xc38   :  { %vm6340_vm12 = vcmp.gt.f32.partialorder %v8525_v32, 0.0  ;;  %v6348_v19 = vmul.f32 0.01, %v8525_v32  ;;  %vm6339_vm5 = vcmp.gt.f32.partialorder %v8524_v31, 0.0  ;;  %v6347_v33 = vmul.f32 0.01, %v8524_v31  ;;  %8458 = vmatpush1.bf16.msra.mxu0 %v8457_v25  ;;  %8212 = vmatprep.subr.bf16.mxu1 %v8211_v9 }
 0xc39   :  { %v6354_v51 = vsel %vm6338_vm8, %v8523_v18, %v6346_v21  ;;  %vm6341_vm14 = vcmp.gt.f32.partialorder %v8526_v16, 0.0  ;;  %v6349_v39 = vmul.f32 0.01, %v8526_v16  ;;  %8460 = vmatprep.subr.bf16.mxu0 %v8459_v2  ;;  %v8471_v24 = vpack.c.bf16 %v5085_v14, %v5077_v43  ;;  %v5099_v25 = vld [vmem:[#allocation2 + $0x1d68] sm:$0xff]  ;;  %v5093_v9 = vld [vmem:[#allocation2 + $0x1d38] sm:$0xff]  ;;  %v5098_v2 = vld [vmem:[#allocation2 + $0x1d60] sm:$0xff] }
 0xc3a   :  { %v6356_v35 = vsel %vm6340_vm12, %v8525_v32, %v6348_v19  ;;  %v6355_v60 = vsel %vm6339_vm5, %v8524_v31, %v6347_v33  ;;  %v8225_v45 = vpack.c.bf16 %v5082_v55, %v5074_v58  ;;  %v8473_v18 = vpack.c.bf16 %v5084_v34, %v5076_v26  ;;  %v5092_v32 = vld [vmem:[#allocation2 + $0x1d30] sm:$0xff]  ;;  %v5155_v14 = vld [vmem:[#allocation2 + $0x1f28] sm:$0xff] }
 0xc3b   :  { %v6370_v37 = vcombine.low %v6354_v51, %v6355_v60  ;;  %v6357_v44 = vsel %vm6341_vm14, %v8526_v16, %v6349_v39  ;;  %8214 = vmatpush1.bf16.msra.mxu1 %v8213_v4  ;;  %v8227_v8 = vpack.c.bf16 %v5099_v25, %v5091_v57  ;;  %v8475_v31 = vpack.c.bf16 %v5101_v59, %v5093_v9  ;;  %v5100_v12 = vld [vmem:[#allocation2 + $0x1d70] sm:$0xff]  ;;  %v5107_v4 = vld [vmem:[#allocation2 + $0x1da8] sm:$0xff]  ;;  %v5122_v60 = vld [vmem:[#allocation2 + $0x1e20] sm:$0xff] }
 0xc3c   :  { %v6371_v49 = vcombine.low %v6356_v35, %v6357_v44  ;;  %8462 = vmatpush1.bf16.msra.mxu0 %v8461_v42  ;;  %8216 = vmatprep.subr.bf16.mxu1 %v8215_v47  ;;  %v5115_v42 = vld [vmem:[#allocation2 + $0x1de8] sm:$0xff]  ;;  %v8229_v21 = vpack.c.bf16 %v5098_v2, %v5090_v15  ;;  %v8477_v16 = vpack.c.bf16 %v5100_v12, %v5092_v32  ;;  %v5116_v33 = vld [vmem:[#allocation2 + $0x1df0] sm:$0xff]  ;;  %v5178_v58 = vsub.s32 4, %v9346_v3 }
 0xc3d   :  { %v6378_v11 = vrot.slane %v6370_v37, %v9349_v5  ;;  %8464 = vmatprep.subr.bf16.mxu0 %v8463_v52  ;;  %v8231_v47 = vpack.c.bf16 %v5115_v42, %v5107_v4  ;;  %v8479_v19 = vpack.c.bf16 %v5117_v10, %v5109_v1  ;;  %v5123_v51 = vld [vmem:[#allocation2 + $0x1e28] sm:$0xff]  ;;  %v5125_v52 = vld [vmem:[#allocation2 + $0x1e38] sm:$0xff]  ;;  %v8481_v40 = vpack.c.bf16 %v5116_v33, %v5108_v23  ;;  %v5132_v44 = vld [vmem:[#allocation2 + $0x1e70] sm:$0xff] }
 0xc3e   :  { %v6385_v30 = vrot.slane %v6371_v49, %v9349_v5  ;;  %v5131_v39 = vld [vmem:[#allocation2 + $0x1e68] sm:$0xff]  ;;  %v8483_v37 = vpack.c.bf16 %v5133_v56, %v5125_v52  ;;  %v8237_v61 = vpack.c.bf16 %v5130_v38, %v5122_v60  ;;  %v8485_v53 = vpack.c.bf16 %v5132_v44, %v5124_v0  ;;  %v5140_v36 = vld [vmem:[#allocation2 + $0x1eb0] sm:$0xff] }
 0xc3f   :  { %8218 = vmatpush1.bf16.msra.mxu1 %v8217_v46  ;;  %v8235_v35 = vpack.c.bf16 %v5131_v39, %v5123_v51  ;;  %v5139_v46 = vld [vmem:[#allocation2 + $0x1ea8] sm:$0xff]  ;;  %v5148_v27 = vld [vmem:[#allocation2 + $0x1ef0] sm:$0xff]  ;;  %v5186_v55 = vsub.s32 6, %v9346_v3  ;;  %v5182_v26 = vsub.s32 5, %v9346_v3 }
 0xc40   :  { %8466 = vmatpush1.bf16.msra.mxu0 %v8465_v17  ;;  %8220 = vmatprep.subr.bf16.mxu1 %v8219_v48  ;;  %v6386_v20 = vcombine.low %v6378_v11, %v6385_v30  ;;  %v5147_v49 = vld [vmem:[#allocation2 + $0x1ee8] sm:$0xff]  ;;  %v5141_v17 = vld [vmem:[#allocation2 + $0x1eb8] sm:$0xff]  ;;  %v5138_v11 = vld [vmem:[#allocation2 + $0x1ea0] sm:$0xff]  ;;  %v8489_v43 = vpack.c.bf16 %v5148_v27, %v5140_v36 }
 0xc41   :  { %8468 = vmatprep.subr.bf16.mxu0 %v8467_v22  ;;  %v5149_v48 = vld [vmem:[#allocation2 + $0x1ef8] sm:$0xff]  ;;  %v8239_v7 = vpack.c.bf16 %v5147_v49, %v5139_v46  ;;  %v5146_v22 = vld [vmem:[#allocation2 + $0x1ee0] sm:$0xff]  ;;  %v5187_v34 = vrot.slane %v10552_v62, %v5186_v55  ;;  %v5183_v57 = vrot.slane %v10552_v62, %v5182_v26 }
 0xc42   :  { %6406 = vst [vmem:[#allocation21] sm:$0xff] %v6386_v20  ;;  %v8487_v63 = vpack.c.bf16 %v5149_v48, %v5141_v17  ;;  %v8241_v30 = vpack.c.bf16 %v5146_v22, %v5138_v11  ;;  %v5190_v20 = vsub.s32 7, %v9346_v3 }
 0xc43   :  { %8222 = vmatpush1.bf16.msra.mxu1 %v8221_v6  ;;  %v5157_v6 = vld [vmem:[#allocation2 + $0x1f38] sm:$0xff] }
 0xc44   :  { %8470 = vmatpush1.bf16.msra.mxu0 %v8469_v54  ;;  %8224 = vmatprep.subr.bf16.mxu1 %v8223_v50  ;;  %v5154_v54 = vld [vmem:[#allocation2 + $0x1f20] sm:$0xff]  ;;  %v5156_v50 = vld [vmem:[#allocation2 + $0x1f30] sm:$0xff]  ;;  %v5191_v25 = vrot.slane %v10552_v62, %v5190_v20 }
 0xc45   :  { %8472 = vmatprep.subr.bf16.mxu0 %v8471_v24  ;;  %v5179_v24 = vrot.slane %v10552_v62, %v5178_v58 }
 0xc47   :  { %8226 = vmatpush1.bf16.msra.mxu1 %v8225_v45 }
 0xc48   :  { %8474 = vmatpush1.bf16.msra.mxu0 %v8473_v18  ;;  %8228 = vmatprep.subr.bf16.mxu1 %v8227_v8 }
 0xc49   :  { %8476 = vmatprep.subr.bf16.mxu0 %v8475_v31 }
 0xc4b   :  { %8230 = vmatpush1.bf16.msra.mxu1 %v8229_v21 }
 0xc4c   :  { %8478 = vmatpush1.bf16.msra.mxu0 %v8477_v16  ;;  %8232 = vmatprep.subr.bf16.mxu1 %v8231_v47 }
 0xc4d   :  { %8480 = vmatprep.subr.bf16.mxu0 %v8479_v19 }
 0xc4f   :  { %8234 = vmatpush1.bf16.msra.mxu1 %v8233_v41 }
 0xc50   :  { %8482 = vmatpush1.bf16.msra.mxu0 %v8481_v40  ;;  %8236 = vmatprep.subr.bf16.mxu1 %v8235_v35 }
 0xc51   :  { %8484 = vmatprep.subr.bf16.mxu0 %v8483_v37 }
 0xc53   :  { %8238 = vmatpush1.bf16.msra.mxu1 %v8237_v61 }
 0xc54   :  { %8486 = vmatpush1.bf16.msra.mxu0 %v8485_v53  ;;  %8240 = vmatprep.subr.bf16.mxu1 %v8239_v7 }
 0xc55   :  { %8488 = vmatprep.subr.bf16.mxu0 %v8487_v63 }
 0xc57   :  { %8242 = vmatpush1.bf16.msra.mxu1 %v8241_v30 }
 0xc58   :  { %8490 = vmatpush1.bf16.msra.mxu0 %v8489_v43  ;;  %6039 = vmatprep.subr.mxu1 %v5155_v14 }
 0xc59   :  { %6323 = vmatprep.subr.mxu0 %v5157_v6 }
 0xc5b   :  { %6040 = vmatpush1.msra.mxu1 %v5154_v54 }
 0xc5c   :  { %6324 = vmatpush1.msra.mxu0 %v5156_v50  ;;  %6048 = vmatmul.mubr.f32.vlgmr.msra.gmra.mrb[114].mxu1 %v10516_v29 }
 0xc5d   :  { %6332 = vmatmul.mubr.f32.vlgmr.msra.gmra.mrb[52].mxu0 %v10516_v29 }
 0xd2f   :  { %v6049_v9 = vpop.f32.mrb[114].mxu1 }
 0xd30   :  { %v8527_v59 = vadd.f32 %v6049_v9, %v5179_v24  ;;  %v6333_v45 = vpop.f32.mrb[52].mxu0  ;;  %v6051_v29 = vpop.f32.mrb[115].mxu1 }
 0xd31   :  { %v8529_v18 = vadd.f32 %v6333_v45, %v5187_v34  ;;  %v8528_v8 = vadd.f32 %v6051_v29, %v5183_v57  ;;  %v6335_v15 = vpop.f32.mrb[53].mxu0 }
 0xd32   :  { %vm6342_vm11 = vcmp.gt.f32.partialorder %v8527_v59, 0.0  ;;  %v6350_v2 = vmul.f32 0.01, %v8527_v59  ;;  %v8530_v32 = vadd.f32 %v6335_v15, %v5191_v25 }
 0xd33   :  { %vm6344_vm1 = vcmp.gt.f32.partialorder %v8529_v18, 0.0  ;;  %v6352_v3 = vmul.f32 0.01, %v8529_v18  ;;  %vm6343_vm15 = vcmp.gt.f32.partialorder %v8528_v8, 0.0  ;;  %v6351_v31 = vmul.f32 0.01, %v8528_v8 }
 0xd34   :  { %v6358_v12 = vsel %vm6342_vm11, %v8527_v59, %v6350_v2  ;;  %vm6345_vm4 = vcmp.gt.f32.partialorder %v8530_v32, 0.0  ;;  %v6353_v4 = vmul.f32 0.01, %v8530_v32 }
 0xd35   :  { %v6360_v62 = vsel %vm6344_vm1, %v8529_v18, %v6352_v3  ;;  %v6359_v42 = vsel %vm6343_vm15, %v8528_v8, %v6351_v31 }
 0xd36   :  { %v6387_v1 = vcombine.low %v6358_v12, %v6359_v42  ;;  %v6361_v10 = vsel %vm6345_vm4, %v8530_v32, %v6353_v4 }
 0xd37   :  { %v6388_v21 = vcombine.low %v6360_v62, %v6361_v10 }
 0xd38   :  { %v6395_v16 = vrot.slane %v6387_v1, %v9349_v5 }
 0xd39   :  { %v6402_v47 = vrot.slane %v6388_v21, %v9349_v5 }
 0xd3b   :  { %v6403_v28 = vcombine.low %v6395_v16, %v6402_v47 }
 0xd3d   :  { %6413 = vst.msk [vmem:[#allocation21 + $0x8] sm:$0xff] %vm6412_vm10, %v6403_v28 }
 0xd3e   :  { %9069 = shalt.err (!%p9066_p8)
}
 0xd3f   :  { %s9070_s10 = scalar_lea.hbm %s10608_s17, 256 }
 0xd40   :  { %p9071_p9 = scmp.ne.s32.totalorder %s10608_s17, %s9070_s10  ;;  %p9074_p10 = scmp.lt.u32.totalorder %s9070_s10, %s10608_s17 }
 0xd42   :  { %p9076_p11 = pnand %p9074_p10, %p9071_p9 }
 0xd44   :  { %9079 = shalt.err (!%p9076_p11)
}
 0xd45   :  { %6423 = dma.vmem_to_hbm [thread:$0]  %s6421_s22, 256, %s10608_s17, [#allocation6]  }
 0xd46   :  { %9094 = dma.done.wait [#allocation6], 256  }
 0xd47   :  { %9095 = vsyncadd [#allocation6], 4294967040 }
 0xd48   :  { %6427 = vsyncpa [#allocation5], 1 }
 0xd49   :  { %6428 = vsyncpa [#allocation8], 1 }
 0xd4a   :  { %6429 = vsyncpa [#allocation11], 1 }
 0xd4b   :  { %6430 = vsyncpa [#allocation14], 1 }
 0xd4c   :  { %6431 = vsyncpa [#allocation17], 1 }
 0xd4d   :  { %6432 = vsyncpa [#allocation20], 1 }
 0xd4e   :  { %6433 = vsyncpa [#allocation6], 1 }
 0xd4f   :  { %6434 = vsyncmov [#allocation3] }
 0xd52   :  { %s6435_s23 = vpop.sfrf %6434 }
 0xd53   :  { %p6572_p12 = scmp.ne.s32.totalorder %s6435_s23, 0 }
 0xd55   :  { %6439 = shalt.err (%p6572_p12)  }

</bundles_post_ra>
